<compile_context>
chip_gen: v5e
topology: v5e:2x2
jax: 0.10.0
libtpu: 0.0.40
codegen_flags: <defaults>
</compile_context>

<pallas_src>
import jax
import jax.numpy as jnp
from jax import lax
from jax.experimental import pallas as pl
from jax.experimental.pallas import tpu as pltpu


# ----------------------------- Pallas kernels ------------------------------ #

def conv_relu_pool_kernel(x_ref, w_ref, b_ref, o_ref):
    # x_ref: (4*TM, K) bf16 -- rows [j*TM:(j+1)*TM] = im2col rows of pool-tap j
    # w_ref: (K, Cout) bf16, b_ref: (1, Cout) f32, o_ref: (TM, Cout) bf16
    tm = o_ref.shape[0]
    # single MXU push over all 4 taps (f32 accumulation)
    y = jnp.dot(x_ref[...], w_ref[...], preferred_element_type=jnp.float32)   # (4*TM, Cout)
    # 2x2 maxpool first (bias is shared, ReLU is monotone -> hoist both after the max)
    m = jnp.maximum(jnp.maximum(y[0:tm], y[tm:2 * tm]),
                    jnp.maximum(y[2 * tm:3 * tm], y[3 * tm:4 * tm]))
    o_ref[...] = jnp.maximum(m + b_ref[...], 0.0).astype(o_ref.dtype)


def conv_relu_pool_fc_kernel(x_ref, w_ref, b_ref, wfc_ref, bfc_ref, o_ref):
    # Last conv layer fused with fc1.  One grid step == one image.
    # x_ref: (4*P, K) bf16, w_ref: (K, C4) bf16, b_ref: (1, C4) f32
    # wfc_ref: (O, P, C4) f32  (fc weights permuted to (out, pooled-pixel, channel))
    # bfc_ref: (1, 1, 128) f32 (zero padded), o_ref: (1, 1, 128) f32
    p = wfc_ref.shape[1]
    y = jnp.dot(x_ref[...], w_ref[...], preferred_element_type=jnp.float32)   # (4*P, C4)
    m = jnp.maximum(jnp.maximum(y[0:p], y[p:2 * p]),
                    jnp.maximum(y[2 * p:3 * p], y[3 * p:4 * p]))
    a = jnp.maximum(m + b_ref[...], 0.0)                                      # (P, C4) f32

    lane = lax.broadcasted_iota(jnp.int32, (1, 1, o_ref.shape[-1]), 2)
    out = bfc_ref[...]
    for o in range(wfc_ref.shape[0]):            # O == 2, static unroll
        r = jnp.sum(a * wfc_ref[o])              # full contraction over (pixel, channel)
        out = out + jnp.where(lane == o, r, jnp.float32(0.0))
    o_ref[...] = out                             # lane-dense (1,1,128) store


# ------------------------------- host glue --------------------------------- #

def _pick_tm(M, W2, max_tm=1024):
    """Largest tile (multiple of W2, divides M, <= max_tm); keep >=2 grid steps when possible."""
    assert M % W2 == 0
    tm = W2
    while tm * 2 <= min(max_tm, M) and M % (tm * 2) == 0:
        tm *= 2
    if M // tm < 2 and tm >= 2 * W2:             # give both v7x TensorCores a step
        tm //= 2
    return tm


def _im2col_pool_tiles(x_nhwc, tm):
    """(B,H,W,C) -> (4*M, K) im2col rows, K = C*9, M = B*(H/2)*(W/2).

    Rows [t*4*tm + j*tm : t*4*tm + (j+1)*tm] hold pool-tap j (j = dh*2+dw) of tile t, so the
    kernel can take a contiguous (4*tm, K) block with no in-kernel reshape.
    """
    B, H, W, C = x_nhwc.shape
    H2, W2 = H // 2, W // 2
    K = C * 9
    M = B * H2 * W2
    assert M % tm == 0 and tm % W2 == 0 and tm % 8 == 0
    xp = jnp.pad(x_nhwc, ((0, 0), (1, 1), (1, 1), (0, 0)))
    # feature ordering = ci*9 + kh*3 + kw (matches w.transpose(1,2,3,0).reshape(K, Cout))
    cols = jnp.stack(
        [xp[:, kh:kh + H, kw:kw + W, :] for kh in range(3) for kw in range(3)],
        axis=-1)                                     # (B, H, W, C, 9)
    cols = cols.reshape(B, H, W, K)
    cols = cols.reshape(B * H2, 2, W2, 2, K)         # (b*h2, dh, w2, dw, K)
    r = tm // W2
    cols = cols.reshape(M // tm, r, 2, W2, 2, K)     # group r pooled rows per tile
    cols = cols.transpose(0, 2, 4, 1, 3, 5)          # (tile, dh, dw, r, w2, K)
    return cols.reshape(4 * M, K)


def conv_relu_pool(x_nhwc, w, b, max_tm=1024):
    """3x3 'same' conv + ReLU + 2x2 maxpool.  w: (Cout, Cin, 3, 3), b: (Cout,) (PyTorch layout)."""
    B, H, W, Cin = x_nhwc.shape
    Cout = w.shape[0]
    K = Cin * 9
    H2, W2 = H // 2, W // 2
    M = B * H2 * W2
    TM = _pick_tm(M, W2, max_tm)

    cols = _im2col_pool_tiles(x_nhwc, TM)                                      # (4*M, K) bf16
    w2 = jnp.transpose(w, (1, 2, 3, 0)).reshape(K, Cout).astype(jnp.bfloat16)
    b2 = b.reshape(1, Cout).astype(jnp.float32)

    out = pl.pallas_call(
        conv_relu_pool_kernel,
        out_shape=jax.ShapeDtypeStruct((M, Cout), jnp.bfloat16),
        grid_spec=pltpu.PrefetchScalarGridSpec(
            num_scalar_prefetch=0,
            grid=(M // TM,),
            in_specs=[
                pl.BlockSpec((4 * TM, K), lambda i: (i, 0)),
                pl.BlockSpec((K, Cout), lambda i: (0, 0)),
                pl.BlockSpec((1, Cout), lambda i: (0, 0)),
            ],
            out_specs=pl.BlockSpec((TM, Cout), lambda i: (i, 0)),
        ),
        compiler_params=pltpu.CompilerParams(dimension_semantics=("parallel",)),
    )(cols, w2, b2)
    return out.reshape(B, H2, W2, Cout)


def conv_relu_pool_fc(x_nhwc, w, b, wfc, bfc):
    """Last conv (+ReLU+pool) fused with fc1.  wfc: (O, Cout*P), bfc: (O,) (PyTorch layout)."""
    B, H, W, Cin = x_nhwc.shape
    Cout = w.shape[0]
    O = wfc.shape[0]
    K = Cin * 9
    H2, W2 = H // 2, W // 2
    P = H2 * W2                                   # pooled pixels per image == one grid tile
    assert P % 8 == 0 and wfc.shape[1] == Cout * P
    M = B * P

    cols = _im2col_pool_tiles(x_nhwc, P)                                       # (4*M, K) bf16
    w2 = jnp.transpose(w, (1, 2, 3, 0)).reshape(K, Cout).astype(jnp.bfloat16)
    b2 = b.reshape(1, Cout).astype(jnp.float32)
    # PyTorch flatten order is (c, h, w); kernel rows are (h*W2 + w) with channels on lanes,
    # so permute fc weights once at trace time to (O, P, Cout) -- no runtime flatten needed.
    w3 = wfc.reshape(O, Cout, P).transpose(0, 2, 1).astype(jnp.float32)
    OP = 128                                      # lane-dense padded fc output width
    b3 = jnp.zeros((1, 1, OP), jnp.float32).at[0, 0, :O].set(bfc.astype(jnp.float32))

    out = pl.pallas_call(
        conv_relu_pool_fc_kernel,
        out_shape=jax.ShapeDtypeStruct((B, 1, OP), jnp.float32),
        grid_spec=pltpu.PrefetchScalarGridSpec(
            num_scalar_prefetch=0,
            grid=(B,),
            in_specs=[
                pl.BlockSpec((4 * P, K), lambda i: (i, 0)),
                pl.BlockSpec((K, Cout), lambda i: (0, 0)),
                pl.BlockSpec((1, Cout), lambda i: (0, 0)),
                pl.BlockSpec((O, P, Cout), lambda i: (0, 0, 0)),
                pl.BlockSpec((1, 1, OP), lambda i: (0, 0, 0)),
            ],
            out_specs=pl.BlockSpec((1, 1, OP), lambda i: (i, 0, 0)),
        ),
        compiler_params=pltpu.CompilerParams(dimension_semantics=("parallel",)),
    )(cols, w2, b2, w3, b3)
    return out[:, 0, :O]


def verifier_cnn_forward(params, x_nchw):
    x = jnp.transpose(x_nchw, (0, 2, 3, 1)).astype(jnp.bfloat16)   # NCHW -> NHWC, bf16 operands
    x = conv_relu_pool(x, *params["conv1"])          # (B, 64, 64,  8)
    x = conv_relu_pool(x, *params["conv2"])          # (B, 32, 32, 16)
    x = conv_relu_pool(x, *params["conv3"])          # (B, 16, 16, 32)
    wfc, bfc = params["fc1"]
    w4, b4 = params["conv4"]
    return conv_relu_pool_fc(x, w4, b4, wfc, bfc)    # (B, 2)


# --------------------------- parameter creation ----------------------------- #

def init_params(key):
    def conv_init(k, cout, cin):
        k1, k2 = jax.random.split(k)
        bound = 1.0 / jnp.sqrt(cin * 9)
        w = jax.random.uniform(k1, (cout, cin, 3, 3), jnp.float32, -bound, bound)
        b = jax.random.uniform(k2, (cout,), jnp.float32, -bound, bound)
        return w, b

    def fc_init(k, out_f, in_f):
        k1, k2 = jax.random.split(k)
        bound = 1.0 / jnp.sqrt(in_f)
        w = jax.random.uniform(k1, (out_f, in_f), jnp.float32, -bound, bound)
        b = jax.random.uniform(k2, (out_f,), jnp.float32, -bound, bound)
        return w, b

    ks = jax.random.split(key, 5)
    return {
        "conv1": conv_init(ks[0], 8, 3),
        "conv2": conv_init(ks[1], 16, 8),
        "conv3": conv_init(ks[2], 32, 16),
        "conv4": conv_init(ks[3], 64, 32),
        "fc1": fc_init(ks[4], 2, 64 * 8 * 8),
    }


# --------------------------- pure-JAX reference ----------------------------- #

def reference_forward(params, x_nchw):
    def conv(x, w, b):
        y = lax.conv_general_dilated(x, w, (1, 1), ((1, 1), (1, 1)),
                                     dimension_numbers=("NCHW", "OIHW", "NCHW"))
        return jax.nn.relu(y + b.reshape(1, -1, 1, 1))

    def pool(x):
        return lax.reduce_window(x, -jnp.inf, lax.max, (1, 1, 2, 2), (1, 1, 2, 2), "VALID")

    x = pool(conv(x_nchw, *params["conv1"]))
    x = pool(conv(x, *params["conv2"]))
    x = pool(conv(x, *params["conv3"]))
    x = pool(conv(x, *params["conv4"]))
    B = x.shape[0]
    x = x.reshape(B, -1)
    w, b = params["fc1"]
    return x @ w.T + b


# ---------------------------------- main ------------------------------------ #

if __name__ == "__main__":
    key = jax.random.PRNGKey(0)
    pkey, xkey = jax.random.split(key)
    params = init_params(pkey)

    # fc1 expects 64*8*8 features after four /2 pools => 128x128 spatial input.
    x = jax.random.normal(xkey, (2, 3, 128, 128), jnp.float32)

    fwd = jax.jit(verifier_cnn_forward)
    out = jax.block_until_ready(fwd(params, x))
    assert out.shape == (2, 2)

    ref = reference_forward(params, x)
    # bf16 matmul operands (f32 accumulation) vs f32 reference -> ~1% expected deviation.
    rel_err = float(jnp.max(jnp.abs(out - ref)) / (jnp.max(jnp.abs(ref)) + 1e-6))
    assert rel_err < 5e-2, f"Pallas output mismatch vs reference, rel_err={rel_err}"

    print("KERNEL_OK")
</pallas_src>

<mosaic_0001>
module attributes {stable_mosaic.version = 11 : i64} {
  func.func @conv_relu_pool_kernel(%arg0: i32, %arg1: memref<4096x27xbf16, #tpu.memory_space<vmem>>, %arg2: memref<27x8xbf16, #tpu.memory_space<vmem>>, %arg3: memref<1x8xf32, #tpu.memory_space<vmem>>, %arg4: memref<1024x8xbf16, #tpu.memory_space<vmem>>) attributes {dimension_semantics = [#tpu.dimension_semantics<parallel>], iteration_bounds = array<i64: 8>, scalar_prefetch = 0 : i64, scratch_operands = 0 : i64, tpu.core_type = #tpu.core_type<tc>, window_params = [{transform_indices = @transform_0, window_bounds = array<i64: 4096, 27>}, {pipeline_mode = #tpu.pipeline_mode<synchronous>, transform_indices = @transform_1, window_bounds = array<i64: 27, 8>}, {pipeline_mode = #tpu.pipeline_mode<synchronous>, transform_indices = @transform_2, window_bounds = array<i64: 1, 8>}, {transform_indices = @transform_3, window_bounds = array<i64: 1024, 8>}]} {
    %c0 = arith.constant 0 : index
    %c0_0 = arith.constant 0 : index
    %0 = vector.load %arg1[%c0, %c0_0] : memref<4096x27xbf16, #tpu.memory_space<vmem>>, vector<4096x27xbf16>
    %c0_1 = arith.constant 0 : index
    %c0_2 = arith.constant 0 : index
    %1 = vector.load %arg2[%c0_1, %c0_2] : memref<27x8xbf16, #tpu.memory_space<vmem>>, vector<27x8xbf16>
    %cst = arith.constant dense<0.000000e+00> : vector<4096x8xf32>
    %2 = tpu.matmul %0, %1, %cst {dimension_numbers = #tpu.dot_dimension_numbers<[1], [0], [0], [1], [0, 0, 1, 1], [], []>} : vector<4096x27xbf16>, vector<27x8xbf16>, vector<4096x8xf32> -> vector<4096x8xf32>
    %3 = vector.extract_strided_slice %2 {offsets = [0, 0], sizes = [1024, 8], strides = [1, 1]} : vector<4096x8xf32> to vector<1024x8xf32>
    %4 = vector.extract_strided_slice %2 {offsets = [1024, 0], sizes = [1024, 8], strides = [1, 1]} : vector<4096x8xf32> to vector<1024x8xf32>
    %5 = arith.maximumf %3, %4 : vector<1024x8xf32>
    %6 = vector.extract_strided_slice %2 {offsets = [2048, 0], sizes = [1024, 8], strides = [1, 1]} : vector<4096x8xf32> to vector<1024x8xf32>
    %7 = vector.extract_strided_slice %2 {offsets = [3072, 0], sizes = [1024, 8], strides = [1, 1]} : vector<4096x8xf32> to vector<1024x8xf32>
    %8 = arith.maximumf %6, %7 : vector<1024x8xf32>
    %9 = arith.maximumf %5, %8 : vector<1024x8xf32>
    %c0_3 = arith.constant 0 : index
    %c0_4 = arith.constant 0 : index
    %10 = vector.load %arg3[%c0_3, %c0_4] : memref<1x8xf32, #tpu.memory_space<vmem>>, vector<1x8xf32>
    %11 = vector.broadcast %10 : vector<1x8xf32> to vector<1024x8xf32>
    %12 = arith.addf %9, %11 : vector<1024x8xf32>
    %cst_5 = arith.constant 0.000000e+00 : f32
    %13 = vector.broadcast %cst_5 : f32 to vector<1024x8xf32>
    %14 = arith.maximumf %12, %13 : vector<1024x8xf32>
    %15 = arith.truncf %14 : vector<1024x8xf32> to vector<1024x8xbf16>
    %c0_6 = arith.constant 0 : index
    %c0_7 = arith.constant 0 : index
    %16 = vector.load %arg4[%c0_6, %c0_7] : memref<1024x8xbf16, #tpu.memory_space<vmem>>, vector<1024x8xbf16>
    tpu.vector_store %arg4[%c0_6, %c0_7], %15 {strides = array<i32>} : memref<1024x8xbf16, #tpu.memory_space<vmem>>, vector<1024x8xbf16>,
    return
  }
  func.func @transform_0(%arg0: i32) -> (i32, i32) {
    %c0_i32 = arith.constant 0 : i32
    %c0_i32_0 = arith.constant 0 : i32
    return %arg0, %c0_i32 : i32, i32
  }
  func.func @transform_1(%arg0: i32) -> (i32, i32) {
    %c0_i32 = arith.constant 0 : i32
    %c0_i32_0 = arith.constant 0 : i32
    %c0_i32_1 = arith.constant 0 : i32
    return %c0_i32, %c0_i32_0 : i32, i32
  }
  func.func @transform_2(%arg0: i32) -> (i32, i32) {
    %c0_i32 = arith.constant 0 : i32
    %c0_i32_0 = arith.constant 0 : i32
    %c0_i32_1 = arith.constant 0 : i32
    return %c0_i32, %c0_i32_0 : i32, i32
  }
  func.func @transform_3(%arg0: i32) -> (i32, i32) {
    %c0_i32 = arith.constant 0 : i32
    %c0_i32_0 = arith.constant 0 : i32
    return %arg0, %c0_i32 : i32, i32
  }
}

module attributes {stable_mosaic.version = 11 : i64} {
  func.func @conv_relu_pool_kernel(%arg0: i32, %arg1: memref<4096x72xbf16, #tpu.memory_space<vmem>>, %arg2: memref<72x16xbf16, #tpu.memory_space<vmem>>, %arg3: memref<1x16xf32, #tpu.memory_space<vmem>>, %arg4: memref<1024x16xbf16, #tpu.memory_space<vmem>>) attributes {dimension_semantics = [#tpu.dimension_semantics<parallel>], iteration_bounds = array<i64: 2>, scalar_prefetch = 0 : i64, scratch_operands = 0 : i64, tpu.core_type = #tpu.core_type<tc>, window_params = [{transform_indices = @transform_0, window_bounds = array<i64: 4096, 72>}, {pipeline_mode = #tpu.pipeline_mode<synchronous>, transform_indices = @transform_1, window_bounds = array<i64: 72, 16>}, {pipeline_mode = #tpu.pipeline_mode<synchronous>, transform_indices = @transform_2, window_bounds = array<i64: 1, 16>}, {transform_indices = @transform_3, window_bounds = array<i64: 1024, 16>}]} {
    %c0 = arith.constant 0 : index
    %c0_0 = arith.constant 0 : index
    %0 = vector.load %arg1[%c0, %c0_0] : memref<4096x72xbf16, #tpu.memory_space<vmem>>, vector<4096x72xbf16>
    %c0_1 = arith.constant 0 : index
    %c0_2 = arith.constant 0 : index
    %1 = vector.load %arg2[%c0_1, %c0_2] : memref<72x16xbf16, #tpu.memory_space<vmem>>, vector<72x16xbf16>
    %cst = arith.constant dense<0.000000e+00> : vector<4096x16xf32>
    %2 = tpu.matmul %0, %1, %cst {dimension_numbers = #tpu.dot_dimension_numbers<[1], [0], [0], [1], [0, 0, 1, 1], [], []>} : vector<4096x72xbf16>, vector<72x16xbf16>, vector<4096x16xf32> -> vector<4096x16xf32>
    %3 = vector.extract_strided_slice %2 {offsets = [0, 0], sizes = [1024, 16], strides = [1, 1]} : vector<4096x16xf32> to vector<1024x16xf32>
    %4 = vector.extract_strided_slice %2 {offsets = [1024, 0], sizes = [1024, 16], strides = [1, 1]} : vector<4096x16xf32> to vector<1024x16xf32>
    %5 = arith.maximumf %3, %4 : vector<1024x16xf32>
    %6 = vector.extract_strided_slice %2 {offsets = [2048, 0], sizes = [1024, 16], strides = [1, 1]} : vector<4096x16xf32> to vector<1024x16xf32>
    %7 = vector.extract_strided_slice %2 {offsets = [3072, 0], sizes = [1024, 16], strides = [1, 1]} : vector<4096x16xf32> to vector<1024x16xf32>
    %8 = arith.maximumf %6, %7 : vector<1024x16xf32>
    %9 = arith.maximumf %5, %8 : vector<1024x16xf32>
    %c0_3 = arith.constant 0 : index
    %c0_4 = arith.constant 0 : index
    %10 = vector.load %arg3[%c0_3, %c0_4] : memref<1x16xf32, #tpu.memory_space<vmem>>, vector<1x16xf32>
    %11 = vector.broadcast %10 : vector<1x16xf32> to vector<1024x16xf32>
    %12 = arith.addf %9, %11 : vector<1024x16xf32>
    %cst_5 = arith.constant 0.000000e+00 : f32
    %13 = vector.broadcast %cst_5 : f32 to vector<1024x16xf32>
    %14 = arith.maximumf %12, %13 : vector<1024x16xf32>
    %15 = arith.truncf %14 : vector<1024x16xf32> to vector<1024x16xbf16>
    %c0_6 = arith.constant 0 : index
    %c0_7 = arith.constant 0 : index
    %16 = vector.load %arg4[%c0_6, %c0_7] : memref<1024x16xbf16, #tpu.memory_space<vmem>>, vector<1024x16xbf16>
    tpu.vector_store %arg4[%c0_6, %c0_7], %15 {strides = array<i32>} : memref<1024x16xbf16, #tpu.memory_space<vmem>>, vector<1024x16xbf16>,
    return
  }
  func.func @transform_0(%arg0: i32) -> (i32, i32) {
    %c0_i32 = arith.constant 0 : i32
    %c0_i32_0 = arith.constant 0 : i32
    return %arg0, %c0_i32 : i32, i32
  }
  func.func @transform_1(%arg0: i32) -> (i32, i32) {
    %c0_i32 = arith.constant 0 : i32
    %c0_i32_0 = arith.constant 0 : i32
    %c0_i32_1 = arith.constant 0 : i32
    return %c0_i32, %c0_i32_0 : i32, i32
  }
  func.func @transform_2(%arg0: i32) -> (i32, i32) {
    %c0_i32 = arith.constant 0 : i32
    %c0_i32_0 = arith.constant 0 : i32
    %c0_i32_1 = arith.constant 0 : i32
    return %c0_i32, %c0_i32_0 : i32, i32
  }
  func.func @transform_3(%arg0: i32) -> (i32, i32) {
    %c0_i32 = arith.constant 0 : i32
    %c0_i32_0 = arith.constant 0 : i32
    return %arg0, %c0_i32 : i32, i32
  }
}

module attributes {stable_mosaic.version = 11 : i64} {
  func.func @conv_relu_pool_kernel(%arg0: i32, %arg1: memref<1024x144xbf16, #tpu.memory_space<vmem>>, %arg2: memref<144x32xbf16, #tpu.memory_space<vmem>>, %arg3: memref<1x32xf32, #tpu.memory_space<vmem>>, %arg4: memref<256x32xbf16, #tpu.memory_space<vmem>>) attributes {dimension_semantics = [#tpu.dimension_semantics<parallel>], iteration_bounds = array<i64: 2>, scalar_prefetch = 0 : i64, scratch_operands = 0 : i64, tpu.core_type = #tpu.core_type<tc>, window_params = [{transform_indices = @transform_0, window_bounds = array<i64: 1024, 144>}, {pipeline_mode = #tpu.pipeline_mode<synchronous>, transform_indices = @transform_1, window_bounds = array<i64: 144, 32>}, {pipeline_mode = #tpu.pipeline_mode<synchronous>, transform_indices = @transform_2, window_bounds = array<i64: 1, 32>}, {transform_indices = @transform_3, window_bounds = array<i64: 256, 32>}]} {
    %c0 = arith.constant 0 : index
    %c0_0 = arith.constant 0 : index
    %0 = vector.load %arg1[%c0, %c0_0] : memref<1024x144xbf16, #tpu.memory_space<vmem>>, vector<1024x144xbf16>
    %c0_1 = arith.constant 0 : index
    %c0_2 = arith.constant 0 : index
    %1 = vector.load %arg2[%c0_1, %c0_2] : memref<144x32xbf16, #tpu.memory_space<vmem>>, vector<144x32xbf16>
    %cst = arith.constant dense<0.000000e+00> : vector<1024x32xf32>
    %2 = tpu.matmul %0, %1, %cst {dimension_numbers = #tpu.dot_dimension_numbers<[1], [0], [0], [1], [0, 0, 1, 1], [], []>} : vector<1024x144xbf16>, vector<144x32xbf16>, vector<1024x32xf32> -> vector<1024x32xf32>
    %3 = vector.extract_strided_slice %2 {offsets = [0, 0], sizes = [256, 32], strides = [1, 1]} : vector<1024x32xf32> to vector<256x32xf32>
    %4 = vector.extract_strided_slice %2 {offsets = [256, 0], sizes = [256, 32], strides = [1, 1]} : vector<1024x32xf32> to vector<256x32xf32>
    %5 = arith.maximumf %3, %4 : vector<256x32xf32>
    %6 = vector.extract_strided_slice %2 {offsets = [512, 0], sizes = [256, 32], strides = [1, 1]} : vector<1024x32xf32> to vector<256x32xf32>
    %7 = vector.extract_strided_slice %2 {offsets = [768, 0], sizes = [256, 32], strides = [1, 1]} : vector<1024x32xf32> to vector<256x32xf32>
    %8 = arith.maximumf %6, %7 : vector<256x32xf32>
    %9 = arith.maximumf %5, %8 : vector<256x32xf32>
    %c0_3 = arith.constant 0 : index
    %c0_4 = arith.constant 0 : index
    %10 = vector.load %arg3[%c0_3, %c0_4] : memref<1x32xf32, #tpu.memory_space<vmem>>, vector<1x32xf32>
    %11 = vector.broadcast %10 : vector<1x32xf32> to vector<256x32xf32>
    %12 = arith.addf %9, %11 : vector<256x32xf32>
    %cst_5 = arith.constant 0.000000e+00 : f32
    %13 = vector.broadcast %cst_5 : f32 to vector<256x32xf32>
    %14 = arith.maximumf %12, %13 : vector<256x32xf32>
    %15 = arith.truncf %14 : vector<256x32xf32> to vector<256x32xbf16>
    %c0_6 = arith.constant 0 : index
    %c0_7 = arith.constant 0 : index
    %16 = vector.load %arg4[%c0_6, %c0_7] : memref<256x32xbf16, #tpu.memory_space<vmem>>, vector<256x32xbf16>
    tpu.vector_store %arg4[%c0_6, %c0_7], %15 {strides = array<i32>} : memref<256x32xbf16, #tpu.memory_space<vmem>>, vector<256x32xbf16>,
    return
  }
  func.func @transform_0(%arg0: i32) -> (i32, i32) {
    %c0_i32 = arith.constant 0 : i32
    %c0_i32_0 = arith.constant 0 : i32
    return %arg0, %c0_i32 : i32, i32
  }
  func.func @transform_1(%arg0: i32) -> (i32, i32) {
    %c0_i32 = arith.constant 0 : i32
    %c0_i32_0 = arith.constant 0 : i32
    %c0_i32_1 = arith.constant 0 : i32
    return %c0_i32, %c0_i32_0 : i32, i32
  }
  func.func @transform_2(%arg0: i32) -> (i32, i32) {
    %c0_i32 = arith.constant 0 : i32
    %c0_i32_0 = arith.constant 0 : i32
    %c0_i32_1 = arith.constant 0 : i32
    return %c0_i32, %c0_i32_0 : i32, i32
  }
  func.func @transform_3(%arg0: i32) -> (i32, i32) {
    %c0_i32 = arith.constant 0 : i32
    %c0_i32_0 = arith.constant 0 : i32
    return %arg0, %c0_i32 : i32, i32
  }
}

module attributes {stable_mosaic.version = 11 : i64} {
  func.func @conv_relu_pool_fc_kernel(%arg0: i32, %arg1: memref<256x288xbf16, #tpu.memory_space<vmem>>, %arg2: memref<288x64xbf16, #tpu.memory_space<vmem>>, %arg3: memref<1x64xf32, #tpu.memory_space<vmem>>, %arg4: memref<2x64x64xf32, #tpu.memory_space<vmem>>, %arg5: memref<1x1x128xf32, #tpu.memory_space<vmem>>, %arg6: memref<1x1x128xf32, #tpu.memory_space<vmem>>) attributes {dimension_semantics = [#tpu.dimension_semantics<parallel>], iteration_bounds = array<i64: 2>, scalar_prefetch = 0 : i64, scratch_operands = 0 : i64, tpu.core_type = #tpu.core_type<tc>, window_params = [{transform_indices = @transform_0, window_bounds = array<i64: 256, 288>}, {pipeline_mode = #tpu.pipeline_mode<synchronous>, transform_indices = @transform_1, window_bounds = array<i64: 288, 64>}, {pipeline_mode = #tpu.pipeline_mode<synchronous>, transform_indices = @transform_2, window_bounds = array<i64: 1, 64>}, {pipeline_mode = #tpu.pipeline_mode<synchronous>, transform_indices = @transform_3, window_bounds = array<i64: 2, 64, 64>}, {pipeline_mode = #tpu.pipeline_mode<synchronous>, transform_indices = @transform_4, window_bounds = array<i64: 1, 1, 128>}, {transform_indices = @transform_5, window_bounds = array<i64: 1, 1, 128>}]} {
    %c0 = arith.constant 0 : index
    %c0_0 = arith.constant 0 : index
    %0 = vector.load %arg1[%c0, %c0_0] : memref<256x288xbf16, #tpu.memory_space<vmem>>, vector<256x288xbf16>
    %c0_1 = arith.constant 0 : index
    %c0_2 = arith.constant 0 : index
    %1 = vector.load %arg2[%c0_1, %c0_2] : memref<288x64xbf16, #tpu.memory_space<vmem>>, vector<288x64xbf16>
    %cst = arith.constant dense<0.000000e+00> : vector<256x64xf32>
    %2 = tpu.matmul %0, %1, %cst {dimension_numbers = #tpu.dot_dimension_numbers<[1], [0], [0], [1], [0, 0, 1, 1], [], []>} : vector<256x288xbf16>, vector<288x64xbf16>, vector<256x64xf32> -> vector<256x64xf32>
    %3 = vector.extract_strided_slice %2 {offsets = [0, 0], sizes = [64, 64], strides = [1, 1]} : vector<256x64xf32> to vector<64x64xf32>
    %4 = vector.extract_strided_slice %2 {offsets = [64, 0], sizes = [64, 64], strides = [1, 1]} : vector<256x64xf32> to vector<64x64xf32>
    %5 = arith.maximumf %3, %4 : vector<64x64xf32>
    %6 = vector.extract_strided_slice %2 {offsets = [128, 0], sizes = [64, 64], strides = [1, 1]} : vector<256x64xf32> to vector<64x64xf32>
    %7 = vector.extract_strided_slice %2 {offsets = [192, 0], sizes = [64, 64], strides = [1, 1]} : vector<256x64xf32> to vector<64x64xf32>
    %8 = arith.maximumf %6, %7 : vector<64x64xf32>
    %9 = arith.maximumf %5, %8 : vector<64x64xf32>
    %c0_3 = arith.constant 0 : index
    %c0_4 = arith.constant 0 : index
    %10 = vector.load %arg3[%c0_3, %c0_4] : memref<1x64xf32, #tpu.memory_space<vmem>>, vector<1x64xf32>
    %11 = vector.broadcast %10 : vector<1x64xf32> to vector<64x64xf32>
    %12 = arith.addf %9, %11 : vector<64x64xf32>
    %cst_5 = arith.constant 0.000000e+00 : f32
    %13 = vector.broadcast %cst_5 : f32 to vector<64x64xf32>
    %14 = arith.maximumf %12, %13 : vector<64x64xf32>
    %15 = tpu.iota {dimensions = array<i32: 2>} : vector<1x1x128xi32>
    %c0_6 = arith.constant 0 : index
    %c0_7 = arith.constant 0 : index
    %c0_8 = arith.constant 0 : index
    %16 = vector.load %arg5[%c0_6, %c0_7, %c0_8] : memref<1x1x128xf32, #tpu.memory_space<vmem>>, vector<1x1x128xf32>
    %c0_9 = arith.constant 0 : index
    %c0_10 = arith.constant 0 : index
    %c0_11 = arith.constant 0 : index
    %17 = vector.load %arg4[%c0_9, %c0_10, %c0_11] : memref<2x64x64xf32, #tpu.memory_space<vmem>>, vector<1x64x64xf32>
    %18 = vector.shape_cast %17 : vector<1x64x64xf32> to vector<64x64xf32>
    %19 = arith.mulf %14, %18 : vector<64x64xf32>
    %20 = vector.shape_cast %19 : vector<64x64xf32> to vector<1x64x64xf32>
    %cst_12 = arith.constant dense<0.000000e+00> : vector<1xf32>
    %21 = vector.multi_reduction <add>, %20, %cst_12 [1, 2] : vector<1x64x64xf32> to vector<1xf32>
    %22 = vector.shape_cast %21 : vector<1xf32> to vector<1x1x1xf32>
    %23 = vector.extract %22[0, 0, 0] : f32 from vector<1x1x1xf32>
    %c0_i32 = arith.constant 0 : i32
    %24 = vector.broadcast %c0_i32 : i32 to vector<1x1x128xi32>
    %25 = arith.cmpi eq, %15, %24 : vector<1x1x128xi32>
    %cst_13 = arith.constant 0.000000e+00 : f32
    %26 = vector.broadcast %23 : f32 to vector<1x1x128xf32>
    %27 = vector.broadcast %cst_13 : f32 to vector<1x1x128xf32>
    %28 = arith.select %25, %26, %27 : vector<1x1x128xi1>, vector<1x1x128xf32>
    %29 = arith.addf %16, %28 : vector<1x1x128xf32>
    %c1 = arith.constant 1 : index
    %c0_14 = arith.constant 0 : index
    %c0_15 = arith.constant 0 : index
    %30 = vector.load %arg4[%c1, %c0_14, %c0_15] : memref<2x64x64xf32, #tpu.memory_space<vmem>>, vector<1x64x64xf32>
    %31 = vector.shape_cast %30 : vector<1x64x64xf32> to vector<64x64xf32>
    %32 = arith.mulf %14, %31 : vector<64x64xf32>
    %33 = vector.shape_cast %32 : vector<64x64xf32> to vector<1x64x64xf32>
    %cst_16 = arith.constant dense<0.000000e+00> : vector<1xf32>
    %34 = vector.multi_reduction <add>, %33, %cst_16 [1, 2] : vector<1x64x64xf32> to vector<1xf32>
    %35 = vector.shape_cast %34 : vector<1xf32> to vector<1x1x1xf32>
    %36 = vector.extract %35[0, 0, 0] : f32 from vector<1x1x1xf32>
    %c1_i32 = arith.constant 1 : i32
    %37 = vector.broadcast %c1_i32 : i32 to vector<1x1x128xi32>
    %38 = arith.cmpi eq, %15, %37 : vector<1x1x128xi32>
    %cst_17 = arith.constant 0.000000e+00 : f32
    %39 = vector.broadcast %36 : f32 to vector<1x1x128xf32>
    %40 = vector.broadcast %cst_17 : f32 to vector<1x1x128xf32>
    %41 = arith.select %38, %39, %40 : vector<1x1x128xi1>, vector<1x1x128xf32>
    %42 = arith.addf %29, %41 : vector<1x1x128xf32>
    %c0_18 = arith.constant 0 : index
    %c0_19 = arith.constant 0 : index
    %c0_20 = arith.constant 0 : index
    %43 = vector.load %arg6[%c0_18, %c0_19, %c0_20] : memref<1x1x128xf32, #tpu.memory_space<vmem>>, vector<1x1x128xf32>
    tpu.vector_store %arg6[%c0_18, %c0_19, %c0_20], %42 {strides = array<i32>} : memref<1x1x128xf32, #tpu.memory_space<vmem>>, vector<1x1x128xf32>,
    return
  }
  func.func @transform_0(%arg0: i32) -> (i32, i32) {
    %c0_i32 = arith.constant 0 : i32
    %c0_i32_0 = arith.constant 0 : i32
    return %arg0, %c0_i32 : i32, i32
  }
  func.func @transform_1(%arg0: i32) -> (i32, i32) {
    %c0_i32 = arith.constant 0 : i32
    %c0_i32_0 = arith.constant 0 : i32
    %c0_i32_1 = arith.constant 0 : i32
    return %c0_i32, %c0_i32_0 : i32, i32
  }
  func.func @transform_2(%arg0: i32) -> (i32, i32) {
    %c0_i32 = arith.constant 0 : i32
    %c0_i32_0 = arith.constant 0 : i32
    %c0_i32_1 = arith.constant 0 : i32
    return %c0_i32, %c0_i32_0 : i32, i32
  }
  func.func @transform_3(%arg0: i32) -> (i32, i32, i32) {
    %c0_i32 = arith.constant 0 : i32
    %c0_i32_0 = arith.constant 0 : i32
    %c0_i32_1 = arith.constant 0 : i32
    %c0_i32_2 = arith.constant 0 : i32
    return %c0_i32, %c0_i32_0, %c0_i32_1 : i32, i32, i32
  }
  func.func @transform_4(%arg0: i32) -> (i32, i32, i32) {
    %c0_i32 = arith.constant 0 : i32
    %c0_i32_0 = arith.constant 0 : i32
    %c0_i32_1 = arith.constant 0 : i32
    %c0_i32_2 = arith.constant 0 : i32
    return %c0_i32, %c0_i32_0, %c0_i32_1 : i32, i32, i32
  }
  func.func @transform_5(%arg0: i32) -> (i32, i32, i32) {
    %c0_i32 = arith.constant 0 : i32
    %c0_i32_0 = arith.constant 0 : i32
    %c0_i32_1 = arith.constant 0 : i32
    return %arg0, %c0_i32, %c0_i32_0 : i32, i32, i32
  }
}

</mosaic_0001>

<bundles_post_ra>
// kernel: verifier_cnn_forward.4
= control target key start
LH: loop header
LB: loop body
LE: loop exit
PB: predicated region body
PF: predicated region fallthrough
CT: control target
= control target key end

     0   :  { %s6609_s12 = smov 0   ;;  %s7559_s0 = inlined_call_operand.vmem [shape: bf16[32768,27], index: 0, kind: input, shape index: {}]   ;;  %s7560_s1 = inlined_call_operand.vmem [shape: bf16[27,8], index: 1, kind: input, shape index: {}]   ;;  %s7561_s2 = inlined_call_operand.vmem [shape: f32[1,8], index: 2, kind: input, shape index: {}]   ;;  %s7562_s3 = inlined_call_operand.vmem [shape: bf16[8192,8], index: 3, kind: output, shape index: {}]  }
   0x1 LB: > { %s5004_s13 = sadd.s32 4294967295, %s6586_s12   ;;  %p5008_p0 = scmp.ge.s32.totalorder %s6586_s12, 1  ;;  %s6586_s12 = sphi %s6609_s12, %s13_s12  }
   0x2   : > { %p138_p1 = scmp.lt.s32.totalorder %s6586_s12, 9 }
   0x4   : > { %p139_p2 = pnand %p5008_p0, %p138_p1 }
   0x5   : > { %s5009_s18 = sshll.u32 (!%p139_p2), %s5004_s13, 9  ;;  %s5011_s25 = sshll.u32 (!%p139_p2), %s5004_s13, 7 }
   0x6   : > { %142 = sbr.rel (%p139_p2) target bundleno = 1184 (0x4a0), region = 32  ;;  %p163_p3 = scmp.lt.s32.totalorder (!%p139_p2), %s5009_s18, 4095 }
   0x7   : > { %p169_p4 = scmp.lt.s32.totalorder (!%p139_p2), %s5011_s25, 1023 }
   0xb   : > { %v6043_v0 = vld [vmem:[%s7560_s1 + $0x8] sm:$0xf]  ;;  %v6560_v1 = vld [vmem:[%s7560_s1 + $0x8] sm:$0x30]  ;;  %vm2751_vm0 = vcmask 1044480   ;;  %vm2752_vm1 = vcmask 1045504  }
   0xc   : > { %v6044_v2 = vor.u32 %v6560_v1, %v6043_v0  ;;  %v6588_v3 = vmov 65535   ;;  %s7564_s18 = smov (!%p163_p3, %s5009_s18), 4095  ;;  %v6559_v7 = vld [vmem:[%s7560_s1] sm:$0xff]  ;;  %vm1982_vm2 = vcmask 220160   ;;  %s7566_s25 = smov (!%p169_p4, %s5011_s25), 1023  ;;  %vm4819_vm3 = vcmask 60416  }
   0xd   : > { %v2753_v4 = vsel %vm2751_vm0, 4294967295, %v6588_v3  ;;  %s5010_s21 = sshll.u32 %s7564_s18, 2  ;;  %v6710_v50 = vld [vmem:[%s7561_s2] ss:$0 sm:$0xff]  ;;  %s5012_s28 = sshll.u32 %s7566_s25, 2 }
   0xe   : > { %v2754_v5 = vsel %vm2752_vm1, %v2753_v4, 0  ;;  %s6631_s24 = scalar_lea.vmem %s7559_s0, %s5010_s21  ;;  %s6716_s4 = scalar_lea.vmem %s7562_s3, %s5012_s28 }
   0xf   : > { %v2756_v6 = vand.u32 %v6044_v2, %v2754_v5  ;;  %v6303_v8 = vld [vmem:[%s6631_s24] sm:$0xff]  ;;  %v6304_v12 = vld [vmem:[%s6631_s24 + $0x8] sm:$0xff]  ;;  %v6305_v16 = vld [vmem:[%s6631_s24 + $0x10] sm:$0xff] }
  0x10   : > { %v6367_v9 = vld [vmem:[%s6631_s24 + $0x200] sm:$0xff]  ;;  %v6368_v13 = vld [vmem:[%s6631_s24 + $0x208] sm:$0xff]  ;;  %v6369_v17 = vld [vmem:[%s6631_s24 + $0x210] sm:$0xff] }
  0x11   : > { %2764 = vmatpush.bf16.msra.mxu0 %v2756_v6  ;;  %6561 = vmatpush.bf16.msra.mxu1 %v2756_v6  ;;  %v6431_v10 = vld [vmem:[%s6631_s24 + $0x400] sm:$0xff]  ;;  %v6432_v14 = vld [vmem:[%s6631_s24 + $0x408] sm:$0xff]  ;;  %v6433_v18 = vld [vmem:[%s6631_s24 + $0x410] sm:$0xff] }
  0x12   : > { %6562 = vmatpush.bf16.msra.mxu2 %v2756_v6  ;;  %6563 = vmatpush.bf16.msra.mxu3 %v2756_v6  ;;  %v6495_v11 = vld [vmem:[%s6631_s24 + $0x600] sm:$0xff]  ;;  %v6496_v15 = vld [vmem:[%s6631_s24 + $0x608] sm:$0xff]  ;;  %v6497_v19 = vld [vmem:[%s6631_s24 + $0x610] sm:$0xff] }
  0x13   : > { %v6306_v20 = vld [vmem:[%s6631_s24 + $0x18] sm:$0xff]  ;;  %v6307_v24 = vld [vmem:[%s6631_s24 + $0x20] sm:$0xff]  ;;  %v6308_v28 = vld [vmem:[%s6631_s24 + $0x28] sm:$0xff] }
  0x14   : > { %v6370_v21 = vld [vmem:[%s6631_s24 + $0x218] sm:$0xff]  ;;  %v6371_v25 = vld [vmem:[%s6631_s24 + $0x220] sm:$0xff]  ;;  %v6372_v29 = vld [vmem:[%s6631_s24 + $0x228] sm:$0xff] }
  0x15   : > { %2765 = vmatpush.bf16.msra.mxu0 %v6559_v7  ;;  %6564 = vmatpush.bf16.msra.mxu1 %v6559_v7  ;;  %v6434_v22 = vld [vmem:[%s6631_s24 + $0x418] sm:$0xff]  ;;  %v6435_v26 = vld [vmem:[%s6631_s24 + $0x420] sm:$0xff]  ;;  %v6436_v30 = vld [vmem:[%s6631_s24 + $0x428] sm:$0xff] }
  0x16   : > { %6565 = vmatpush.bf16.msra.mxu2 %v6559_v7  ;;  %6566 = vmatpush.bf16.msra.mxu3 %v6559_v7  ;;  %v6498_v23 = vld [vmem:[%s6631_s24 + $0x618] sm:$0xff]  ;;  %v6499_v27 = vld [vmem:[%s6631_s24 + $0x620] sm:$0xff]  ;;  %v6500_v31 = vld [vmem:[%s6631_s24 + $0x628] sm:$0xff] }
  0x17   : > { %v6309_v32 = vld [vmem:[%s6631_s24 + $0x30] sm:$0xff]  ;;  %v6310_v36 = vld [vmem:[%s6631_s24 + $0x38] sm:$0xff]  ;;  %v6311_v40 = vld [vmem:[%s6631_s24 + $0x40] sm:$0xff] }
  0x18   : > { %6045 = vmatmul.msk.bf16.vlgmr.msra.gmra.mxu0 %vm1982_vm2, %v6303_v8  ;;  %6109 = vmatmul.msk.bf16.vlgmr.msra.gmra.mxu1 %vm1982_vm2, %v6367_v9  ;;  %v6373_v33 = vld [vmem:[%s6631_s24 + $0x230] sm:$0xff]  ;;  %v6374_v37 = vld [vmem:[%s6631_s24 + $0x238] sm:$0xff]  ;;  %v6375_v41 = vld [vmem:[%s6631_s24 + $0x240] sm:$0xff] }
  0x19   : > { %6173 = vmatmul.msk.bf16.vlgmr.msra.gmra.mxu2 %vm1982_vm2, %v6431_v10  ;;  %6237 = vmatmul.msk.bf16.vlgmr.msra.gmra.mxu3 %vm1982_vm2, %v6495_v11  ;;  %v6437_v34 = vld [vmem:[%s6631_s24 + $0x430] sm:$0xff]  ;;  %v6438_v38 = vld [vmem:[%s6631_s24 + $0x438] sm:$0xff]  ;;  %v6439_v44 = vld [vmem:[%s6631_s24 + $0x440] sm:$0xff] }
  0x1a   : > { %v6501_v35 = vld [vmem:[%s6631_s24 + $0x630] sm:$0xff]  ;;  %v6502_v39 = vld [vmem:[%s6631_s24 + $0x638] sm:$0xff]  ;;  %v6503_v45 = vld [vmem:[%s6631_s24 + $0x640] sm:$0xff] }
  0x1b   : > { %v6312_v58 = vld [vmem:[%s6631_s24 + $0x48] sm:$0xff] }
  0x1c   : > { %v6376_v59 = vld [vmem:[%s6631_s24 + $0x248] sm:$0xff] }
  0x1d   : > { %v6440_v1 = vld [vmem:[%s6631_s24 + $0x448] sm:$0xff] }
  0x1e   : > { %v6504_v2 = vld [vmem:[%s6631_s24 + $0x648] sm:$0xff] }
  0x28   : > { %6046 = vmatmul.msk.bf16.gmra.mxu0 %vm1982_vm2, %v6304_v12  ;;  %6110 = vmatmul.msk.bf16.gmra.mxu1 %vm1982_vm2, %v6368_v13 }
  0x29   : > { %6174 = vmatmul.msk.bf16.gmra.mxu2 %vm1982_vm2, %v6432_v14  ;;  %6238 = vmatmul.msk.bf16.gmra.mxu3 %vm1982_vm2, %v6496_v15 }
  0x38   : > { %6047 = vmatmul.msk.bf16.gmra.mxu0 %vm1982_vm2, %v6305_v16  ;;  %6111 = vmatmul.msk.bf16.gmra.mxu1 %vm1982_vm2, %v6369_v17 }
  0x39   : > { %6175 = vmatmul.msk.bf16.gmra.mxu2 %vm1982_vm2, %v6433_v18  ;;  %6239 = vmatmul.msk.bf16.gmra.mxu3 %vm1982_vm2, %v6497_v19  ;;  %v6313_v18 = vld [vmem:[%s6631_s24 + $0x50] sm:$0xff] }
  0x3a   : > { %v6377_v19 = vld [vmem:[%s6631_s24 + $0x250] sm:$0xff] }
  0x48   : > { %6048 = vmatmul.msk.bf16.gmra.mxu0 %vm1982_vm2, %v6306_v20  ;;  %6112 = vmatmul.msk.bf16.gmra.mxu1 %vm1982_vm2, %v6370_v21 }
  0x49   : > { %6176 = vmatmul.msk.bf16.gmra.mxu2 %vm1982_vm2, %v6434_v22  ;;  %6240 = vmatmul.msk.bf16.gmra.mxu3 %vm1982_vm2, %v6498_v23 }
  0x58   : > { %6049 = vmatmul.msk.bf16.gmra.mxu0 %vm1982_vm2, %v6307_v24  ;;  %6113 = vmatmul.msk.bf16.gmra.mxu1 %vm1982_vm2, %v6371_v25  ;;  %v6441_v25 = vld [vmem:[%s6631_s24 + $0x450] sm:$0xff] }
  0x59   : > { %6177 = vmatmul.msk.bf16.gmra.mxu2 %vm1982_vm2, %v6435_v26  ;;  %6241 = vmatmul.msk.bf16.gmra.mxu3 %vm1982_vm2, %v6499_v27  ;;  %v6505_v26 = vld [vmem:[%s6631_s24 + $0x650] sm:$0xff] }
  0x68   : > { %6050 = vmatmul.msk.bf16.gmra.mxu0 %vm1982_vm2, %v6308_v28  ;;  %6114 = vmatmul.msk.bf16.gmra.mxu1 %vm1982_vm2, %v6372_v29 }
  0x69   : > { %6178 = vmatmul.msk.bf16.gmra.mxu2 %vm1982_vm2, %v6436_v30  ;;  %6242 = vmatmul.msk.bf16.gmra.mxu3 %vm1982_vm2, %v6500_v31 }
  0x78   : > { %6051 = vmatmul.msk.bf16.gmra.mxu0 %vm1982_vm2, %v6309_v32  ;;  %6115 = vmatmul.msk.bf16.gmra.mxu1 %vm1982_vm2, %v6373_v33 }
  0x79   : > { %6179 = vmatmul.msk.bf16.gmra.mxu2 %vm1982_vm2, %v6437_v34  ;;  %6243 = vmatmul.msk.bf16.gmra.mxu3 %vm1982_vm2, %v6501_v35 }
  0x88   : > { %6052 = vmatmul.msk.bf16.gmra.mxu0 %vm1982_vm2, %v6310_v36  ;;  %6116 = vmatmul.msk.bf16.gmra.mxu1 %vm1982_vm2, %v6374_v37 }
  0x89   : > { %6180 = vmatmul.msk.bf16.gmra.mxu2 %vm1982_vm2, %v6438_v38  ;;  %6244 = vmatmul.msk.bf16.gmra.mxu3 %vm1982_vm2, %v6502_v39 }
  0x95   : > { %v2767_v42 = vpop.f32.mrf.mxu0  ;;  %v3087_v43 = vpop.f32.mrf.mxu1 }
  0x96   : > { %v4047_v46 = vmax.f32 %v2767_v42, %v3087_v43  ;;  %v6314_v42 = vld [vmem:[%s6631_s24 + $0x58] sm:$0xff] }
  0x97   : > { %v6378_v43 = vld [vmem:[%s6631_s24 + $0x258] sm:$0xff] }
  0x98   : > { %6053 = vmatmul.msk.bf16.gmra.mxu0 %vm1982_vm2, %v6311_v40  ;;  %6117 = vmatmul.msk.bf16.gmra.mxu1 %vm1982_vm2, %v6375_v41 }
  0x99   : > { %6181 = vmatmul.msk.bf16.gmra.mxu2 %vm1982_vm2, %v6439_v44  ;;  %6245 = vmatmul.msk.bf16.gmra.mxu3 %vm1982_vm2, %v6503_v45 }
  0x9c   : > { %v3407_v47 = vpop.f32.mrf.mxu2  ;;  %v3727_v48 = vpop.f32.mrf.mxu3 }
  0x9d   : > { %v4175_v49 = vmax.f32 %v3407_v47, %v3727_v48  ;;  %v2769_v51 = vpop.f32.mrf.mxu0  ;;  %v3089_v52 = vpop.f32.mrf.mxu1 }
  0x9e   : > { %v4048_v61 = vmax.f32 %v2769_v51, %v3089_v52  ;;  %v6506_v51 = vld [vmem:[%s6631_s24 + $0x658] sm:$0xff] }
  0x9f   : > { %v4303_v53 = vmax.f32 %v4047_v46, %v4175_v49  ;;  %v6442_v49 = vld [vmem:[%s6631_s24 + $0x458] sm:$0xff] }
  0xa1   : > { %v4435_v54 = vadd.f32 %v6710_v50, %v4303_v53 }
  0xa3   : > { %v4563_v55 = vmax.f32 %v4435_v54, 0.0 }
  0xa4   : > { %v3409_v56 = vpop.f32.mrf.mxu2  ;;  %v3729_v57 = vpop.f32.mrf.mxu3 }
  0xa5   : > { %v4691_v60 = vpack.c.bf16 %v4563_v55, %v4563_v55  ;;  %v4176_v62 = vmax.f32 %v3409_v56, %v3729_v57  ;;  %v2772_v63 = vpop.f32.mrf.mxu0  ;;  %v3092_v0 = vpop.f32.mrf.mxu1 }
  0xa6   : > { %v4049_v6 = vmax.f32 %v2772_v63, %v3092_v0 }
  0xa7   : > { %4820 = vst.msk [vmem:[%s6716_s4] sm:$0xf] %vm4819_vm3, %v4691_v60  ;;  %v4304_v3 = vmax.f32 %v4048_v61, %v4176_v62 }
  0xa8   : > { %6054 = vmatmul.msk.bf16.gmra.mxu0 %vm1982_vm2, %v6312_v58  ;;  %6118 = vmatmul.msk.bf16.gmra.mxu1 %vm1982_vm2, %v6376_v59 }
  0xa9   : > { %v4436_v4 = vadd.f32 %v6710_v50, %v4304_v3  ;;  %6182 = vmatmul.msk.bf16.gmra.mxu2 %vm1982_vm2, %v6440_v1  ;;  %6246 = vmatmul.msk.bf16.gmra.mxu3 %vm1982_vm2, %v6504_v2  ;;  %v6315_v3 = vld [vmem:[%s6631_s24 + $0x60] sm:$0xff] }
  0xab   : > { %v4564_v5 = vmax.f32 %v4436_v4, 0.0  ;;  %v6379_v4 = vld [vmem:[%s6631_s24 + $0x260] sm:$0xff] }
  0xac   : > { %v3412_v7 = vpop.f32.mrf.mxu2  ;;  %v3732_v8 = vpop.f32.mrf.mxu3 }
  0xad   : > { %v4692_v9 = vpack.c.bf16 %v4564_v5, %v4564_v5  ;;  %v4177_v10 = vmax.f32 %v3412_v7, %v3732_v8  ;;  %v2774_v11 = vpop.f32.mrf.mxu0  ;;  %v3094_v12 = vpop.f32.mrf.mxu1 }
  0xae   : > { %v4050_v21 = vmax.f32 %v2774_v11, %v3094_v12  ;;  %v6507_v11 = vld [vmem:[%s6631_s24 + $0x660] sm:$0xff] }
  0xaf   : > { %4821 = vst.msk [vmem:[%s6716_s4 + $0x4] sm:$0xf] %vm4819_vm3, %v4692_v9  ;;  %v4305_v13 = vmax.f32 %v4049_v6, %v4177_v10  ;;  %v6443_v10 = vld [vmem:[%s6631_s24 + $0x460] sm:$0xff] }
  0xb1   : > { %v4437_v14 = vadd.f32 %v6710_v50, %v4305_v13 }
  0xb3   : > { %v4565_v15 = vmax.f32 %v4437_v14, 0.0 }
  0xb4   : > { %v3414_v16 = vpop.f32.mrf.mxu2  ;;  %v3734_v17 = vpop.f32.mrf.mxu3 }
  0xb5   : > { %v4693_v20 = vpack.c.bf16 %v4565_v15, %v4565_v15  ;;  %v4178_v22 = vmax.f32 %v3414_v16, %v3734_v17  ;;  %v2777_v23 = vpop.f32.mrf.mxu0  ;;  %v3097_v24 = vpop.f32.mrf.mxu1 }
  0xb6   : > { %v4051_v30 = vmax.f32 %v2777_v23, %v3097_v24 }
  0xb7   : > { %4822 = vst.msk [vmem:[%s6716_s4 + $0x8] sm:$0xf] %vm4819_vm3, %v4693_v20  ;;  %v4306_v27 = vmax.f32 %v4050_v21, %v4178_v22 }
  0xb8   : > { %6055 = vmatmul.msk.bf16.gmra.mxu0 %vm1982_vm2, %v6313_v18  ;;  %6119 = vmatmul.msk.bf16.gmra.mxu1 %vm1982_vm2, %v6377_v19 }
  0xb9   : > { %v4438_v28 = vadd.f32 %v6710_v50, %v4306_v27  ;;  %6183 = vmatmul.msk.bf16.gmra.mxu2 %vm1982_vm2, %v6441_v25  ;;  %6247 = vmatmul.msk.bf16.gmra.mxu3 %vm1982_vm2, %v6505_v26  ;;  %v6316_v27 = vld [vmem:[%s6631_s24 + $0x68] sm:$0xff] }
  0xbb   : > { %v4566_v29 = vmax.f32 %v4438_v28, 0.0  ;;  %v6380_v28 = vld [vmem:[%s6631_s24 + $0x268] sm:$0xff] }
  0xbc   : > { %v3417_v31 = vpop.f32.mrf.mxu2  ;;  %v3737_v32 = vpop.f32.mrf.mxu3 }
  0xbd   : > { %v4694_v33 = vpack.c.bf16 %v4566_v29, %v4566_v29  ;;  %v4179_v34 = vmax.f32 %v3417_v31, %v3737_v32  ;;  %v2779_v35 = vpop.f32.mrf.mxu0  ;;  %v3099_v36 = vpop.f32.mrf.mxu1 }
  0xbe   : > { %v4052_v45 = vmax.f32 %v2779_v35, %v3099_v36  ;;  %v6508_v35 = vld [vmem:[%s6631_s24 + $0x668] sm:$0xff] }
  0xbf   : > { %4823 = vst.msk [vmem:[%s6716_s4 + $0xc] sm:$0xf] %vm4819_vm3, %v4694_v33  ;;  %v4307_v37 = vmax.f32 %v4051_v30, %v4179_v34  ;;  %v6444_v34 = vld [vmem:[%s6631_s24 + $0x468] sm:$0xff] }
  0xc1   : > { %v4439_v38 = vadd.f32 %v6710_v50, %v4307_v37 }
  0xc3   : > { %v4567_v39 = vmax.f32 %v4439_v38, 0.0 }
  0xc4   : > { %v3419_v40 = vpop.f32.mrf.mxu2  ;;  %v3739_v41 = vpop.f32.mrf.mxu3 }
  0xc5   : > { %v4695_v44 = vpack.c.bf16 %v4567_v39, %v4567_v39  ;;  %v4180_v46 = vmax.f32 %v3419_v40, %v3739_v41  ;;  %v2782_v47 = vpop.f32.mrf.mxu0  ;;  %v3102_v48 = vpop.f32.mrf.mxu1 }
  0xc6   : > { %v4053_v55 = vmax.f32 %v2782_v47, %v3102_v48 }
  0xc7   : > { %4824 = vst.msk [vmem:[%s6716_s4 + $0x10] sm:$0xf] %vm4819_vm3, %v4695_v44  ;;  %v4308_v52 = vmax.f32 %v4052_v45, %v4180_v46 }
  0xc8   : > { %6056 = vmatmul.msk.bf16.gmra.mxu0 %vm1982_vm2, %v6314_v42  ;;  %6120 = vmatmul.msk.bf16.gmra.mxu1 %vm1982_vm2, %v6378_v43 }
  0xc9   : > { %v4440_v53 = vadd.f32 %v6710_v50, %v4308_v52  ;;  %6184 = vmatmul.msk.bf16.gmra.mxu2 %vm1982_vm2, %v6442_v49  ;;  %6248 = vmatmul.msk.bf16.gmra.mxu3 %vm1982_vm2, %v6506_v51  ;;  %v6317_v52 = vld [vmem:[%s6631_s24 + $0x70] sm:$0xff] }
  0xcb   : > { %v4568_v54 = vmax.f32 %v4440_v53, 0.0  ;;  %v6381_v53 = vld [vmem:[%s6631_s24 + $0x270] sm:$0xff] }
  0xcc   : > { %v3422_v56 = vpop.f32.mrf.mxu2  ;;  %v3742_v57 = vpop.f32.mrf.mxu3 }
  0xcd   : > { %v4696_v58 = vpack.c.bf16 %v4568_v54, %v4568_v54  ;;  %v4181_v59 = vmax.f32 %v3422_v56, %v3742_v57  ;;  %v2784_v60 = vpop.f32.mrf.mxu0  ;;  %v3104_v61 = vpop.f32.mrf.mxu1 }
  0xce   : > { %v4054_v6 = vmax.f32 %v2784_v60, %v3104_v61  ;;  %v6509_v60 = vld [vmem:[%s6631_s24 + $0x670] sm:$0xff] }
  0xcf   : > { %4825 = vst.msk [vmem:[%s6716_s4 + $0x14] sm:$0xf] %vm4819_vm3, %v4696_v58  ;;  %v4309_v62 = vmax.f32 %v4053_v55, %v4181_v59  ;;  %v6445_v59 = vld [vmem:[%s6631_s24 + $0x470] sm:$0xff] }
  0xd1   : > { %v4441_v63 = vadd.f32 %v6710_v50, %v4309_v62 }
  0xd3   : > { %v4569_v0 = vmax.f32 %v4441_v63, 0.0 }
  0xd4   : > { %v3424_v1 = vpop.f32.mrf.mxu2  ;;  %v3744_v2 = vpop.f32.mrf.mxu3 }
  0xd5   : > { %v4697_v5 = vpack.c.bf16 %v4569_v0, %v4569_v0  ;;  %v4182_v7 = vmax.f32 %v3424_v1, %v3744_v2  ;;  %v2787_v8 = vpop.f32.mrf.mxu0  ;;  %v3107_v9 = vpop.f32.mrf.mxu1 }
  0xd6   : > { %v4055_v15 = vmax.f32 %v2787_v8, %v3107_v9 }
  0xd7   : > { %4826 = vst.msk [vmem:[%s6716_s4 + $0x18] sm:$0xf] %vm4819_vm3, %v4697_v5  ;;  %v4310_v12 = vmax.f32 %v4054_v6, %v4182_v7 }
  0xd8   : > { %6057 = vmatmul.msk.bf16.gmra.mxu0 %vm1982_vm2, %v6315_v3  ;;  %6121 = vmatmul.msk.bf16.gmra.mxu1 %vm1982_vm2, %v6379_v4 }
  0xd9   : > { %v4442_v13 = vadd.f32 %v6710_v50, %v4310_v12  ;;  %6185 = vmatmul.msk.bf16.gmra.mxu2 %vm1982_vm2, %v6443_v10  ;;  %6249 = vmatmul.msk.bf16.gmra.mxu3 %vm1982_vm2, %v6507_v11  ;;  %v6318_v12 = vld [vmem:[%s6631_s24 + $0x78] sm:$0xff] }
  0xdb   : > { %v4570_v14 = vmax.f32 %v4442_v13, 0.0  ;;  %v6382_v13 = vld [vmem:[%s6631_s24 + $0x278] sm:$0xff] }
  0xdc   : > { %v3427_v16 = vpop.f32.mrf.mxu2  ;;  %v3747_v17 = vpop.f32.mrf.mxu3 }
  0xdd   : > { %v4698_v18 = vpack.c.bf16 %v4570_v14, %v4570_v14  ;;  %v4183_v19 = vmax.f32 %v3427_v16, %v3747_v17  ;;  %v2789_v20 = vpop.f32.mrf.mxu0  ;;  %v3109_v21 = vpop.f32.mrf.mxu1 }
  0xde   : > { %v4056_v30 = vmax.f32 %v2789_v20, %v3109_v21  ;;  %v6510_v20 = vld [vmem:[%s6631_s24 + $0x678] sm:$0xff] }
  0xdf   : > { %4827 = vst.msk [vmem:[%s6716_s4 + $0x1c] sm:$0xf] %vm4819_vm3, %v4698_v18  ;;  %v4311_v22 = vmax.f32 %v4055_v15, %v4183_v19  ;;  %v6446_v19 = vld [vmem:[%s6631_s24 + $0x478] sm:$0xff] }
  0xe1   : > { %v4443_v23 = vadd.f32 %v6710_v50, %v4311_v22 }
  0xe3   : > { %v4571_v24 = vmax.f32 %v4443_v23, 0.0 }
  0xe4   : > { %v3429_v25 = vpop.f32.mrf.mxu2  ;;  %v3749_v26 = vpop.f32.mrf.mxu3 }
  0xe5   : > { %v4699_v29 = vpack.c.bf16 %v4571_v24, %v4571_v24  ;;  %v4184_v31 = vmax.f32 %v3429_v25, %v3749_v26  ;;  %v2792_v32 = vpop.f32.mrf.mxu0  ;;  %v3112_v33 = vpop.f32.mrf.mxu1 }
  0xe6   : > { %v4057_v39 = vmax.f32 %v2792_v32, %v3112_v33 }
  0xe7   : > { %4828 = vst.msk [vmem:[%s6716_s4 + $0x20] sm:$0xf] %vm4819_vm3, %v4699_v29  ;;  %v4312_v36 = vmax.f32 %v4056_v30, %v4184_v31 }
  0xe8   : > { %6058 = vmatmul.msk.bf16.gmra.mxu0 %vm1982_vm2, %v6316_v27  ;;  %6122 = vmatmul.msk.bf16.gmra.mxu1 %vm1982_vm2, %v6380_v28 }
  0xe9   : > { %v4444_v37 = vadd.f32 %v6710_v50, %v4312_v36  ;;  %6186 = vmatmul.msk.bf16.gmra.mxu2 %vm1982_vm2, %v6444_v34  ;;  %6250 = vmatmul.msk.bf16.gmra.mxu3 %vm1982_vm2, %v6508_v35  ;;  %v6319_v36 = vld [vmem:[%s6631_s24 + $0x80] sm:$0xff] }
  0xeb   : > { %v4572_v38 = vmax.f32 %v4444_v37, 0.0  ;;  %v6383_v37 = vld [vmem:[%s6631_s24 + $0x280] sm:$0xff] }
  0xec   : > { %v3432_v40 = vpop.f32.mrf.mxu2  ;;  %v3752_v41 = vpop.f32.mrf.mxu3 }
  0xed   : > { %v4700_v42 = vpack.c.bf16 %v4572_v38, %v4572_v38  ;;  %v4185_v43 = vmax.f32 %v3432_v40, %v3752_v41  ;;  %v2794_v44 = vpop.f32.mrf.mxu0  ;;  %v3114_v45 = vpop.f32.mrf.mxu1 }
  0xee   : > { %v4058_v55 = vmax.f32 %v2794_v44, %v3114_v45  ;;  %v6511_v44 = vld [vmem:[%s6631_s24 + $0x680] sm:$0xff] }
  0xef   : > { %4829 = vst.msk [vmem:[%s6716_s4 + $0x24] sm:$0xf] %vm4819_vm3, %v4700_v42  ;;  %v4313_v46 = vmax.f32 %v4057_v39, %v4185_v43  ;;  %v6447_v43 = vld [vmem:[%s6631_s24 + $0x480] sm:$0xff] }
  0xf1   : > { %v4445_v47 = vadd.f32 %v6710_v50, %v4313_v46 }
  0xf3   : > { %v4573_v48 = vmax.f32 %v4445_v47, 0.0 }
  0xf4   : > { %v3434_v49 = vpop.f32.mrf.mxu2  ;;  %v3754_v51 = vpop.f32.mrf.mxu3 }
  0xf5   : > { %v4701_v54 = vpack.c.bf16 %v4573_v48, %v4573_v48  ;;  %v4186_v56 = vmax.f32 %v3434_v49, %v3754_v51  ;;  %v2797_v57 = vpop.f32.mrf.mxu0  ;;  %v3117_v58 = vpop.f32.mrf.mxu1 }
  0xf6   : > { %v4059_v0 = vmax.f32 %v2797_v57, %v3117_v58 }
  0xf7   : > { %4830 = vst.msk [vmem:[%s6716_s4 + $0x28] sm:$0xf] %vm4819_vm3, %v4701_v54  ;;  %v4314_v61 = vmax.f32 %v4058_v55, %v4186_v56 }
  0xf8   : > { %6059 = vmatmul.msk.bf16.gmra.mxu0 %vm1982_vm2, %v6317_v52  ;;  %6123 = vmatmul.msk.bf16.gmra.mxu1 %vm1982_vm2, %v6381_v53 }
  0xf9   : > { %v4446_v62 = vadd.f32 %v6710_v50, %v4314_v61  ;;  %6187 = vmatmul.msk.bf16.gmra.mxu2 %vm1982_vm2, %v6445_v59  ;;  %6251 = vmatmul.msk.bf16.gmra.mxu3 %vm1982_vm2, %v6509_v60  ;;  %v6320_v61 = vld [vmem:[%s6631_s24 + $0x88] sm:$0xff] }
  0xfb   : > { %v4574_v63 = vmax.f32 %v4446_v62, 0.0  ;;  %v6384_v62 = vld [vmem:[%s6631_s24 + $0x288] sm:$0xff] }
  0xfc   : > { %v3437_v1 = vpop.f32.mrf.mxu2  ;;  %v3757_v2 = vpop.f32.mrf.mxu3 }
  0xfd   : > { %v4702_v3 = vpack.c.bf16 %v4574_v63, %v4574_v63  ;;  %v4187_v4 = vmax.f32 %v3437_v1, %v3757_v2  ;;  %v2799_v5 = vpop.f32.mrf.mxu0  ;;  %v3119_v6 = vpop.f32.mrf.mxu1 }
  0xfe   : > { %v4060_v15 = vmax.f32 %v2799_v5, %v3119_v6  ;;  %v6512_v5 = vld [vmem:[%s6631_s24 + $0x688] sm:$0xff] }
  0xff   : > { %4831 = vst.msk [vmem:[%s6716_s4 + $0x2c] sm:$0xf] %vm4819_vm3, %v4702_v3  ;;  %v4315_v7 = vmax.f32 %v4059_v0, %v4187_v4  ;;  %v6448_v4 = vld [vmem:[%s6631_s24 + $0x488] sm:$0xff] }
 0x101   : > { %v4447_v8 = vadd.f32 %v6710_v50, %v4315_v7 }
 0x103   : > { %v4575_v9 = vmax.f32 %v4447_v8, 0.0 }
 0x104   : > { %v3439_v10 = vpop.f32.mrf.mxu2  ;;  %v3759_v11 = vpop.f32.mrf.mxu3 }
 0x105   : > { %v4703_v14 = vpack.c.bf16 %v4575_v9, %v4575_v9  ;;  %v4188_v16 = vmax.f32 %v3439_v10, %v3759_v11  ;;  %v2802_v17 = vpop.f32.mrf.mxu0  ;;  %v3122_v18 = vpop.f32.mrf.mxu1 }
 0x106   : > { %v4061_v24 = vmax.f32 %v2802_v17, %v3122_v18 }
 0x107   : > { %4832 = vst.msk [vmem:[%s6716_s4 + $0x30] sm:$0xf] %vm4819_vm3, %v4703_v14  ;;  %v4316_v21 = vmax.f32 %v4060_v15, %v4188_v16 }
 0x108   : > { %6060 = vmatmul.msk.bf16.gmra.mxu0 %vm1982_vm2, %v6318_v12  ;;  %6124 = vmatmul.msk.bf16.gmra.mxu1 %vm1982_vm2, %v6382_v13 }
 0x109   : > { %v4448_v22 = vadd.f32 %v6710_v50, %v4316_v21  ;;  %6188 = vmatmul.msk.bf16.gmra.mxu2 %vm1982_vm2, %v6446_v19  ;;  %6252 = vmatmul.msk.bf16.gmra.mxu3 %vm1982_vm2, %v6510_v20  ;;  %v6321_v21 = vld [vmem:[%s6631_s24 + $0x90] sm:$0xff] }
 0x10b   : > { %v4576_v23 = vmax.f32 %v4448_v22, 0.0  ;;  %v6385_v22 = vld [vmem:[%s6631_s24 + $0x290] sm:$0xff] }
 0x10c   : > { %v3442_v25 = vpop.f32.mrf.mxu2  ;;  %v3762_v26 = vpop.f32.mrf.mxu3 }
 0x10d   : > { %v4704_v27 = vpack.c.bf16 %v4576_v23, %v4576_v23  ;;  %v4189_v28 = vmax.f32 %v3442_v25, %v3762_v26  ;;  %v2804_v29 = vpop.f32.mrf.mxu0  ;;  %v3124_v30 = vpop.f32.mrf.mxu1 }
 0x10e   : > { %v4062_v39 = vmax.f32 %v2804_v29, %v3124_v30  ;;  %v6513_v29 = vld [vmem:[%s6631_s24 + $0x690] sm:$0xff] }
 0x10f   : > { %4833 = vst.msk [vmem:[%s6716_s4 + $0x34] sm:$0xf] %vm4819_vm3, %v4704_v27  ;;  %v4317_v31 = vmax.f32 %v4061_v24, %v4189_v28  ;;  %v6449_v28 = vld [vmem:[%s6631_s24 + $0x490] sm:$0xff] }
 0x111   : > { %v4449_v32 = vadd.f32 %v6710_v50, %v4317_v31 }
 0x113   : > { %v4577_v33 = vmax.f32 %v4449_v32, 0.0 }
 0x114   : > { %v3444_v34 = vpop.f32.mrf.mxu2  ;;  %v3764_v35 = vpop.f32.mrf.mxu3 }
 0x115   : > { %v4705_v38 = vpack.c.bf16 %v4577_v33, %v4577_v33  ;;  %v4190_v40 = vmax.f32 %v3444_v34, %v3764_v35  ;;  %v2807_v41 = vpop.f32.mrf.mxu0  ;;  %v3127_v42 = vpop.f32.mrf.mxu1 }
 0x116   : > { %v4063_v48 = vmax.f32 %v2807_v41, %v3127_v42 }
 0x117   : > { %4834 = vst.msk [vmem:[%s6716_s4 + $0x38] sm:$0xf] %vm4819_vm3, %v4705_v38  ;;  %v4318_v45 = vmax.f32 %v4062_v39, %v4190_v40 }
 0x118   : > { %6061 = vmatmul.msk.bf16.gmra.mxu0 %vm1982_vm2, %v6319_v36  ;;  %6125 = vmatmul.msk.bf16.gmra.mxu1 %vm1982_vm2, %v6383_v37 }
 0x119   : > { %v4450_v46 = vadd.f32 %v6710_v50, %v4318_v45  ;;  %6189 = vmatmul.msk.bf16.gmra.mxu2 %vm1982_vm2, %v6447_v43  ;;  %6253 = vmatmul.msk.bf16.gmra.mxu3 %vm1982_vm2, %v6511_v44  ;;  %v6322_v45 = vld [vmem:[%s6631_s24 + $0x98] sm:$0xff] }
 0x11b   : > { %v4578_v47 = vmax.f32 %v4450_v46, 0.0  ;;  %v6386_v46 = vld [vmem:[%s6631_s24 + $0x298] sm:$0xff] }
 0x11c   : > { %v3447_v49 = vpop.f32.mrf.mxu2  ;;  %v3767_v51 = vpop.f32.mrf.mxu3 }
 0x11d   : > { %v4706_v52 = vpack.c.bf16 %v4578_v47, %v4578_v47  ;;  %v4191_v53 = vmax.f32 %v3447_v49, %v3767_v51  ;;  %v2809_v54 = vpop.f32.mrf.mxu0  ;;  %v3129_v55 = vpop.f32.mrf.mxu1 }
 0x11e   : > { %v4064_v0 = vmax.f32 %v2809_v54, %v3129_v55  ;;  %v6514_v54 = vld [vmem:[%s6631_s24 + $0x698] sm:$0xff] }
 0x11f   : > { %4835 = vst.msk [vmem:[%s6716_s4 + $0x3c] sm:$0xf] %vm4819_vm3, %v4706_v52  ;;  %v4319_v56 = vmax.f32 %v4063_v48, %v4191_v53  ;;  %v6450_v53 = vld [vmem:[%s6631_s24 + $0x498] sm:$0xff] }
 0x121   : > { %v4451_v57 = vadd.f32 %v6710_v50, %v4319_v56 }
 0x123   : > { %v4579_v58 = vmax.f32 %v4451_v57, 0.0 }
 0x124   : > { %v3449_v59 = vpop.f32.mrf.mxu2  ;;  %v3769_v60 = vpop.f32.mrf.mxu3 }
 0x125   : > { %v4707_v63 = vpack.c.bf16 %v4579_v58, %v4579_v58  ;;  %v4192_v1 = vmax.f32 %v3449_v59, %v3769_v60  ;;  %v2812_v2 = vpop.f32.mrf.mxu0  ;;  %v3132_v3 = vpop.f32.mrf.mxu1 }
 0x126   : > { %v4065_v9 = vmax.f32 %v2812_v2, %v3132_v3 }
 0x127   : > { %4836 = vst.msk [vmem:[%s6716_s4 + $0x40] sm:$0xf] %vm4819_vm3, %v4707_v63  ;;  %v4320_v6 = vmax.f32 %v4064_v0, %v4192_v1 }
 0x128   : > { %6062 = vmatmul.msk.bf16.gmra.mxu0 %vm1982_vm2, %v6320_v61  ;;  %6126 = vmatmul.msk.bf16.gmra.mxu1 %vm1982_vm2, %v6384_v62 }
 0x129   : > { %v4452_v7 = vadd.f32 %v6710_v50, %v4320_v6  ;;  %6190 = vmatmul.msk.bf16.gmra.mxu2 %vm1982_vm2, %v6448_v4  ;;  %6254 = vmatmul.msk.bf16.gmra.mxu3 %vm1982_vm2, %v6512_v5  ;;  %v6323_v6 = vld [vmem:[%s6631_s24 + $0xa0] sm:$0xff] }
 0x12b   : > { %v4580_v8 = vmax.f32 %v4452_v7, 0.0  ;;  %v6387_v7 = vld [vmem:[%s6631_s24 + $0x2a0] sm:$0xff] }
 0x12c   : > { %v3452_v10 = vpop.f32.mrf.mxu2  ;;  %v3772_v11 = vpop.f32.mrf.mxu3 }
 0x12d   : > { %v4708_v12 = vpack.c.bf16 %v4580_v8, %v4580_v8  ;;  %v4193_v13 = vmax.f32 %v3452_v10, %v3772_v11  ;;  %v2814_v14 = vpop.f32.mrf.mxu0  ;;  %v3134_v15 = vpop.f32.mrf.mxu1 }
 0x12e   : > { %v4066_v24 = vmax.f32 %v2814_v14, %v3134_v15  ;;  %v6515_v14 = vld [vmem:[%s6631_s24 + $0x6a0] sm:$0xff] }
 0x12f   : > { %4837 = vst.msk [vmem:[%s6716_s4 + $0x44] sm:$0xf] %vm4819_vm3, %v4708_v12  ;;  %v4321_v16 = vmax.f32 %v4065_v9, %v4193_v13  ;;  %v6451_v13 = vld [vmem:[%s6631_s24 + $0x4a0] sm:$0xff] }
 0x131   : > { %v4453_v17 = vadd.f32 %v6710_v50, %v4321_v16 }
 0x133   : > { %v4581_v18 = vmax.f32 %v4453_v17, 0.0 }
 0x134   : > { %v3454_v19 = vpop.f32.mrf.mxu2  ;;  %v3774_v20 = vpop.f32.mrf.mxu3 }
 0x135   : > { %v4709_v23 = vpack.c.bf16 %v4581_v18, %v4581_v18  ;;  %v4194_v25 = vmax.f32 %v3454_v19, %v3774_v20  ;;  %v2817_v26 = vpop.f32.mrf.mxu0  ;;  %v3137_v27 = vpop.f32.mrf.mxu1 }
 0x136   : > { %v4067_v33 = vmax.f32 %v2817_v26, %v3137_v27 }
 0x137   : > { %4838 = vst.msk [vmem:[%s6716_s4 + $0x48] sm:$0xf] %vm4819_vm3, %v4709_v23  ;;  %v4322_v30 = vmax.f32 %v4066_v24, %v4194_v25 }
 0x138   : > { %6063 = vmatmul.msk.bf16.gmra.mxu0 %vm1982_vm2, %v6321_v21  ;;  %6127 = vmatmul.msk.bf16.gmra.mxu1 %vm1982_vm2, %v6385_v22 }
 0x139   : > { %v4454_v31 = vadd.f32 %v6710_v50, %v4322_v30  ;;  %6191 = vmatmul.msk.bf16.gmra.mxu2 %vm1982_vm2, %v6449_v28  ;;  %6255 = vmatmul.msk.bf16.gmra.mxu3 %vm1982_vm2, %v6513_v29  ;;  %v6324_v30 = vld [vmem:[%s6631_s24 + $0xa8] sm:$0xff] }
 0x13b   : > { %v4582_v32 = vmax.f32 %v4454_v31, 0.0  ;;  %v6388_v31 = vld [vmem:[%s6631_s24 + $0x2a8] sm:$0xff] }
 0x13c   : > { %v3457_v34 = vpop.f32.mrf.mxu2  ;;  %v3777_v35 = vpop.f32.mrf.mxu3 }
 0x13d   : > { %v4710_v36 = vpack.c.bf16 %v4582_v32, %v4582_v32  ;;  %v4195_v37 = vmax.f32 %v3457_v34, %v3777_v35  ;;  %v2819_v38 = vpop.f32.mrf.mxu0  ;;  %v3139_v39 = vpop.f32.mrf.mxu1 }
 0x13e   : > { %v4068_v48 = vmax.f32 %v2819_v38, %v3139_v39  ;;  %v6516_v38 = vld [vmem:[%s6631_s24 + $0x6a8] sm:$0xff] }
 0x13f   : > { %4839 = vst.msk [vmem:[%s6716_s4 + $0x4c] sm:$0xf] %vm4819_vm3, %v4710_v36  ;;  %v4323_v40 = vmax.f32 %v4067_v33, %v4195_v37  ;;  %v6452_v37 = vld [vmem:[%s6631_s24 + $0x4a8] sm:$0xff] }
 0x141   : > { %v4455_v41 = vadd.f32 %v6710_v50, %v4323_v40 }
 0x143   : > { %v4583_v42 = vmax.f32 %v4455_v41, 0.0 }
 0x144   : > { %v3459_v43 = vpop.f32.mrf.mxu2  ;;  %v3779_v44 = vpop.f32.mrf.mxu3 }
 0x145   : > { %v4711_v47 = vpack.c.bf16 %v4583_v42, %v4583_v42  ;;  %v4196_v49 = vmax.f32 %v3459_v43, %v3779_v44  ;;  %v2822_v51 = vpop.f32.mrf.mxu0  ;;  %v3142_v52 = vpop.f32.mrf.mxu1 }
 0x146   : > { %v4069_v58 = vmax.f32 %v2822_v51, %v3142_v52 }
 0x147   : > { %4840 = vst.msk [vmem:[%s6716_s4 + $0x50] sm:$0xf] %vm4819_vm3, %v4711_v47  ;;  %v4324_v55 = vmax.f32 %v4068_v48, %v4196_v49 }
 0x148   : > { %6064 = vmatmul.msk.bf16.gmra.mxu0 %vm1982_vm2, %v6322_v45  ;;  %6128 = vmatmul.msk.bf16.gmra.mxu1 %vm1982_vm2, %v6386_v46 }
 0x149   : > { %v4456_v56 = vadd.f32 %v6710_v50, %v4324_v55  ;;  %6192 = vmatmul.msk.bf16.gmra.mxu2 %vm1982_vm2, %v6450_v53  ;;  %6256 = vmatmul.msk.bf16.gmra.mxu3 %vm1982_vm2, %v6514_v54  ;;  %v6325_v55 = vld [vmem:[%s6631_s24 + $0xb0] sm:$0xff] }
 0x14b   : > { %v4584_v57 = vmax.f32 %v4456_v56, 0.0  ;;  %v6389_v56 = vld [vmem:[%s6631_s24 + $0x2b0] sm:$0xff] }
 0x14c   : > { %v3462_v59 = vpop.f32.mrf.mxu2  ;;  %v3782_v60 = vpop.f32.mrf.mxu3 }
 0x14d   : > { %v4712_v61 = vpack.c.bf16 %v4584_v57, %v4584_v57  ;;  %v4197_v62 = vmax.f32 %v3462_v59, %v3782_v60  ;;  %v2824_v63 = vpop.f32.mrf.mxu0  ;;  %v3144_v0 = vpop.f32.mrf.mxu1 }
 0x14e   : > { %v4070_v9 = vmax.f32 %v2824_v63, %v3144_v0  ;;  %v6517_v63 = vld [vmem:[%s6631_s24 + $0x6b0] sm:$0xff] }
 0x14f   : > { %4841 = vst.msk [vmem:[%s6716_s4 + $0x54] sm:$0xf] %vm4819_vm3, %v4712_v61  ;;  %v4325_v1 = vmax.f32 %v4069_v58, %v4197_v62  ;;  %v6453_v62 = vld [vmem:[%s6631_s24 + $0x4b0] sm:$0xff] }
 0x151   : > { %v4457_v2 = vadd.f32 %v6710_v50, %v4325_v1 }
 0x153   : > { %v4585_v3 = vmax.f32 %v4457_v2, 0.0 }
 0x154   : > { %v3464_v4 = vpop.f32.mrf.mxu2  ;;  %v3784_v5 = vpop.f32.mrf.mxu3 }
 0x155   : > { %v4713_v8 = vpack.c.bf16 %v4585_v3, %v4585_v3  ;;  %v4198_v10 = vmax.f32 %v3464_v4, %v3784_v5  ;;  %v2827_v11 = vpop.f32.mrf.mxu0  ;;  %v3147_v12 = vpop.f32.mrf.mxu1 }
 0x156   : > { %v4071_v18 = vmax.f32 %v2827_v11, %v3147_v12 }
 0x157   : > { %4842 = vst.msk [vmem:[%s6716_s4 + $0x58] sm:$0xf] %vm4819_vm3, %v4713_v8  ;;  %v4326_v15 = vmax.f32 %v4070_v9, %v4198_v10 }
 0x158   : > { %6065 = vmatmul.msk.bf16.gmra.mxu0 %vm1982_vm2, %v6323_v6  ;;  %6129 = vmatmul.msk.bf16.gmra.mxu1 %vm1982_vm2, %v6387_v7 }
 0x159   : > { %v4458_v16 = vadd.f32 %v6710_v50, %v4326_v15  ;;  %6193 = vmatmul.msk.bf16.gmra.mxu2 %vm1982_vm2, %v6451_v13  ;;  %6257 = vmatmul.msk.bf16.gmra.mxu3 %vm1982_vm2, %v6515_v14  ;;  %v6326_v15 = vld [vmem:[%s6631_s24 + $0xb8] sm:$0xff] }
 0x15b   : > { %v4586_v17 = vmax.f32 %v4458_v16, 0.0  ;;  %v6390_v16 = vld [vmem:[%s6631_s24 + $0x2b8] sm:$0xff] }
 0x15c   : > { %v3467_v19 = vpop.f32.mrf.mxu2  ;;  %v3787_v20 = vpop.f32.mrf.mxu3 }
 0x15d   : > { %v4714_v21 = vpack.c.bf16 %v4586_v17, %v4586_v17  ;;  %v4199_v22 = vmax.f32 %v3467_v19, %v3787_v20  ;;  %v2829_v23 = vpop.f32.mrf.mxu0  ;;  %v3149_v24 = vpop.f32.mrf.mxu1 }
 0x15e   : > { %v4072_v33 = vmax.f32 %v2829_v23, %v3149_v24  ;;  %v6518_v23 = vld [vmem:[%s6631_s24 + $0x6b8] sm:$0xff] }
 0x15f   : > { %4843 = vst.msk [vmem:[%s6716_s4 + $0x5c] sm:$0xf] %vm4819_vm3, %v4714_v21  ;;  %v4327_v25 = vmax.f32 %v4071_v18, %v4199_v22  ;;  %v6454_v22 = vld [vmem:[%s6631_s24 + $0x4b8] sm:$0xff] }
 0x161   : > { %v4459_v26 = vadd.f32 %v6710_v50, %v4327_v25 }
 0x163   : > { %v4587_v27 = vmax.f32 %v4459_v26, 0.0 }
 0x164   : > { %v3469_v28 = vpop.f32.mrf.mxu2  ;;  %v3789_v29 = vpop.f32.mrf.mxu3 }
 0x165   : > { %v4715_v32 = vpack.c.bf16 %v4587_v27, %v4587_v27  ;;  %v4200_v34 = vmax.f32 %v3469_v28, %v3789_v29  ;;  %v2832_v35 = vpop.f32.mrf.mxu0  ;;  %v3152_v36 = vpop.f32.mrf.mxu1 }
 0x166   : > { %v4073_v42 = vmax.f32 %v2832_v35, %v3152_v36 }
 0x167   : > { %4844 = vst.msk [vmem:[%s6716_s4 + $0x60] sm:$0xf] %vm4819_vm3, %v4715_v32  ;;  %v4328_v39 = vmax.f32 %v4072_v33, %v4200_v34 }
 0x168   : > { %6066 = vmatmul.msk.bf16.gmra.mxu0 %vm1982_vm2, %v6324_v30  ;;  %6130 = vmatmul.msk.bf16.gmra.mxu1 %vm1982_vm2, %v6388_v31 }
 0x169   : > { %v4460_v40 = vadd.f32 %v6710_v50, %v4328_v39  ;;  %6194 = vmatmul.msk.bf16.gmra.mxu2 %vm1982_vm2, %v6452_v37  ;;  %6258 = vmatmul.msk.bf16.gmra.mxu3 %vm1982_vm2, %v6516_v38  ;;  %v6327_v39 = vld [vmem:[%s6631_s24 + $0xc0] sm:$0xff] }
 0x16b   : > { %v4588_v41 = vmax.f32 %v4460_v40, 0.0  ;;  %v6391_v40 = vld [vmem:[%s6631_s24 + $0x2c0] sm:$0xff] }
 0x16c   : > { %v3472_v43 = vpop.f32.mrf.mxu2  ;;  %v3792_v44 = vpop.f32.mrf.mxu3 }
 0x16d   : > { %v4716_v45 = vpack.c.bf16 %v4588_v41, %v4588_v41  ;;  %v4201_v46 = vmax.f32 %v3472_v43, %v3792_v44  ;;  %v2834_v47 = vpop.f32.mrf.mxu0  ;;  %v3154_v48 = vpop.f32.mrf.mxu1 }
 0x16e   : > { %v4074_v58 = vmax.f32 %v2834_v47, %v3154_v48  ;;  %v6519_v47 = vld [vmem:[%s6631_s24 + $0x6c0] sm:$0xff] }
 0x16f   : > { %4845 = vst.msk [vmem:[%s6716_s4 + $0x64] sm:$0xf] %vm4819_vm3, %v4716_v45  ;;  %v4329_v49 = vmax.f32 %v4073_v42, %v4201_v46  ;;  %v6455_v46 = vld [vmem:[%s6631_s24 + $0x4c0] sm:$0xff] }
 0x171   : > { %v4461_v51 = vadd.f32 %v6710_v50, %v4329_v49 }
 0x173   : > { %v4589_v52 = vmax.f32 %v4461_v51, 0.0 }
 0x174   : > { %v3474_v53 = vpop.f32.mrf.mxu2  ;;  %v3794_v54 = vpop.f32.mrf.mxu3 }
 0x175   : > { %v4717_v57 = vpack.c.bf16 %v4589_v52, %v4589_v52  ;;  %v4202_v59 = vmax.f32 %v3474_v53, %v3794_v54  ;;  %v2837_v60 = vpop.f32.mrf.mxu0  ;;  %v3157_v61 = vpop.f32.mrf.mxu1 }
 0x176   : > { %v4075_v3 = vmax.f32 %v2837_v60, %v3157_v61 }
 0x177   : > { %4846 = vst.msk [vmem:[%s6716_s4 + $0x68] sm:$0xf] %vm4819_vm3, %v4717_v57  ;;  %v4330_v0 = vmax.f32 %v4074_v58, %v4202_v59 }
 0x178   : > { %6067 = vmatmul.msk.bf16.gmra.mxu0 %vm1982_vm2, %v6325_v55  ;;  %6131 = vmatmul.msk.bf16.gmra.mxu1 %vm1982_vm2, %v6389_v56 }
 0x179   : > { %v4462_v1 = vadd.f32 %v6710_v50, %v4330_v0  ;;  %6195 = vmatmul.msk.bf16.gmra.mxu2 %vm1982_vm2, %v6453_v62  ;;  %6259 = vmatmul.msk.bf16.gmra.mxu3 %vm1982_vm2, %v6517_v63  ;;  %v6328_v0 = vld [vmem:[%s6631_s24 + $0xc8] sm:$0xff] }
 0x17b   : > { %v4590_v2 = vmax.f32 %v4462_v1, 0.0  ;;  %v6392_v1 = vld [vmem:[%s6631_s24 + $0x2c8] sm:$0xff] }
 0x17c   : > { %v3477_v4 = vpop.f32.mrf.mxu2  ;;  %v3797_v5 = vpop.f32.mrf.mxu3 }
 0x17d   : > { %v4718_v6 = vpack.c.bf16 %v4590_v2, %v4590_v2  ;;  %v4203_v7 = vmax.f32 %v3477_v4, %v3797_v5  ;;  %v2839_v8 = vpop.f32.mrf.mxu0  ;;  %v3159_v9 = vpop.f32.mrf.mxu1 }
 0x17e   : > { %v4076_v18 = vmax.f32 %v2839_v8, %v3159_v9  ;;  %v6520_v8 = vld [vmem:[%s6631_s24 + $0x6c8] sm:$0xff] }
 0x17f   : > { %4847 = vst.msk [vmem:[%s6716_s4 + $0x6c] sm:$0xf] %vm4819_vm3, %v4718_v6  ;;  %v4331_v10 = vmax.f32 %v4075_v3, %v4203_v7  ;;  %v6456_v7 = vld [vmem:[%s6631_s24 + $0x4c8] sm:$0xff] }
 0x181   : > { %v4463_v11 = vadd.f32 %v6710_v50, %v4331_v10 }
 0x183   : > { %v4591_v12 = vmax.f32 %v4463_v11, 0.0 }
 0x184   : > { %v3479_v13 = vpop.f32.mrf.mxu2  ;;  %v3799_v14 = vpop.f32.mrf.mxu3 }
 0x185   : > { %v4719_v17 = vpack.c.bf16 %v4591_v12, %v4591_v12  ;;  %v4204_v19 = vmax.f32 %v3479_v13, %v3799_v14  ;;  %v2842_v20 = vpop.f32.mrf.mxu0  ;;  %v3162_v21 = vpop.f32.mrf.mxu1 }
 0x186   : > { %v4077_v27 = vmax.f32 %v2842_v20, %v3162_v21 }
 0x187   : > { %4848 = vst.msk [vmem:[%s6716_s4 + $0x70] sm:$0xf] %vm4819_vm3, %v4719_v17  ;;  %v4332_v24 = vmax.f32 %v4076_v18, %v4204_v19  ;;  %v6958_v19 = vld [vmem:[%s7561_s2] ss:$0 sm:$0xff] }
 0x188   : > { %6068 = vmatmul.msk.bf16.gmra.mxu0 %vm1982_vm2, %v6326_v15  ;;  %6132 = vmatmul.msk.bf16.gmra.mxu1 %vm1982_vm2, %v6390_v16 }
 0x189   : > { %v4464_v25 = vadd.f32 %v6710_v50, %v4332_v24  ;;  %6196 = vmatmul.msk.bf16.gmra.mxu2 %vm1982_vm2, %v6454_v22  ;;  %6260 = vmatmul.msk.bf16.gmra.mxu3 %vm1982_vm2, %v6518_v23  ;;  %v6329_v24 = vld [vmem:[%s6631_s24 + $0xd0] sm:$0xff] }
 0x18b   : > { %v4592_v26 = vmax.f32 %v4464_v25, 0.0  ;;  %v6393_v25 = vld [vmem:[%s6631_s24 + $0x2d0] sm:$0xff] }
 0x18c   : > { %v3482_v28 = vpop.f32.mrf.mxu2  ;;  %v3802_v29 = vpop.f32.mrf.mxu3 }
 0x18d   : > { %v4720_v30 = vpack.c.bf16 %v4592_v26, %v4592_v26  ;;  %v4205_v31 = vmax.f32 %v3482_v28, %v3802_v29  ;;  %v2844_v32 = vpop.f32.mrf.mxu0  ;;  %v3164_v33 = vpop.f32.mrf.mxu1 }
 0x18e   : > { %v4078_v42 = vmax.f32 %v2844_v32, %v3164_v33  ;;  %v6521_v32 = vld [vmem:[%s6631_s24 + $0x6d0] sm:$0xff] }
 0x18f   : > { %4849 = vst.msk [vmem:[%s6716_s4 + $0x74] sm:$0xf] %vm4819_vm3, %v4720_v30  ;;  %v4333_v34 = vmax.f32 %v4077_v27, %v4205_v31  ;;  %v6457_v31 = vld [vmem:[%s6631_s24 + $0x4d0] sm:$0xff] }
 0x191   : > { %v4465_v35 = vadd.f32 %v6710_v50, %v4333_v34 }
 0x193   : > { %v4593_v36 = vmax.f32 %v4465_v35, 0.0 }
 0x194   : > { %v3484_v37 = vpop.f32.mrf.mxu2  ;;  %v3804_v38 = vpop.f32.mrf.mxu3 }
 0x195   : > { %v4721_v41 = vpack.c.bf16 %v4593_v36, %v4593_v36  ;;  %v4206_v43 = vmax.f32 %v3484_v37, %v3804_v38  ;;  %v2847_v44 = vpop.f32.mrf.mxu0  ;;  %v3167_v45 = vpop.f32.mrf.mxu1 }
 0x196   : > { %v4079_v52 = vmax.f32 %v2847_v44, %v3167_v45 }
 0x197   : > { %4850 = vst.msk [vmem:[%s6716_s4 + $0x78] sm:$0xf] %vm4819_vm3, %v4721_v41  ;;  %v4334_v48 = vmax.f32 %v4078_v42, %v4206_v43 }
 0x198   : > { %6069 = vmatmul.msk.bf16.gmra.mxu0 %vm1982_vm2, %v6327_v39  ;;  %6133 = vmatmul.msk.bf16.gmra.mxu1 %vm1982_vm2, %v6391_v40 }
 0x199   : > { %v4466_v49 = vadd.f32 %v6710_v50, %v4334_v48  ;;  %6197 = vmatmul.msk.bf16.gmra.mxu2 %vm1982_vm2, %v6455_v46  ;;  %6261 = vmatmul.msk.bf16.gmra.mxu3 %vm1982_vm2, %v6519_v47  ;;  %v6330_v48 = vld [vmem:[%s6631_s24 + $0xd8] sm:$0xff] }
 0x19b   : > { %v4594_v51 = vmax.f32 %v4466_v49, 0.0  ;;  %v6394_v49 = vld [vmem:[%s6631_s24 + $0x2d8] sm:$0xff] }
 0x19c   : > { %v3487_v53 = vpop.f32.mrf.mxu2  ;;  %v3807_v54 = vpop.f32.mrf.mxu3 }
 0x19d   : > { %v4722_v55 = vpack.c.bf16 %v4594_v51, %v4594_v51  ;;  %v4207_v56 = vmax.f32 %v3487_v53, %v3807_v54  ;;  %v2849_v57 = vpop.f32.mrf.mxu0  ;;  %v3169_v58 = vpop.f32.mrf.mxu1 }
 0x19e   : > { %v4080_v3 = vmax.f32 %v2849_v57, %v3169_v58  ;;  %v6522_v57 = vld [vmem:[%s6631_s24 + $0x6d8] sm:$0xff] }
 0x19f   : > { %4851 = vst.msk [vmem:[%s6716_s4 + $0x7c] sm:$0xf] %vm4819_vm3, %v4722_v55  ;;  %v4335_v59 = vmax.f32 %v4079_v52, %v4207_v56  ;;  %v6458_v56 = vld [vmem:[%s6631_s24 + $0x4d8] sm:$0xff] }
 0x1a1   : > { %v4467_v60 = vadd.f32 %v6710_v50, %v4335_v59 }
 0x1a3   : > { %v4595_v61 = vmax.f32 %v4467_v60, 0.0 }
 0x1a4   : > { %v3489_v62 = vpop.f32.mrf.mxu2  ;;  %v3809_v63 = vpop.f32.mrf.mxu3 }
 0x1a5   : > { %v4723_v2 = vpack.c.bf16 %v4595_v61, %v4595_v61  ;;  %v4208_v4 = vmax.f32 %v3489_v62, %v3809_v63  ;;  %v2852_v5 = vpop.f32.mrf.mxu0  ;;  %v3172_v6 = vpop.f32.mrf.mxu1 }
 0x1a6   : > { %v4081_v12 = vmax.f32 %v2852_v5, %v3172_v6 }
 0x1a7   : > { %4852 = vst.msk [vmem:[%s6716_s4 + $0x80] sm:$0xf] %vm4819_vm3, %v4723_v2  ;;  %v4336_v9 = vmax.f32 %v4080_v3, %v4208_v4 }
 0x1a8   : > { %6070 = vmatmul.msk.bf16.gmra.mxu0 %vm1982_vm2, %v6328_v0  ;;  %6134 = vmatmul.msk.bf16.gmra.mxu1 %vm1982_vm2, %v6392_v1 }
 0x1a9   : > { %v4468_v10 = vadd.f32 %v6710_v50, %v4336_v9  ;;  %6198 = vmatmul.msk.bf16.gmra.mxu2 %vm1982_vm2, %v6456_v7  ;;  %6262 = vmatmul.msk.bf16.gmra.mxu3 %vm1982_vm2, %v6520_v8  ;;  %v6331_v9 = vld [vmem:[%s6631_s24 + $0xe0] sm:$0xff] }
 0x1ab   : > { %v4596_v11 = vmax.f32 %v4468_v10, 0.0  ;;  %v6395_v10 = vld [vmem:[%s6631_s24 + $0x2e0] sm:$0xff] }
 0x1ac   : > { %v3492_v13 = vpop.f32.mrf.mxu2  ;;  %v3812_v14 = vpop.f32.mrf.mxu3 }
 0x1ad   : > { %v4724_v15 = vpack.c.bf16 %v4596_v11, %v4596_v11  ;;  %v4209_v16 = vmax.f32 %v3492_v13, %v3812_v14  ;;  %v2854_v17 = vpop.f32.mrf.mxu0  ;;  %v3174_v18 = vpop.f32.mrf.mxu1 }
 0x1ae   : > { %v4082_v27 = vmax.f32 %v2854_v17, %v3174_v18  ;;  %v6523_v17 = vld [vmem:[%s6631_s24 + $0x6e0] sm:$0xff] }
 0x1af   : > { %4853 = vst.msk [vmem:[%s6716_s4 + $0x84] sm:$0xf] %vm4819_vm3, %v4724_v15  ;;  %v4337_v50 = vmax.f32 %v4081_v12, %v4209_v16  ;;  %v6459_v16 = vld [vmem:[%s6631_s24 + $0x4e0] sm:$0xff] }
 0x1b1   : > { %v4469_v20 = vadd.f32 %v6958_v19, %v4337_v50 }
 0x1b3   : > { %v4597_v21 = vmax.f32 %v4469_v20, 0.0 }
 0x1b4   : > { %v3494_v22 = vpop.f32.mrf.mxu2  ;;  %v3814_v23 = vpop.f32.mrf.mxu3 }
 0x1b5   : > { %v4725_v26 = vpack.c.bf16 %v4597_v21, %v4597_v21  ;;  %v4210_v28 = vmax.f32 %v3494_v22, %v3814_v23  ;;  %v2857_v29 = vpop.f32.mrf.mxu0  ;;  %v3177_v30 = vpop.f32.mrf.mxu1 }
 0x1b6   : > { %v4083_v36 = vmax.f32 %v2857_v29, %v3177_v30 }
 0x1b7   : > { %4854 = vst.msk [vmem:[%s6716_s4 + $0x88] sm:$0xf] %vm4819_vm3, %v4725_v26  ;;  %v4338_v33 = vmax.f32 %v4082_v27, %v4210_v28 }
 0x1b8   : > { %6071 = vmatmul.msk.bf16.gmra.mxu0 %vm1982_vm2, %v6329_v24  ;;  %6135 = vmatmul.msk.bf16.gmra.mxu1 %vm1982_vm2, %v6393_v25 }
 0x1b9   : > { %v4470_v34 = vadd.f32 %v6958_v19, %v4338_v33  ;;  %6199 = vmatmul.msk.bf16.gmra.mxu2 %vm1982_vm2, %v6457_v31  ;;  %6263 = vmatmul.msk.bf16.gmra.mxu3 %vm1982_vm2, %v6521_v32  ;;  %v6332_v33 = vld [vmem:[%s6631_s24 + $0xe8] sm:$0xff] }
 0x1bb   : > { %v4598_v35 = vmax.f32 %v4470_v34, 0.0  ;;  %v6396_v34 = vld [vmem:[%s6631_s24 + $0x2e8] sm:$0xff] }
 0x1bc   : > { %v3497_v37 = vpop.f32.mrf.mxu2  ;;  %v3817_v38 = vpop.f32.mrf.mxu3 }
 0x1bd   : > { %v4726_v39 = vpack.c.bf16 %v4598_v35, %v4598_v35  ;;  %v4211_v40 = vmax.f32 %v3497_v37, %v3817_v38  ;;  %v2859_v41 = vpop.f32.mrf.mxu0  ;;  %v3179_v42 = vpop.f32.mrf.mxu1 }
 0x1be   : > { %v4084_v52 = vmax.f32 %v2859_v41, %v3179_v42  ;;  %v6524_v41 = vld [vmem:[%s6631_s24 + $0x6e8] sm:$0xff] }
 0x1bf   : > { %4855 = vst.msk [vmem:[%s6716_s4 + $0x8c] sm:$0xf] %vm4819_vm3, %v4726_v39  ;;  %v4339_v43 = vmax.f32 %v4083_v36, %v4211_v40  ;;  %v6460_v40 = vld [vmem:[%s6631_s24 + $0x4e8] sm:$0xff] }
 0x1c1   : > { %v4471_v44 = vadd.f32 %v6958_v19, %v4339_v43 }
 0x1c3   : > { %v4599_v45 = vmax.f32 %v4471_v44, 0.0 }
 0x1c4   : > { %v3499_v46 = vpop.f32.mrf.mxu2  ;;  %v3819_v47 = vpop.f32.mrf.mxu3 }
 0x1c5   : > { %v4727_v51 = vpack.c.bf16 %v4599_v45, %v4599_v45  ;;  %v4212_v53 = vmax.f32 %v3499_v46, %v3819_v47  ;;  %v2862_v54 = vpop.f32.mrf.mxu0  ;;  %v3182_v55 = vpop.f32.mrf.mxu1 }
 0x1c6   : > { %v4085_v61 = vmax.f32 %v2862_v54, %v3182_v55 }
 0x1c7   : > { %4856 = vst.msk [vmem:[%s6716_s4 + $0x90] sm:$0xf] %vm4819_vm3, %v4727_v51  ;;  %v4340_v58 = vmax.f32 %v4084_v52, %v4212_v53 }
 0x1c8   : > { %6072 = vmatmul.msk.bf16.gmra.mxu0 %vm1982_vm2, %v6330_v48  ;;  %6136 = vmatmul.msk.bf16.gmra.mxu1 %vm1982_vm2, %v6394_v49 }
 0x1c9   : > { %v4472_v59 = vadd.f32 %v6958_v19, %v4340_v58  ;;  %6200 = vmatmul.msk.bf16.gmra.mxu2 %vm1982_vm2, %v6458_v56  ;;  %6264 = vmatmul.msk.bf16.gmra.mxu3 %vm1982_vm2, %v6522_v57  ;;  %v6333_v58 = vld [vmem:[%s6631_s24 + $0xf0] sm:$0xff] }
 0x1cb   : > { %v4600_v60 = vmax.f32 %v4472_v59, 0.0  ;;  %v6397_v59 = vld [vmem:[%s6631_s24 + $0x2f0] sm:$0xff] }
 0x1cc   : > { %v3502_v62 = vpop.f32.mrf.mxu2  ;;  %v3822_v63 = vpop.f32.mrf.mxu3 }
 0x1cd   : > { %v4728_v0 = vpack.c.bf16 %v4600_v60, %v4600_v60  ;;  %v4213_v1 = vmax.f32 %v3502_v62, %v3822_v63  ;;  %v2864_v2 = vpop.f32.mrf.mxu0  ;;  %v3184_v3 = vpop.f32.mrf.mxu1 }
 0x1ce   : > { %v4086_v12 = vmax.f32 %v2864_v2, %v3184_v3  ;;  %v6525_v2 = vld [vmem:[%s6631_s24 + $0x6f0] sm:$0xff] }
 0x1cf   : > { %4857 = vst.msk [vmem:[%s6716_s4 + $0x94] sm:$0xf] %vm4819_vm3, %v4728_v0  ;;  %v4341_v4 = vmax.f32 %v4085_v61, %v4213_v1  ;;  %v6461_v1 = vld [vmem:[%s6631_s24 + $0x4f0] sm:$0xff] }
 0x1d1   : > { %v4473_v5 = vadd.f32 %v6958_v19, %v4341_v4 }
 0x1d3   : > { %v4601_v6 = vmax.f32 %v4473_v5, 0.0 }
 0x1d4   : > { %v3504_v7 = vpop.f32.mrf.mxu2  ;;  %v3824_v8 = vpop.f32.mrf.mxu3 }
 0x1d5   : > { %v4729_v11 = vpack.c.bf16 %v4601_v6, %v4601_v6  ;;  %v4214_v13 = vmax.f32 %v3504_v7, %v3824_v8  ;;  %v2867_v14 = vpop.f32.mrf.mxu0  ;;  %v3187_v15 = vpop.f32.mrf.mxu1 }
 0x1d6   : > { %v4087_v21 = vmax.f32 %v2867_v14, %v3187_v15 }
 0x1d7   : > { %4858 = vst.msk [vmem:[%s6716_s4 + $0x98] sm:$0xf] %vm4819_vm3, %v4729_v11  ;;  %v4342_v18 = vmax.f32 %v4086_v12, %v4214_v13 }
 0x1d8   : > { %6073 = vmatmul.msk.bf16.gmra.mxu0 %vm1982_vm2, %v6331_v9  ;;  %6137 = vmatmul.msk.bf16.gmra.mxu1 %vm1982_vm2, %v6395_v10 }
 0x1d9   : > { %v4474_v50 = vadd.f32 %v6958_v19, %v4342_v18  ;;  %6201 = vmatmul.msk.bf16.gmra.mxu2 %vm1982_vm2, %v6459_v16  ;;  %6265 = vmatmul.msk.bf16.gmra.mxu3 %vm1982_vm2, %v6523_v17  ;;  %v6334_v18 = vld [vmem:[%s6631_s24 + $0xf8] sm:$0xff] }
 0x1db   : > { %v4602_v20 = vmax.f32 %v4474_v50, 0.0  ;;  %v6398_v50 = vld [vmem:[%s6631_s24 + $0x2f8] sm:$0xff] }
 0x1dc   : > { %v3507_v22 = vpop.f32.mrf.mxu2  ;;  %v3827_v23 = vpop.f32.mrf.mxu3 }
 0x1dd   : > { %v4730_v24 = vpack.c.bf16 %v4602_v20, %v4602_v20  ;;  %v4215_v25 = vmax.f32 %v3507_v22, %v3827_v23  ;;  %v2869_v26 = vpop.f32.mrf.mxu0  ;;  %v3189_v27 = vpop.f32.mrf.mxu1 }
 0x1de   : > { %v4088_v36 = vmax.f32 %v2869_v26, %v3189_v27  ;;  %v6526_v26 = vld [vmem:[%s6631_s24 + $0x6f8] sm:$0xff] }
 0x1df   : > { %4859 = vst.msk [vmem:[%s6716_s4 + $0x9c] sm:$0xf] %vm4819_vm3, %v4730_v24  ;;  %v4343_v28 = vmax.f32 %v4087_v21, %v4215_v25  ;;  %v6462_v25 = vld [vmem:[%s6631_s24 + $0x4f8] sm:$0xff] }
 0x1e1   : > { %v4475_v29 = vadd.f32 %v6958_v19, %v4343_v28 }
 0x1e3   : > { %v4603_v30 = vmax.f32 %v4475_v29, 0.0 }
 0x1e4   : > { %v3509_v31 = vpop.f32.mrf.mxu2  ;;  %v3829_v32 = vpop.f32.mrf.mxu3 }
 0x1e5   : > { %v4731_v35 = vpack.c.bf16 %v4603_v30, %v4603_v30  ;;  %v4216_v37 = vmax.f32 %v3509_v31, %v3829_v32  ;;  %v2872_v38 = vpop.f32.mrf.mxu0  ;;  %v3192_v39 = vpop.f32.mrf.mxu1 }
 0x1e6   : > { %v4089_v45 = vmax.f32 %v2872_v38, %v3192_v39 }
 0x1e7   : > { %4860 = vst.msk [vmem:[%s6716_s4 + $0xa0] sm:$0xf] %vm4819_vm3, %v4731_v35  ;;  %v4344_v42 = vmax.f32 %v4088_v36, %v4216_v37 }
 0x1e8   : > { %6074 = vmatmul.msk.bf16.gmra.mxu0 %vm1982_vm2, %v6332_v33  ;;  %6138 = vmatmul.msk.bf16.gmra.mxu1 %vm1982_vm2, %v6396_v34 }
 0x1e9   : > { %v4476_v43 = vadd.f32 %v6958_v19, %v4344_v42  ;;  %6202 = vmatmul.msk.bf16.gmra.mxu2 %vm1982_vm2, %v6460_v40  ;;  %6266 = vmatmul.msk.bf16.gmra.mxu3 %vm1982_vm2, %v6524_v41  ;;  %v6335_v42 = vld [vmem:[%s6631_s24 + $0x100] sm:$0xff] }
 0x1eb   : > { %v4604_v44 = vmax.f32 %v4476_v43, 0.0  ;;  %v6399_v43 = vld [vmem:[%s6631_s24 + $0x300] sm:$0xff] }
 0x1ec   : > { %v3512_v46 = vpop.f32.mrf.mxu2  ;;  %v3832_v47 = vpop.f32.mrf.mxu3 }
 0x1ed   : > { %v4732_v48 = vpack.c.bf16 %v4604_v44, %v4604_v44  ;;  %v4217_v49 = vmax.f32 %v3512_v46, %v3832_v47  ;;  %v2874_v51 = vpop.f32.mrf.mxu0  ;;  %v3194_v52 = vpop.f32.mrf.mxu1 }
 0x1ee   : > { %v4090_v61 = vmax.f32 %v2874_v51, %v3194_v52  ;;  %v6527_v51 = vld [vmem:[%s6631_s24 + $0x700] sm:$0xff] }
 0x1ef   : > { %4861 = vst.msk [vmem:[%s6716_s4 + $0xa4] sm:$0xf] %vm4819_vm3, %v4732_v48  ;;  %v4345_v53 = vmax.f32 %v4089_v45, %v4217_v49  ;;  %v6463_v49 = vld [vmem:[%s6631_s24 + $0x500] sm:$0xff] }
 0x1f1   : > { %v4477_v54 = vadd.f32 %v6958_v19, %v4345_v53 }
 0x1f3   : > { %v4605_v55 = vmax.f32 %v4477_v54, 0.0 }
 0x1f4   : > { %v3514_v56 = vpop.f32.mrf.mxu2  ;;  %v3834_v57 = vpop.f32.mrf.mxu3 }
 0x1f5   : > { %v4733_v60 = vpack.c.bf16 %v4605_v55, %v4605_v55  ;;  %v4218_v62 = vmax.f32 %v3514_v56, %v3834_v57  ;;  %v2877_v63 = vpop.f32.mrf.mxu0  ;;  %v3197_v0 = vpop.f32.mrf.mxu1 }
 0x1f6   : > { %v4091_v6 = vmax.f32 %v2877_v63, %v3197_v0 }
 0x1f7   : > { %4862 = vst.msk [vmem:[%s6716_s4 + $0xa8] sm:$0xf] %vm4819_vm3, %v4733_v60  ;;  %v4346_v3 = vmax.f32 %v4090_v61, %v4218_v62 }
 0x1f8   : > { %6075 = vmatmul.msk.bf16.gmra.mxu0 %vm1982_vm2, %v6333_v58  ;;  %6139 = vmatmul.msk.bf16.gmra.mxu1 %vm1982_vm2, %v6397_v59 }
 0x1f9   : > { %v4478_v4 = vadd.f32 %v6958_v19, %v4346_v3  ;;  %6203 = vmatmul.msk.bf16.gmra.mxu2 %vm1982_vm2, %v6461_v1  ;;  %6267 = vmatmul.msk.bf16.gmra.mxu3 %vm1982_vm2, %v6525_v2  ;;  %v6336_v3 = vld [vmem:[%s6631_s24 + $0x108] sm:$0xff] }
 0x1fb   : > { %v4606_v5 = vmax.f32 %v4478_v4, 0.0  ;;  %v6400_v4 = vld [vmem:[%s6631_s24 + $0x308] sm:$0xff] }
 0x1fc   : > { %v3517_v7 = vpop.f32.mrf.mxu2  ;;  %v3837_v8 = vpop.f32.mrf.mxu3 }
 0x1fd   : > { %v4734_v9 = vpack.c.bf16 %v4606_v5, %v4606_v5  ;;  %v4219_v10 = vmax.f32 %v3517_v7, %v3837_v8  ;;  %v2879_v11 = vpop.f32.mrf.mxu0  ;;  %v3199_v12 = vpop.f32.mrf.mxu1 }
 0x1fe   : > { %v4092_v21 = vmax.f32 %v2879_v11, %v3199_v12  ;;  %v6528_v11 = vld [vmem:[%s6631_s24 + $0x708] sm:$0xff] }
 0x1ff   : > { %4863 = vst.msk [vmem:[%s6716_s4 + $0xac] sm:$0xf] %vm4819_vm3, %v4734_v9  ;;  %v4347_v13 = vmax.f32 %v4091_v6, %v4219_v10  ;;  %v6464_v10 = vld [vmem:[%s6631_s24 + $0x508] sm:$0xff] }
 0x201   : > { %v4479_v14 = vadd.f32 %v6958_v19, %v4347_v13 }
 0x203   : > { %v4607_v15 = vmax.f32 %v4479_v14, 0.0 }
 0x204   : > { %v3519_v16 = vpop.f32.mrf.mxu2  ;;  %v3839_v17 = vpop.f32.mrf.mxu3 }
 0x205   : > { %v4735_v20 = vpack.c.bf16 %v4607_v15, %v4607_v15  ;;  %v4220_v22 = vmax.f32 %v3519_v16, %v3839_v17  ;;  %v2882_v23 = vpop.f32.mrf.mxu0  ;;  %v3202_v24 = vpop.f32.mrf.mxu1 }
 0x206   : > { %v4093_v30 = vmax.f32 %v2882_v23, %v3202_v24 }
 0x207   : > { %4864 = vst.msk [vmem:[%s6716_s4 + $0xb0] sm:$0xf] %vm4819_vm3, %v4735_v20  ;;  %v4348_v27 = vmax.f32 %v4092_v21, %v4220_v22 }
 0x208   : > { %6076 = vmatmul.msk.bf16.gmra.mxu0 %vm1982_vm2, %v6334_v18  ;;  %6140 = vmatmul.msk.bf16.gmra.mxu1 %vm1982_vm2, %v6398_v50 }
 0x209   : > { %v4480_v28 = vadd.f32 %v6958_v19, %v4348_v27  ;;  %6204 = vmatmul.msk.bf16.gmra.mxu2 %vm1982_vm2, %v6462_v25  ;;  %6268 = vmatmul.msk.bf16.gmra.mxu3 %vm1982_vm2, %v6526_v26  ;;  %v6337_v27 = vld [vmem:[%s6631_s24 + $0x110] sm:$0xff] }
 0x20b   : > { %v4608_v29 = vmax.f32 %v4480_v28, 0.0  ;;  %v6401_v28 = vld [vmem:[%s6631_s24 + $0x310] sm:$0xff] }
 0x20c   : > { %v3522_v31 = vpop.f32.mrf.mxu2  ;;  %v3842_v32 = vpop.f32.mrf.mxu3 }
 0x20d   : > { %v4736_v33 = vpack.c.bf16 %v4608_v29, %v4608_v29  ;;  %v4221_v34 = vmax.f32 %v3522_v31, %v3842_v32  ;;  %v2884_v35 = vpop.f32.mrf.mxu0  ;;  %v3204_v36 = vpop.f32.mrf.mxu1 }
 0x20e   : > { %v4094_v45 = vmax.f32 %v2884_v35, %v3204_v36  ;;  %v6529_v35 = vld [vmem:[%s6631_s24 + $0x710] sm:$0xff] }
 0x20f   : > { %4865 = vst.msk [vmem:[%s6716_s4 + $0xb4] sm:$0xf] %vm4819_vm3, %v4736_v33  ;;  %v4349_v37 = vmax.f32 %v4093_v30, %v4221_v34  ;;  %v6465_v34 = vld [vmem:[%s6631_s24 + $0x510] sm:$0xff] }
 0x211   : > { %v4481_v38 = vadd.f32 %v6958_v19, %v4349_v37 }
 0x213   : > { %v4609_v39 = vmax.f32 %v4481_v38, 0.0 }
 0x214   : > { %v3524_v40 = vpop.f32.mrf.mxu2  ;;  %v3844_v41 = vpop.f32.mrf.mxu3 }
 0x215   : > { %v4737_v44 = vpack.c.bf16 %v4609_v39, %v4609_v39  ;;  %v4222_v46 = vmax.f32 %v3524_v40, %v3844_v41  ;;  %v2887_v47 = vpop.f32.mrf.mxu0  ;;  %v3207_v48 = vpop.f32.mrf.mxu1 }
 0x216   : > { %v4095_v55 = vmax.f32 %v2887_v47, %v3207_v48 }
 0x217   : > { %4866 = vst.msk [vmem:[%s6716_s4 + $0xb8] sm:$0xf] %vm4819_vm3, %v4737_v44  ;;  %v4350_v52 = vmax.f32 %v4094_v45, %v4222_v46 }
 0x218   : > { %6077 = vmatmul.msk.bf16.gmra.mxu0 %vm1982_vm2, %v6335_v42  ;;  %6141 = vmatmul.msk.bf16.gmra.mxu1 %vm1982_vm2, %v6399_v43 }
 0x219   : > { %v4482_v53 = vadd.f32 %v6958_v19, %v4350_v52  ;;  %6205 = vmatmul.msk.bf16.gmra.mxu2 %vm1982_vm2, %v6463_v49  ;;  %6269 = vmatmul.msk.bf16.gmra.mxu3 %vm1982_vm2, %v6527_v51  ;;  %v6338_v52 = vld [vmem:[%s6631_s24 + $0x118] sm:$0xff] }
 0x21b   : > { %v4610_v54 = vmax.f32 %v4482_v53, 0.0  ;;  %v6402_v53 = vld [vmem:[%s6631_s24 + $0x318] sm:$0xff] }
 0x21c   : > { %v3527_v56 = vpop.f32.mrf.mxu2  ;;  %v3847_v57 = vpop.f32.mrf.mxu3 }
 0x21d   : > { %v4738_v58 = vpack.c.bf16 %v4610_v54, %v4610_v54  ;;  %v4223_v59 = vmax.f32 %v3527_v56, %v3847_v57  ;;  %v2889_v60 = vpop.f32.mrf.mxu0  ;;  %v3209_v61 = vpop.f32.mrf.mxu1 }
 0x21e   : > { %v4096_v6 = vmax.f32 %v2889_v60, %v3209_v61  ;;  %v6530_v60 = vld [vmem:[%s6631_s24 + $0x718] sm:$0xff] }
 0x21f   : > { %4867 = vst.msk [vmem:[%s6716_s4 + $0xbc] sm:$0xf] %vm4819_vm3, %v4738_v58  ;;  %v4351_v62 = vmax.f32 %v4095_v55, %v4223_v59  ;;  %v6466_v59 = vld [vmem:[%s6631_s24 + $0x518] sm:$0xff] }
 0x221   : > { %v4483_v63 = vadd.f32 %v6958_v19, %v4351_v62 }
 0x223   : > { %v4611_v0 = vmax.f32 %v4483_v63, 0.0 }
 0x224   : > { %v3529_v1 = vpop.f32.mrf.mxu2  ;;  %v3849_v2 = vpop.f32.mrf.mxu3 }
 0x225   : > { %v4739_v5 = vpack.c.bf16 %v4611_v0, %v4611_v0  ;;  %v4224_v7 = vmax.f32 %v3529_v1, %v3849_v2  ;;  %v2892_v8 = vpop.f32.mrf.mxu0  ;;  %v3212_v9 = vpop.f32.mrf.mxu1 }
 0x226   : > { %v4097_v15 = vmax.f32 %v2892_v8, %v3212_v9 }
 0x227   : > { %4868 = vst.msk [vmem:[%s6716_s4 + $0xc0] sm:$0xf] %vm4819_vm3, %v4739_v5  ;;  %v4352_v12 = vmax.f32 %v4096_v6, %v4224_v7 }
 0x228   : > { %6078 = vmatmul.msk.bf16.gmra.mxu0 %vm1982_vm2, %v6336_v3  ;;  %6142 = vmatmul.msk.bf16.gmra.mxu1 %vm1982_vm2, %v6400_v4 }
 0x229   : > { %v4484_v13 = vadd.f32 %v6958_v19, %v4352_v12  ;;  %6206 = vmatmul.msk.bf16.gmra.mxu2 %vm1982_vm2, %v6464_v10  ;;  %6270 = vmatmul.msk.bf16.gmra.mxu3 %vm1982_vm2, %v6528_v11  ;;  %v6339_v12 = vld [vmem:[%s6631_s24 + $0x120] sm:$0xff] }
 0x22b   : > { %v4612_v14 = vmax.f32 %v4484_v13, 0.0  ;;  %v6403_v13 = vld [vmem:[%s6631_s24 + $0x320] sm:$0xff] }
 0x22c   : > { %v3532_v16 = vpop.f32.mrf.mxu2  ;;  %v3852_v17 = vpop.f32.mrf.mxu3 }
 0x22d   : > { %v4740_v18 = vpack.c.bf16 %v4612_v14, %v4612_v14  ;;  %v4225_v50 = vmax.f32 %v3532_v16, %v3852_v17  ;;  %v2894_v20 = vpop.f32.mrf.mxu0  ;;  %v3214_v21 = vpop.f32.mrf.mxu1 }
 0x22e   : > { %v4098_v30 = vmax.f32 %v2894_v20, %v3214_v21  ;;  %v6531_v20 = vld [vmem:[%s6631_s24 + $0x720] sm:$0xff] }
 0x22f   : > { %4869 = vst.msk [vmem:[%s6716_s4 + $0xc4] sm:$0xf] %vm4819_vm3, %v4740_v18  ;;  %v4353_v22 = vmax.f32 %v4097_v15, %v4225_v50  ;;  %v6467_v50 = vld [vmem:[%s6631_s24 + $0x520] sm:$0xff] }
 0x231   : > { %v4485_v23 = vadd.f32 %v6958_v19, %v4353_v22 }
 0x233   : > { %v4613_v24 = vmax.f32 %v4485_v23, 0.0 }
 0x234   : > { %v3534_v25 = vpop.f32.mrf.mxu2  ;;  %v3854_v26 = vpop.f32.mrf.mxu3 }
 0x235   : > { %v4741_v29 = vpack.c.bf16 %v4613_v24, %v4613_v24  ;;  %v4226_v31 = vmax.f32 %v3534_v25, %v3854_v26  ;;  %v2897_v32 = vpop.f32.mrf.mxu0  ;;  %v3217_v33 = vpop.f32.mrf.mxu1 }
 0x236   : > { %v4099_v39 = vmax.f32 %v2897_v32, %v3217_v33 }
 0x237   : > { %4870 = vst.msk [vmem:[%s6716_s4 + $0xc8] sm:$0xf] %vm4819_vm3, %v4741_v29  ;;  %v4354_v36 = vmax.f32 %v4098_v30, %v4226_v31 }
 0x238   : > { %6079 = vmatmul.msk.bf16.gmra.mxu0 %vm1982_vm2, %v6337_v27  ;;  %6143 = vmatmul.msk.bf16.gmra.mxu1 %vm1982_vm2, %v6401_v28 }
 0x239   : > { %v4486_v37 = vadd.f32 %v6958_v19, %v4354_v36  ;;  %6207 = vmatmul.msk.bf16.gmra.mxu2 %vm1982_vm2, %v6465_v34  ;;  %6271 = vmatmul.msk.bf16.gmra.mxu3 %vm1982_vm2, %v6529_v35  ;;  %v6340_v36 = vld [vmem:[%s6631_s24 + $0x128] sm:$0xff] }
 0x23b   : > { %v4614_v38 = vmax.f32 %v4486_v37, 0.0  ;;  %v6404_v37 = vld [vmem:[%s6631_s24 + $0x328] sm:$0xff] }
 0x23c   : > { %v3537_v40 = vpop.f32.mrf.mxu2  ;;  %v3857_v41 = vpop.f32.mrf.mxu3 }
 0x23d   : > { %v4742_v42 = vpack.c.bf16 %v4614_v38, %v4614_v38  ;;  %v4227_v43 = vmax.f32 %v3537_v40, %v3857_v41  ;;  %v2899_v44 = vpop.f32.mrf.mxu0  ;;  %v3219_v45 = vpop.f32.mrf.mxu1 }
 0x23e   : > { %v4100_v55 = vmax.f32 %v2899_v44, %v3219_v45  ;;  %v6532_v44 = vld [vmem:[%s6631_s24 + $0x728] sm:$0xff] }
 0x23f   : > { %4871 = vst.msk [vmem:[%s6716_s4 + $0xcc] sm:$0xf] %vm4819_vm3, %v4742_v42  ;;  %v4355_v46 = vmax.f32 %v4099_v39, %v4227_v43  ;;  %v6468_v43 = vld [vmem:[%s6631_s24 + $0x528] sm:$0xff] }
 0x241   : > { %v4487_v47 = vadd.f32 %v6958_v19, %v4355_v46 }
 0x243   : > { %v4615_v48 = vmax.f32 %v4487_v47, 0.0 }
 0x244   : > { %v3539_v49 = vpop.f32.mrf.mxu2  ;;  %v3859_v51 = vpop.f32.mrf.mxu3 }
 0x245   : > { %v4743_v54 = vpack.c.bf16 %v4615_v48, %v4615_v48  ;;  %v4228_v56 = vmax.f32 %v3539_v49, %v3859_v51  ;;  %v2902_v57 = vpop.f32.mrf.mxu0  ;;  %v3222_v58 = vpop.f32.mrf.mxu1 }
 0x246   : > { %v4101_v0 = vmax.f32 %v2902_v57, %v3222_v58 }
 0x247   : > { %4872 = vst.msk [vmem:[%s6716_s4 + $0xd0] sm:$0xf] %vm4819_vm3, %v4743_v54  ;;  %v4356_v61 = vmax.f32 %v4100_v55, %v4228_v56 }
 0x248   : > { %6080 = vmatmul.msk.bf16.gmra.mxu0 %vm1982_vm2, %v6338_v52  ;;  %6144 = vmatmul.msk.bf16.gmra.mxu1 %vm1982_vm2, %v6402_v53 }
 0x249   : > { %v4488_v62 = vadd.f32 %v6958_v19, %v4356_v61  ;;  %6208 = vmatmul.msk.bf16.gmra.mxu2 %vm1982_vm2, %v6466_v59  ;;  %6272 = vmatmul.msk.bf16.gmra.mxu3 %vm1982_vm2, %v6530_v60  ;;  %v6341_v61 = vld [vmem:[%s6631_s24 + $0x130] sm:$0xff] }
 0x24b   : > { %v4616_v63 = vmax.f32 %v4488_v62, 0.0  ;;  %v6405_v62 = vld [vmem:[%s6631_s24 + $0x330] sm:$0xff] }
 0x24c   : > { %v3542_v1 = vpop.f32.mrf.mxu2  ;;  %v3862_v2 = vpop.f32.mrf.mxu3 }
 0x24d   : > { %v4744_v3 = vpack.c.bf16 %v4616_v63, %v4616_v63  ;;  %v4229_v4 = vmax.f32 %v3542_v1, %v3862_v2  ;;  %v2904_v5 = vpop.f32.mrf.mxu0  ;;  %v3224_v6 = vpop.f32.mrf.mxu1 }
 0x24e   : > { %v4102_v15 = vmax.f32 %v2904_v5, %v3224_v6  ;;  %v6533_v5 = vld [vmem:[%s6631_s24 + $0x730] sm:$0xff] }
 0x24f   : > { %4873 = vst.msk [vmem:[%s6716_s4 + $0xd4] sm:$0xf] %vm4819_vm3, %v4744_v3  ;;  %v4357_v7 = vmax.f32 %v4101_v0, %v4229_v4  ;;  %v6469_v4 = vld [vmem:[%s6631_s24 + $0x530] sm:$0xff] }
 0x251   : > { %v4489_v8 = vadd.f32 %v6958_v19, %v4357_v7 }
 0x253   : > { %v4617_v9 = vmax.f32 %v4489_v8, 0.0 }
 0x254   : > { %v3544_v10 = vpop.f32.mrf.mxu2  ;;  %v3864_v11 = vpop.f32.mrf.mxu3 }
 0x255   : > { %v4745_v14 = vpack.c.bf16 %v4617_v9, %v4617_v9  ;;  %v4230_v16 = vmax.f32 %v3544_v10, %v3864_v11  ;;  %v2907_v17 = vpop.f32.mrf.mxu0  ;;  %v3227_v18 = vpop.f32.mrf.mxu1 }
 0x256   : > { %v4103_v24 = vmax.f32 %v2907_v17, %v3227_v18 }
 0x257   : > { %4874 = vst.msk [vmem:[%s6716_s4 + $0xd8] sm:$0xf] %vm4819_vm3, %v4745_v14  ;;  %v4358_v21 = vmax.f32 %v4102_v15, %v4230_v16 }
 0x258   : > { %6081 = vmatmul.msk.bf16.gmra.mxu0 %vm1982_vm2, %v6339_v12  ;;  %6145 = vmatmul.msk.bf16.gmra.mxu1 %vm1982_vm2, %v6403_v13 }
 0x259   : > { %v4490_v22 = vadd.f32 %v6958_v19, %v4358_v21  ;;  %6209 = vmatmul.msk.bf16.gmra.mxu2 %vm1982_vm2, %v6467_v50  ;;  %6273 = vmatmul.msk.bf16.gmra.mxu3 %vm1982_vm2, %v6531_v20  ;;  %v6342_v21 = vld [vmem:[%s6631_s24 + $0x138] sm:$0xff] }
 0x25b   : > { %v4618_v23 = vmax.f32 %v4490_v22, 0.0  ;;  %v6406_v22 = vld [vmem:[%s6631_s24 + $0x338] sm:$0xff] }
 0x25c   : > { %v3547_v25 = vpop.f32.mrf.mxu2  ;;  %v3867_v26 = vpop.f32.mrf.mxu3 }
 0x25d   : > { %v4746_v27 = vpack.c.bf16 %v4618_v23, %v4618_v23  ;;  %v4231_v28 = vmax.f32 %v3547_v25, %v3867_v26  ;;  %v2909_v29 = vpop.f32.mrf.mxu0  ;;  %v3229_v30 = vpop.f32.mrf.mxu1 }
 0x25e   : > { %v4104_v39 = vmax.f32 %v2909_v29, %v3229_v30  ;;  %v6534_v29 = vld [vmem:[%s6631_s24 + $0x738] sm:$0xff] }
 0x25f   : > { %4875 = vst.msk [vmem:[%s6716_s4 + $0xdc] sm:$0xf] %vm4819_vm3, %v4746_v27  ;;  %v4359_v31 = vmax.f32 %v4103_v24, %v4231_v28  ;;  %v6470_v28 = vld [vmem:[%s6631_s24 + $0x538] sm:$0xff] }
 0x261   : > { %v4491_v32 = vadd.f32 %v6958_v19, %v4359_v31 }
 0x263   : > { %v4619_v33 = vmax.f32 %v4491_v32, 0.0 }
 0x264   : > { %v3549_v34 = vpop.f32.mrf.mxu2  ;;  %v3869_v35 = vpop.f32.mrf.mxu3 }
 0x265   : > { %v4747_v38 = vpack.c.bf16 %v4619_v33, %v4619_v33  ;;  %v4232_v40 = vmax.f32 %v3549_v34, %v3869_v35  ;;  %v2912_v41 = vpop.f32.mrf.mxu0  ;;  %v3232_v42 = vpop.f32.mrf.mxu1 }
 0x266   : > { %v4105_v48 = vmax.f32 %v2912_v41, %v3232_v42 }
 0x267   : > { %4876 = vst.msk [vmem:[%s6716_s4 + $0xe0] sm:$0xf] %vm4819_vm3, %v4747_v38  ;;  %v4360_v45 = vmax.f32 %v4104_v39, %v4232_v40 }
 0x268   : > { %6082 = vmatmul.msk.bf16.gmra.mxu0 %vm1982_vm2, %v6340_v36  ;;  %6146 = vmatmul.msk.bf16.gmra.mxu1 %vm1982_vm2, %v6404_v37 }
 0x269   : > { %v4492_v46 = vadd.f32 %v6958_v19, %v4360_v45  ;;  %6210 = vmatmul.msk.bf16.gmra.mxu2 %vm1982_vm2, %v6468_v43  ;;  %6274 = vmatmul.msk.bf16.gmra.mxu3 %vm1982_vm2, %v6532_v44  ;;  %v6343_v45 = vld [vmem:[%s6631_s24 + $0x140] sm:$0xff] }
 0x26b   : > { %v4620_v47 = vmax.f32 %v4492_v46, 0.0  ;;  %v6407_v46 = vld [vmem:[%s6631_s24 + $0x340] sm:$0xff] }
 0x26c   : > { %v3552_v49 = vpop.f32.mrf.mxu2  ;;  %v3872_v51 = vpop.f32.mrf.mxu3 }
 0x26d   : > { %v4748_v52 = vpack.c.bf16 %v4620_v47, %v4620_v47  ;;  %v4233_v53 = vmax.f32 %v3552_v49, %v3872_v51  ;;  %v2914_v54 = vpop.f32.mrf.mxu0  ;;  %v3234_v55 = vpop.f32.mrf.mxu1 }
 0x26e   : > { %v4106_v0 = vmax.f32 %v2914_v54, %v3234_v55  ;;  %v6535_v54 = vld [vmem:[%s6631_s24 + $0x740] sm:$0xff] }
 0x26f   : > { %4877 = vst.msk [vmem:[%s6716_s4 + $0xe4] sm:$0xf] %vm4819_vm3, %v4748_v52  ;;  %v4361_v56 = vmax.f32 %v4105_v48, %v4233_v53  ;;  %v6471_v53 = vld [vmem:[%s6631_s24 + $0x540] sm:$0xff] }
 0x271   : > { %v4493_v57 = vadd.f32 %v6958_v19, %v4361_v56 }
 0x273   : > { %v4621_v58 = vmax.f32 %v4493_v57, 0.0 }
 0x274   : > { %v3554_v59 = vpop.f32.mrf.mxu2  ;;  %v3874_v60 = vpop.f32.mrf.mxu3 }
 0x275   : > { %v4749_v63 = vpack.c.bf16 %v4621_v58, %v4621_v58  ;;  %v4234_v1 = vmax.f32 %v3554_v59, %v3874_v60  ;;  %v2917_v2 = vpop.f32.mrf.mxu0  ;;  %v3237_v3 = vpop.f32.mrf.mxu1 }
 0x276   : > { %v4107_v9 = vmax.f32 %v2917_v2, %v3237_v3 }
 0x277   : > { %4878 = vst.msk [vmem:[%s6716_s4 + $0xe8] sm:$0xf] %vm4819_vm3, %v4749_v63  ;;  %v4362_v6 = vmax.f32 %v4106_v0, %v4234_v1 }
 0x278   : > { %6083 = vmatmul.msk.bf16.gmra.mxu0 %vm1982_vm2, %v6341_v61  ;;  %6147 = vmatmul.msk.bf16.gmra.mxu1 %vm1982_vm2, %v6405_v62 }
 0x279   : > { %v4494_v7 = vadd.f32 %v6958_v19, %v4362_v6  ;;  %6211 = vmatmul.msk.bf16.gmra.mxu2 %vm1982_vm2, %v6469_v4  ;;  %6275 = vmatmul.msk.bf16.gmra.mxu3 %vm1982_vm2, %v6533_v5  ;;  %v6344_v6 = vld [vmem:[%s6631_s24 + $0x148] sm:$0xff] }
 0x27b   : > { %v4622_v8 = vmax.f32 %v4494_v7, 0.0  ;;  %v6408_v7 = vld [vmem:[%s6631_s24 + $0x348] sm:$0xff] }
 0x27c   : > { %v3557_v10 = vpop.f32.mrf.mxu2  ;;  %v3877_v11 = vpop.f32.mrf.mxu3 }
 0x27d   : > { %v4750_v12 = vpack.c.bf16 %v4622_v8, %v4622_v8  ;;  %v4235_v13 = vmax.f32 %v3557_v10, %v3877_v11  ;;  %v2919_v14 = vpop.f32.mrf.mxu0  ;;  %v3239_v15 = vpop.f32.mrf.mxu1 }
 0x27e   : > { %v4108_v24 = vmax.f32 %v2919_v14, %v3239_v15  ;;  %v6536_v14 = vld [vmem:[%s6631_s24 + $0x748] sm:$0xff] }
 0x27f   : > { %4879 = vst.msk [vmem:[%s6716_s4 + $0xec] sm:$0xf] %vm4819_vm3, %v4750_v12  ;;  %v4363_v16 = vmax.f32 %v4107_v9, %v4235_v13  ;;  %v6472_v13 = vld [vmem:[%s6631_s24 + $0x548] sm:$0xff] }
 0x281   : > { %v4495_v17 = vadd.f32 %v6958_v19, %v4363_v16 }
 0x283   : > { %v4623_v18 = vmax.f32 %v4495_v17, 0.0 }
 0x284   : > { %v3559_v50 = vpop.f32.mrf.mxu2  ;;  %v3879_v20 = vpop.f32.mrf.mxu3 }
 0x285   : > { %v4751_v23 = vpack.c.bf16 %v4623_v18, %v4623_v18  ;;  %v4236_v25 = vmax.f32 %v3559_v50, %v3879_v20  ;;  %v2922_v26 = vpop.f32.mrf.mxu0  ;;  %v3242_v27 = vpop.f32.mrf.mxu1 }
 0x286   : > { %v4109_v33 = vmax.f32 %v2922_v26, %v3242_v27 }
 0x287   : > { %4880 = vst.msk [vmem:[%s6716_s4 + $0xf0] sm:$0xf] %vm4819_vm3, %v4751_v23  ;;  %v4364_v30 = vmax.f32 %v4108_v24, %v4236_v25 }
 0x288   : > { %6084 = vmatmul.msk.bf16.gmra.mxu0 %vm1982_vm2, %v6342_v21  ;;  %6148 = vmatmul.msk.bf16.gmra.mxu1 %vm1982_vm2, %v6406_v22 }
 0x289   : > { %v4496_v31 = vadd.f32 %v6958_v19, %v4364_v30  ;;  %6212 = vmatmul.msk.bf16.gmra.mxu2 %vm1982_vm2, %v6470_v28  ;;  %6276 = vmatmul.msk.bf16.gmra.mxu3 %vm1982_vm2, %v6534_v29  ;;  %v6345_v30 = vld [vmem:[%s6631_s24 + $0x150] sm:$0xff] }
 0x28b   : > { %v4624_v32 = vmax.f32 %v4496_v31, 0.0  ;;  %v6409_v31 = vld [vmem:[%s6631_s24 + $0x350] sm:$0xff] }
 0x28c   : > { %v3562_v34 = vpop.f32.mrf.mxu2  ;;  %v3882_v35 = vpop.f32.mrf.mxu3 }
 0x28d   : > { %v4752_v36 = vpack.c.bf16 %v4624_v32, %v4624_v32  ;;  %v4237_v37 = vmax.f32 %v3562_v34, %v3882_v35  ;;  %v2924_v38 = vpop.f32.mrf.mxu0  ;;  %v3244_v39 = vpop.f32.mrf.mxu1 }
 0x28e   : > { %v4110_v48 = vmax.f32 %v2924_v38, %v3244_v39  ;;  %v6537_v38 = vld [vmem:[%s6631_s24 + $0x750] sm:$0xff] }
 0x28f   : > { %4881 = vst.msk [vmem:[%s6716_s4 + $0xf4] sm:$0xf] %vm4819_vm3, %v4752_v36  ;;  %v4365_v40 = vmax.f32 %v4109_v33, %v4237_v37  ;;  %v6473_v37 = vld [vmem:[%s6631_s24 + $0x550] sm:$0xff] }
 0x291   : > { %v4497_v41 = vadd.f32 %v6958_v19, %v4365_v40 }
 0x293   : > { %v4625_v42 = vmax.f32 %v4497_v41, 0.0 }
 0x294   : > { %v3564_v43 = vpop.f32.mrf.mxu2  ;;  %v3884_v44 = vpop.f32.mrf.mxu3 }
 0x295   : > { %v4753_v47 = vpack.c.bf16 %v4625_v42, %v4625_v42  ;;  %v4238_v49 = vmax.f32 %v3564_v43, %v3884_v44  ;;  %v2927_v51 = vpop.f32.mrf.mxu0  ;;  %v3247_v52 = vpop.f32.mrf.mxu1 }
 0x296   : > { %v4111_v58 = vmax.f32 %v2927_v51, %v3247_v52 }
 0x297   : > { %4882 = vst.msk [vmem:[%s6716_s4 + $0xf8] sm:$0xf] %vm4819_vm3, %v4753_v47  ;;  %v4366_v55 = vmax.f32 %v4110_v48, %v4238_v49 }
 0x298   : > { %6085 = vmatmul.msk.bf16.gmra.mxu0 %vm1982_vm2, %v6343_v45  ;;  %6149 = vmatmul.msk.bf16.gmra.mxu1 %vm1982_vm2, %v6407_v46 }
 0x299   : > { %v4498_v56 = vadd.f32 %v6958_v19, %v4366_v55  ;;  %6213 = vmatmul.msk.bf16.gmra.mxu2 %vm1982_vm2, %v6471_v53  ;;  %6277 = vmatmul.msk.bf16.gmra.mxu3 %vm1982_vm2, %v6535_v54  ;;  %v6346_v55 = vld [vmem:[%s6631_s24 + $0x158] sm:$0xff] }
 0x29b   : > { %v4626_v57 = vmax.f32 %v4498_v56, 0.0  ;;  %v6410_v56 = vld [vmem:[%s6631_s24 + $0x358] sm:$0xff] }
 0x29c   : > { %v3567_v59 = vpop.f32.mrf.mxu2  ;;  %v3887_v60 = vpop.f32.mrf.mxu3 }
 0x29d   : > { %v4754_v61 = vpack.c.bf16 %v4626_v57, %v4626_v57  ;;  %v4239_v62 = vmax.f32 %v3567_v59, %v3887_v60  ;;  %v2929_v63 = vpop.f32.mrf.mxu0  ;;  %v3249_v0 = vpop.f32.mrf.mxu1 }
 0x29e   : > { %v4112_v9 = vmax.f32 %v2929_v63, %v3249_v0  ;;  %v6538_v63 = vld [vmem:[%s6631_s24 + $0x758] sm:$0xff] }
 0x29f   : > { %4883 = vst.msk [vmem:[%s6716_s4 + $0xfc] sm:$0xf] %vm4819_vm3, %v4754_v61  ;;  %v4367_v1 = vmax.f32 %v4111_v58, %v4239_v62  ;;  %v6474_v62 = vld [vmem:[%s6631_s24 + $0x558] sm:$0xff] }
 0x2a1   : > { %v4499_v2 = vadd.f32 %v6958_v19, %v4367_v1 }
 0x2a3   : > { %v4627_v3 = vmax.f32 %v4499_v2, 0.0 }
 0x2a4   : > { %v3569_v4 = vpop.f32.mrf.mxu2  ;;  %v3889_v5 = vpop.f32.mrf.mxu3 }
 0x2a5   : > { %v4755_v8 = vpack.c.bf16 %v4627_v3, %v4627_v3  ;;  %v4240_v10 = vmax.f32 %v3569_v4, %v3889_v5  ;;  %v2932_v11 = vpop.f32.mrf.mxu0  ;;  %v3252_v12 = vpop.f32.mrf.mxu1 }
 0x2a6   : > { %v4113_v18 = vmax.f32 %v2932_v11, %v3252_v12 }
 0x2a7   : > { %4884 = vst.msk [vmem:[%s6716_s4 + $0x100] sm:$0xf] %vm4819_vm3, %v4755_v8  ;;  %v4368_v15 = vmax.f32 %v4112_v9, %v4240_v10 }
 0x2a8   : > { %6086 = vmatmul.msk.bf16.gmra.mxu0 %vm1982_vm2, %v6344_v6  ;;  %6150 = vmatmul.msk.bf16.gmra.mxu1 %vm1982_vm2, %v6408_v7 }
 0x2a9   : > { %v4500_v16 = vadd.f32 %v6958_v19, %v4368_v15  ;;  %6214 = vmatmul.msk.bf16.gmra.mxu2 %vm1982_vm2, %v6472_v13  ;;  %6278 = vmatmul.msk.bf16.gmra.mxu3 %vm1982_vm2, %v6536_v14  ;;  %v6347_v15 = vld [vmem:[%s6631_s24 + $0x160] sm:$0xff] }
 0x2ab   : > { %v4628_v17 = vmax.f32 %v4500_v16, 0.0  ;;  %v6411_v16 = vld [vmem:[%s6631_s24 + $0x360] sm:$0xff] }
 0x2ac   : > { %v3572_v50 = vpop.f32.mrf.mxu2  ;;  %v3892_v20 = vpop.f32.mrf.mxu3 }
 0x2ad   : > { %v4756_v21 = vpack.c.bf16 %v4628_v17, %v4628_v17  ;;  %v4241_v22 = vmax.f32 %v3572_v50, %v3892_v20  ;;  %v2934_v23 = vpop.f32.mrf.mxu0  ;;  %v3254_v24 = vpop.f32.mrf.mxu1 }
 0x2ae   : > { %v4114_v33 = vmax.f32 %v2934_v23, %v3254_v24  ;;  %v6539_v23 = vld [vmem:[%s6631_s24 + $0x760] sm:$0xff] }
 0x2af   : > { %4885 = vst.msk [vmem:[%s6716_s4 + $0x104] sm:$0xf] %vm4819_vm3, %v4756_v21  ;;  %v4369_v25 = vmax.f32 %v4113_v18, %v4241_v22  ;;  %v6475_v22 = vld [vmem:[%s6631_s24 + $0x560] sm:$0xff] }
 0x2b1   : > { %v4501_v26 = vadd.f32 %v6958_v19, %v4369_v25 }
 0x2b3   : > { %v4629_v27 = vmax.f32 %v4501_v26, 0.0 }
 0x2b4   : > { %v3574_v28 = vpop.f32.mrf.mxu2  ;;  %v3894_v29 = vpop.f32.mrf.mxu3 }
 0x2b5   : > { %v4757_v32 = vpack.c.bf16 %v4629_v27, %v4629_v27  ;;  %v4242_v34 = vmax.f32 %v3574_v28, %v3894_v29  ;;  %v2937_v35 = vpop.f32.mrf.mxu0  ;;  %v3257_v36 = vpop.f32.mrf.mxu1 }
 0x2b6   : > { %v4115_v42 = vmax.f32 %v2937_v35, %v3257_v36 }
 0x2b7   : > { %4886 = vst.msk [vmem:[%s6716_s4 + $0x108] sm:$0xf] %vm4819_vm3, %v4757_v32  ;;  %v4370_v39 = vmax.f32 %v4114_v33, %v4242_v34 }
 0x2b8   : > { %6087 = vmatmul.msk.bf16.gmra.mxu0 %vm1982_vm2, %v6345_v30  ;;  %6151 = vmatmul.msk.bf16.gmra.mxu1 %vm1982_vm2, %v6409_v31 }
 0x2b9   : > { %v4502_v40 = vadd.f32 %v6958_v19, %v4370_v39  ;;  %6215 = vmatmul.msk.bf16.gmra.mxu2 %vm1982_vm2, %v6473_v37  ;;  %6279 = vmatmul.msk.bf16.gmra.mxu3 %vm1982_vm2, %v6537_v38  ;;  %v6348_v39 = vld [vmem:[%s6631_s24 + $0x168] sm:$0xff] }
 0x2bb   : > { %v4630_v41 = vmax.f32 %v4502_v40, 0.0  ;;  %v6412_v40 = vld [vmem:[%s6631_s24 + $0x368] sm:$0xff] }
 0x2bc   : > { %v3577_v43 = vpop.f32.mrf.mxu2  ;;  %v3897_v44 = vpop.f32.mrf.mxu3 }
 0x2bd   : > { %v4758_v45 = vpack.c.bf16 %v4630_v41, %v4630_v41  ;;  %v4243_v46 = vmax.f32 %v3577_v43, %v3897_v44  ;;  %v2939_v47 = vpop.f32.mrf.mxu0  ;;  %v3259_v48 = vpop.f32.mrf.mxu1 }
 0x2be   : > { %v4116_v58 = vmax.f32 %v2939_v47, %v3259_v48  ;;  %v6540_v47 = vld [vmem:[%s6631_s24 + $0x768] sm:$0xff] }
 0x2bf   : > { %4887 = vst.msk [vmem:[%s6716_s4 + $0x10c] sm:$0xf] %vm4819_vm3, %v4758_v45  ;;  %v4371_v49 = vmax.f32 %v4115_v42, %v4243_v46  ;;  %v6476_v46 = vld [vmem:[%s6631_s24 + $0x568] sm:$0xff] }
 0x2c1   : > { %v4503_v51 = vadd.f32 %v6958_v19, %v4371_v49  ;;  %v7210_v19 = vld [vmem:[%s7561_s2] ss:$0 sm:$0xff] }
 0x2c3   : > { %v4631_v52 = vmax.f32 %v4503_v51, 0.0 }
 0x2c4   : > { %v3579_v53 = vpop.f32.mrf.mxu2  ;;  %v3899_v54 = vpop.f32.mrf.mxu3 }
 0x2c5   : > { %v4759_v57 = vpack.c.bf16 %v4631_v52, %v4631_v52  ;;  %v4244_v59 = vmax.f32 %v3579_v53, %v3899_v54  ;;  %v2942_v60 = vpop.f32.mrf.mxu0  ;;  %v3262_v61 = vpop.f32.mrf.mxu1 }
 0x2c6   : > { %v4117_v3 = vmax.f32 %v2942_v60, %v3262_v61 }
 0x2c7   : > { %4888 = vst.msk [vmem:[%s6716_s4 + $0x110] sm:$0xf] %vm4819_vm3, %v4759_v57  ;;  %v4372_v0 = vmax.f32 %v4116_v58, %v4244_v59 }
 0x2c8   : > { %6088 = vmatmul.msk.bf16.gmra.mxu0 %vm1982_vm2, %v6346_v55  ;;  %6152 = vmatmul.msk.bf16.gmra.mxu1 %vm1982_vm2, %v6410_v56 }
 0x2c9   : > { %v4504_v1 = vadd.f32 %v7210_v19, %v4372_v0  ;;  %6216 = vmatmul.msk.bf16.gmra.mxu2 %vm1982_vm2, %v6474_v62  ;;  %6280 = vmatmul.msk.bf16.gmra.mxu3 %vm1982_vm2, %v6538_v63  ;;  %v6349_v0 = vld [vmem:[%s6631_s24 + $0x170] sm:$0xff] }
 0x2cb   : > { %v4632_v2 = vmax.f32 %v4504_v1, 0.0  ;;  %v6413_v1 = vld [vmem:[%s6631_s24 + $0x370] sm:$0xff] }
 0x2cc   : > { %v3582_v4 = vpop.f32.mrf.mxu2  ;;  %v3902_v5 = vpop.f32.mrf.mxu3 }
 0x2cd   : > { %v4760_v6 = vpack.c.bf16 %v4632_v2, %v4632_v2  ;;  %v4245_v7 = vmax.f32 %v3582_v4, %v3902_v5  ;;  %v2944_v8 = vpop.f32.mrf.mxu0  ;;  %v3264_v9 = vpop.f32.mrf.mxu1 }
 0x2ce   : > { %v4118_v18 = vmax.f32 %v2944_v8, %v3264_v9  ;;  %v6541_v8 = vld [vmem:[%s6631_s24 + $0x770] sm:$0xff] }
 0x2cf   : > { %4889 = vst.msk [vmem:[%s6716_s4 + $0x114] sm:$0xf] %vm4819_vm3, %v4760_v6  ;;  %v4373_v10 = vmax.f32 %v4117_v3, %v4245_v7  ;;  %v6477_v7 = vld [vmem:[%s6631_s24 + $0x570] sm:$0xff] }
 0x2d1   : > { %v4505_v11 = vadd.f32 %v7210_v19, %v4373_v10 }
 0x2d3   : > { %v4633_v12 = vmax.f32 %v4505_v11, 0.0 }
 0x2d4   : > { %v3584_v13 = vpop.f32.mrf.mxu2  ;;  %v3904_v14 = vpop.f32.mrf.mxu3 }
 0x2d5   : > { %v4761_v17 = vpack.c.bf16 %v4633_v12, %v4633_v12  ;;  %v4246_v50 = vmax.f32 %v3584_v13, %v3904_v14  ;;  %v2947_v20 = vpop.f32.mrf.mxu0  ;;  %v3267_v21 = vpop.f32.mrf.mxu1 }
 0x2d6   : > { %v4119_v27 = vmax.f32 %v2947_v20, %v3267_v21 }
 0x2d7   : > { %4890 = vst.msk [vmem:[%s6716_s4 + $0x118] sm:$0xf] %vm4819_vm3, %v4761_v17  ;;  %v4374_v24 = vmax.f32 %v4118_v18, %v4246_v50 }
 0x2d8   : > { %6089 = vmatmul.msk.bf16.gmra.mxu0 %vm1982_vm2, %v6347_v15  ;;  %6153 = vmatmul.msk.bf16.gmra.mxu1 %vm1982_vm2, %v6411_v16 }
 0x2d9   : > { %v4506_v25 = vadd.f32 %v7210_v19, %v4374_v24  ;;  %6217 = vmatmul.msk.bf16.gmra.mxu2 %vm1982_vm2, %v6475_v22  ;;  %6281 = vmatmul.msk.bf16.gmra.mxu3 %vm1982_vm2, %v6539_v23  ;;  %v6350_v24 = vld [vmem:[%s6631_s24 + $0x178] sm:$0xff] }
 0x2db   : > { %v4634_v26 = vmax.f32 %v4506_v25, 0.0  ;;  %v6414_v25 = vld [vmem:[%s6631_s24 + $0x378] sm:$0xff] }
 0x2dc   : > { %v3587_v28 = vpop.f32.mrf.mxu2  ;;  %v3907_v29 = vpop.f32.mrf.mxu3 }
 0x2dd   : > { %v4762_v30 = vpack.c.bf16 %v4634_v26, %v4634_v26  ;;  %v4247_v31 = vmax.f32 %v3587_v28, %v3907_v29  ;;  %v2949_v32 = vpop.f32.mrf.mxu0  ;;  %v3269_v33 = vpop.f32.mrf.mxu1 }
 0x2de   : > { %v4120_v42 = vmax.f32 %v2949_v32, %v3269_v33  ;;  %v6542_v32 = vld [vmem:[%s6631_s24 + $0x778] sm:$0xff] }
 0x2df   : > { %4891 = vst.msk [vmem:[%s6716_s4 + $0x11c] sm:$0xf] %vm4819_vm3, %v4762_v30  ;;  %v4375_v34 = vmax.f32 %v4119_v27, %v4247_v31  ;;  %v6478_v31 = vld [vmem:[%s6631_s24 + $0x578] sm:$0xff] }
 0x2e1   : > { %v4507_v35 = vadd.f32 %v7210_v19, %v4375_v34 }
 0x2e3   : > { %v4635_v36 = vmax.f32 %v4507_v35, 0.0 }
 0x2e4   : > { %v3589_v37 = vpop.f32.mrf.mxu2  ;;  %v3909_v38 = vpop.f32.mrf.mxu3 }
 0x2e5   : > { %v4763_v41 = vpack.c.bf16 %v4635_v36, %v4635_v36  ;;  %v4248_v43 = vmax.f32 %v3589_v37, %v3909_v38  ;;  %v2952_v44 = vpop.f32.mrf.mxu0  ;;  %v3272_v45 = vpop.f32.mrf.mxu1 }
 0x2e6   : > { %v4121_v52 = vmax.f32 %v2952_v44, %v3272_v45 }
 0x2e7   : > { %4892 = vst.msk [vmem:[%s6716_s4 + $0x120] sm:$0xf] %vm4819_vm3, %v4763_v41  ;;  %v4376_v48 = vmax.f32 %v4120_v42, %v4248_v43 }
 0x2e8   : > { %6090 = vmatmul.msk.bf16.gmra.mxu0 %vm1982_vm2, %v6348_v39  ;;  %6154 = vmatmul.msk.bf16.gmra.mxu1 %vm1982_vm2, %v6412_v40 }
 0x2e9   : > { %v4508_v49 = vadd.f32 %v7210_v19, %v4376_v48  ;;  %6218 = vmatmul.msk.bf16.gmra.mxu2 %vm1982_vm2, %v6476_v46  ;;  %6282 = vmatmul.msk.bf16.gmra.mxu3 %vm1982_vm2, %v6540_v47  ;;  %v6351_v48 = vld [vmem:[%s6631_s24 + $0x180] sm:$0xff] }
 0x2eb   : > { %v4636_v51 = vmax.f32 %v4508_v49, 0.0  ;;  %v6415_v49 = vld [vmem:[%s6631_s24 + $0x380] sm:$0xff] }
 0x2ec   : > { %v3592_v53 = vpop.f32.mrf.mxu2  ;;  %v3912_v54 = vpop.f32.mrf.mxu3 }
 0x2ed   : > { %v4764_v55 = vpack.c.bf16 %v4636_v51, %v4636_v51  ;;  %v4249_v56 = vmax.f32 %v3592_v53, %v3912_v54  ;;  %v2954_v57 = vpop.f32.mrf.mxu0  ;;  %v3274_v58 = vpop.f32.mrf.mxu1 }
 0x2ee   : > { %v4122_v3 = vmax.f32 %v2954_v57, %v3274_v58  ;;  %v6543_v57 = vld [vmem:[%s6631_s24 + $0x780] sm:$0xff] }
 0x2ef   : > { %4893 = vst.msk [vmem:[%s6716_s4 + $0x124] sm:$0xf] %vm4819_vm3, %v4764_v55  ;;  %v4377_v59 = vmax.f32 %v4121_v52, %v4249_v56  ;;  %v6479_v56 = vld [vmem:[%s6631_s24 + $0x580] sm:$0xff] }
 0x2f1   : > { %v4509_v60 = vadd.f32 %v7210_v19, %v4377_v59 }
 0x2f3   : > { %v4637_v61 = vmax.f32 %v4509_v60, 0.0 }
 0x2f4   : > { %v3594_v62 = vpop.f32.mrf.mxu2  ;;  %v3914_v63 = vpop.f32.mrf.mxu3 }
 0x2f5   : > { %v4765_v2 = vpack.c.bf16 %v4637_v61, %v4637_v61  ;;  %v4250_v4 = vmax.f32 %v3594_v62, %v3914_v63  ;;  %v2957_v5 = vpop.f32.mrf.mxu0  ;;  %v3277_v6 = vpop.f32.mrf.mxu1 }
 0x2f6   : > { %v4123_v12 = vmax.f32 %v2957_v5, %v3277_v6 }
 0x2f7   : > { %4894 = vst.msk [vmem:[%s6716_s4 + $0x128] sm:$0xf] %vm4819_vm3, %v4765_v2  ;;  %v4378_v9 = vmax.f32 %v4122_v3, %v4250_v4 }
 0x2f8   : > { %6091 = vmatmul.msk.bf16.gmra.mxu0 %vm1982_vm2, %v6349_v0  ;;  %6155 = vmatmul.msk.bf16.gmra.mxu1 %vm1982_vm2, %v6413_v1 }
 0x2f9   : > { %v4510_v10 = vadd.f32 %v7210_v19, %v4378_v9  ;;  %6219 = vmatmul.msk.bf16.gmra.mxu2 %vm1982_vm2, %v6477_v7  ;;  %6283 = vmatmul.msk.bf16.gmra.mxu3 %vm1982_vm2, %v6541_v8  ;;  %v6352_v9 = vld [vmem:[%s6631_s24 + $0x188] sm:$0xff] }
 0x2fb   : > { %v4638_v11 = vmax.f32 %v4510_v10, 0.0  ;;  %v6416_v10 = vld [vmem:[%s6631_s24 + $0x388] sm:$0xff] }
 0x2fc   : > { %v3597_v13 = vpop.f32.mrf.mxu2  ;;  %v3917_v14 = vpop.f32.mrf.mxu3 }
 0x2fd   : > { %v4766_v15 = vpack.c.bf16 %v4638_v11, %v4638_v11  ;;  %v4251_v16 = vmax.f32 %v3597_v13, %v3917_v14  ;;  %v2959_v17 = vpop.f32.mrf.mxu0  ;;  %v3279_v18 = vpop.f32.mrf.mxu1 }
 0x2fe   : > { %v4124_v27 = vmax.f32 %v2959_v17, %v3279_v18  ;;  %v6544_v17 = vld [vmem:[%s6631_s24 + $0x788] sm:$0xff] }
 0x2ff   : > { %4895 = vst.msk [vmem:[%s6716_s4 + $0x12c] sm:$0xf] %vm4819_vm3, %v4766_v15  ;;  %v4379_v50 = vmax.f32 %v4123_v12, %v4251_v16  ;;  %v6480_v16 = vld [vmem:[%s6631_s24 + $0x588] sm:$0xff] }
 0x301   : > { %v4511_v20 = vadd.f32 %v7210_v19, %v4379_v50 }
 0x303   : > { %v4639_v21 = vmax.f32 %v4511_v20, 0.0 }
 0x304   : > { %v3599_v22 = vpop.f32.mrf.mxu2  ;;  %v3919_v23 = vpop.f32.mrf.mxu3 }
 0x305   : > { %v4767_v26 = vpack.c.bf16 %v4639_v21, %v4639_v21  ;;  %v4252_v28 = vmax.f32 %v3599_v22, %v3919_v23  ;;  %v2962_v29 = vpop.f32.mrf.mxu0  ;;  %v3282_v30 = vpop.f32.mrf.mxu1 }
 0x306   : > { %v4125_v36 = vmax.f32 %v2962_v29, %v3282_v30 }
 0x307   : > { %4896 = vst.msk [vmem:[%s6716_s4 + $0x130] sm:$0xf] %vm4819_vm3, %v4767_v26  ;;  %v4380_v33 = vmax.f32 %v4124_v27, %v4252_v28 }
 0x308   : > { %6092 = vmatmul.msk.bf16.gmra.mxu0 %vm1982_vm2, %v6350_v24  ;;  %6156 = vmatmul.msk.bf16.gmra.mxu1 %vm1982_vm2, %v6414_v25 }
 0x309   : > { %v4512_v34 = vadd.f32 %v7210_v19, %v4380_v33  ;;  %6220 = vmatmul.msk.bf16.gmra.mxu2 %vm1982_vm2, %v6478_v31  ;;  %6284 = vmatmul.msk.bf16.gmra.mxu3 %vm1982_vm2, %v6542_v32  ;;  %v6353_v33 = vld [vmem:[%s6631_s24 + $0x190] sm:$0xff] }
 0x30b   : > { %v4640_v35 = vmax.f32 %v4512_v34, 0.0  ;;  %v6417_v34 = vld [vmem:[%s6631_s24 + $0x390] sm:$0xff] }
 0x30c   : > { %v3602_v37 = vpop.f32.mrf.mxu2  ;;  %v3922_v38 = vpop.f32.mrf.mxu3 }
 0x30d   : > { %v4768_v39 = vpack.c.bf16 %v4640_v35, %v4640_v35  ;;  %v4253_v40 = vmax.f32 %v3602_v37, %v3922_v38  ;;  %v2964_v41 = vpop.f32.mrf.mxu0  ;;  %v3284_v42 = vpop.f32.mrf.mxu1 }
 0x30e   : > { %v4126_v52 = vmax.f32 %v2964_v41, %v3284_v42  ;;  %v6545_v41 = vld [vmem:[%s6631_s24 + $0x790] sm:$0xff] }
 0x30f   : > { %4897 = vst.msk [vmem:[%s6716_s4 + $0x134] sm:$0xf] %vm4819_vm3, %v4768_v39  ;;  %v4381_v43 = vmax.f32 %v4125_v36, %v4253_v40  ;;  %v6481_v40 = vld [vmem:[%s6631_s24 + $0x590] sm:$0xff] }
 0x311   : > { %v4513_v44 = vadd.f32 %v7210_v19, %v4381_v43 }
 0x313   : > { %v4641_v45 = vmax.f32 %v4513_v44, 0.0 }
 0x314   : > { %v3604_v46 = vpop.f32.mrf.mxu2  ;;  %v3924_v47 = vpop.f32.mrf.mxu3 }
 0x315   : > { %v4769_v51 = vpack.c.bf16 %v4641_v45, %v4641_v45  ;;  %v4254_v53 = vmax.f32 %v3604_v46, %v3924_v47  ;;  %v2967_v54 = vpop.f32.mrf.mxu0  ;;  %v3287_v55 = vpop.f32.mrf.mxu1 }
 0x316   : > { %v4127_v61 = vmax.f32 %v2967_v54, %v3287_v55 }
 0x317   : > { %4898 = vst.msk [vmem:[%s6716_s4 + $0x138] sm:$0xf] %vm4819_vm3, %v4769_v51  ;;  %v4382_v58 = vmax.f32 %v4126_v52, %v4254_v53 }
 0x318   : > { %6093 = vmatmul.msk.bf16.gmra.mxu0 %vm1982_vm2, %v6351_v48  ;;  %6157 = vmatmul.msk.bf16.gmra.mxu1 %vm1982_vm2, %v6415_v49 }
 0x319   : > { %v4514_v59 = vadd.f32 %v7210_v19, %v4382_v58  ;;  %6221 = vmatmul.msk.bf16.gmra.mxu2 %vm1982_vm2, %v6479_v56  ;;  %6285 = vmatmul.msk.bf16.gmra.mxu3 %vm1982_vm2, %v6543_v57  ;;  %v6354_v58 = vld [vmem:[%s6631_s24 + $0x198] sm:$0xff] }
 0x31b   : > { %v4642_v60 = vmax.f32 %v4514_v59, 0.0  ;;  %v6418_v59 = vld [vmem:[%s6631_s24 + $0x398] sm:$0xff] }
 0x31c   : > { %v3607_v62 = vpop.f32.mrf.mxu2  ;;  %v3927_v63 = vpop.f32.mrf.mxu3 }
 0x31d   : > { %v4770_v0 = vpack.c.bf16 %v4642_v60, %v4642_v60  ;;  %v4255_v1 = vmax.f32 %v3607_v62, %v3927_v63  ;;  %v2969_v2 = vpop.f32.mrf.mxu0  ;;  %v3289_v3 = vpop.f32.mrf.mxu1 }
 0x31e   : > { %v4128_v12 = vmax.f32 %v2969_v2, %v3289_v3  ;;  %v6546_v2 = vld [vmem:[%s6631_s24 + $0x798] sm:$0xff] }
 0x31f   : > { %4899 = vst.msk [vmem:[%s6716_s4 + $0x13c] sm:$0xf] %vm4819_vm3, %v4770_v0  ;;  %v4383_v4 = vmax.f32 %v4127_v61, %v4255_v1  ;;  %v6482_v1 = vld [vmem:[%s6631_s24 + $0x598] sm:$0xff] }
 0x321   : > { %v4515_v5 = vadd.f32 %v7210_v19, %v4383_v4 }
 0x323   : > { %v4643_v6 = vmax.f32 %v4515_v5, 0.0 }
 0x324   : > { %v3609_v7 = vpop.f32.mrf.mxu2  ;;  %v3929_v8 = vpop.f32.mrf.mxu3 }
 0x325   : > { %v4771_v11 = vpack.c.bf16 %v4643_v6, %v4643_v6  ;;  %v4256_v13 = vmax.f32 %v3609_v7, %v3929_v8  ;;  %v2972_v14 = vpop.f32.mrf.mxu0  ;;  %v3292_v15 = vpop.f32.mrf.mxu1 }
 0x326   : > { %v4129_v21 = vmax.f32 %v2972_v14, %v3292_v15 }
 0x327   : > { %4900 = vst.msk [vmem:[%s6716_s4 + $0x140] sm:$0xf] %vm4819_vm3, %v4771_v11  ;;  %v4384_v18 = vmax.f32 %v4128_v12, %v4256_v13 }
 0x328   : > { %6094 = vmatmul.msk.bf16.gmra.mxu0 %vm1982_vm2, %v6352_v9  ;;  %6158 = vmatmul.msk.bf16.gmra.mxu1 %vm1982_vm2, %v6416_v10 }
 0x329   : > { %v4516_v50 = vadd.f32 %v7210_v19, %v4384_v18  ;;  %6222 = vmatmul.msk.bf16.gmra.mxu2 %vm1982_vm2, %v6480_v16  ;;  %6286 = vmatmul.msk.bf16.gmra.mxu3 %vm1982_vm2, %v6544_v17  ;;  %v6355_v18 = vld [vmem:[%s6631_s24 + $0x1a0] sm:$0xff] }
 0x32b   : > { %v4644_v20 = vmax.f32 %v4516_v50, 0.0  ;;  %v6419_v50 = vld [vmem:[%s6631_s24 + $0x3a0] sm:$0xff] }
 0x32c   : > { %v3612_v22 = vpop.f32.mrf.mxu2  ;;  %v3932_v23 = vpop.f32.mrf.mxu3 }
 0x32d   : > { %v4772_v24 = vpack.c.bf16 %v4644_v20, %v4644_v20  ;;  %v4257_v25 = vmax.f32 %v3612_v22, %v3932_v23  ;;  %v2974_v26 = vpop.f32.mrf.mxu0  ;;  %v3294_v27 = vpop.f32.mrf.mxu1 }
 0x32e   : > { %v4130_v36 = vmax.f32 %v2974_v26, %v3294_v27  ;;  %v6547_v26 = vld [vmem:[%s6631_s24 + $0x7a0] sm:$0xff] }
 0x32f   : > { %4901 = vst.msk [vmem:[%s6716_s4 + $0x144] sm:$0xf] %vm4819_vm3, %v4772_v24  ;;  %v4385_v28 = vmax.f32 %v4129_v21, %v4257_v25  ;;  %v6483_v25 = vld [vmem:[%s6631_s24 + $0x5a0] sm:$0xff] }
 0x331   : > { %v4517_v29 = vadd.f32 %v7210_v19, %v4385_v28 }
 0x333   : > { %v4645_v30 = vmax.f32 %v4517_v29, 0.0 }
 0x334   : > { %v3614_v31 = vpop.f32.mrf.mxu2  ;;  %v3934_v32 = vpop.f32.mrf.mxu3 }
 0x335   : > { %v4773_v35 = vpack.c.bf16 %v4645_v30, %v4645_v30  ;;  %v4258_v37 = vmax.f32 %v3614_v31, %v3934_v32  ;;  %v2977_v38 = vpop.f32.mrf.mxu0  ;;  %v3297_v39 = vpop.f32.mrf.mxu1 }
 0x336   : > { %v4131_v45 = vmax.f32 %v2977_v38, %v3297_v39 }
 0x337   : > { %4902 = vst.msk [vmem:[%s6716_s4 + $0x148] sm:$0xf] %vm4819_vm3, %v4773_v35  ;;  %v4386_v42 = vmax.f32 %v4130_v36, %v4258_v37 }
 0x338   : > { %6095 = vmatmul.msk.bf16.gmra.mxu0 %vm1982_vm2, %v6353_v33  ;;  %6159 = vmatmul.msk.bf16.gmra.mxu1 %vm1982_vm2, %v6417_v34 }
 0x339   : > { %v4518_v43 = vadd.f32 %v7210_v19, %v4386_v42  ;;  %6223 = vmatmul.msk.bf16.gmra.mxu2 %vm1982_vm2, %v6481_v40  ;;  %6287 = vmatmul.msk.bf16.gmra.mxu3 %vm1982_vm2, %v6545_v41  ;;  %v6356_v42 = vld [vmem:[%s6631_s24 + $0x1a8] sm:$0xff] }
 0x33b   : > { %v4646_v44 = vmax.f32 %v4518_v43, 0.0  ;;  %v6420_v43 = vld [vmem:[%s6631_s24 + $0x3a8] sm:$0xff] }
 0x33c   : > { %v3617_v46 = vpop.f32.mrf.mxu2  ;;  %v3937_v47 = vpop.f32.mrf.mxu3 }
 0x33d   : > { %v4774_v48 = vpack.c.bf16 %v4646_v44, %v4646_v44  ;;  %v4259_v49 = vmax.f32 %v3617_v46, %v3937_v47  ;;  %v2979_v51 = vpop.f32.mrf.mxu0  ;;  %v3299_v52 = vpop.f32.mrf.mxu1 }
 0x33e   : > { %v4132_v61 = vmax.f32 %v2979_v51, %v3299_v52  ;;  %v6548_v51 = vld [vmem:[%s6631_s24 + $0x7a8] sm:$0xff] }
 0x33f   : > { %4903 = vst.msk [vmem:[%s6716_s4 + $0x14c] sm:$0xf] %vm4819_vm3, %v4774_v48  ;;  %v4387_v53 = vmax.f32 %v4131_v45, %v4259_v49  ;;  %v6484_v49 = vld [vmem:[%s6631_s24 + $0x5a8] sm:$0xff] }
 0x341   : > { %v4519_v54 = vadd.f32 %v7210_v19, %v4387_v53 }
 0x343   : > { %v4647_v55 = vmax.f32 %v4519_v54, 0.0 }
 0x344   : > { %v3619_v56 = vpop.f32.mrf.mxu2  ;;  %v3939_v57 = vpop.f32.mrf.mxu3 }
 0x345   : > { %v4775_v60 = vpack.c.bf16 %v4647_v55, %v4647_v55  ;;  %v4260_v62 = vmax.f32 %v3619_v56, %v3939_v57  ;;  %v2982_v63 = vpop.f32.mrf.mxu0  ;;  %v3302_v0 = vpop.f32.mrf.mxu1 }
 0x346   : > { %v4133_v6 = vmax.f32 %v2982_v63, %v3302_v0 }
 0x347   : > { %4904 = vst.msk [vmem:[%s6716_s4 + $0x150] sm:$0xf] %vm4819_vm3, %v4775_v60  ;;  %v4388_v3 = vmax.f32 %v4132_v61, %v4260_v62 }
 0x348   : > { %6096 = vmatmul.msk.bf16.gmra.mxu0 %vm1982_vm2, %v6354_v58  ;;  %6160 = vmatmul.msk.bf16.gmra.mxu1 %vm1982_vm2, %v6418_v59 }
 0x349   : > { %v4520_v4 = vadd.f32 %v7210_v19, %v4388_v3  ;;  %6224 = vmatmul.msk.bf16.gmra.mxu2 %vm1982_vm2, %v6482_v1  ;;  %6288 = vmatmul.msk.bf16.gmra.mxu3 %vm1982_vm2, %v6546_v2  ;;  %v6357_v3 = vld [vmem:[%s6631_s24 + $0x1b0] sm:$0xff] }
 0x34b   : > { %v4648_v5 = vmax.f32 %v4520_v4, 0.0  ;;  %v6421_v4 = vld [vmem:[%s6631_s24 + $0x3b0] sm:$0xff] }
 0x34c   : > { %v3622_v7 = vpop.f32.mrf.mxu2  ;;  %v3942_v8 = vpop.f32.mrf.mxu3 }
 0x34d   : > { %v4776_v9 = vpack.c.bf16 %v4648_v5, %v4648_v5  ;;  %v4261_v10 = vmax.f32 %v3622_v7, %v3942_v8  ;;  %v2984_v11 = vpop.f32.mrf.mxu0  ;;  %v3304_v12 = vpop.f32.mrf.mxu1 }
 0x34e   : > { %v4134_v21 = vmax.f32 %v2984_v11, %v3304_v12  ;;  %v6549_v11 = vld [vmem:[%s6631_s24 + $0x7b0] sm:$0xff] }
 0x34f   : > { %4905 = vst.msk [vmem:[%s6716_s4 + $0x154] sm:$0xf] %vm4819_vm3, %v4776_v9  ;;  %v4389_v13 = vmax.f32 %v4133_v6, %v4261_v10  ;;  %v6485_v10 = vld [vmem:[%s6631_s24 + $0x5b0] sm:$0xff] }
 0x351   : > { %v4521_v14 = vadd.f32 %v7210_v19, %v4389_v13 }
 0x353   : > { %v4649_v15 = vmax.f32 %v4521_v14, 0.0 }
 0x354   : > { %v3624_v16 = vpop.f32.mrf.mxu2  ;;  %v3944_v17 = vpop.f32.mrf.mxu3 }
 0x355   : > { %v4777_v20 = vpack.c.bf16 %v4649_v15, %v4649_v15  ;;  %v4262_v22 = vmax.f32 %v3624_v16, %v3944_v17  ;;  %v2987_v23 = vpop.f32.mrf.mxu0  ;;  %v3307_v24 = vpop.f32.mrf.mxu1 }
 0x356   : > { %v4135_v30 = vmax.f32 %v2987_v23, %v3307_v24 }
 0x357   : > { %4906 = vst.msk [vmem:[%s6716_s4 + $0x158] sm:$0xf] %vm4819_vm3, %v4777_v20  ;;  %v4390_v27 = vmax.f32 %v4134_v21, %v4262_v22 }
 0x358   : > { %6097 = vmatmul.msk.bf16.gmra.mxu0 %vm1982_vm2, %v6355_v18  ;;  %6161 = vmatmul.msk.bf16.gmra.mxu1 %vm1982_vm2, %v6419_v50 }
 0x359   : > { %v4522_v28 = vadd.f32 %v7210_v19, %v4390_v27  ;;  %6225 = vmatmul.msk.bf16.gmra.mxu2 %vm1982_vm2, %v6483_v25  ;;  %6289 = vmatmul.msk.bf16.gmra.mxu3 %vm1982_vm2, %v6547_v26  ;;  %v6358_v27 = vld [vmem:[%s6631_s24 + $0x1b8] sm:$0xff] }
 0x35b   : > { %v4650_v29 = vmax.f32 %v4522_v28, 0.0  ;;  %v6422_v28 = vld [vmem:[%s6631_s24 + $0x3b8] sm:$0xff] }
 0x35c   : > { %v3627_v31 = vpop.f32.mrf.mxu2  ;;  %v3947_v32 = vpop.f32.mrf.mxu3 }
 0x35d   : > { %v4778_v33 = vpack.c.bf16 %v4650_v29, %v4650_v29  ;;  %v4263_v34 = vmax.f32 %v3627_v31, %v3947_v32  ;;  %v2989_v35 = vpop.f32.mrf.mxu0  ;;  %v3309_v36 = vpop.f32.mrf.mxu1 }
 0x35e   : > { %v4136_v45 = vmax.f32 %v2989_v35, %v3309_v36  ;;  %v6550_v35 = vld [vmem:[%s6631_s24 + $0x7b8] sm:$0xff] }
 0x35f   : > { %4907 = vst.msk [vmem:[%s6716_s4 + $0x15c] sm:$0xf] %vm4819_vm3, %v4778_v33  ;;  %v4391_v37 = vmax.f32 %v4135_v30, %v4263_v34  ;;  %v6486_v34 = vld [vmem:[%s6631_s24 + $0x5b8] sm:$0xff] }
 0x361   : > { %v4523_v38 = vadd.f32 %v7210_v19, %v4391_v37 }
 0x363   : > { %v4651_v39 = vmax.f32 %v4523_v38, 0.0 }
 0x364   : > { %v3629_v40 = vpop.f32.mrf.mxu2  ;;  %v3949_v41 = vpop.f32.mrf.mxu3 }
 0x365   : > { %v4779_v44 = vpack.c.bf16 %v4651_v39, %v4651_v39  ;;  %v4264_v46 = vmax.f32 %v3629_v40, %v3949_v41  ;;  %v2992_v47 = vpop.f32.mrf.mxu0  ;;  %v3312_v48 = vpop.f32.mrf.mxu1 }
 0x366   : > { %v4137_v55 = vmax.f32 %v2992_v47, %v3312_v48 }
 0x367   : > { %4908 = vst.msk [vmem:[%s6716_s4 + $0x160] sm:$0xf] %vm4819_vm3, %v4779_v44  ;;  %v4392_v52 = vmax.f32 %v4136_v45, %v4264_v46 }
 0x368   : > { %6098 = vmatmul.msk.bf16.gmra.mxu0 %vm1982_vm2, %v6356_v42  ;;  %6162 = vmatmul.msk.bf16.gmra.mxu1 %vm1982_vm2, %v6420_v43 }
 0x369   : > { %v4524_v53 = vadd.f32 %v7210_v19, %v4392_v52  ;;  %6226 = vmatmul.msk.bf16.gmra.mxu2 %vm1982_vm2, %v6484_v49  ;;  %6290 = vmatmul.msk.bf16.gmra.mxu3 %vm1982_vm2, %v6548_v51  ;;  %v6359_v52 = vld [vmem:[%s6631_s24 + $0x1c0] sm:$0xff] }
 0x36b   : > { %v4652_v54 = vmax.f32 %v4524_v53, 0.0  ;;  %v6423_v53 = vld [vmem:[%s6631_s24 + $0x3c0] sm:$0xff] }
 0x36c   : > { %v3632_v56 = vpop.f32.mrf.mxu2  ;;  %v3952_v57 = vpop.f32.mrf.mxu3 }
 0x36d   : > { %v4780_v58 = vpack.c.bf16 %v4652_v54, %v4652_v54  ;;  %v4265_v59 = vmax.f32 %v3632_v56, %v3952_v57  ;;  %v2994_v60 = vpop.f32.mrf.mxu0  ;;  %v3314_v61 = vpop.f32.mrf.mxu1 }
 0x36e   : > { %v4138_v6 = vmax.f32 %v2994_v60, %v3314_v61  ;;  %v6551_v60 = vld [vmem:[%s6631_s24 + $0x7c0] sm:$0xff] }
 0x36f   : > { %4909 = vst.msk [vmem:[%s6716_s4 + $0x164] sm:$0xf] %vm4819_vm3, %v4780_v58  ;;  %v4393_v62 = vmax.f32 %v4137_v55, %v4265_v59  ;;  %v6487_v59 = vld [vmem:[%s6631_s24 + $0x5c0] sm:$0xff] }
 0x371   : > { %v4525_v63 = vadd.f32 %v7210_v19, %v4393_v62 }
 0x373   : > { %v4653_v0 = vmax.f32 %v4525_v63, 0.0 }
 0x374   : > { %v3634_v1 = vpop.f32.mrf.mxu2  ;;  %v3954_v2 = vpop.f32.mrf.mxu3 }
 0x375   : > { %v4781_v5 = vpack.c.bf16 %v4653_v0, %v4653_v0  ;;  %v4266_v7 = vmax.f32 %v3634_v1, %v3954_v2  ;;  %v2997_v8 = vpop.f32.mrf.mxu0  ;;  %v3317_v9 = vpop.f32.mrf.mxu1 }
 0x376   : > { %v4139_v15 = vmax.f32 %v2997_v8, %v3317_v9 }
 0x377   : > { %4910 = vst.msk [vmem:[%s6716_s4 + $0x168] sm:$0xf] %vm4819_vm3, %v4781_v5  ;;  %v4394_v12 = vmax.f32 %v4138_v6, %v4266_v7 }
 0x378   : > { %6099 = vmatmul.msk.bf16.gmra.mxu0 %vm1982_vm2, %v6357_v3  ;;  %6163 = vmatmul.msk.bf16.gmra.mxu1 %vm1982_vm2, %v6421_v4 }
 0x379   : > { %v4526_v13 = vadd.f32 %v7210_v19, %v4394_v12  ;;  %6227 = vmatmul.msk.bf16.gmra.mxu2 %vm1982_vm2, %v6485_v10  ;;  %6291 = vmatmul.msk.bf16.gmra.mxu3 %vm1982_vm2, %v6549_v11  ;;  %v6360_v12 = vld [vmem:[%s6631_s24 + $0x1c8] sm:$0xff] }
 0x37b   : > { %v4654_v14 = vmax.f32 %v4526_v13, 0.0  ;;  %v6424_v13 = vld [vmem:[%s6631_s24 + $0x3c8] sm:$0xff] }
 0x37c   : > { %v3637_v16 = vpop.f32.mrf.mxu2  ;;  %v3957_v17 = vpop.f32.mrf.mxu3 }
 0x37d   : > { %v4782_v18 = vpack.c.bf16 %v4654_v14, %v4654_v14  ;;  %v4267_v50 = vmax.f32 %v3637_v16, %v3957_v17  ;;  %v2999_v20 = vpop.f32.mrf.mxu0  ;;  %v3319_v21 = vpop.f32.mrf.mxu1 }
 0x37e   : > { %v4140_v30 = vmax.f32 %v2999_v20, %v3319_v21  ;;  %v6552_v20 = vld [vmem:[%s6631_s24 + $0x7c8] sm:$0xff] }
 0x37f   : > { %4911 = vst.msk [vmem:[%s6716_s4 + $0x16c] sm:$0xf] %vm4819_vm3, %v4782_v18  ;;  %v4395_v22 = vmax.f32 %v4139_v15, %v4267_v50  ;;  %v6488_v50 = vld [vmem:[%s6631_s24 + $0x5c8] sm:$0xff] }
 0x381   : > { %v4527_v23 = vadd.f32 %v7210_v19, %v4395_v22 }
 0x383   : > { %v4655_v24 = vmax.f32 %v4527_v23, 0.0 }
 0x384   : > { %v3639_v25 = vpop.f32.mrf.mxu2  ;;  %v3959_v26 = vpop.f32.mrf.mxu3 }
 0x385   : > { %v4783_v29 = vpack.c.bf16 %v4655_v24, %v4655_v24  ;;  %v4268_v31 = vmax.f32 %v3639_v25, %v3959_v26  ;;  %v3002_v32 = vpop.f32.mrf.mxu0  ;;  %v3322_v33 = vpop.f32.mrf.mxu1 }
 0x386   : > { %v4141_v39 = vmax.f32 %v3002_v32, %v3322_v33 }
 0x387   : > { %4912 = vst.msk [vmem:[%s6716_s4 + $0x170] sm:$0xf] %vm4819_vm3, %v4783_v29  ;;  %v4396_v36 = vmax.f32 %v4140_v30, %v4268_v31 }
 0x388   : > { %6100 = vmatmul.msk.bf16.gmra.mxu0 %vm1982_vm2, %v6358_v27  ;;  %6164 = vmatmul.msk.bf16.gmra.mxu1 %vm1982_vm2, %v6422_v28 }
 0x389   : > { %v4528_v37 = vadd.f32 %v7210_v19, %v4396_v36  ;;  %6228 = vmatmul.msk.bf16.gmra.mxu2 %vm1982_vm2, %v6486_v34  ;;  %6292 = vmatmul.msk.bf16.gmra.mxu3 %vm1982_vm2, %v6550_v35  ;;  %v6361_v36 = vld [vmem:[%s6631_s24 + $0x1d0] sm:$0xff] }
 0x38b   : > { %v4656_v38 = vmax.f32 %v4528_v37, 0.0  ;;  %v6425_v37 = vld [vmem:[%s6631_s24 + $0x3d0] sm:$0xff] }
 0x38c   : > { %v3642_v40 = vpop.f32.mrf.mxu2  ;;  %v3962_v41 = vpop.f32.mrf.mxu3 }
 0x38d   : > { %v4784_v42 = vpack.c.bf16 %v4656_v38, %v4656_v38  ;;  %v4269_v43 = vmax.f32 %v3642_v40, %v3962_v41  ;;  %v3004_v44 = vpop.f32.mrf.mxu0  ;;  %v3324_v45 = vpop.f32.mrf.mxu1 }
 0x38e   : > { %v4142_v55 = vmax.f32 %v3004_v44, %v3324_v45  ;;  %v6553_v44 = vld [vmem:[%s6631_s24 + $0x7d0] sm:$0xff] }
 0x38f   : > { %4913 = vst.msk [vmem:[%s6716_s4 + $0x174] sm:$0xf] %vm4819_vm3, %v4784_v42  ;;  %v4397_v46 = vmax.f32 %v4141_v39, %v4269_v43  ;;  %v6489_v43 = vld [vmem:[%s6631_s24 + $0x5d0] sm:$0xff] }
 0x391   : > { %v4529_v47 = vadd.f32 %v7210_v19, %v4397_v46 }
 0x393   : > { %v4657_v48 = vmax.f32 %v4529_v47, 0.0 }
 0x394   : > { %v3644_v49 = vpop.f32.mrf.mxu2  ;;  %v3964_v51 = vpop.f32.mrf.mxu3 }
 0x395   : > { %v4785_v54 = vpack.c.bf16 %v4657_v48, %v4657_v48  ;;  %v4270_v56 = vmax.f32 %v3644_v49, %v3964_v51  ;;  %v3007_v57 = vpop.f32.mrf.mxu0  ;;  %v3327_v58 = vpop.f32.mrf.mxu1 }
 0x396   : > { %v4143_v0 = vmax.f32 %v3007_v57, %v3327_v58 }
 0x397   : > { %4914 = vst.msk [vmem:[%s6716_s4 + $0x178] sm:$0xf] %vm4819_vm3, %v4785_v54  ;;  %v4398_v61 = vmax.f32 %v4142_v55, %v4270_v56 }
 0x398   : > { %6101 = vmatmul.msk.bf16.gmra.mxu0 %vm1982_vm2, %v6359_v52  ;;  %6165 = vmatmul.msk.bf16.gmra.mxu1 %vm1982_vm2, %v6423_v53 }
 0x399   : > { %v4530_v62 = vadd.f32 %v7210_v19, %v4398_v61  ;;  %6229 = vmatmul.msk.bf16.gmra.mxu2 %vm1982_vm2, %v6487_v59  ;;  %6293 = vmatmul.msk.bf16.gmra.mxu3 %vm1982_vm2, %v6551_v60  ;;  %v6362_v61 = vld [vmem:[%s6631_s24 + $0x1d8] sm:$0xff] }
 0x39b   : > { %v4658_v63 = vmax.f32 %v4530_v62, 0.0  ;;  %v6426_v62 = vld [vmem:[%s6631_s24 + $0x3d8] sm:$0xff] }
 0x39c   : > { %v3647_v1 = vpop.f32.mrf.mxu2  ;;  %v3967_v2 = vpop.f32.mrf.mxu3 }
 0x39d   : > { %v4786_v3 = vpack.c.bf16 %v4658_v63, %v4658_v63  ;;  %v4271_v4 = vmax.f32 %v3647_v1, %v3967_v2  ;;  %v3009_v5 = vpop.f32.mrf.mxu0  ;;  %v3329_v6 = vpop.f32.mrf.mxu1 }
 0x39e   : > { %v4144_v15 = vmax.f32 %v3009_v5, %v3329_v6  ;;  %v6554_v5 = vld [vmem:[%s6631_s24 + $0x7d8] sm:$0xff] }
 0x39f   : > { %4915 = vst.msk [vmem:[%s6716_s4 + $0x17c] sm:$0xf] %vm4819_vm3, %v4786_v3  ;;  %v4399_v7 = vmax.f32 %v4143_v0, %v4271_v4  ;;  %v6490_v4 = vld [vmem:[%s6631_s24 + $0x5d8] sm:$0xff] }
 0x3a1   : > { %v4531_v8 = vadd.f32 %v7210_v19, %v4399_v7 }
 0x3a3   : > { %v4659_v9 = vmax.f32 %v4531_v8, 0.0 }
 0x3a4   : > { %v3649_v10 = vpop.f32.mrf.mxu2  ;;  %v3969_v11 = vpop.f32.mrf.mxu3 }
 0x3a5   : > { %v4787_v14 = vpack.c.bf16 %v4659_v9, %v4659_v9  ;;  %v4272_v16 = vmax.f32 %v3649_v10, %v3969_v11  ;;  %v3012_v17 = vpop.f32.mrf.mxu0  ;;  %v3332_v18 = vpop.f32.mrf.mxu1 }
 0x3a6   : > { %v4145_v24 = vmax.f32 %v3012_v17, %v3332_v18 }
 0x3a7   : > { %4916 = vst.msk [vmem:[%s6716_s4 + $0x180] sm:$0xf] %vm4819_vm3, %v4787_v14  ;;  %v4400_v21 = vmax.f32 %v4144_v15, %v4272_v16 }
 0x3a8   : > { %6102 = vmatmul.msk.bf16.gmra.mxu0 %vm1982_vm2, %v6360_v12  ;;  %6166 = vmatmul.msk.bf16.gmra.mxu1 %vm1982_vm2, %v6424_v13 }
 0x3a9   : > { %v4532_v22 = vadd.f32 %v7210_v19, %v4400_v21  ;;  %6230 = vmatmul.msk.bf16.gmra.mxu2 %vm1982_vm2, %v6488_v50  ;;  %6294 = vmatmul.msk.bf16.gmra.mxu3 %vm1982_vm2, %v6552_v20  ;;  %v6363_v21 = vld [vmem:[%s6631_s24 + $0x1e0] sm:$0xff] }
 0x3ab   : > { %v4660_v23 = vmax.f32 %v4532_v22, 0.0  ;;  %v6427_v22 = vld [vmem:[%s6631_s24 + $0x3e0] sm:$0xff] }
 0x3ac   : > { %v3652_v25 = vpop.f32.mrf.mxu2  ;;  %v3972_v26 = vpop.f32.mrf.mxu3 }
 0x3ad   : > { %v4788_v27 = vpack.c.bf16 %v4660_v23, %v4660_v23  ;;  %v4273_v28 = vmax.f32 %v3652_v25, %v3972_v26  ;;  %v3014_v29 = vpop.f32.mrf.mxu0  ;;  %v3334_v30 = vpop.f32.mrf.mxu1 }
 0x3ae   : > { %v4146_v39 = vmax.f32 %v3014_v29, %v3334_v30  ;;  %v6555_v29 = vld [vmem:[%s6631_s24 + $0x7e0] sm:$0xff] }
 0x3af   : > { %4917 = vst.msk [vmem:[%s6716_s4 + $0x184] sm:$0xf] %vm4819_vm3, %v4788_v27  ;;  %v4401_v31 = vmax.f32 %v4145_v24, %v4273_v28  ;;  %v6491_v28 = vld [vmem:[%s6631_s24 + $0x5e0] sm:$0xff] }
 0x3b1   : > { %v4533_v32 = vadd.f32 %v7210_v19, %v4401_v31 }
 0x3b3   : > { %v4661_v33 = vmax.f32 %v4533_v32, 0.0 }
 0x3b4   : > { %v3654_v34 = vpop.f32.mrf.mxu2  ;;  %v3974_v35 = vpop.f32.mrf.mxu3 }
 0x3b5   : > { %v4789_v38 = vpack.c.bf16 %v4661_v33, %v4661_v33  ;;  %v4274_v40 = vmax.f32 %v3654_v34, %v3974_v35  ;;  %v3017_v41 = vpop.f32.mrf.mxu0  ;;  %v3337_v42 = vpop.f32.mrf.mxu1 }
 0x3b6   : > { %v4147_v48 = vmax.f32 %v3017_v41, %v3337_v42 }
 0x3b7   : > { %4918 = vst.msk [vmem:[%s6716_s4 + $0x188] sm:$0xf] %vm4819_vm3, %v4789_v38  ;;  %v4402_v45 = vmax.f32 %v4146_v39, %v4274_v40  ;;  %v7458_v40 = vld [vmem:[%s7561_s2] ss:$0 sm:$0xff] }
 0x3b8   : > { %6103 = vmatmul.msk.bf16.gmra.mxu0 %vm1982_vm2, %v6361_v36  ;;  %6167 = vmatmul.msk.bf16.gmra.mxu1 %vm1982_vm2, %v6425_v37 }
 0x3b9   : > { %v4534_v46 = vadd.f32 %v7210_v19, %v4402_v45  ;;  %6231 = vmatmul.msk.bf16.gmra.mxu2 %vm1982_vm2, %v6489_v43  ;;  %6295 = vmatmul.msk.bf16.gmra.mxu3 %vm1982_vm2, %v6553_v44  ;;  %v6364_v45 = vld [vmem:[%s6631_s24 + $0x1e8] sm:$0xff] }
 0x3bb   : > { %v4662_v47 = vmax.f32 %v4534_v46, 0.0  ;;  %v6428_v46 = vld [vmem:[%s6631_s24 + $0x3e8] sm:$0xff] }
 0x3bc   : > { %v3657_v49 = vpop.f32.mrf.mxu2  ;;  %v3977_v51 = vpop.f32.mrf.mxu3 }
 0x3bd   : > { %v4790_v52 = vpack.c.bf16 %v4662_v47, %v4662_v47  ;;  %v4275_v53 = vmax.f32 %v3657_v49, %v3977_v51  ;;  %v3019_v54 = vpop.f32.mrf.mxu0  ;;  %v3339_v55 = vpop.f32.mrf.mxu1 }
 0x3be   : > { %v4148_v0 = vmax.f32 %v3019_v54, %v3339_v55  ;;  %v6556_v54 = vld [vmem:[%s6631_s24 + $0x7e8] sm:$0xff] }
 0x3bf   : > { %4919 = vst.msk [vmem:[%s6716_s4 + $0x18c] sm:$0xf] %vm4819_vm3, %v4790_v52  ;;  %v4403_v56 = vmax.f32 %v4147_v48, %v4275_v53  ;;  %v6492_v53 = vld [vmem:[%s6631_s24 + $0x5e8] sm:$0xff] }
 0x3c1   : > { %v4535_v57 = vadd.f32 %v7210_v19, %v4403_v56 }
 0x3c3   : > { %v4663_v58 = vmax.f32 %v4535_v57, 0.0 }
 0x3c4   : > { %v3659_v59 = vpop.f32.mrf.mxu2  ;;  %v3979_v60 = vpop.f32.mrf.mxu3 }
 0x3c5   : > { %v4791_v63 = vpack.c.bf16 %v4663_v58, %v4663_v58  ;;  %v4276_v1 = vmax.f32 %v3659_v59, %v3979_v60  ;;  %v3022_v2 = vpop.f32.mrf.mxu0  ;;  %v3342_v3 = vpop.f32.mrf.mxu1 }
 0x3c6   : > { %v4149_v9 = vmax.f32 %v3022_v2, %v3342_v3 }
 0x3c7   : > { %4920 = vst.msk [vmem:[%s6716_s4 + $0x190] sm:$0xf] %vm4819_vm3, %v4791_v63  ;;  %v4404_v6 = vmax.f32 %v4148_v0, %v4276_v1 }
 0x3c8   : > { %6104 = vmatmul.msk.bf16.gmra.mxu0 %vm1982_vm2, %v6362_v61  ;;  %6168 = vmatmul.msk.bf16.gmra.mxu1 %vm1982_vm2, %v6426_v62 }
 0x3c9   : > { %v4536_v7 = vadd.f32 %v7210_v19, %v4404_v6  ;;  %6232 = vmatmul.msk.bf16.gmra.mxu2 %vm1982_vm2, %v6490_v4  ;;  %6296 = vmatmul.msk.bf16.gmra.mxu3 %vm1982_vm2, %v6554_v5  ;;  %v6365_v6 = vld [vmem:[%s6631_s24 + $0x1f0] sm:$0xff] }
 0x3cb   : > { %v4664_v8 = vmax.f32 %v4536_v7, 0.0  ;;  %v6429_v7 = vld [vmem:[%s6631_s24 + $0x3f0] sm:$0xff] }
 0x3cc   : > { %v3662_v10 = vpop.f32.mrf.mxu2  ;;  %v3982_v11 = vpop.f32.mrf.mxu3 }
 0x3cd   : > { %v4792_v12 = vpack.c.bf16 %v4664_v8, %v4664_v8  ;;  %v4277_v13 = vmax.f32 %v3662_v10, %v3982_v11  ;;  %v3024_v14 = vpop.f32.mrf.mxu0  ;;  %v3344_v15 = vpop.f32.mrf.mxu1 }
 0x3ce   : > { %v4150_v24 = vmax.f32 %v3024_v14, %v3344_v15  ;;  %v6557_v14 = vld [vmem:[%s6631_s24 + $0x7f0] sm:$0xff] }
 0x3cf   : > { %4921 = vst.msk [vmem:[%s6716_s4 + $0x194] sm:$0xf] %vm4819_vm3, %v4792_v12  ;;  %v4405_v16 = vmax.f32 %v4149_v9, %v4277_v13  ;;  %v6493_v13 = vld [vmem:[%s6631_s24 + $0x5f0] sm:$0xff] }
 0x3d1   : > { %v4537_v17 = vadd.f32 %v7210_v19, %v4405_v16 }
 0x3d3   : > { %v4665_v18 = vmax.f32 %v4537_v17, 0.0 }
 0x3d4   : > { %v3664_v50 = vpop.f32.mrf.mxu2  ;;  %v3984_v20 = vpop.f32.mrf.mxu3 }
 0x3d5   : > { %v4793_v23 = vpack.c.bf16 %v4665_v18, %v4665_v18  ;;  %v4278_v25 = vmax.f32 %v3664_v50, %v3984_v20  ;;  %v3027_v26 = vpop.f32.mrf.mxu0  ;;  %v3347_v27 = vpop.f32.mrf.mxu1 }
 0x3d6   : > { %v4151_v33 = vmax.f32 %v3027_v26, %v3347_v27 }
 0x3d7   : > { %4922 = vst.msk [vmem:[%s6716_s4 + $0x198] sm:$0xf] %vm4819_vm3, %v4793_v23  ;;  %v4406_v30 = vmax.f32 %v4150_v24, %v4278_v25 }
 0x3d8   : > { %6105 = vmatmul.msk.bf16.gmra.mxu0 %vm1982_vm2, %v6363_v21  ;;  %6169 = vmatmul.msk.bf16.gmra.mxu1 %vm1982_vm2, %v6427_v22 }
 0x3d9   : > { %v4538_v31 = vadd.f32 %v7210_v19, %v4406_v30  ;;  %6233 = vmatmul.msk.bf16.gmra.mxu2 %vm1982_vm2, %v6491_v28  ;;  %6297 = vmatmul.msk.bf16.gmra.mxu3 %vm1982_vm2, %v6555_v29  ;;  %v6366_v30 = vld [vmem:[%s6631_s24 + $0x1f8] sm:$0xff] }
 0x3db   : > { %v4666_v32 = vmax.f32 %v4538_v31, 0.0  ;;  %v6430_v31 = vld [vmem:[%s6631_s24 + $0x3f8] sm:$0xff] }
 0x3dc   : > { %v3667_v34 = vpop.f32.mrf.mxu2  ;;  %v3987_v35 = vpop.f32.mrf.mxu3 }
 0x3dd   : > { %v4794_v36 = vpack.c.bf16 %v4666_v32, %v4666_v32  ;;  %v4279_v37 = vmax.f32 %v3667_v34, %v3987_v35  ;;  %v3029_v38 = vpop.f32.mrf.mxu0  ;;  %v3349_v39 = vpop.f32.mrf.mxu1 }
 0x3de   : > { %v4152_v48 = vmax.f32 %v3029_v38, %v3349_v39  ;;  %v6558_v38 = vld [vmem:[%s6631_s24 + $0x7f8] sm:$0xff] }
 0x3df   : > { %4923 = vst.msk [vmem:[%s6716_s4 + $0x19c] sm:$0xf] %vm4819_vm3, %v4794_v36  ;;  %v4407_v19 = vmax.f32 %v4151_v33, %v4279_v37  ;;  %v6494_v37 = vld [vmem:[%s6631_s24 + $0x5f8] sm:$0xff] }
 0x3e1   : > { %v4539_v41 = vadd.f32 %v7458_v40, %v4407_v19 }
 0x3e3   : > { %v4667_v42 = vmax.f32 %v4539_v41, 0.0 }
 0x3e4   : > { %v3669_v43 = vpop.f32.mrf.mxu2  ;;  %v3989_v44 = vpop.f32.mrf.mxu3 }
 0x3e5   : > { %v4795_v47 = vpack.c.bf16 %v4667_v42, %v4667_v42  ;;  %v4280_v49 = vmax.f32 %v3669_v43, %v3989_v44  ;;  %v3032_v51 = vpop.f32.mrf.mxu0  ;;  %v3352_v52 = vpop.f32.mrf.mxu1 }
 0x3e6   : > { %v4153_v58 = vmax.f32 %v3032_v51, %v3352_v52 }
 0x3e7   : > { %4924 = vst.msk [vmem:[%s6716_s4 + $0x1a0] sm:$0xf] %vm4819_vm3, %v4795_v47  ;;  %v4408_v55 = vmax.f32 %v4152_v48, %v4280_v49 }
 0x3e8   : > { %6106 = vmatmul.msk.bf16.gmra.mxu0 %vm1982_vm2, %v6364_v45  ;;  %6170 = vmatmul.msk.bf16.gmra.mxu1 %vm1982_vm2, %v6428_v46 }
 0x3e9   : > { %v4540_v56 = vadd.f32 %v7458_v40, %v4408_v55  ;;  %6234 = vmatmul.msk.bf16.gmra.mxu2 %vm1982_vm2, %v6492_v53  ;;  %6298 = vmatmul.msk.bf16.gmra.mxu3 %vm1982_vm2, %v6556_v54 }
 0x3eb   : > { %v4668_v57 = vmax.f32 %v4540_v56, 0.0 }
 0x3ec   : > { %v3672_v59 = vpop.f32.mrf.mxu2  ;;  %v3992_v60 = vpop.f32.mrf.mxu3 }
 0x3ed   : > { %v4796_v61 = vpack.c.bf16 %v4668_v57, %v4668_v57  ;;  %v4281_v62 = vmax.f32 %v3672_v59, %v3992_v60  ;;  %v3034_v63 = vpop.f32.mrf.mxu0  ;;  %v3354_v0 = vpop.f32.mrf.mxu1 }
 0x3ee   : > { %v4154_v9 = vmax.f32 %v3034_v63, %v3354_v0 }
 0x3ef   : > { %4925 = vst.msk [vmem:[%s6716_s4 + $0x1a4] sm:$0xf] %vm4819_vm3, %v4796_v61  ;;  %v4409_v1 = vmax.f32 %v4153_v58, %v4281_v62 }
 0x3f1   : > { %v4541_v2 = vadd.f32 %v7458_v40, %v4409_v1 }
 0x3f3   : > { %v4669_v3 = vmax.f32 %v4541_v2, 0.0 }
 0x3f4   : > { %v3674_v4 = vpop.f32.mrf.mxu2  ;;  %v3994_v5 = vpop.f32.mrf.mxu3 }
 0x3f5   : > { %v4797_v8 = vpack.c.bf16 %v4669_v3, %v4669_v3  ;;  %v4282_v10 = vmax.f32 %v3674_v4, %v3994_v5  ;;  %v3037_v11 = vpop.f32.mrf.mxu0  ;;  %v3357_v12 = vpop.f32.mrf.mxu1 }
 0x3f6   : > { %v4155_v18 = vmax.f32 %v3037_v11, %v3357_v12 }
 0x3f7   : > { %4926 = vst.msk [vmem:[%s6716_s4 + $0x1a8] sm:$0xf] %vm4819_vm3, %v4797_v8  ;;  %v4410_v15 = vmax.f32 %v4154_v9, %v4282_v10 }
 0x3f8   : > { %6107 = vmatmul.msk.bf16.gmra.mxu0 %vm1982_vm2, %v6365_v6  ;;  %6171 = vmatmul.msk.bf16.gmra.mxu1 %vm1982_vm2, %v6429_v7 }
 0x3f9   : > { %v4542_v16 = vadd.f32 %v7458_v40, %v4410_v15  ;;  %6235 = vmatmul.msk.bf16.gmra.mxu2 %vm1982_vm2, %v6493_v13  ;;  %6299 = vmatmul.msk.bf16.gmra.mxu3 %vm1982_vm2, %v6557_v14 }
 0x3fb   : > { %v4670_v17 = vmax.f32 %v4542_v16, 0.0 }
 0x3fc   : > { %v3677_v50 = vpop.f32.mrf.mxu2  ;;  %v3997_v20 = vpop.f32.mrf.mxu3 }
 0x3fd   : > { %v4798_v21 = vpack.c.bf16 %v4670_v17, %v4670_v17  ;;  %v4283_v22 = vmax.f32 %v3677_v50, %v3997_v20  ;;  %v3039_v23 = vpop.f32.mrf.mxu0  ;;  %v3359_v24 = vpop.f32.mrf.mxu1 }
 0x3fe   : > { %v4156_v33 = vmax.f32 %v3039_v23, %v3359_v24 }
 0x3ff   : > { %4927 = vst.msk [vmem:[%s6716_s4 + $0x1ac] sm:$0xf] %vm4819_vm3, %v4798_v21  ;;  %v4411_v25 = vmax.f32 %v4155_v18, %v4283_v22 }
 0x401   : > { %v4543_v26 = vadd.f32 %v7458_v40, %v4411_v25 }
 0x403   : > { %v4671_v27 = vmax.f32 %v4543_v26, 0.0 }
 0x404   : > { %v3679_v28 = vpop.f32.mrf.mxu2  ;;  %v3999_v29 = vpop.f32.mrf.mxu3 }
 0x405   : > { %v4799_v32 = vpack.c.bf16 %v4671_v27, %v4671_v27  ;;  %v4284_v34 = vmax.f32 %v3679_v28, %v3999_v29  ;;  %v3042_v35 = vpop.f32.mrf.mxu0  ;;  %v3362_v36 = vpop.f32.mrf.mxu1 }
 0x406   : > { %v4157_v42 = vmax.f32 %v3042_v35, %v3362_v36 }
 0x407   : > { %4928 = vst.msk [vmem:[%s6716_s4 + $0x1b0] sm:$0xf] %vm4819_vm3, %v4799_v32  ;;  %v4412_v39 = vmax.f32 %v4156_v33, %v4284_v34 }
 0x408   : > { %6108 = vmatmul.msk.bf16.gmra.mxu0 %vm1982_vm2, %v6366_v30  ;;  %6172 = vmatmul.msk.bf16.gmra.mxu1 %vm1982_vm2, %v6430_v31 }
 0x409   : > { %v4544_v19 = vadd.f32 %v7458_v40, %v4412_v39  ;;  %6236 = vmatmul.msk.bf16.gmra.mxu2 %vm1982_vm2, %v6494_v37  ;;  %6300 = vmatmul.msk.bf16.gmra.mxu3 %vm1982_vm2, %v6558_v38 }
 0x40b   : > { %v4672_v41 = vmax.f32 %v4544_v19, 0.0 }
 0x40c   : > { %v3682_v43 = vpop.f32.mrf.mxu2  ;;  %v4002_v44 = vpop.f32.mrf.mxu3 }
 0x40d   : > { %v4800_v45 = vpack.c.bf16 %v4672_v41, %v4672_v41  ;;  %v4285_v46 = vmax.f32 %v3682_v43, %v4002_v44  ;;  %v3044_v47 = vpop.f32.mrf.mxu0  ;;  %v3364_v48 = vpop.f32.mrf.mxu1 }
 0x40e   : > { %v4158_v56 = vmax.f32 %v3044_v47, %v3364_v48 }
 0x40f   : > { %4929 = vst.msk [vmem:[%s6716_s4 + $0x1b4] sm:$0xf] %vm4819_vm3, %v4800_v45  ;;  %v4413_v49 = vmax.f32 %v4157_v42, %v4285_v46 }
 0x411   : > { %v4545_v51 = vadd.f32 %v7458_v40, %v4413_v49 }
 0x413   : > { %v4673_v52 = vmax.f32 %v4545_v51, 0.0 }
 0x414   : > { %v3684_v53 = vpop.f32.mrf.mxu2  ;;  %v4004_v54 = vpop.f32.mrf.mxu3 }
 0x415   : > { %v4801_v55 = vpack.c.bf16 %v4673_v52, %v4673_v52  ;;  %v4286_v57 = vmax.f32 %v3684_v53, %v4004_v54  ;;  %v3047_v58 = vpop.f32.mrf.mxu0  ;;  %v3367_v59 = vpop.f32.mrf.mxu1 }
 0x416   : > { %v4159_v63 = vmax.f32 %v3047_v58, %v3367_v59 }
 0x417   : > { %4930 = vst.msk [vmem:[%s6716_s4 + $0x1b8] sm:$0xf] %vm4819_vm3, %v4801_v55  ;;  %v4414_v60 = vmax.f32 %v4158_v56, %v4286_v57 }
 0x419   : > { %v4546_v61 = vadd.f32 %v7458_v40, %v4414_v60 }
 0x41b   : > { %v4674_v62 = vmax.f32 %v4546_v61, 0.0 }
 0x41c   : > { %v3687_v0 = vpop.f32.mrf.mxu2  ;;  %v4007_v1 = vpop.f32.mrf.mxu3 }
 0x41d   : > { %v4802_v2 = vpack.c.bf16 %v4674_v62, %v4674_v62  ;;  %v4287_v3 = vmax.f32 %v3687_v0, %v4007_v1  ;;  %v3049_v4 = vpop.f32.mrf.mxu0  ;;  %v3369_v5 = vpop.f32.mrf.mxu1 }
 0x41e   : > { %v4160_v12 = vmax.f32 %v3049_v4, %v3369_v5 }
 0x41f   : > { %4931 = vst.msk [vmem:[%s6716_s4 + $0x1bc] sm:$0xf] %vm4819_vm3, %v4802_v2  ;;  %v4415_v6 = vmax.f32 %v4159_v63, %v4287_v3 }
 0x421   : > { %v4547_v7 = vadd.f32 %v7458_v40, %v4415_v6 }
 0x423   : > { %v4675_v8 = vmax.f32 %v4547_v7, 0.0 }
 0x424   : > { %v3689_v9 = vpop.f32.mrf.mxu2  ;;  %v4009_v10 = vpop.f32.mrf.mxu3 }
 0x425   : > { %v4803_v11 = vpack.c.bf16 %v4675_v8, %v4675_v8  ;;  %v4288_v13 = vmax.f32 %v3689_v9, %v4009_v10  ;;  %v3052_v14 = vpop.f32.mrf.mxu0  ;;  %v3372_v15 = vpop.f32.mrf.mxu1 }
 0x426   : > { %v4161_v50 = vmax.f32 %v3052_v14, %v3372_v15 }
 0x427   : > { %4932 = vst.msk [vmem:[%s6716_s4 + $0x1c0] sm:$0xf] %vm4819_vm3, %v4803_v11  ;;  %v4416_v16 = vmax.f32 %v4160_v12, %v4288_v13 }
 0x429   : > { %v4548_v17 = vadd.f32 %v7458_v40, %v4416_v16 }
 0x42b   : > { %v4676_v18 = vmax.f32 %v4548_v17, 0.0 }
 0x42c   : > { %v3692_v20 = vpop.f32.mrf.mxu2  ;;  %v4012_v21 = vpop.f32.mrf.mxu3 }
 0x42d   : > { %v4804_v22 = vpack.c.bf16 %v4676_v18, %v4676_v18  ;;  %v4289_v23 = vmax.f32 %v3692_v20, %v4012_v21  ;;  %v3054_v24 = vpop.f32.mrf.mxu0  ;;  %v3374_v25 = vpop.f32.mrf.mxu1 }
 0x42e   : > { %v4162_v32 = vmax.f32 %v3054_v24, %v3374_v25 }
 0x42f   : > { %4933 = vst.msk [vmem:[%s6716_s4 + $0x1c4] sm:$0xf] %vm4819_vm3, %v4804_v22  ;;  %v4417_v26 = vmax.f32 %v4161_v50, %v4289_v23 }
 0x431   : > { %v4549_v27 = vadd.f32 %v7458_v40, %v4417_v26 }
 0x433   : > { %v4677_v28 = vmax.f32 %v4549_v27, 0.0 }
 0x434   : > { %v3694_v29 = vpop.f32.mrf.mxu2  ;;  %v4014_v30 = vpop.f32.mrf.mxu3 }
 0x435   : > { %v4805_v31 = vpack.c.bf16 %v4677_v28, %v4677_v28  ;;  %v4290_v33 = vmax.f32 %v3694_v29, %v4014_v30  ;;  %v3057_v34 = vpop.f32.mrf.mxu0  ;;  %v3377_v35 = vpop.f32.mrf.mxu1 }
 0x436   : > { %v4163_v39 = vmax.f32 %v3057_v34, %v3377_v35 }
 0x437   : > { %4934 = vst.msk [vmem:[%s6716_s4 + $0x1c8] sm:$0xf] %vm4819_vm3, %v4805_v31  ;;  %v4418_v36 = vmax.f32 %v4162_v32, %v4290_v33 }
 0x439   : > { %v4550_v37 = vadd.f32 %v7458_v40, %v4418_v36 }
 0x43b   : > { %v4678_v38 = vmax.f32 %v4550_v37, 0.0 }
 0x43c   : > { %v3697_v19 = vpop.f32.mrf.mxu2  ;;  %v4017_v41 = vpop.f32.mrf.mxu3 }
 0x43d   : > { %v4806_v42 = vpack.c.bf16 %v4678_v38, %v4678_v38  ;;  %v4291_v43 = vmax.f32 %v3697_v19, %v4017_v41  ;;  %v3059_v44 = vpop.f32.mrf.mxu0  ;;  %v3379_v45 = vpop.f32.mrf.mxu1 }
 0x43e   : > { %v4164_v53 = vmax.f32 %v3059_v44, %v3379_v45 }
 0x43f   : > { %4935 = vst.msk [vmem:[%s6716_s4 + $0x1cc] sm:$0xf] %vm4819_vm3, %v4806_v42  ;;  %v4419_v46 = vmax.f32 %v4163_v39, %v4291_v43 }
 0x441   : > { %v4551_v47 = vadd.f32 %v7458_v40, %v4419_v46 }
 0x443   : > { %v4679_v48 = vmax.f32 %v4551_v47, 0.0 }
 0x444   : > { %v3699_v49 = vpop.f32.mrf.mxu2  ;;  %v4019_v51 = vpop.f32.mrf.mxu3 }
 0x445   : > { %v4807_v52 = vpack.c.bf16 %v4679_v48, %v4679_v48  ;;  %v4292_v54 = vmax.f32 %v3699_v49, %v4019_v51  ;;  %v3062_v55 = vpop.f32.mrf.mxu0  ;;  %v3382_v56 = vpop.f32.mrf.mxu1 }
 0x446   : > { %v4165_v60 = vmax.f32 %v3062_v55, %v3382_v56 }
 0x447   : > { %4936 = vst.msk [vmem:[%s6716_s4 + $0x1d0] sm:$0xf] %vm4819_vm3, %v4807_v52  ;;  %v4420_v57 = vmax.f32 %v4164_v53, %v4292_v54 }
 0x449   : > { %v4552_v58 = vadd.f32 %v7458_v40, %v4420_v57 }
 0x44b   : > { %v4680_v59 = vmax.f32 %v4552_v58, 0.0 }
 0x44c   : > { %v3702_v61 = vpop.f32.mrf.mxu2  ;;  %v4022_v62 = vpop.f32.mrf.mxu3 }
 0x44d   : > { %v4808_v63 = vpack.c.bf16 %v4680_v59, %v4680_v59  ;;  %v4293_v0 = vmax.f32 %v3702_v61, %v4022_v62  ;;  %v3064_v1 = vpop.f32.mrf.mxu0  ;;  %v3384_v2 = vpop.f32.mrf.mxu1 }
 0x44e   : > { %v4166_v9 = vmax.f32 %v3064_v1, %v3384_v2 }
 0x44f   : > { %4937 = vst.msk [vmem:[%s6716_s4 + $0x1d4] sm:$0xf] %vm4819_vm3, %v4808_v63  ;;  %v4421_v3 = vmax.f32 %v4165_v60, %v4293_v0 }
 0x451   : > { %v4553_v4 = vadd.f32 %v7458_v40, %v4421_v3 }
 0x453   : > { %v4681_v5 = vmax.f32 %v4553_v4, 0.0 }
 0x454   : > { %v3704_v6 = vpop.f32.mrf.mxu2  ;;  %v4024_v7 = vpop.f32.mrf.mxu3 }
 0x455   : > { %v4809_v8 = vpack.c.bf16 %v4681_v5, %v4681_v5  ;;  %v4294_v10 = vmax.f32 %v3704_v6, %v4024_v7  ;;  %v3067_v11 = vpop.f32.mrf.mxu0  ;;  %v3387_v12 = vpop.f32.mrf.mxu1 }
 0x456   : > { %v4167_v16 = vmax.f32 %v3067_v11, %v3387_v12 }
 0x457   : > { %4938 = vst.msk [vmem:[%s6716_s4 + $0x1d8] sm:$0xf] %vm4819_vm3, %v4809_v8  ;;  %v4422_v13 = vmax.f32 %v4166_v9, %v4294_v10 }
 0x459   : > { %v4554_v14 = vadd.f32 %v7458_v40, %v4422_v13 }
 0x45b   : > { %v4682_v15 = vmax.f32 %v4554_v14, 0.0 }
 0x45c   : > { %v3707_v17 = vpop.f32.mrf.mxu2  ;;  %v4027_v18 = vpop.f32.mrf.mxu3 }
 0x45d   : > { %v4810_v50 = vpack.c.bf16 %v4682_v15, %v4682_v15  ;;  %v4295_v20 = vmax.f32 %v3707_v17, %v4027_v18  ;;  %v3069_v21 = vpop.f32.mrf.mxu0  ;;  %v3389_v22 = vpop.f32.mrf.mxu1 }
 0x45e   : > { %v4168_v29 = vmax.f32 %v3069_v21, %v3389_v22 }
 0x45f   : > { %4939 = vst.msk [vmem:[%s6716_s4 + $0x1dc] sm:$0xf] %vm4819_vm3, %v4810_v50  ;;  %v4423_v23 = vmax.f32 %v4167_v16, %v4295_v20 }
 0x461   : > { %v4555_v24 = vadd.f32 %v7458_v40, %v4423_v23 }
 0x463   : > { %v4683_v25 = vmax.f32 %v4555_v24, 0.0 }
 0x464   : > { %v3709_v26 = vpop.f32.mrf.mxu2  ;;  %v4029_v27 = vpop.f32.mrf.mxu3 }
 0x465   : > { %v4811_v28 = vpack.c.bf16 %v4683_v25, %v4683_v25  ;;  %v4296_v30 = vmax.f32 %v3709_v26, %v4029_v27  ;;  %v3072_v31 = vpop.f32.mrf.mxu0  ;;  %v3392_v32 = vpop.f32.mrf.mxu1 }
 0x466   : > { %v4169_v36 = vmax.f32 %v3072_v31, %v3392_v32 }
 0x467   : > { %4940 = vst.msk [vmem:[%s6716_s4 + $0x1e0] sm:$0xf] %vm4819_vm3, %v4811_v28  ;;  %v4424_v33 = vmax.f32 %v4168_v29, %v4296_v30 }
 0x469   : > { %v4556_v34 = vadd.f32 %v7458_v40, %v4424_v33 }
 0x46b   : > { %v4684_v35 = vmax.f32 %v4556_v34, 0.0 }
 0x46c   : > { %v3712_v37 = vpop.f32.mrf.mxu2  ;;  %v4032_v38 = vpop.f32.mrf.mxu3 }
 0x46d   : > { %v4812_v39 = vpack.c.bf16 %v4684_v35, %v4684_v35  ;;  %v4297_v19 = vmax.f32 %v3712_v37, %v4032_v38  ;;  %v3074_v41 = vpop.f32.mrf.mxu0  ;;  %v3394_v42 = vpop.f32.mrf.mxu1 }
 0x46e   : > { %v4170_v49 = vmax.f32 %v3074_v41, %v3394_v42 }
 0x46f   : > { %4941 = vst.msk [vmem:[%s6716_s4 + $0x1e4] sm:$0xf] %vm4819_vm3, %v4812_v39  ;;  %v4425_v43 = vmax.f32 %v4169_v36, %v4297_v19 }
 0x471   : > { %v4557_v44 = vadd.f32 %v7458_v40, %v4425_v43 }
 0x473   : > { %v4685_v45 = vmax.f32 %v4557_v44, 0.0 }
 0x474   : > { %v3714_v46 = vpop.f32.mrf.mxu2  ;;  %v4034_v47 = vpop.f32.mrf.mxu3 }
 0x475   : > { %v4813_v48 = vpack.c.bf16 %v4685_v45, %v4685_v45  ;;  %v4298_v51 = vmax.f32 %v3714_v46, %v4034_v47  ;;  %v3077_v52 = vpop.f32.mrf.mxu0  ;;  %v3397_v53 = vpop.f32.mrf.mxu1 }
 0x476   : > { %v4171_v57 = vmax.f32 %v3077_v52, %v3397_v53 }
 0x477   : > { %4942 = vst.msk [vmem:[%s6716_s4 + $0x1e8] sm:$0xf] %vm4819_vm3, %v4813_v48  ;;  %v4426_v54 = vmax.f32 %v4170_v49, %v4298_v51 }
 0x479   : > { %v4558_v55 = vadd.f32 %v7458_v40, %v4426_v54 }
 0x47b   : > { %v4686_v56 = vmax.f32 %v4558_v55, 0.0 }
 0x47c   : > { %v3717_v58 = vpop.f32.mrf.mxu2  ;;  %v4037_v59 = vpop.f32.mrf.mxu3 }
 0x47d   : > { %v4814_v60 = vpack.c.bf16 %v4686_v56, %v4686_v56  ;;  %v4299_v61 = vmax.f32 %v3717_v58, %v4037_v59  ;;  %v3079_v62 = vpop.f32.mrf.mxu0  ;;  %v3399_v63 = vpop.f32.mrf.mxu1 }
 0x47e   : > { %v4172_v6 = vmax.f32 %v3079_v62, %v3399_v63 }
 0x47f   : > { %4943 = vst.msk [vmem:[%s6716_s4 + $0x1ec] sm:$0xf] %vm4819_vm3, %v4814_v60  ;;  %v4427_v0 = vmax.f32 %v4171_v57, %v4299_v61 }
 0x481   : > { %v4559_v1 = vadd.f32 %v7458_v40, %v4427_v0 }
 0x483   : > { %v4687_v2 = vmax.f32 %v4559_v1, 0.0 }
 0x484   : > { %v3719_v3 = vpop.f32.mrf.mxu2  ;;  %v4039_v4 = vpop.f32.mrf.mxu3 }
 0x485   : > { %v4815_v5 = vpack.c.bf16 %v4687_v2, %v4687_v2  ;;  %v4300_v7 = vmax.f32 %v3719_v3, %v4039_v4  ;;  %v3082_v9 = vpop.f32.mrf.mxu0  ;;  %v3402_v10 = vpop.f32.mrf.mxu1 }
 0x486   : > { %v4173_v13 = vmax.f32 %v3082_v9, %v3402_v10 }
 0x487   : > { %4944 = vst.msk [vmem:[%s6716_s4 + $0x1f0] sm:$0xf] %vm4819_vm3, %v4815_v5  ;;  %v4428_v8 = vmax.f32 %v4172_v6, %v4300_v7 }
 0x489   : > { %v4560_v11 = vadd.f32 %v7458_v40, %v4428_v8 }
 0x48b   : > { %v4688_v12 = vmax.f32 %v4560_v11, 0.0 }
 0x48c   : > { %v3722_v14 = vpop.f32.mrf.mxu2  ;;  %v4042_v15 = vpop.f32.mrf.mxu3 }
 0x48d   : > { %v4816_v16 = vpack.c.bf16 %v4688_v12, %v4688_v12  ;;  %v4301_v17 = vmax.f32 %v3722_v14, %v4042_v15  ;;  %v3084_v20 = vpop.f32.mrf.mxu0  ;;  %v3404_v21 = vpop.f32.mrf.mxu1 }
 0x48e   : > { %v4174_v26 = vmax.f32 %v3084_v20, %v3404_v21 }
 0x48f   : > { %4945 = vst.msk [vmem:[%s6716_s4 + $0x1f4] sm:$0xf] %vm4819_vm3, %v4816_v16  ;;  %v4429_v18 = vmax.f32 %v4173_v13, %v4301_v17 }
 0x491   : > { %v4561_v50 = vadd.f32 %v7458_v40, %v4429_v18 }
 0x493   : > { %v4689_v22 = vmax.f32 %v4561_v50, 0.0 }
 0x494   : > { %v3724_v23 = vpop.f32.mrf.mxu2  ;;  %v4044_v24 = vpop.f32.mrf.mxu3 }
 0x495   : > { %v4817_v25 = vpack.c.bf16 %v4689_v22, %v4689_v22  ;;  %v4302_v27 = vmax.f32 %v3724_v23, %v4044_v24 }
 0x497   : > { %4946 = vst.msk [vmem:[%s6716_s4 + $0x1f8] sm:$0xf] %vm4819_vm3, %v4817_v25  ;;  %v4430_v28 = vmax.f32 %v4174_v26, %v4302_v27 }
 0x499   : > { %v4562_v29 = vadd.f32 %v7458_v40, %v4430_v28 }
 0x49b   : > { %v4690_v30 = vmax.f32 %v4562_v29, 0.0 }
 0x49d   : > { %v4818_v31 = vpack.c.bf16 %v4690_v30, %v4690_v30 }
 0x49f   : > { %4947 = vst.msk [vmem:[%s6716_s4 + $0x1fc] sm:$0xf] %vm4819_vm3, %v4818_v31 }
 0x4a0 PF: > { %s13_s12 = sadd.s32 1, %s6586_s12  }
 0x4a1   : > { %p10_p5 = scmp.ge.s32.totalorder %s13_s12, 10  }
 0x4a3   :  { %12 = sbr.rel (!%p10_p5) target bundleno = 1 (0x1), region = 62 }

// kernel: verifier_cnn_forward.5
= control target key start
LH: loop header
LB: loop body
LE: loop exit
PB: predicated region body
PF: predicated region fallthrough
CT: control target
= control target key end

     0   :  { %s6644_s12 = smov 0   ;;  %s7600_s0 = inlined_call_operand.vmem [shape: bf16[8192,72], index: 0, kind: input, shape index: {}]   ;;  %s7601_s1 = inlined_call_operand.vmem [shape: bf16[72,16], index: 1, kind: input, shape index: {}]   ;;  %s7602_s2 = inlined_call_operand.vmem [shape: f32[1,16], index: 2, kind: input, shape index: {}]   ;;  %s7603_s3 = inlined_call_operand.vmem [shape: bf16[2048,16], index: 3, kind: output, shape index: {}]  }
   0x1 LB: > { %s5022_s13 = sadd.s32 4294967295, %s6622_s12   ;;  %p5026_p0 = scmp.ge.s32.totalorder %s6622_s12, 1  ;;  %s6622_s12 = sphi %s6644_s12, %s13_s12  }
   0x2   : > { %p138_p1 = scmp.lt.s32.totalorder %s6622_s12, 3 }
   0x4   : > { %p139_p2 = pnand %p5026_p0, %p138_p1 }
   0x5   : > { %s5027_s16 = sshll.u32 (!%p139_p2), %s5022_s13, 9  ;;  %s5029_s29 = sshll.u32 (!%p139_p2), %s5022_s13, 7 }
   0x6   : > { %142 = sbr.rel (%p139_p2) target bundleno = 1196 (0x4ac), region = 32  ;;  %p163_p3 = scmp.lt.s32.totalorder (!%p139_p2), %s5027_s16, 1023 }
   0x7   : > { %p169_p4 = scmp.lt.s32.totalorder (!%p139_p2), %s5029_s29, 255 }
   0xb   : > { %v695_v0 = vld [vmem:[%s7601_s1 + $0x20] sm:$0xf]  ;;  %vm2772_vm0 = vcmask 1043456   ;;  %v6588_v4 = vld [vmem:[%s7601_s1 + $0x18] sm:$0xff]  ;;  %v6587_v5 = vld [vmem:[%s7601_s1 + $0x10] sm:$0xff]  ;;  %s7605_s16 = smov (!%p163_p3, %s5027_s16), 1023 }
   0xc   : > { %v1993_v1 = vunpack.c.l.b16 %v695_v0  ;;  %v6586_v6 = vld [vmem:[%s7601_s1 + $0x8] sm:$0xff]  ;;  %s5028_s23 = sshll.u32 %s7605_s16, 2  ;;  %v6585_v7 = vld [vmem:[%s7601_s1] sm:$0xff]  ;;  %vm2003_vm1 = vcmask 588800   ;;  %s7607_s29 = smov (!%p169_p4, %s5029_s29), 255  ;;  %vm4837_vm2 = vcmask 125952  }
   0xd   : > { %s6672_s28 = scalar_lea.vmem %s7600_s0, %s5028_s23  ;;  %v6751_v50 = vld [vmem:[%s7602_s2] ss:$0 sm:$0xff]  ;;  %s5030_s5 = sshll.u32 %s7607_s29, 2 }
   0xe   : > { %v1998_v2 = vpack.c.b16 %v1993_v1, %v1993_v1  ;;  %v6329_v8 = vld [vmem:[%s6672_s28] sm:$0xff]  ;;  %v6330_v12 = vld [vmem:[%s6672_s28 + $0x8] sm:$0xff]  ;;  %v6331_v16 = vld [vmem:[%s6672_s28 + $0x10] sm:$0xff]  ;;  %s6757_s8 = scalar_lea.vmem %s7603_s3, %s5030_s5 }
   0xf   : > { %v6393_v9 = vld [vmem:[%s6672_s28 + $0x200] sm:$0xff]  ;;  %v6394_v13 = vld [vmem:[%s6672_s28 + $0x208] sm:$0xff]  ;;  %v6395_v17 = vld [vmem:[%s6672_s28 + $0x210] sm:$0xff] }
  0x10   : > { %v2774_v3 = vsel %vm2772_vm0, %v1998_v2, 0  ;;  %v6457_v10 = vld [vmem:[%s6672_s28 + $0x400] sm:$0xff]  ;;  %v6458_v14 = vld [vmem:[%s6672_s28 + $0x408] sm:$0xff]  ;;  %v6459_v18 = vld [vmem:[%s6672_s28 + $0x410] sm:$0xff] }
  0x11   : > { %2779 = vmatpush.bf16.msra.mxu0 %v2774_v3  ;;  %6589 = vmatpush.bf16.msra.mxu1 %v2774_v3  ;;  %v6521_v11 = vld [vmem:[%s6672_s28 + $0x600] sm:$0xff]  ;;  %v6522_v15 = vld [vmem:[%s6672_s28 + $0x608] sm:$0xff]  ;;  %v6523_v19 = vld [vmem:[%s6672_s28 + $0x610] sm:$0xff] }
  0x12   : > { %6590 = vmatpush.bf16.msra.mxu2 %v2774_v3  ;;  %6591 = vmatpush.bf16.msra.mxu3 %v2774_v3  ;;  %v6332_v20 = vld [vmem:[%s6672_s28 + $0x18] sm:$0xff]  ;;  %v6333_v24 = vld [vmem:[%s6672_s28 + $0x20] sm:$0xff]  ;;  %v6334_v28 = vld [vmem:[%s6672_s28 + $0x28] sm:$0xff] }
  0x13   : > { %v6396_v21 = vld [vmem:[%s6672_s28 + $0x218] sm:$0xff]  ;;  %v6397_v25 = vld [vmem:[%s6672_s28 + $0x220] sm:$0xff]  ;;  %v6398_v29 = vld [vmem:[%s6672_s28 + $0x228] sm:$0xff] }
  0x14   : > { %v6460_v22 = vld [vmem:[%s6672_s28 + $0x418] sm:$0xff]  ;;  %v6461_v26 = vld [vmem:[%s6672_s28 + $0x420] sm:$0xff]  ;;  %v6462_v30 = vld [vmem:[%s6672_s28 + $0x428] sm:$0xff] }
  0x15   : > { %2780 = vmatpush.bf16.msra.mxu0 %v6588_v4  ;;  %6592 = vmatpush.bf16.msra.mxu1 %v6588_v4  ;;  %v6524_v23 = vld [vmem:[%s6672_s28 + $0x618] sm:$0xff]  ;;  %v6525_v27 = vld [vmem:[%s6672_s28 + $0x620] sm:$0xff]  ;;  %v6526_v31 = vld [vmem:[%s6672_s28 + $0x628] sm:$0xff] }
  0x16   : > { %6593 = vmatpush.bf16.msra.mxu2 %v6588_v4  ;;  %6594 = vmatpush.bf16.msra.mxu3 %v6588_v4  ;;  %v6335_v32 = vld [vmem:[%s6672_s28 + $0x30] sm:$0xff]  ;;  %v6336_v36 = vld [vmem:[%s6672_s28 + $0x38] sm:$0xff]  ;;  %v6337_v40 = vld [vmem:[%s6672_s28 + $0x40] sm:$0xff] }
  0x17   : > { %v6399_v33 = vld [vmem:[%s6672_s28 + $0x230] sm:$0xff]  ;;  %v6400_v37 = vld [vmem:[%s6672_s28 + $0x238] sm:$0xff]  ;;  %v6401_v41 = vld [vmem:[%s6672_s28 + $0x240] sm:$0xff] }
  0x18   : > { %v6463_v34 = vld [vmem:[%s6672_s28 + $0x430] sm:$0xff]  ;;  %v6464_v38 = vld [vmem:[%s6672_s28 + $0x438] sm:$0xff]  ;;  %v6465_v44 = vld [vmem:[%s6672_s28 + $0x440] sm:$0xff] }
  0x19   : > { %2781 = vmatpush.bf16.msra.mxu0 %v6587_v5  ;;  %6595 = vmatpush.bf16.msra.mxu1 %v6587_v5  ;;  %v6527_v35 = vld [vmem:[%s6672_s28 + $0x630] sm:$0xff]  ;;  %v6528_v39 = vld [vmem:[%s6672_s28 + $0x638] sm:$0xff]  ;;  %v6529_v45 = vld [vmem:[%s6672_s28 + $0x640] sm:$0xff] }
  0x1a   : > { %6596 = vmatpush.bf16.msra.mxu2 %v6587_v5  ;;  %6597 = vmatpush.bf16.msra.mxu3 %v6587_v5  ;;  %v6338_v58 = vld [vmem:[%s6672_s28 + $0x48] sm:$0xff] }
  0x1b   : > { %v6402_v59 = vld [vmem:[%s6672_s28 + $0x248] sm:$0xff] }
  0x1c   : > { %v6466_v1 = vld [vmem:[%s6672_s28 + $0x448] sm:$0xff] }
  0x1d   : > { %2782 = vmatpush.bf16.msra.mxu0 %v6586_v6  ;;  %6598 = vmatpush.bf16.msra.mxu1 %v6586_v6  ;;  %v6530_v2 = vld [vmem:[%s6672_s28 + $0x648] sm:$0xff] }
  0x1e   : > { %6599 = vmatpush.bf16.msra.mxu2 %v6586_v6  ;;  %6600 = vmatpush.bf16.msra.mxu3 %v6586_v6 }
  0x21   : > { %2783 = vmatpush.bf16.msra.mxu0 %v6585_v7  ;;  %6601 = vmatpush.bf16.msra.mxu1 %v6585_v7 }
  0x22   : > { %6602 = vmatpush.bf16.msra.mxu2 %v6585_v7  ;;  %6603 = vmatpush.bf16.msra.mxu3 %v6585_v7 }
  0x24   : > { %6071 = vmatmul.msk.bf16.vlgmr.msra.gmra.mxu0 %vm2003_vm1, %v6329_v8  ;;  %6135 = vmatmul.msk.bf16.vlgmr.msra.gmra.mxu1 %vm2003_vm1, %v6393_v9 }
  0x25   : > { %6199 = vmatmul.msk.bf16.vlgmr.msra.gmra.mxu2 %vm2003_vm1, %v6457_v10  ;;  %6263 = vmatmul.msk.bf16.vlgmr.msra.gmra.mxu3 %vm2003_vm1, %v6521_v11 }
  0x34   : > { %6072 = vmatmul.msk.bf16.gmra.mxu0 %vm2003_vm1, %v6330_v12  ;;  %6136 = vmatmul.msk.bf16.gmra.mxu1 %vm2003_vm1, %v6394_v13 }
  0x35   : > { %6200 = vmatmul.msk.bf16.gmra.mxu2 %vm2003_vm1, %v6458_v14  ;;  %6264 = vmatmul.msk.bf16.gmra.mxu3 %vm2003_vm1, %v6522_v15 }
  0x44   : > { %6073 = vmatmul.msk.bf16.gmra.mxu0 %vm2003_vm1, %v6331_v16  ;;  %6137 = vmatmul.msk.bf16.gmra.mxu1 %vm2003_vm1, %v6395_v17 }
  0x45   : > { %6201 = vmatmul.msk.bf16.gmra.mxu2 %vm2003_vm1, %v6459_v18  ;;  %6265 = vmatmul.msk.bf16.gmra.mxu3 %vm2003_vm1, %v6523_v19  ;;  %v6339_v18 = vld [vmem:[%s6672_s28 + $0x50] sm:$0xff] }
  0x46   : > { %v6403_v19 = vld [vmem:[%s6672_s28 + $0x250] sm:$0xff] }
  0x54   : > { %6074 = vmatmul.msk.bf16.gmra.mxu0 %vm2003_vm1, %v6332_v20  ;;  %6138 = vmatmul.msk.bf16.gmra.mxu1 %vm2003_vm1, %v6396_v21 }
  0x55   : > { %6202 = vmatmul.msk.bf16.gmra.mxu2 %vm2003_vm1, %v6460_v22  ;;  %6266 = vmatmul.msk.bf16.gmra.mxu3 %vm2003_vm1, %v6524_v23 }
  0x64   : > { %6075 = vmatmul.msk.bf16.gmra.mxu0 %vm2003_vm1, %v6333_v24  ;;  %6139 = vmatmul.msk.bf16.gmra.mxu1 %vm2003_vm1, %v6397_v25  ;;  %v6467_v25 = vld [vmem:[%s6672_s28 + $0x450] sm:$0xff] }
  0x65   : > { %6203 = vmatmul.msk.bf16.gmra.mxu2 %vm2003_vm1, %v6461_v26  ;;  %6267 = vmatmul.msk.bf16.gmra.mxu3 %vm2003_vm1, %v6525_v27  ;;  %v6531_v26 = vld [vmem:[%s6672_s28 + $0x650] sm:$0xff] }
  0x74   : > { %6076 = vmatmul.msk.bf16.gmra.mxu0 %vm2003_vm1, %v6334_v28  ;;  %6140 = vmatmul.msk.bf16.gmra.mxu1 %vm2003_vm1, %v6398_v29 }
  0x75   : > { %6204 = vmatmul.msk.bf16.gmra.mxu2 %vm2003_vm1, %v6462_v30  ;;  %6268 = vmatmul.msk.bf16.gmra.mxu3 %vm2003_vm1, %v6526_v31 }
  0x84   : > { %6077 = vmatmul.msk.bf16.gmra.mxu0 %vm2003_vm1, %v6335_v32  ;;  %6141 = vmatmul.msk.bf16.gmra.mxu1 %vm2003_vm1, %v6399_v33 }
  0x85   : > { %6205 = vmatmul.msk.bf16.gmra.mxu2 %vm2003_vm1, %v6463_v34  ;;  %6269 = vmatmul.msk.bf16.gmra.mxu3 %vm2003_vm1, %v6527_v35 }
  0x94   : > { %6078 = vmatmul.msk.bf16.gmra.mxu0 %vm2003_vm1, %v6336_v36  ;;  %6142 = vmatmul.msk.bf16.gmra.mxu1 %vm2003_vm1, %v6400_v37 }
  0x95   : > { %6206 = vmatmul.msk.bf16.gmra.mxu2 %vm2003_vm1, %v6464_v38  ;;  %6270 = vmatmul.msk.bf16.gmra.mxu3 %vm2003_vm1, %v6528_v39 }
  0xa1   : > { %v2785_v42 = vpop.f32.mrf.mxu0  ;;  %v3105_v43 = vpop.f32.mrf.mxu1 }
  0xa2   : > { %v4065_v46 = vmax.f32 %v2785_v42, %v3105_v43  ;;  %v6340_v42 = vld [vmem:[%s6672_s28 + $0x58] sm:$0xff] }
  0xa3   : > { %v6404_v43 = vld [vmem:[%s6672_s28 + $0x258] sm:$0xff] }
  0xa4   : > { %6079 = vmatmul.msk.bf16.gmra.mxu0 %vm2003_vm1, %v6337_v40  ;;  %6143 = vmatmul.msk.bf16.gmra.mxu1 %vm2003_vm1, %v6401_v41 }
  0xa5   : > { %6207 = vmatmul.msk.bf16.gmra.mxu2 %vm2003_vm1, %v6465_v44  ;;  %6271 = vmatmul.msk.bf16.gmra.mxu3 %vm2003_vm1, %v6529_v45 }
  0xa8   : > { %v3425_v47 = vpop.f32.mrf.mxu2  ;;  %v3745_v48 = vpop.f32.mrf.mxu3 }
  0xa9   : > { %v4193_v49 = vmax.f32 %v3425_v47, %v3745_v48  ;;  %v2787_v51 = vpop.f32.mrf.mxu0  ;;  %v3107_v52 = vpop.f32.mrf.mxu1 }
  0xaa   : > { %v4066_v61 = vmax.f32 %v2787_v51, %v3107_v52  ;;  %v6532_v51 = vld [vmem:[%s6672_s28 + $0x658] sm:$0xff] }
  0xab   : > { %v4321_v53 = vmax.f32 %v4065_v46, %v4193_v49  ;;  %v6468_v49 = vld [vmem:[%s6672_s28 + $0x458] sm:$0xff] }
  0xad   : > { %v4453_v54 = vadd.f32 %v6751_v50, %v4321_v53 }
  0xaf   : > { %v4581_v55 = vmax.f32 %v4453_v54, 0.0 }
  0xb0   : > { %v3427_v56 = vpop.f32.mrf.mxu2  ;;  %v3747_v57 = vpop.f32.mrf.mxu3 }
  0xb1   : > { %v4709_v60 = vpack.c.bf16 %v4581_v55, %v4581_v55  ;;  %v4194_v62 = vmax.f32 %v3427_v56, %v3747_v57  ;;  %v2790_v63 = vpop.f32.mrf.mxu0  ;;  %v3110_v0 = vpop.f32.mrf.mxu1 }
  0xb2   : > { %v4067_v6 = vmax.f32 %v2790_v63, %v3110_v0 }
  0xb3   : > { %4838 = vst.msk [vmem:[%s6757_s8] sm:$0xf] %vm4837_vm2, %v4709_v60  ;;  %v4322_v3 = vmax.f32 %v4066_v61, %v4194_v62 }
  0xb4   : > { %6080 = vmatmul.msk.bf16.gmra.mxu0 %vm2003_vm1, %v6338_v58  ;;  %6144 = vmatmul.msk.bf16.gmra.mxu1 %vm2003_vm1, %v6402_v59 }
  0xb5   : > { %v4454_v4 = vadd.f32 %v6751_v50, %v4322_v3  ;;  %6208 = vmatmul.msk.bf16.gmra.mxu2 %vm2003_vm1, %v6466_v1  ;;  %6272 = vmatmul.msk.bf16.gmra.mxu3 %vm2003_vm1, %v6530_v2  ;;  %v6341_v3 = vld [vmem:[%s6672_s28 + $0x60] sm:$0xff] }
  0xb7   : > { %v4582_v5 = vmax.f32 %v4454_v4, 0.0  ;;  %v6405_v4 = vld [vmem:[%s6672_s28 + $0x260] sm:$0xff] }
  0xb8   : > { %v3430_v7 = vpop.f32.mrf.mxu2  ;;  %v3750_v8 = vpop.f32.mrf.mxu3 }
  0xb9   : > { %v4710_v9 = vpack.c.bf16 %v4582_v5, %v4582_v5  ;;  %v4195_v10 = vmax.f32 %v3430_v7, %v3750_v8  ;;  %v2792_v11 = vpop.f32.mrf.mxu0  ;;  %v3112_v12 = vpop.f32.mrf.mxu1 }
  0xba   : > { %v4068_v21 = vmax.f32 %v2792_v11, %v3112_v12  ;;  %v6533_v11 = vld [vmem:[%s6672_s28 + $0x660] sm:$0xff] }
  0xbb   : > { %4839 = vst.msk [vmem:[%s6757_s8 + $0x4] sm:$0xf] %vm4837_vm2, %v4710_v9  ;;  %v4323_v13 = vmax.f32 %v4067_v6, %v4195_v10  ;;  %v6469_v10 = vld [vmem:[%s6672_s28 + $0x460] sm:$0xff] }
  0xbd   : > { %v4455_v14 = vadd.f32 %v6751_v50, %v4323_v13 }
  0xbf   : > { %v4583_v15 = vmax.f32 %v4455_v14, 0.0 }
  0xc0   : > { %v3432_v16 = vpop.f32.mrf.mxu2  ;;  %v3752_v17 = vpop.f32.mrf.mxu3 }
  0xc1   : > { %v4711_v20 = vpack.c.bf16 %v4583_v15, %v4583_v15  ;;  %v4196_v22 = vmax.f32 %v3432_v16, %v3752_v17  ;;  %v2795_v23 = vpop.f32.mrf.mxu0  ;;  %v3115_v24 = vpop.f32.mrf.mxu1 }
  0xc2   : > { %v4069_v30 = vmax.f32 %v2795_v23, %v3115_v24 }
  0xc3   : > { %4840 = vst.msk [vmem:[%s6757_s8 + $0x8] sm:$0xf] %vm4837_vm2, %v4711_v20  ;;  %v4324_v27 = vmax.f32 %v4068_v21, %v4196_v22 }
  0xc4   : > { %6081 = vmatmul.msk.bf16.gmra.mxu0 %vm2003_vm1, %v6339_v18  ;;  %6145 = vmatmul.msk.bf16.gmra.mxu1 %vm2003_vm1, %v6403_v19 }
  0xc5   : > { %v4456_v28 = vadd.f32 %v6751_v50, %v4324_v27  ;;  %6209 = vmatmul.msk.bf16.gmra.mxu2 %vm2003_vm1, %v6467_v25  ;;  %6273 = vmatmul.msk.bf16.gmra.mxu3 %vm2003_vm1, %v6531_v26  ;;  %v6342_v27 = vld [vmem:[%s6672_s28 + $0x68] sm:$0xff] }
  0xc7   : > { %v4584_v29 = vmax.f32 %v4456_v28, 0.0  ;;  %v6406_v28 = vld [vmem:[%s6672_s28 + $0x268] sm:$0xff] }
  0xc8   : > { %v3435_v31 = vpop.f32.mrf.mxu2  ;;  %v3755_v32 = vpop.f32.mrf.mxu3 }
  0xc9   : > { %v4712_v33 = vpack.c.bf16 %v4584_v29, %v4584_v29  ;;  %v4197_v34 = vmax.f32 %v3435_v31, %v3755_v32  ;;  %v2797_v35 = vpop.f32.mrf.mxu0  ;;  %v3117_v36 = vpop.f32.mrf.mxu1 }
  0xca   : > { %v4070_v45 = vmax.f32 %v2797_v35, %v3117_v36  ;;  %v6534_v35 = vld [vmem:[%s6672_s28 + $0x668] sm:$0xff] }
  0xcb   : > { %4841 = vst.msk [vmem:[%s6757_s8 + $0xc] sm:$0xf] %vm4837_vm2, %v4712_v33  ;;  %v4325_v37 = vmax.f32 %v4069_v30, %v4197_v34  ;;  %v6470_v34 = vld [vmem:[%s6672_s28 + $0x468] sm:$0xff] }
  0xcd   : > { %v4457_v38 = vadd.f32 %v6751_v50, %v4325_v37 }
  0xcf   : > { %v4585_v39 = vmax.f32 %v4457_v38, 0.0 }
  0xd0   : > { %v3437_v40 = vpop.f32.mrf.mxu2  ;;  %v3757_v41 = vpop.f32.mrf.mxu3 }
  0xd1   : > { %v4713_v44 = vpack.c.bf16 %v4585_v39, %v4585_v39  ;;  %v4198_v46 = vmax.f32 %v3437_v40, %v3757_v41  ;;  %v2800_v47 = vpop.f32.mrf.mxu0  ;;  %v3120_v48 = vpop.f32.mrf.mxu1 }
  0xd2   : > { %v4071_v55 = vmax.f32 %v2800_v47, %v3120_v48 }
  0xd3   : > { %4842 = vst.msk [vmem:[%s6757_s8 + $0x10] sm:$0xf] %vm4837_vm2, %v4713_v44  ;;  %v4326_v52 = vmax.f32 %v4070_v45, %v4198_v46 }
  0xd4   : > { %6082 = vmatmul.msk.bf16.gmra.mxu0 %vm2003_vm1, %v6340_v42  ;;  %6146 = vmatmul.msk.bf16.gmra.mxu1 %vm2003_vm1, %v6404_v43 }
  0xd5   : > { %v4458_v53 = vadd.f32 %v6751_v50, %v4326_v52  ;;  %6210 = vmatmul.msk.bf16.gmra.mxu2 %vm2003_vm1, %v6468_v49  ;;  %6274 = vmatmul.msk.bf16.gmra.mxu3 %vm2003_vm1, %v6532_v51  ;;  %v6343_v52 = vld [vmem:[%s6672_s28 + $0x70] sm:$0xff] }
  0xd7   : > { %v4586_v54 = vmax.f32 %v4458_v53, 0.0  ;;  %v6407_v53 = vld [vmem:[%s6672_s28 + $0x270] sm:$0xff] }
  0xd8   : > { %v3440_v56 = vpop.f32.mrf.mxu2  ;;  %v3760_v57 = vpop.f32.mrf.mxu3 }
  0xd9   : > { %v4714_v58 = vpack.c.bf16 %v4586_v54, %v4586_v54  ;;  %v4199_v59 = vmax.f32 %v3440_v56, %v3760_v57  ;;  %v2802_v60 = vpop.f32.mrf.mxu0  ;;  %v3122_v61 = vpop.f32.mrf.mxu1 }
  0xda   : > { %v4072_v6 = vmax.f32 %v2802_v60, %v3122_v61  ;;  %v6535_v60 = vld [vmem:[%s6672_s28 + $0x670] sm:$0xff] }
  0xdb   : > { %4843 = vst.msk [vmem:[%s6757_s8 + $0x14] sm:$0xf] %vm4837_vm2, %v4714_v58  ;;  %v4327_v62 = vmax.f32 %v4071_v55, %v4199_v59  ;;  %v6471_v59 = vld [vmem:[%s6672_s28 + $0x470] sm:$0xff] }
  0xdd   : > { %v4459_v63 = vadd.f32 %v6751_v50, %v4327_v62 }
  0xdf   : > { %v4587_v0 = vmax.f32 %v4459_v63, 0.0 }
  0xe0   : > { %v3442_v1 = vpop.f32.mrf.mxu2  ;;  %v3762_v2 = vpop.f32.mrf.mxu3 }
  0xe1   : > { %v4715_v5 = vpack.c.bf16 %v4587_v0, %v4587_v0  ;;  %v4200_v7 = vmax.f32 %v3442_v1, %v3762_v2  ;;  %v2805_v8 = vpop.f32.mrf.mxu0  ;;  %v3125_v9 = vpop.f32.mrf.mxu1 }
  0xe2   : > { %v4073_v15 = vmax.f32 %v2805_v8, %v3125_v9 }
  0xe3   : > { %4844 = vst.msk [vmem:[%s6757_s8 + $0x18] sm:$0xf] %vm4837_vm2, %v4715_v5  ;;  %v4328_v12 = vmax.f32 %v4072_v6, %v4200_v7 }
  0xe4   : > { %6083 = vmatmul.msk.bf16.gmra.mxu0 %vm2003_vm1, %v6341_v3  ;;  %6147 = vmatmul.msk.bf16.gmra.mxu1 %vm2003_vm1, %v6405_v4 }
  0xe5   : > { %v4460_v13 = vadd.f32 %v6751_v50, %v4328_v12  ;;  %6211 = vmatmul.msk.bf16.gmra.mxu2 %vm2003_vm1, %v6469_v10  ;;  %6275 = vmatmul.msk.bf16.gmra.mxu3 %vm2003_vm1, %v6533_v11  ;;  %v6344_v12 = vld [vmem:[%s6672_s28 + $0x78] sm:$0xff] }
  0xe7   : > { %v4588_v14 = vmax.f32 %v4460_v13, 0.0  ;;  %v6408_v13 = vld [vmem:[%s6672_s28 + $0x278] sm:$0xff] }
  0xe8   : > { %v3445_v16 = vpop.f32.mrf.mxu2  ;;  %v3765_v17 = vpop.f32.mrf.mxu3 }
  0xe9   : > { %v4716_v18 = vpack.c.bf16 %v4588_v14, %v4588_v14  ;;  %v4201_v19 = vmax.f32 %v3445_v16, %v3765_v17  ;;  %v2807_v20 = vpop.f32.mrf.mxu0  ;;  %v3127_v21 = vpop.f32.mrf.mxu1 }
  0xea   : > { %v4074_v30 = vmax.f32 %v2807_v20, %v3127_v21  ;;  %v6536_v20 = vld [vmem:[%s6672_s28 + $0x678] sm:$0xff] }
  0xeb   : > { %4845 = vst.msk [vmem:[%s6757_s8 + $0x1c] sm:$0xf] %vm4837_vm2, %v4716_v18  ;;  %v4329_v22 = vmax.f32 %v4073_v15, %v4201_v19  ;;  %v6472_v19 = vld [vmem:[%s6672_s28 + $0x478] sm:$0xff] }
  0xed   : > { %v4461_v23 = vadd.f32 %v6751_v50, %v4329_v22 }
  0xef   : > { %v4589_v24 = vmax.f32 %v4461_v23, 0.0 }
  0xf0   : > { %v3447_v25 = vpop.f32.mrf.mxu2  ;;  %v3767_v26 = vpop.f32.mrf.mxu3 }
  0xf1   : > { %v4717_v29 = vpack.c.bf16 %v4589_v24, %v4589_v24  ;;  %v4202_v31 = vmax.f32 %v3447_v25, %v3767_v26  ;;  %v2810_v32 = vpop.f32.mrf.mxu0  ;;  %v3130_v33 = vpop.f32.mrf.mxu1 }
  0xf2   : > { %v4075_v39 = vmax.f32 %v2810_v32, %v3130_v33 }
  0xf3   : > { %4846 = vst.msk [vmem:[%s6757_s8 + $0x20] sm:$0xf] %vm4837_vm2, %v4717_v29  ;;  %v4330_v36 = vmax.f32 %v4074_v30, %v4202_v31 }
  0xf4   : > { %6084 = vmatmul.msk.bf16.gmra.mxu0 %vm2003_vm1, %v6342_v27  ;;  %6148 = vmatmul.msk.bf16.gmra.mxu1 %vm2003_vm1, %v6406_v28 }
  0xf5   : > { %v4462_v37 = vadd.f32 %v6751_v50, %v4330_v36  ;;  %6212 = vmatmul.msk.bf16.gmra.mxu2 %vm2003_vm1, %v6470_v34  ;;  %6276 = vmatmul.msk.bf16.gmra.mxu3 %vm2003_vm1, %v6534_v35  ;;  %v6345_v36 = vld [vmem:[%s6672_s28 + $0x80] sm:$0xff] }
  0xf7   : > { %v4590_v38 = vmax.f32 %v4462_v37, 0.0  ;;  %v6409_v37 = vld [vmem:[%s6672_s28 + $0x280] sm:$0xff] }
  0xf8   : > { %v3450_v40 = vpop.f32.mrf.mxu2  ;;  %v3770_v41 = vpop.f32.mrf.mxu3 }
  0xf9   : > { %v4718_v42 = vpack.c.bf16 %v4590_v38, %v4590_v38  ;;  %v4203_v43 = vmax.f32 %v3450_v40, %v3770_v41  ;;  %v2812_v44 = vpop.f32.mrf.mxu0  ;;  %v3132_v45 = vpop.f32.mrf.mxu1 }
  0xfa   : > { %v4076_v55 = vmax.f32 %v2812_v44, %v3132_v45  ;;  %v6537_v44 = vld [vmem:[%s6672_s28 + $0x680] sm:$0xff] }
  0xfb   : > { %4847 = vst.msk [vmem:[%s6757_s8 + $0x24] sm:$0xf] %vm4837_vm2, %v4718_v42  ;;  %v4331_v46 = vmax.f32 %v4075_v39, %v4203_v43  ;;  %v6473_v43 = vld [vmem:[%s6672_s28 + $0x480] sm:$0xff] }
  0xfd   : > { %v4463_v47 = vadd.f32 %v6751_v50, %v4331_v46 }
  0xff   : > { %v4591_v48 = vmax.f32 %v4463_v47, 0.0 }
 0x100   : > { %v3452_v49 = vpop.f32.mrf.mxu2  ;;  %v3772_v51 = vpop.f32.mrf.mxu3 }
 0x101   : > { %v4719_v54 = vpack.c.bf16 %v4591_v48, %v4591_v48  ;;  %v4204_v56 = vmax.f32 %v3452_v49, %v3772_v51  ;;  %v2815_v57 = vpop.f32.mrf.mxu0  ;;  %v3135_v58 = vpop.f32.mrf.mxu1 }
 0x102   : > { %v4077_v0 = vmax.f32 %v2815_v57, %v3135_v58 }
 0x103   : > { %4848 = vst.msk [vmem:[%s6757_s8 + $0x28] sm:$0xf] %vm4837_vm2, %v4719_v54  ;;  %v4332_v61 = vmax.f32 %v4076_v55, %v4204_v56 }
 0x104   : > { %6085 = vmatmul.msk.bf16.gmra.mxu0 %vm2003_vm1, %v6343_v52  ;;  %6149 = vmatmul.msk.bf16.gmra.mxu1 %vm2003_vm1, %v6407_v53 }
 0x105   : > { %v4464_v62 = vadd.f32 %v6751_v50, %v4332_v61  ;;  %6213 = vmatmul.msk.bf16.gmra.mxu2 %vm2003_vm1, %v6471_v59  ;;  %6277 = vmatmul.msk.bf16.gmra.mxu3 %vm2003_vm1, %v6535_v60  ;;  %v6346_v61 = vld [vmem:[%s6672_s28 + $0x88] sm:$0xff] }
 0x107   : > { %v4592_v63 = vmax.f32 %v4464_v62, 0.0  ;;  %v6410_v62 = vld [vmem:[%s6672_s28 + $0x288] sm:$0xff] }
 0x108   : > { %v3455_v1 = vpop.f32.mrf.mxu2  ;;  %v3775_v2 = vpop.f32.mrf.mxu3 }
 0x109   : > { %v4720_v3 = vpack.c.bf16 %v4592_v63, %v4592_v63  ;;  %v4205_v4 = vmax.f32 %v3455_v1, %v3775_v2  ;;  %v2817_v5 = vpop.f32.mrf.mxu0  ;;  %v3137_v6 = vpop.f32.mrf.mxu1 }
 0x10a   : > { %v4078_v15 = vmax.f32 %v2817_v5, %v3137_v6  ;;  %v6538_v5 = vld [vmem:[%s6672_s28 + $0x688] sm:$0xff] }
 0x10b   : > { %4849 = vst.msk [vmem:[%s6757_s8 + $0x2c] sm:$0xf] %vm4837_vm2, %v4720_v3  ;;  %v4333_v7 = vmax.f32 %v4077_v0, %v4205_v4  ;;  %v6474_v4 = vld [vmem:[%s6672_s28 + $0x488] sm:$0xff] }
 0x10d   : > { %v4465_v8 = vadd.f32 %v6751_v50, %v4333_v7 }
 0x10f   : > { %v4593_v9 = vmax.f32 %v4465_v8, 0.0 }
 0x110   : > { %v3457_v10 = vpop.f32.mrf.mxu2  ;;  %v3777_v11 = vpop.f32.mrf.mxu3 }
 0x111   : > { %v4721_v14 = vpack.c.bf16 %v4593_v9, %v4593_v9  ;;  %v4206_v16 = vmax.f32 %v3457_v10, %v3777_v11  ;;  %v2820_v17 = vpop.f32.mrf.mxu0  ;;  %v3140_v18 = vpop.f32.mrf.mxu1 }
 0x112   : > { %v4079_v24 = vmax.f32 %v2820_v17, %v3140_v18 }
 0x113   : > { %4850 = vst.msk [vmem:[%s6757_s8 + $0x30] sm:$0xf] %vm4837_vm2, %v4721_v14  ;;  %v4334_v21 = vmax.f32 %v4078_v15, %v4206_v16 }
 0x114   : > { %6086 = vmatmul.msk.bf16.gmra.mxu0 %vm2003_vm1, %v6344_v12  ;;  %6150 = vmatmul.msk.bf16.gmra.mxu1 %vm2003_vm1, %v6408_v13 }
 0x115   : > { %v4466_v22 = vadd.f32 %v6751_v50, %v4334_v21  ;;  %6214 = vmatmul.msk.bf16.gmra.mxu2 %vm2003_vm1, %v6472_v19  ;;  %6278 = vmatmul.msk.bf16.gmra.mxu3 %vm2003_vm1, %v6536_v20  ;;  %v6347_v21 = vld [vmem:[%s6672_s28 + $0x90] sm:$0xff] }
 0x117   : > { %v4594_v23 = vmax.f32 %v4466_v22, 0.0  ;;  %v6411_v22 = vld [vmem:[%s6672_s28 + $0x290] sm:$0xff] }
 0x118   : > { %v3460_v25 = vpop.f32.mrf.mxu2  ;;  %v3780_v26 = vpop.f32.mrf.mxu3 }
 0x119   : > { %v4722_v27 = vpack.c.bf16 %v4594_v23, %v4594_v23  ;;  %v4207_v28 = vmax.f32 %v3460_v25, %v3780_v26  ;;  %v2822_v29 = vpop.f32.mrf.mxu0  ;;  %v3142_v30 = vpop.f32.mrf.mxu1 }
 0x11a   : > { %v4080_v39 = vmax.f32 %v2822_v29, %v3142_v30  ;;  %v6539_v29 = vld [vmem:[%s6672_s28 + $0x690] sm:$0xff] }
 0x11b   : > { %4851 = vst.msk [vmem:[%s6757_s8 + $0x34] sm:$0xf] %vm4837_vm2, %v4722_v27  ;;  %v4335_v31 = vmax.f32 %v4079_v24, %v4207_v28  ;;  %v6475_v28 = vld [vmem:[%s6672_s28 + $0x490] sm:$0xff] }
 0x11d   : > { %v4467_v32 = vadd.f32 %v6751_v50, %v4335_v31 }
 0x11f   : > { %v4595_v33 = vmax.f32 %v4467_v32, 0.0 }
 0x120   : > { %v3462_v34 = vpop.f32.mrf.mxu2  ;;  %v3782_v35 = vpop.f32.mrf.mxu3 }
 0x121   : > { %v4723_v38 = vpack.c.bf16 %v4595_v33, %v4595_v33  ;;  %v4208_v40 = vmax.f32 %v3462_v34, %v3782_v35  ;;  %v2825_v41 = vpop.f32.mrf.mxu0  ;;  %v3145_v42 = vpop.f32.mrf.mxu1 }
 0x122   : > { %v4081_v48 = vmax.f32 %v2825_v41, %v3145_v42 }
 0x123   : > { %4852 = vst.msk [vmem:[%s6757_s8 + $0x38] sm:$0xf] %vm4837_vm2, %v4723_v38  ;;  %v4336_v45 = vmax.f32 %v4080_v39, %v4208_v40 }
 0x124   : > { %6087 = vmatmul.msk.bf16.gmra.mxu0 %vm2003_vm1, %v6345_v36  ;;  %6151 = vmatmul.msk.bf16.gmra.mxu1 %vm2003_vm1, %v6409_v37 }
 0x125   : > { %v4468_v46 = vadd.f32 %v6751_v50, %v4336_v45  ;;  %6215 = vmatmul.msk.bf16.gmra.mxu2 %vm2003_vm1, %v6473_v43  ;;  %6279 = vmatmul.msk.bf16.gmra.mxu3 %vm2003_vm1, %v6537_v44  ;;  %v6348_v45 = vld [vmem:[%s6672_s28 + $0x98] sm:$0xff] }
 0x127   : > { %v4596_v47 = vmax.f32 %v4468_v46, 0.0  ;;  %v6412_v46 = vld [vmem:[%s6672_s28 + $0x298] sm:$0xff] }
 0x128   : > { %v3465_v49 = vpop.f32.mrf.mxu2  ;;  %v3785_v51 = vpop.f32.mrf.mxu3 }
 0x129   : > { %v4724_v52 = vpack.c.bf16 %v4596_v47, %v4596_v47  ;;  %v4209_v53 = vmax.f32 %v3465_v49, %v3785_v51  ;;  %v2827_v54 = vpop.f32.mrf.mxu0  ;;  %v3147_v55 = vpop.f32.mrf.mxu1 }
 0x12a   : > { %v4082_v0 = vmax.f32 %v2827_v54, %v3147_v55  ;;  %v6540_v54 = vld [vmem:[%s6672_s28 + $0x698] sm:$0xff] }
 0x12b   : > { %4853 = vst.msk [vmem:[%s6757_s8 + $0x3c] sm:$0xf] %vm4837_vm2, %v4724_v52  ;;  %v4337_v56 = vmax.f32 %v4081_v48, %v4209_v53  ;;  %v6476_v53 = vld [vmem:[%s6672_s28 + $0x498] sm:$0xff] }
 0x12d   : > { %v4469_v57 = vadd.f32 %v6751_v50, %v4337_v56 }
 0x12f   : > { %v4597_v58 = vmax.f32 %v4469_v57, 0.0 }
 0x130   : > { %v3467_v59 = vpop.f32.mrf.mxu2  ;;  %v3787_v60 = vpop.f32.mrf.mxu3 }
 0x131   : > { %v4725_v63 = vpack.c.bf16 %v4597_v58, %v4597_v58  ;;  %v4210_v1 = vmax.f32 %v3467_v59, %v3787_v60  ;;  %v2830_v2 = vpop.f32.mrf.mxu0  ;;  %v3150_v3 = vpop.f32.mrf.mxu1 }
 0x132   : > { %v4083_v9 = vmax.f32 %v2830_v2, %v3150_v3 }
 0x133   : > { %4854 = vst.msk [vmem:[%s6757_s8 + $0x40] sm:$0xf] %vm4837_vm2, %v4725_v63  ;;  %v4338_v6 = vmax.f32 %v4082_v0, %v4210_v1 }
 0x134   : > { %6088 = vmatmul.msk.bf16.gmra.mxu0 %vm2003_vm1, %v6346_v61  ;;  %6152 = vmatmul.msk.bf16.gmra.mxu1 %vm2003_vm1, %v6410_v62 }
 0x135   : > { %v4470_v7 = vadd.f32 %v6751_v50, %v4338_v6  ;;  %6216 = vmatmul.msk.bf16.gmra.mxu2 %vm2003_vm1, %v6474_v4  ;;  %6280 = vmatmul.msk.bf16.gmra.mxu3 %vm2003_vm1, %v6538_v5  ;;  %v6349_v6 = vld [vmem:[%s6672_s28 + $0xa0] sm:$0xff] }
 0x137   : > { %v4598_v8 = vmax.f32 %v4470_v7, 0.0  ;;  %v6413_v7 = vld [vmem:[%s6672_s28 + $0x2a0] sm:$0xff] }
 0x138   : > { %v3470_v10 = vpop.f32.mrf.mxu2  ;;  %v3790_v11 = vpop.f32.mrf.mxu3 }
 0x139   : > { %v4726_v12 = vpack.c.bf16 %v4598_v8, %v4598_v8  ;;  %v4211_v13 = vmax.f32 %v3470_v10, %v3790_v11  ;;  %v2832_v14 = vpop.f32.mrf.mxu0  ;;  %v3152_v15 = vpop.f32.mrf.mxu1 }
 0x13a   : > { %v4084_v24 = vmax.f32 %v2832_v14, %v3152_v15  ;;  %v6541_v14 = vld [vmem:[%s6672_s28 + $0x6a0] sm:$0xff] }
 0x13b   : > { %4855 = vst.msk [vmem:[%s6757_s8 + $0x44] sm:$0xf] %vm4837_vm2, %v4726_v12  ;;  %v4339_v16 = vmax.f32 %v4083_v9, %v4211_v13  ;;  %v6477_v13 = vld [vmem:[%s6672_s28 + $0x4a0] sm:$0xff] }
 0x13d   : > { %v4471_v17 = vadd.f32 %v6751_v50, %v4339_v16 }
 0x13f   : > { %v4599_v18 = vmax.f32 %v4471_v17, 0.0 }
 0x140   : > { %v3472_v19 = vpop.f32.mrf.mxu2  ;;  %v3792_v20 = vpop.f32.mrf.mxu3 }
 0x141   : > { %v4727_v23 = vpack.c.bf16 %v4599_v18, %v4599_v18  ;;  %v4212_v25 = vmax.f32 %v3472_v19, %v3792_v20  ;;  %v2835_v26 = vpop.f32.mrf.mxu0  ;;  %v3155_v27 = vpop.f32.mrf.mxu1 }
 0x142   : > { %v4085_v33 = vmax.f32 %v2835_v26, %v3155_v27 }
 0x143   : > { %4856 = vst.msk [vmem:[%s6757_s8 + $0x48] sm:$0xf] %vm4837_vm2, %v4727_v23  ;;  %v4340_v30 = vmax.f32 %v4084_v24, %v4212_v25 }
 0x144   : > { %6089 = vmatmul.msk.bf16.gmra.mxu0 %vm2003_vm1, %v6347_v21  ;;  %6153 = vmatmul.msk.bf16.gmra.mxu1 %vm2003_vm1, %v6411_v22 }
 0x145   : > { %v4472_v31 = vadd.f32 %v6751_v50, %v4340_v30  ;;  %6217 = vmatmul.msk.bf16.gmra.mxu2 %vm2003_vm1, %v6475_v28  ;;  %6281 = vmatmul.msk.bf16.gmra.mxu3 %vm2003_vm1, %v6539_v29  ;;  %v6350_v30 = vld [vmem:[%s6672_s28 + $0xa8] sm:$0xff] }
 0x147   : > { %v4600_v32 = vmax.f32 %v4472_v31, 0.0  ;;  %v6414_v31 = vld [vmem:[%s6672_s28 + $0x2a8] sm:$0xff] }
 0x148   : > { %v3475_v34 = vpop.f32.mrf.mxu2  ;;  %v3795_v35 = vpop.f32.mrf.mxu3 }
 0x149   : > { %v4728_v36 = vpack.c.bf16 %v4600_v32, %v4600_v32  ;;  %v4213_v37 = vmax.f32 %v3475_v34, %v3795_v35  ;;  %v2837_v38 = vpop.f32.mrf.mxu0  ;;  %v3157_v39 = vpop.f32.mrf.mxu1 }
 0x14a   : > { %v4086_v48 = vmax.f32 %v2837_v38, %v3157_v39  ;;  %v6542_v38 = vld [vmem:[%s6672_s28 + $0x6a8] sm:$0xff] }
 0x14b   : > { %4857 = vst.msk [vmem:[%s6757_s8 + $0x4c] sm:$0xf] %vm4837_vm2, %v4728_v36  ;;  %v4341_v40 = vmax.f32 %v4085_v33, %v4213_v37  ;;  %v6478_v37 = vld [vmem:[%s6672_s28 + $0x4a8] sm:$0xff] }
 0x14d   : > { %v4473_v41 = vadd.f32 %v6751_v50, %v4341_v40 }
 0x14f   : > { %v4601_v42 = vmax.f32 %v4473_v41, 0.0 }
 0x150   : > { %v3477_v43 = vpop.f32.mrf.mxu2  ;;  %v3797_v44 = vpop.f32.mrf.mxu3 }
 0x151   : > { %v4729_v47 = vpack.c.bf16 %v4601_v42, %v4601_v42  ;;  %v4214_v49 = vmax.f32 %v3477_v43, %v3797_v44  ;;  %v2840_v51 = vpop.f32.mrf.mxu0  ;;  %v3160_v52 = vpop.f32.mrf.mxu1 }
 0x152   : > { %v4087_v58 = vmax.f32 %v2840_v51, %v3160_v52 }
 0x153   : > { %4858 = vst.msk [vmem:[%s6757_s8 + $0x50] sm:$0xf] %vm4837_vm2, %v4729_v47  ;;  %v4342_v55 = vmax.f32 %v4086_v48, %v4214_v49 }
 0x154   : > { %6090 = vmatmul.msk.bf16.gmra.mxu0 %vm2003_vm1, %v6348_v45  ;;  %6154 = vmatmul.msk.bf16.gmra.mxu1 %vm2003_vm1, %v6412_v46 }
 0x155   : > { %v4474_v56 = vadd.f32 %v6751_v50, %v4342_v55  ;;  %6218 = vmatmul.msk.bf16.gmra.mxu2 %vm2003_vm1, %v6476_v53  ;;  %6282 = vmatmul.msk.bf16.gmra.mxu3 %vm2003_vm1, %v6540_v54  ;;  %v6351_v55 = vld [vmem:[%s6672_s28 + $0xb0] sm:$0xff] }
 0x157   : > { %v4602_v57 = vmax.f32 %v4474_v56, 0.0  ;;  %v6415_v56 = vld [vmem:[%s6672_s28 + $0x2b0] sm:$0xff] }
 0x158   : > { %v3480_v59 = vpop.f32.mrf.mxu2  ;;  %v3800_v60 = vpop.f32.mrf.mxu3 }
 0x159   : > { %v4730_v61 = vpack.c.bf16 %v4602_v57, %v4602_v57  ;;  %v4215_v62 = vmax.f32 %v3480_v59, %v3800_v60  ;;  %v2842_v63 = vpop.f32.mrf.mxu0  ;;  %v3162_v0 = vpop.f32.mrf.mxu1 }
 0x15a   : > { %v4088_v9 = vmax.f32 %v2842_v63, %v3162_v0  ;;  %v6543_v63 = vld [vmem:[%s6672_s28 + $0x6b0] sm:$0xff] }
 0x15b   : > { %4859 = vst.msk [vmem:[%s6757_s8 + $0x54] sm:$0xf] %vm4837_vm2, %v4730_v61  ;;  %v4343_v1 = vmax.f32 %v4087_v58, %v4215_v62  ;;  %v6479_v62 = vld [vmem:[%s6672_s28 + $0x4b0] sm:$0xff] }
 0x15d   : > { %v4475_v2 = vadd.f32 %v6751_v50, %v4343_v1 }
 0x15f   : > { %v4603_v3 = vmax.f32 %v4475_v2, 0.0 }
 0x160   : > { %v3482_v4 = vpop.f32.mrf.mxu2  ;;  %v3802_v5 = vpop.f32.mrf.mxu3 }
 0x161   : > { %v4731_v8 = vpack.c.bf16 %v4603_v3, %v4603_v3  ;;  %v4216_v10 = vmax.f32 %v3482_v4, %v3802_v5  ;;  %v2845_v11 = vpop.f32.mrf.mxu0  ;;  %v3165_v12 = vpop.f32.mrf.mxu1 }
 0x162   : > { %v4089_v18 = vmax.f32 %v2845_v11, %v3165_v12 }
 0x163   : > { %4860 = vst.msk [vmem:[%s6757_s8 + $0x58] sm:$0xf] %vm4837_vm2, %v4731_v8  ;;  %v4344_v15 = vmax.f32 %v4088_v9, %v4216_v10 }
 0x164   : > { %6091 = vmatmul.msk.bf16.gmra.mxu0 %vm2003_vm1, %v6349_v6  ;;  %6155 = vmatmul.msk.bf16.gmra.mxu1 %vm2003_vm1, %v6413_v7 }
 0x165   : > { %v4476_v16 = vadd.f32 %v6751_v50, %v4344_v15  ;;  %6219 = vmatmul.msk.bf16.gmra.mxu2 %vm2003_vm1, %v6477_v13  ;;  %6283 = vmatmul.msk.bf16.gmra.mxu3 %vm2003_vm1, %v6541_v14  ;;  %v6352_v15 = vld [vmem:[%s6672_s28 + $0xb8] sm:$0xff] }
 0x167   : > { %v4604_v17 = vmax.f32 %v4476_v16, 0.0  ;;  %v6416_v16 = vld [vmem:[%s6672_s28 + $0x2b8] sm:$0xff] }
 0x168   : > { %v3485_v19 = vpop.f32.mrf.mxu2  ;;  %v3805_v20 = vpop.f32.mrf.mxu3 }
 0x169   : > { %v4732_v21 = vpack.c.bf16 %v4604_v17, %v4604_v17  ;;  %v4217_v22 = vmax.f32 %v3485_v19, %v3805_v20  ;;  %v2847_v23 = vpop.f32.mrf.mxu0  ;;  %v3167_v24 = vpop.f32.mrf.mxu1 }
 0x16a   : > { %v4090_v33 = vmax.f32 %v2847_v23, %v3167_v24  ;;  %v6544_v23 = vld [vmem:[%s6672_s28 + $0x6b8] sm:$0xff] }
 0x16b   : > { %4861 = vst.msk [vmem:[%s6757_s8 + $0x5c] sm:$0xf] %vm4837_vm2, %v4732_v21  ;;  %v4345_v25 = vmax.f32 %v4089_v18, %v4217_v22  ;;  %v6480_v22 = vld [vmem:[%s6672_s28 + $0x4b8] sm:$0xff] }
 0x16d   : > { %v4477_v26 = vadd.f32 %v6751_v50, %v4345_v25 }
 0x16f   : > { %v4605_v27 = vmax.f32 %v4477_v26, 0.0 }
 0x170   : > { %v3487_v28 = vpop.f32.mrf.mxu2  ;;  %v3807_v29 = vpop.f32.mrf.mxu3 }
 0x171   : > { %v4733_v32 = vpack.c.bf16 %v4605_v27, %v4605_v27  ;;  %v4218_v34 = vmax.f32 %v3487_v28, %v3807_v29  ;;  %v2850_v35 = vpop.f32.mrf.mxu0  ;;  %v3170_v36 = vpop.f32.mrf.mxu1 }
 0x172   : > { %v4091_v42 = vmax.f32 %v2850_v35, %v3170_v36 }
 0x173   : > { %4862 = vst.msk [vmem:[%s6757_s8 + $0x60] sm:$0xf] %vm4837_vm2, %v4733_v32  ;;  %v4346_v39 = vmax.f32 %v4090_v33, %v4218_v34 }
 0x174   : > { %6092 = vmatmul.msk.bf16.gmra.mxu0 %vm2003_vm1, %v6350_v30  ;;  %6156 = vmatmul.msk.bf16.gmra.mxu1 %vm2003_vm1, %v6414_v31 }
 0x175   : > { %v4478_v40 = vadd.f32 %v6751_v50, %v4346_v39  ;;  %6220 = vmatmul.msk.bf16.gmra.mxu2 %vm2003_vm1, %v6478_v37  ;;  %6284 = vmatmul.msk.bf16.gmra.mxu3 %vm2003_vm1, %v6542_v38  ;;  %v6353_v39 = vld [vmem:[%s6672_s28 + $0xc0] sm:$0xff] }
 0x177   : > { %v4606_v41 = vmax.f32 %v4478_v40, 0.0  ;;  %v6417_v40 = vld [vmem:[%s6672_s28 + $0x2c0] sm:$0xff] }
 0x178   : > { %v3490_v43 = vpop.f32.mrf.mxu2  ;;  %v3810_v44 = vpop.f32.mrf.mxu3 }
 0x179   : > { %v4734_v45 = vpack.c.bf16 %v4606_v41, %v4606_v41  ;;  %v4219_v46 = vmax.f32 %v3490_v43, %v3810_v44  ;;  %v2852_v47 = vpop.f32.mrf.mxu0  ;;  %v3172_v48 = vpop.f32.mrf.mxu1 }
 0x17a   : > { %v4092_v58 = vmax.f32 %v2852_v47, %v3172_v48  ;;  %v6545_v47 = vld [vmem:[%s6672_s28 + $0x6c0] sm:$0xff] }
 0x17b   : > { %4863 = vst.msk [vmem:[%s6757_s8 + $0x64] sm:$0xf] %vm4837_vm2, %v4734_v45  ;;  %v4347_v49 = vmax.f32 %v4091_v42, %v4219_v46  ;;  %v6481_v46 = vld [vmem:[%s6672_s28 + $0x4c0] sm:$0xff] }
 0x17d   : > { %v4479_v51 = vadd.f32 %v6751_v50, %v4347_v49 }
 0x17f   : > { %v4607_v52 = vmax.f32 %v4479_v51, 0.0 }
 0x180   : > { %v3492_v53 = vpop.f32.mrf.mxu2  ;;  %v3812_v54 = vpop.f32.mrf.mxu3 }
 0x181   : > { %v4735_v57 = vpack.c.bf16 %v4607_v52, %v4607_v52  ;;  %v4220_v59 = vmax.f32 %v3492_v53, %v3812_v54  ;;  %v2855_v60 = vpop.f32.mrf.mxu0  ;;  %v3175_v61 = vpop.f32.mrf.mxu1 }
 0x182   : > { %v4093_v3 = vmax.f32 %v2855_v60, %v3175_v61 }
 0x183   : > { %4864 = vst.msk [vmem:[%s6757_s8 + $0x68] sm:$0xf] %vm4837_vm2, %v4735_v57  ;;  %v4348_v0 = vmax.f32 %v4092_v58, %v4220_v59 }
 0x184   : > { %6093 = vmatmul.msk.bf16.gmra.mxu0 %vm2003_vm1, %v6351_v55  ;;  %6157 = vmatmul.msk.bf16.gmra.mxu1 %vm2003_vm1, %v6415_v56 }
 0x185   : > { %v4480_v1 = vadd.f32 %v6751_v50, %v4348_v0  ;;  %6221 = vmatmul.msk.bf16.gmra.mxu2 %vm2003_vm1, %v6479_v62  ;;  %6285 = vmatmul.msk.bf16.gmra.mxu3 %vm2003_vm1, %v6543_v63  ;;  %v6354_v0 = vld [vmem:[%s6672_s28 + $0xc8] sm:$0xff] }
 0x187   : > { %v4608_v2 = vmax.f32 %v4480_v1, 0.0  ;;  %v6418_v1 = vld [vmem:[%s6672_s28 + $0x2c8] sm:$0xff] }
 0x188   : > { %v3495_v4 = vpop.f32.mrf.mxu2  ;;  %v3815_v5 = vpop.f32.mrf.mxu3 }
 0x189   : > { %v4736_v6 = vpack.c.bf16 %v4608_v2, %v4608_v2  ;;  %v4221_v7 = vmax.f32 %v3495_v4, %v3815_v5  ;;  %v2857_v8 = vpop.f32.mrf.mxu0  ;;  %v3177_v9 = vpop.f32.mrf.mxu1 }
 0x18a   : > { %v4094_v18 = vmax.f32 %v2857_v8, %v3177_v9  ;;  %v6546_v8 = vld [vmem:[%s6672_s28 + $0x6c8] sm:$0xff] }
 0x18b   : > { %4865 = vst.msk [vmem:[%s6757_s8 + $0x6c] sm:$0xf] %vm4837_vm2, %v4736_v6  ;;  %v4349_v10 = vmax.f32 %v4093_v3, %v4221_v7  ;;  %v6482_v7 = vld [vmem:[%s6672_s28 + $0x4c8] sm:$0xff] }
 0x18d   : > { %v4481_v11 = vadd.f32 %v6751_v50, %v4349_v10 }
 0x18f   : > { %v4609_v12 = vmax.f32 %v4481_v11, 0.0 }
 0x190   : > { %v3497_v13 = vpop.f32.mrf.mxu2  ;;  %v3817_v14 = vpop.f32.mrf.mxu3 }
 0x191   : > { %v4737_v17 = vpack.c.bf16 %v4609_v12, %v4609_v12  ;;  %v4222_v19 = vmax.f32 %v3497_v13, %v3817_v14  ;;  %v2860_v20 = vpop.f32.mrf.mxu0  ;;  %v3180_v21 = vpop.f32.mrf.mxu1 }
 0x192   : > { %v4095_v27 = vmax.f32 %v2860_v20, %v3180_v21 }
 0x193   : > { %4866 = vst.msk [vmem:[%s6757_s8 + $0x70] sm:$0xf] %vm4837_vm2, %v4737_v17  ;;  %v4350_v24 = vmax.f32 %v4094_v18, %v4222_v19  ;;  %v6999_v19 = vld [vmem:[%s7602_s2] ss:$0 sm:$0xff] }
 0x194   : > { %6094 = vmatmul.msk.bf16.gmra.mxu0 %vm2003_vm1, %v6352_v15  ;;  %6158 = vmatmul.msk.bf16.gmra.mxu1 %vm2003_vm1, %v6416_v16 }
 0x195   : > { %v4482_v25 = vadd.f32 %v6751_v50, %v4350_v24  ;;  %6222 = vmatmul.msk.bf16.gmra.mxu2 %vm2003_vm1, %v6480_v22  ;;  %6286 = vmatmul.msk.bf16.gmra.mxu3 %vm2003_vm1, %v6544_v23  ;;  %v6355_v24 = vld [vmem:[%s6672_s28 + $0xd0] sm:$0xff] }
 0x197   : > { %v4610_v26 = vmax.f32 %v4482_v25, 0.0  ;;  %v6419_v25 = vld [vmem:[%s6672_s28 + $0x2d0] sm:$0xff] }
 0x198   : > { %v3500_v28 = vpop.f32.mrf.mxu2  ;;  %v3820_v29 = vpop.f32.mrf.mxu3 }
 0x199   : > { %v4738_v30 = vpack.c.bf16 %v4610_v26, %v4610_v26  ;;  %v4223_v31 = vmax.f32 %v3500_v28, %v3820_v29  ;;  %v2862_v32 = vpop.f32.mrf.mxu0  ;;  %v3182_v33 = vpop.f32.mrf.mxu1 }
 0x19a   : > { %v4096_v42 = vmax.f32 %v2862_v32, %v3182_v33  ;;  %v6547_v32 = vld [vmem:[%s6672_s28 + $0x6d0] sm:$0xff] }
 0x19b   : > { %4867 = vst.msk [vmem:[%s6757_s8 + $0x74] sm:$0xf] %vm4837_vm2, %v4738_v30  ;;  %v4351_v34 = vmax.f32 %v4095_v27, %v4223_v31  ;;  %v6483_v31 = vld [vmem:[%s6672_s28 + $0x4d0] sm:$0xff] }
 0x19d   : > { %v4483_v35 = vadd.f32 %v6751_v50, %v4351_v34 }
 0x19f   : > { %v4611_v36 = vmax.f32 %v4483_v35, 0.0 }
 0x1a0   : > { %v3502_v37 = vpop.f32.mrf.mxu2  ;;  %v3822_v38 = vpop.f32.mrf.mxu3 }
 0x1a1   : > { %v4739_v41 = vpack.c.bf16 %v4611_v36, %v4611_v36  ;;  %v4224_v43 = vmax.f32 %v3502_v37, %v3822_v38  ;;  %v2865_v44 = vpop.f32.mrf.mxu0  ;;  %v3185_v45 = vpop.f32.mrf.mxu1 }
 0x1a2   : > { %v4097_v52 = vmax.f32 %v2865_v44, %v3185_v45 }
 0x1a3   : > { %4868 = vst.msk [vmem:[%s6757_s8 + $0x78] sm:$0xf] %vm4837_vm2, %v4739_v41  ;;  %v4352_v48 = vmax.f32 %v4096_v42, %v4224_v43 }
 0x1a4   : > { %6095 = vmatmul.msk.bf16.gmra.mxu0 %vm2003_vm1, %v6353_v39  ;;  %6159 = vmatmul.msk.bf16.gmra.mxu1 %vm2003_vm1, %v6417_v40 }
 0x1a5   : > { %v4484_v49 = vadd.f32 %v6751_v50, %v4352_v48  ;;  %6223 = vmatmul.msk.bf16.gmra.mxu2 %vm2003_vm1, %v6481_v46  ;;  %6287 = vmatmul.msk.bf16.gmra.mxu3 %vm2003_vm1, %v6545_v47  ;;  %v6356_v48 = vld [vmem:[%s6672_s28 + $0xd8] sm:$0xff] }
 0x1a7   : > { %v4612_v51 = vmax.f32 %v4484_v49, 0.0  ;;  %v6420_v49 = vld [vmem:[%s6672_s28 + $0x2d8] sm:$0xff] }
 0x1a8   : > { %v3505_v53 = vpop.f32.mrf.mxu2  ;;  %v3825_v54 = vpop.f32.mrf.mxu3 }
 0x1a9   : > { %v4740_v55 = vpack.c.bf16 %v4612_v51, %v4612_v51  ;;  %v4225_v56 = vmax.f32 %v3505_v53, %v3825_v54  ;;  %v2867_v57 = vpop.f32.mrf.mxu0  ;;  %v3187_v58 = vpop.f32.mrf.mxu1 }
 0x1aa   : > { %v4098_v3 = vmax.f32 %v2867_v57, %v3187_v58  ;;  %v6548_v57 = vld [vmem:[%s6672_s28 + $0x6d8] sm:$0xff] }
 0x1ab   : > { %4869 = vst.msk [vmem:[%s6757_s8 + $0x7c] sm:$0xf] %vm4837_vm2, %v4740_v55  ;;  %v4353_v59 = vmax.f32 %v4097_v52, %v4225_v56  ;;  %v6484_v56 = vld [vmem:[%s6672_s28 + $0x4d8] sm:$0xff] }
 0x1ad   : > { %v4485_v60 = vadd.f32 %v6751_v50, %v4353_v59 }
 0x1af   : > { %v4613_v61 = vmax.f32 %v4485_v60, 0.0 }
 0x1b0   : > { %v3507_v62 = vpop.f32.mrf.mxu2  ;;  %v3827_v63 = vpop.f32.mrf.mxu3 }
 0x1b1   : > { %v4741_v2 = vpack.c.bf16 %v4613_v61, %v4613_v61  ;;  %v4226_v4 = vmax.f32 %v3507_v62, %v3827_v63  ;;  %v2870_v5 = vpop.f32.mrf.mxu0  ;;  %v3190_v6 = vpop.f32.mrf.mxu1 }
 0x1b2   : > { %v4099_v12 = vmax.f32 %v2870_v5, %v3190_v6 }
 0x1b3   : > { %4870 = vst.msk [vmem:[%s6757_s8 + $0x80] sm:$0xf] %vm4837_vm2, %v4741_v2  ;;  %v4354_v9 = vmax.f32 %v4098_v3, %v4226_v4 }
 0x1b4   : > { %6096 = vmatmul.msk.bf16.gmra.mxu0 %vm2003_vm1, %v6354_v0  ;;  %6160 = vmatmul.msk.bf16.gmra.mxu1 %vm2003_vm1, %v6418_v1 }
 0x1b5   : > { %v4486_v10 = vadd.f32 %v6751_v50, %v4354_v9  ;;  %6224 = vmatmul.msk.bf16.gmra.mxu2 %vm2003_vm1, %v6482_v7  ;;  %6288 = vmatmul.msk.bf16.gmra.mxu3 %vm2003_vm1, %v6546_v8  ;;  %v6357_v9 = vld [vmem:[%s6672_s28 + $0xe0] sm:$0xff] }
 0x1b7   : > { %v4614_v11 = vmax.f32 %v4486_v10, 0.0  ;;  %v6421_v10 = vld [vmem:[%s6672_s28 + $0x2e0] sm:$0xff] }
 0x1b8   : > { %v3510_v13 = vpop.f32.mrf.mxu2  ;;  %v3830_v14 = vpop.f32.mrf.mxu3 }
 0x1b9   : > { %v4742_v15 = vpack.c.bf16 %v4614_v11, %v4614_v11  ;;  %v4227_v16 = vmax.f32 %v3510_v13, %v3830_v14  ;;  %v2872_v17 = vpop.f32.mrf.mxu0  ;;  %v3192_v18 = vpop.f32.mrf.mxu1 }
 0x1ba   : > { %v4100_v27 = vmax.f32 %v2872_v17, %v3192_v18  ;;  %v6549_v17 = vld [vmem:[%s6672_s28 + $0x6e0] sm:$0xff] }
 0x1bb   : > { %4871 = vst.msk [vmem:[%s6757_s8 + $0x84] sm:$0xf] %vm4837_vm2, %v4742_v15  ;;  %v4355_v50 = vmax.f32 %v4099_v12, %v4227_v16  ;;  %v6485_v16 = vld [vmem:[%s6672_s28 + $0x4e0] sm:$0xff] }
 0x1bd   : > { %v4487_v20 = vadd.f32 %v6999_v19, %v4355_v50 }
 0x1bf   : > { %v4615_v21 = vmax.f32 %v4487_v20, 0.0 }
 0x1c0   : > { %v3512_v22 = vpop.f32.mrf.mxu2  ;;  %v3832_v23 = vpop.f32.mrf.mxu3 }
 0x1c1   : > { %v4743_v26 = vpack.c.bf16 %v4615_v21, %v4615_v21  ;;  %v4228_v28 = vmax.f32 %v3512_v22, %v3832_v23  ;;  %v2875_v29 = vpop.f32.mrf.mxu0  ;;  %v3195_v30 = vpop.f32.mrf.mxu1 }
 0x1c2   : > { %v4101_v36 = vmax.f32 %v2875_v29, %v3195_v30 }
 0x1c3   : > { %4872 = vst.msk [vmem:[%s6757_s8 + $0x88] sm:$0xf] %vm4837_vm2, %v4743_v26  ;;  %v4356_v33 = vmax.f32 %v4100_v27, %v4228_v28 }
 0x1c4   : > { %6097 = vmatmul.msk.bf16.gmra.mxu0 %vm2003_vm1, %v6355_v24  ;;  %6161 = vmatmul.msk.bf16.gmra.mxu1 %vm2003_vm1, %v6419_v25 }
 0x1c5   : > { %v4488_v34 = vadd.f32 %v6999_v19, %v4356_v33  ;;  %6225 = vmatmul.msk.bf16.gmra.mxu2 %vm2003_vm1, %v6483_v31  ;;  %6289 = vmatmul.msk.bf16.gmra.mxu3 %vm2003_vm1, %v6547_v32  ;;  %v6358_v33 = vld [vmem:[%s6672_s28 + $0xe8] sm:$0xff] }
 0x1c7   : > { %v4616_v35 = vmax.f32 %v4488_v34, 0.0  ;;  %v6422_v34 = vld [vmem:[%s6672_s28 + $0x2e8] sm:$0xff] }
 0x1c8   : > { %v3515_v37 = vpop.f32.mrf.mxu2  ;;  %v3835_v38 = vpop.f32.mrf.mxu3 }
 0x1c9   : > { %v4744_v39 = vpack.c.bf16 %v4616_v35, %v4616_v35  ;;  %v4229_v40 = vmax.f32 %v3515_v37, %v3835_v38  ;;  %v2877_v41 = vpop.f32.mrf.mxu0  ;;  %v3197_v42 = vpop.f32.mrf.mxu1 }
 0x1ca   : > { %v4102_v52 = vmax.f32 %v2877_v41, %v3197_v42  ;;  %v6550_v41 = vld [vmem:[%s6672_s28 + $0x6e8] sm:$0xff] }
 0x1cb   : > { %4873 = vst.msk [vmem:[%s6757_s8 + $0x8c] sm:$0xf] %vm4837_vm2, %v4744_v39  ;;  %v4357_v43 = vmax.f32 %v4101_v36, %v4229_v40  ;;  %v6486_v40 = vld [vmem:[%s6672_s28 + $0x4e8] sm:$0xff] }
 0x1cd   : > { %v4489_v44 = vadd.f32 %v6999_v19, %v4357_v43 }
 0x1cf   : > { %v4617_v45 = vmax.f32 %v4489_v44, 0.0 }
 0x1d0   : > { %v3517_v46 = vpop.f32.mrf.mxu2  ;;  %v3837_v47 = vpop.f32.mrf.mxu3 }
 0x1d1   : > { %v4745_v51 = vpack.c.bf16 %v4617_v45, %v4617_v45  ;;  %v4230_v53 = vmax.f32 %v3517_v46, %v3837_v47  ;;  %v2880_v54 = vpop.f32.mrf.mxu0  ;;  %v3200_v55 = vpop.f32.mrf.mxu1 }
 0x1d2   : > { %v4103_v61 = vmax.f32 %v2880_v54, %v3200_v55 }
 0x1d3   : > { %4874 = vst.msk [vmem:[%s6757_s8 + $0x90] sm:$0xf] %vm4837_vm2, %v4745_v51  ;;  %v4358_v58 = vmax.f32 %v4102_v52, %v4230_v53 }
 0x1d4   : > { %6098 = vmatmul.msk.bf16.gmra.mxu0 %vm2003_vm1, %v6356_v48  ;;  %6162 = vmatmul.msk.bf16.gmra.mxu1 %vm2003_vm1, %v6420_v49 }
 0x1d5   : > { %v4490_v59 = vadd.f32 %v6999_v19, %v4358_v58  ;;  %6226 = vmatmul.msk.bf16.gmra.mxu2 %vm2003_vm1, %v6484_v56  ;;  %6290 = vmatmul.msk.bf16.gmra.mxu3 %vm2003_vm1, %v6548_v57  ;;  %v6359_v58 = vld [vmem:[%s6672_s28 + $0xf0] sm:$0xff] }
 0x1d7   : > { %v4618_v60 = vmax.f32 %v4490_v59, 0.0  ;;  %v6423_v59 = vld [vmem:[%s6672_s28 + $0x2f0] sm:$0xff] }
 0x1d8   : > { %v3520_v62 = vpop.f32.mrf.mxu2  ;;  %v3840_v63 = vpop.f32.mrf.mxu3 }
 0x1d9   : > { %v4746_v0 = vpack.c.bf16 %v4618_v60, %v4618_v60  ;;  %v4231_v1 = vmax.f32 %v3520_v62, %v3840_v63  ;;  %v2882_v2 = vpop.f32.mrf.mxu0  ;;  %v3202_v3 = vpop.f32.mrf.mxu1 }
 0x1da   : > { %v4104_v12 = vmax.f32 %v2882_v2, %v3202_v3  ;;  %v6551_v2 = vld [vmem:[%s6672_s28 + $0x6f0] sm:$0xff] }
 0x1db   : > { %4875 = vst.msk [vmem:[%s6757_s8 + $0x94] sm:$0xf] %vm4837_vm2, %v4746_v0  ;;  %v4359_v4 = vmax.f32 %v4103_v61, %v4231_v1  ;;  %v6487_v1 = vld [vmem:[%s6672_s28 + $0x4f0] sm:$0xff] }
 0x1dd   : > { %v4491_v5 = vadd.f32 %v6999_v19, %v4359_v4 }
 0x1df   : > { %v4619_v6 = vmax.f32 %v4491_v5, 0.0 }
 0x1e0   : > { %v3522_v7 = vpop.f32.mrf.mxu2  ;;  %v3842_v8 = vpop.f32.mrf.mxu3 }
 0x1e1   : > { %v4747_v11 = vpack.c.bf16 %v4619_v6, %v4619_v6  ;;  %v4232_v13 = vmax.f32 %v3522_v7, %v3842_v8  ;;  %v2885_v14 = vpop.f32.mrf.mxu0  ;;  %v3205_v15 = vpop.f32.mrf.mxu1 }
 0x1e2   : > { %v4105_v21 = vmax.f32 %v2885_v14, %v3205_v15 }
 0x1e3   : > { %4876 = vst.msk [vmem:[%s6757_s8 + $0x98] sm:$0xf] %vm4837_vm2, %v4747_v11  ;;  %v4360_v18 = vmax.f32 %v4104_v12, %v4232_v13 }
 0x1e4   : > { %6099 = vmatmul.msk.bf16.gmra.mxu0 %vm2003_vm1, %v6357_v9  ;;  %6163 = vmatmul.msk.bf16.gmra.mxu1 %vm2003_vm1, %v6421_v10 }
 0x1e5   : > { %v4492_v50 = vadd.f32 %v6999_v19, %v4360_v18  ;;  %6227 = vmatmul.msk.bf16.gmra.mxu2 %vm2003_vm1, %v6485_v16  ;;  %6291 = vmatmul.msk.bf16.gmra.mxu3 %vm2003_vm1, %v6549_v17  ;;  %v6360_v18 = vld [vmem:[%s6672_s28 + $0xf8] sm:$0xff] }
 0x1e7   : > { %v4620_v20 = vmax.f32 %v4492_v50, 0.0  ;;  %v6424_v50 = vld [vmem:[%s6672_s28 + $0x2f8] sm:$0xff] }
 0x1e8   : > { %v3525_v22 = vpop.f32.mrf.mxu2  ;;  %v3845_v23 = vpop.f32.mrf.mxu3 }
 0x1e9   : > { %v4748_v24 = vpack.c.bf16 %v4620_v20, %v4620_v20  ;;  %v4233_v25 = vmax.f32 %v3525_v22, %v3845_v23  ;;  %v2887_v26 = vpop.f32.mrf.mxu0  ;;  %v3207_v27 = vpop.f32.mrf.mxu1 }
 0x1ea   : > { %v4106_v36 = vmax.f32 %v2887_v26, %v3207_v27  ;;  %v6552_v26 = vld [vmem:[%s6672_s28 + $0x6f8] sm:$0xff] }
 0x1eb   : > { %4877 = vst.msk [vmem:[%s6757_s8 + $0x9c] sm:$0xf] %vm4837_vm2, %v4748_v24  ;;  %v4361_v28 = vmax.f32 %v4105_v21, %v4233_v25  ;;  %v6488_v25 = vld [vmem:[%s6672_s28 + $0x4f8] sm:$0xff] }
 0x1ed   : > { %v4493_v29 = vadd.f32 %v6999_v19, %v4361_v28 }
 0x1ef   : > { %v4621_v30 = vmax.f32 %v4493_v29, 0.0 }
 0x1f0   : > { %v3527_v31 = vpop.f32.mrf.mxu2  ;;  %v3847_v32 = vpop.f32.mrf.mxu3 }
 0x1f1   : > { %v4749_v35 = vpack.c.bf16 %v4621_v30, %v4621_v30  ;;  %v4234_v37 = vmax.f32 %v3527_v31, %v3847_v32  ;;  %v2890_v38 = vpop.f32.mrf.mxu0  ;;  %v3210_v39 = vpop.f32.mrf.mxu1 }
 0x1f2   : > { %v4107_v45 = vmax.f32 %v2890_v38, %v3210_v39 }
 0x1f3   : > { %4878 = vst.msk [vmem:[%s6757_s8 + $0xa0] sm:$0xf] %vm4837_vm2, %v4749_v35  ;;  %v4362_v42 = vmax.f32 %v4106_v36, %v4234_v37 }
 0x1f4   : > { %6100 = vmatmul.msk.bf16.gmra.mxu0 %vm2003_vm1, %v6358_v33  ;;  %6164 = vmatmul.msk.bf16.gmra.mxu1 %vm2003_vm1, %v6422_v34 }
 0x1f5   : > { %v4494_v43 = vadd.f32 %v6999_v19, %v4362_v42  ;;  %6228 = vmatmul.msk.bf16.gmra.mxu2 %vm2003_vm1, %v6486_v40  ;;  %6292 = vmatmul.msk.bf16.gmra.mxu3 %vm2003_vm1, %v6550_v41  ;;  %v6361_v42 = vld [vmem:[%s6672_s28 + $0x100] sm:$0xff] }
 0x1f7   : > { %v4622_v44 = vmax.f32 %v4494_v43, 0.0  ;;  %v6425_v43 = vld [vmem:[%s6672_s28 + $0x300] sm:$0xff] }
 0x1f8   : > { %v3530_v46 = vpop.f32.mrf.mxu2  ;;  %v3850_v47 = vpop.f32.mrf.mxu3 }
 0x1f9   : > { %v4750_v48 = vpack.c.bf16 %v4622_v44, %v4622_v44  ;;  %v4235_v49 = vmax.f32 %v3530_v46, %v3850_v47  ;;  %v2892_v51 = vpop.f32.mrf.mxu0  ;;  %v3212_v52 = vpop.f32.mrf.mxu1 }
 0x1fa   : > { %v4108_v61 = vmax.f32 %v2892_v51, %v3212_v52  ;;  %v6553_v51 = vld [vmem:[%s6672_s28 + $0x700] sm:$0xff] }
 0x1fb   : > { %4879 = vst.msk [vmem:[%s6757_s8 + $0xa4] sm:$0xf] %vm4837_vm2, %v4750_v48  ;;  %v4363_v53 = vmax.f32 %v4107_v45, %v4235_v49  ;;  %v6489_v49 = vld [vmem:[%s6672_s28 + $0x500] sm:$0xff] }
 0x1fd   : > { %v4495_v54 = vadd.f32 %v6999_v19, %v4363_v53 }
 0x1ff   : > { %v4623_v55 = vmax.f32 %v4495_v54, 0.0 }
 0x200   : > { %v3532_v56 = vpop.f32.mrf.mxu2  ;;  %v3852_v57 = vpop.f32.mrf.mxu3 }
 0x201   : > { %v4751_v60 = vpack.c.bf16 %v4623_v55, %v4623_v55  ;;  %v4236_v62 = vmax.f32 %v3532_v56, %v3852_v57  ;;  %v2895_v63 = vpop.f32.mrf.mxu0  ;;  %v3215_v0 = vpop.f32.mrf.mxu1 }
 0x202   : > { %v4109_v6 = vmax.f32 %v2895_v63, %v3215_v0 }
 0x203   : > { %4880 = vst.msk [vmem:[%s6757_s8 + $0xa8] sm:$0xf] %vm4837_vm2, %v4751_v60  ;;  %v4364_v3 = vmax.f32 %v4108_v61, %v4236_v62 }
 0x204   : > { %6101 = vmatmul.msk.bf16.gmra.mxu0 %vm2003_vm1, %v6359_v58  ;;  %6165 = vmatmul.msk.bf16.gmra.mxu1 %vm2003_vm1, %v6423_v59 }
 0x205   : > { %v4496_v4 = vadd.f32 %v6999_v19, %v4364_v3  ;;  %6229 = vmatmul.msk.bf16.gmra.mxu2 %vm2003_vm1, %v6487_v1  ;;  %6293 = vmatmul.msk.bf16.gmra.mxu3 %vm2003_vm1, %v6551_v2  ;;  %v6362_v3 = vld [vmem:[%s6672_s28 + $0x108] sm:$0xff] }
 0x207   : > { %v4624_v5 = vmax.f32 %v4496_v4, 0.0  ;;  %v6426_v4 = vld [vmem:[%s6672_s28 + $0x308] sm:$0xff] }
 0x208   : > { %v3535_v7 = vpop.f32.mrf.mxu2  ;;  %v3855_v8 = vpop.f32.mrf.mxu3 }
 0x209   : > { %v4752_v9 = vpack.c.bf16 %v4624_v5, %v4624_v5  ;;  %v4237_v10 = vmax.f32 %v3535_v7, %v3855_v8  ;;  %v2897_v11 = vpop.f32.mrf.mxu0  ;;  %v3217_v12 = vpop.f32.mrf.mxu1 }
 0x20a   : > { %v4110_v21 = vmax.f32 %v2897_v11, %v3217_v12  ;;  %v6554_v11 = vld [vmem:[%s6672_s28 + $0x708] sm:$0xff] }
 0x20b   : > { %4881 = vst.msk [vmem:[%s6757_s8 + $0xac] sm:$0xf] %vm4837_vm2, %v4752_v9  ;;  %v4365_v13 = vmax.f32 %v4109_v6, %v4237_v10  ;;  %v6490_v10 = vld [vmem:[%s6672_s28 + $0x508] sm:$0xff] }
 0x20d   : > { %v4497_v14 = vadd.f32 %v6999_v19, %v4365_v13 }
 0x20f   : > { %v4625_v15 = vmax.f32 %v4497_v14, 0.0 }
 0x210   : > { %v3537_v16 = vpop.f32.mrf.mxu2  ;;  %v3857_v17 = vpop.f32.mrf.mxu3 }
 0x211   : > { %v4753_v20 = vpack.c.bf16 %v4625_v15, %v4625_v15  ;;  %v4238_v22 = vmax.f32 %v3537_v16, %v3857_v17  ;;  %v2900_v23 = vpop.f32.mrf.mxu0  ;;  %v3220_v24 = vpop.f32.mrf.mxu1 }
 0x212   : > { %v4111_v30 = vmax.f32 %v2900_v23, %v3220_v24 }
 0x213   : > { %4882 = vst.msk [vmem:[%s6757_s8 + $0xb0] sm:$0xf] %vm4837_vm2, %v4753_v20  ;;  %v4366_v27 = vmax.f32 %v4110_v21, %v4238_v22 }
 0x214   : > { %6102 = vmatmul.msk.bf16.gmra.mxu0 %vm2003_vm1, %v6360_v18  ;;  %6166 = vmatmul.msk.bf16.gmra.mxu1 %vm2003_vm1, %v6424_v50 }
 0x215   : > { %v4498_v28 = vadd.f32 %v6999_v19, %v4366_v27  ;;  %6230 = vmatmul.msk.bf16.gmra.mxu2 %vm2003_vm1, %v6488_v25  ;;  %6294 = vmatmul.msk.bf16.gmra.mxu3 %vm2003_vm1, %v6552_v26  ;;  %v6363_v27 = vld [vmem:[%s6672_s28 + $0x110] sm:$0xff] }
 0x217   : > { %v4626_v29 = vmax.f32 %v4498_v28, 0.0  ;;  %v6427_v28 = vld [vmem:[%s6672_s28 + $0x310] sm:$0xff] }
 0x218   : > { %v3540_v31 = vpop.f32.mrf.mxu2  ;;  %v3860_v32 = vpop.f32.mrf.mxu3 }
 0x219   : > { %v4754_v33 = vpack.c.bf16 %v4626_v29, %v4626_v29  ;;  %v4239_v34 = vmax.f32 %v3540_v31, %v3860_v32  ;;  %v2902_v35 = vpop.f32.mrf.mxu0  ;;  %v3222_v36 = vpop.f32.mrf.mxu1 }
 0x21a   : > { %v4112_v45 = vmax.f32 %v2902_v35, %v3222_v36  ;;  %v6555_v35 = vld [vmem:[%s6672_s28 + $0x710] sm:$0xff] }
 0x21b   : > { %4883 = vst.msk [vmem:[%s6757_s8 + $0xb4] sm:$0xf] %vm4837_vm2, %v4754_v33  ;;  %v4367_v37 = vmax.f32 %v4111_v30, %v4239_v34  ;;  %v6491_v34 = vld [vmem:[%s6672_s28 + $0x510] sm:$0xff] }
 0x21d   : > { %v4499_v38 = vadd.f32 %v6999_v19, %v4367_v37 }
 0x21f   : > { %v4627_v39 = vmax.f32 %v4499_v38, 0.0 }
 0x220   : > { %v3542_v40 = vpop.f32.mrf.mxu2  ;;  %v3862_v41 = vpop.f32.mrf.mxu3 }
 0x221   : > { %v4755_v44 = vpack.c.bf16 %v4627_v39, %v4627_v39  ;;  %v4240_v46 = vmax.f32 %v3542_v40, %v3862_v41  ;;  %v2905_v47 = vpop.f32.mrf.mxu0  ;;  %v3225_v48 = vpop.f32.mrf.mxu1 }
 0x222   : > { %v4113_v55 = vmax.f32 %v2905_v47, %v3225_v48 }
 0x223   : > { %4884 = vst.msk [vmem:[%s6757_s8 + $0xb8] sm:$0xf] %vm4837_vm2, %v4755_v44  ;;  %v4368_v52 = vmax.f32 %v4112_v45, %v4240_v46 }
 0x224   : > { %6103 = vmatmul.msk.bf16.gmra.mxu0 %vm2003_vm1, %v6361_v42  ;;  %6167 = vmatmul.msk.bf16.gmra.mxu1 %vm2003_vm1, %v6425_v43 }
 0x225   : > { %v4500_v53 = vadd.f32 %v6999_v19, %v4368_v52  ;;  %6231 = vmatmul.msk.bf16.gmra.mxu2 %vm2003_vm1, %v6489_v49  ;;  %6295 = vmatmul.msk.bf16.gmra.mxu3 %vm2003_vm1, %v6553_v51  ;;  %v6364_v52 = vld [vmem:[%s6672_s28 + $0x118] sm:$0xff] }
 0x227   : > { %v4628_v54 = vmax.f32 %v4500_v53, 0.0  ;;  %v6428_v53 = vld [vmem:[%s6672_s28 + $0x318] sm:$0xff] }
 0x228   : > { %v3545_v56 = vpop.f32.mrf.mxu2  ;;  %v3865_v57 = vpop.f32.mrf.mxu3 }
 0x229   : > { %v4756_v58 = vpack.c.bf16 %v4628_v54, %v4628_v54  ;;  %v4241_v59 = vmax.f32 %v3545_v56, %v3865_v57  ;;  %v2907_v60 = vpop.f32.mrf.mxu0  ;;  %v3227_v61 = vpop.f32.mrf.mxu1 }
 0x22a   : > { %v4114_v6 = vmax.f32 %v2907_v60, %v3227_v61  ;;  %v6556_v60 = vld [vmem:[%s6672_s28 + $0x718] sm:$0xff] }
 0x22b   : > { %4885 = vst.msk [vmem:[%s6757_s8 + $0xbc] sm:$0xf] %vm4837_vm2, %v4756_v58  ;;  %v4369_v62 = vmax.f32 %v4113_v55, %v4241_v59  ;;  %v6492_v59 = vld [vmem:[%s6672_s28 + $0x518] sm:$0xff] }
 0x22d   : > { %v4501_v63 = vadd.f32 %v6999_v19, %v4369_v62 }
 0x22f   : > { %v4629_v0 = vmax.f32 %v4501_v63, 0.0 }
 0x230   : > { %v3547_v1 = vpop.f32.mrf.mxu2  ;;  %v3867_v2 = vpop.f32.mrf.mxu3 }
 0x231   : > { %v4757_v5 = vpack.c.bf16 %v4629_v0, %v4629_v0  ;;  %v4242_v7 = vmax.f32 %v3547_v1, %v3867_v2  ;;  %v2910_v8 = vpop.f32.mrf.mxu0  ;;  %v3230_v9 = vpop.f32.mrf.mxu1 }
 0x232   : > { %v4115_v15 = vmax.f32 %v2910_v8, %v3230_v9 }
 0x233   : > { %4886 = vst.msk [vmem:[%s6757_s8 + $0xc0] sm:$0xf] %vm4837_vm2, %v4757_v5  ;;  %v4370_v12 = vmax.f32 %v4114_v6, %v4242_v7 }
 0x234   : > { %6104 = vmatmul.msk.bf16.gmra.mxu0 %vm2003_vm1, %v6362_v3  ;;  %6168 = vmatmul.msk.bf16.gmra.mxu1 %vm2003_vm1, %v6426_v4 }
 0x235   : > { %v4502_v13 = vadd.f32 %v6999_v19, %v4370_v12  ;;  %6232 = vmatmul.msk.bf16.gmra.mxu2 %vm2003_vm1, %v6490_v10  ;;  %6296 = vmatmul.msk.bf16.gmra.mxu3 %vm2003_vm1, %v6554_v11  ;;  %v6365_v12 = vld [vmem:[%s6672_s28 + $0x120] sm:$0xff] }
 0x237   : > { %v4630_v14 = vmax.f32 %v4502_v13, 0.0  ;;  %v6429_v13 = vld [vmem:[%s6672_s28 + $0x320] sm:$0xff] }
 0x238   : > { %v3550_v16 = vpop.f32.mrf.mxu2  ;;  %v3870_v17 = vpop.f32.mrf.mxu3 }
 0x239   : > { %v4758_v18 = vpack.c.bf16 %v4630_v14, %v4630_v14  ;;  %v4243_v50 = vmax.f32 %v3550_v16, %v3870_v17  ;;  %v2912_v20 = vpop.f32.mrf.mxu0  ;;  %v3232_v21 = vpop.f32.mrf.mxu1 }
 0x23a   : > { %v4116_v30 = vmax.f32 %v2912_v20, %v3232_v21  ;;  %v6557_v20 = vld [vmem:[%s6672_s28 + $0x720] sm:$0xff] }
 0x23b   : > { %4887 = vst.msk [vmem:[%s6757_s8 + $0xc4] sm:$0xf] %vm4837_vm2, %v4758_v18  ;;  %v4371_v22 = vmax.f32 %v4115_v15, %v4243_v50  ;;  %v6493_v50 = vld [vmem:[%s6672_s28 + $0x520] sm:$0xff] }
 0x23d   : > { %v4503_v23 = vadd.f32 %v6999_v19, %v4371_v22 }
 0x23f   : > { %v4631_v24 = vmax.f32 %v4503_v23, 0.0 }
 0x240   : > { %v3552_v25 = vpop.f32.mrf.mxu2  ;;  %v3872_v26 = vpop.f32.mrf.mxu3 }
 0x241   : > { %v4759_v29 = vpack.c.bf16 %v4631_v24, %v4631_v24  ;;  %v4244_v31 = vmax.f32 %v3552_v25, %v3872_v26  ;;  %v2915_v32 = vpop.f32.mrf.mxu0  ;;  %v3235_v33 = vpop.f32.mrf.mxu1 }
 0x242   : > { %v4117_v39 = vmax.f32 %v2915_v32, %v3235_v33 }
 0x243   : > { %4888 = vst.msk [vmem:[%s6757_s8 + $0xc8] sm:$0xf] %vm4837_vm2, %v4759_v29  ;;  %v4372_v36 = vmax.f32 %v4116_v30, %v4244_v31 }
 0x244   : > { %6105 = vmatmul.msk.bf16.gmra.mxu0 %vm2003_vm1, %v6363_v27  ;;  %6169 = vmatmul.msk.bf16.gmra.mxu1 %vm2003_vm1, %v6427_v28 }
 0x245   : > { %v4504_v37 = vadd.f32 %v6999_v19, %v4372_v36  ;;  %6233 = vmatmul.msk.bf16.gmra.mxu2 %vm2003_vm1, %v6491_v34  ;;  %6297 = vmatmul.msk.bf16.gmra.mxu3 %vm2003_vm1, %v6555_v35  ;;  %v6366_v36 = vld [vmem:[%s6672_s28 + $0x128] sm:$0xff] }
 0x247   : > { %v4632_v38 = vmax.f32 %v4504_v37, 0.0  ;;  %v6430_v37 = vld [vmem:[%s6672_s28 + $0x328] sm:$0xff] }
 0x248   : > { %v3555_v40 = vpop.f32.mrf.mxu2  ;;  %v3875_v41 = vpop.f32.mrf.mxu3 }
 0x249   : > { %v4760_v42 = vpack.c.bf16 %v4632_v38, %v4632_v38  ;;  %v4245_v43 = vmax.f32 %v3555_v40, %v3875_v41  ;;  %v2917_v44 = vpop.f32.mrf.mxu0  ;;  %v3237_v45 = vpop.f32.mrf.mxu1 }
 0x24a   : > { %v4118_v55 = vmax.f32 %v2917_v44, %v3237_v45  ;;  %v6558_v44 = vld [vmem:[%s6672_s28 + $0x728] sm:$0xff] }
 0x24b   : > { %4889 = vst.msk [vmem:[%s6757_s8 + $0xcc] sm:$0xf] %vm4837_vm2, %v4760_v42  ;;  %v4373_v46 = vmax.f32 %v4117_v39, %v4245_v43  ;;  %v6494_v43 = vld [vmem:[%s6672_s28 + $0x528] sm:$0xff] }
 0x24d   : > { %v4505_v47 = vadd.f32 %v6999_v19, %v4373_v46 }
 0x24f   : > { %v4633_v48 = vmax.f32 %v4505_v47, 0.0 }
 0x250   : > { %v3557_v49 = vpop.f32.mrf.mxu2  ;;  %v3877_v51 = vpop.f32.mrf.mxu3 }
 0x251   : > { %v4761_v54 = vpack.c.bf16 %v4633_v48, %v4633_v48  ;;  %v4246_v56 = vmax.f32 %v3557_v49, %v3877_v51  ;;  %v2920_v57 = vpop.f32.mrf.mxu0  ;;  %v3240_v58 = vpop.f32.mrf.mxu1 }
 0x252   : > { %v4119_v0 = vmax.f32 %v2920_v57, %v3240_v58 }
 0x253   : > { %4890 = vst.msk [vmem:[%s6757_s8 + $0xd0] sm:$0xf] %vm4837_vm2, %v4761_v54  ;;  %v4374_v61 = vmax.f32 %v4118_v55, %v4246_v56 }
 0x254   : > { %6106 = vmatmul.msk.bf16.gmra.mxu0 %vm2003_vm1, %v6364_v52  ;;  %6170 = vmatmul.msk.bf16.gmra.mxu1 %vm2003_vm1, %v6428_v53 }
 0x255   : > { %v4506_v62 = vadd.f32 %v6999_v19, %v4374_v61  ;;  %6234 = vmatmul.msk.bf16.gmra.mxu2 %vm2003_vm1, %v6492_v59  ;;  %6298 = vmatmul.msk.bf16.gmra.mxu3 %vm2003_vm1, %v6556_v60  ;;  %v6367_v61 = vld [vmem:[%s6672_s28 + $0x130] sm:$0xff] }
 0x257   : > { %v4634_v63 = vmax.f32 %v4506_v62, 0.0  ;;  %v6431_v62 = vld [vmem:[%s6672_s28 + $0x330] sm:$0xff] }
 0x258   : > { %v3560_v1 = vpop.f32.mrf.mxu2  ;;  %v3880_v2 = vpop.f32.mrf.mxu3 }
 0x259   : > { %v4762_v3 = vpack.c.bf16 %v4634_v63, %v4634_v63  ;;  %v4247_v4 = vmax.f32 %v3560_v1, %v3880_v2  ;;  %v2922_v5 = vpop.f32.mrf.mxu0  ;;  %v3242_v6 = vpop.f32.mrf.mxu1 }
 0x25a   : > { %v4120_v15 = vmax.f32 %v2922_v5, %v3242_v6  ;;  %v6559_v5 = vld [vmem:[%s6672_s28 + $0x730] sm:$0xff] }
 0x25b   : > { %4891 = vst.msk [vmem:[%s6757_s8 + $0xd4] sm:$0xf] %vm4837_vm2, %v4762_v3  ;;  %v4375_v7 = vmax.f32 %v4119_v0, %v4247_v4  ;;  %v6495_v4 = vld [vmem:[%s6672_s28 + $0x530] sm:$0xff] }
 0x25d   : > { %v4507_v8 = vadd.f32 %v6999_v19, %v4375_v7 }
 0x25f   : > { %v4635_v9 = vmax.f32 %v4507_v8, 0.0 }
 0x260   : > { %v3562_v10 = vpop.f32.mrf.mxu2  ;;  %v3882_v11 = vpop.f32.mrf.mxu3 }
 0x261   : > { %v4763_v14 = vpack.c.bf16 %v4635_v9, %v4635_v9  ;;  %v4248_v16 = vmax.f32 %v3562_v10, %v3882_v11  ;;  %v2925_v17 = vpop.f32.mrf.mxu0  ;;  %v3245_v18 = vpop.f32.mrf.mxu1 }
 0x262   : > { %v4121_v24 = vmax.f32 %v2925_v17, %v3245_v18 }
 0x263   : > { %4892 = vst.msk [vmem:[%s6757_s8 + $0xd8] sm:$0xf] %vm4837_vm2, %v4763_v14  ;;  %v4376_v21 = vmax.f32 %v4120_v15, %v4248_v16 }
 0x264   : > { %6107 = vmatmul.msk.bf16.gmra.mxu0 %vm2003_vm1, %v6365_v12  ;;  %6171 = vmatmul.msk.bf16.gmra.mxu1 %vm2003_vm1, %v6429_v13 }
 0x265   : > { %v4508_v22 = vadd.f32 %v6999_v19, %v4376_v21  ;;  %6235 = vmatmul.msk.bf16.gmra.mxu2 %vm2003_vm1, %v6493_v50  ;;  %6299 = vmatmul.msk.bf16.gmra.mxu3 %vm2003_vm1, %v6557_v20  ;;  %v6368_v21 = vld [vmem:[%s6672_s28 + $0x138] sm:$0xff] }
 0x267   : > { %v4636_v23 = vmax.f32 %v4508_v22, 0.0  ;;  %v6432_v22 = vld [vmem:[%s6672_s28 + $0x338] sm:$0xff] }
 0x268   : > { %v3565_v25 = vpop.f32.mrf.mxu2  ;;  %v3885_v26 = vpop.f32.mrf.mxu3 }
 0x269   : > { %v4764_v27 = vpack.c.bf16 %v4636_v23, %v4636_v23  ;;  %v4249_v28 = vmax.f32 %v3565_v25, %v3885_v26  ;;  %v2927_v29 = vpop.f32.mrf.mxu0  ;;  %v3247_v30 = vpop.f32.mrf.mxu1 }
 0x26a   : > { %v4122_v39 = vmax.f32 %v2927_v29, %v3247_v30  ;;  %v6560_v29 = vld [vmem:[%s6672_s28 + $0x738] sm:$0xff] }
 0x26b   : > { %4893 = vst.msk [vmem:[%s6757_s8 + $0xdc] sm:$0xf] %vm4837_vm2, %v4764_v27  ;;  %v4377_v31 = vmax.f32 %v4121_v24, %v4249_v28  ;;  %v6496_v28 = vld [vmem:[%s6672_s28 + $0x538] sm:$0xff] }
 0x26d   : > { %v4509_v32 = vadd.f32 %v6999_v19, %v4377_v31 }
 0x26f   : > { %v4637_v33 = vmax.f32 %v4509_v32, 0.0 }
 0x270   : > { %v3567_v34 = vpop.f32.mrf.mxu2  ;;  %v3887_v35 = vpop.f32.mrf.mxu3 }
 0x271   : > { %v4765_v38 = vpack.c.bf16 %v4637_v33, %v4637_v33  ;;  %v4250_v40 = vmax.f32 %v3567_v34, %v3887_v35  ;;  %v2930_v41 = vpop.f32.mrf.mxu0  ;;  %v3250_v42 = vpop.f32.mrf.mxu1 }
 0x272   : > { %v4123_v48 = vmax.f32 %v2930_v41, %v3250_v42 }
 0x273   : > { %4894 = vst.msk [vmem:[%s6757_s8 + $0xe0] sm:$0xf] %vm4837_vm2, %v4765_v38  ;;  %v4378_v45 = vmax.f32 %v4122_v39, %v4250_v40 }
 0x274   : > { %6108 = vmatmul.msk.bf16.gmra.mxu0 %vm2003_vm1, %v6366_v36  ;;  %6172 = vmatmul.msk.bf16.gmra.mxu1 %vm2003_vm1, %v6430_v37 }
 0x275   : > { %v4510_v46 = vadd.f32 %v6999_v19, %v4378_v45  ;;  %6236 = vmatmul.msk.bf16.gmra.mxu2 %vm2003_vm1, %v6494_v43  ;;  %6300 = vmatmul.msk.bf16.gmra.mxu3 %vm2003_vm1, %v6558_v44  ;;  %v6369_v45 = vld [vmem:[%s6672_s28 + $0x140] sm:$0xff] }
 0x277   : > { %v4638_v47 = vmax.f32 %v4510_v46, 0.0  ;;  %v6433_v46 = vld [vmem:[%s6672_s28 + $0x340] sm:$0xff] }
 0x278   : > { %v3570_v49 = vpop.f32.mrf.mxu2  ;;  %v3890_v51 = vpop.f32.mrf.mxu3 }
 0x279   : > { %v4766_v52 = vpack.c.bf16 %v4638_v47, %v4638_v47  ;;  %v4251_v53 = vmax.f32 %v3570_v49, %v3890_v51  ;;  %v2932_v54 = vpop.f32.mrf.mxu0  ;;  %v3252_v55 = vpop.f32.mrf.mxu1 }
 0x27a   : > { %v4124_v0 = vmax.f32 %v2932_v54, %v3252_v55  ;;  %v6561_v54 = vld [vmem:[%s6672_s28 + $0x740] sm:$0xff] }
 0x27b   : > { %4895 = vst.msk [vmem:[%s6757_s8 + $0xe4] sm:$0xf] %vm4837_vm2, %v4766_v52  ;;  %v4379_v56 = vmax.f32 %v4123_v48, %v4251_v53  ;;  %v6497_v53 = vld [vmem:[%s6672_s28 + $0x540] sm:$0xff] }
 0x27d   : > { %v4511_v57 = vadd.f32 %v6999_v19, %v4379_v56 }
 0x27f   : > { %v4639_v58 = vmax.f32 %v4511_v57, 0.0 }
 0x280   : > { %v3572_v59 = vpop.f32.mrf.mxu2  ;;  %v3892_v60 = vpop.f32.mrf.mxu3 }
 0x281   : > { %v4767_v63 = vpack.c.bf16 %v4639_v58, %v4639_v58  ;;  %v4252_v1 = vmax.f32 %v3572_v59, %v3892_v60  ;;  %v2935_v2 = vpop.f32.mrf.mxu0  ;;  %v3255_v3 = vpop.f32.mrf.mxu1 }
 0x282   : > { %v4125_v9 = vmax.f32 %v2935_v2, %v3255_v3 }
 0x283   : > { %4896 = vst.msk [vmem:[%s6757_s8 + $0xe8] sm:$0xf] %vm4837_vm2, %v4767_v63  ;;  %v4380_v6 = vmax.f32 %v4124_v0, %v4252_v1 }
 0x284   : > { %6109 = vmatmul.msk.bf16.gmra.mxu0 %vm2003_vm1, %v6367_v61  ;;  %6173 = vmatmul.msk.bf16.gmra.mxu1 %vm2003_vm1, %v6431_v62 }
 0x285   : > { %v4512_v7 = vadd.f32 %v6999_v19, %v4380_v6  ;;  %6237 = vmatmul.msk.bf16.gmra.mxu2 %vm2003_vm1, %v6495_v4  ;;  %6301 = vmatmul.msk.bf16.gmra.mxu3 %vm2003_vm1, %v6559_v5  ;;  %v6370_v6 = vld [vmem:[%s6672_s28 + $0x148] sm:$0xff] }
 0x287   : > { %v4640_v8 = vmax.f32 %v4512_v7, 0.0  ;;  %v6434_v7 = vld [vmem:[%s6672_s28 + $0x348] sm:$0xff] }
 0x288   : > { %v3575_v10 = vpop.f32.mrf.mxu2  ;;  %v3895_v11 = vpop.f32.mrf.mxu3 }
 0x289   : > { %v4768_v12 = vpack.c.bf16 %v4640_v8, %v4640_v8  ;;  %v4253_v13 = vmax.f32 %v3575_v10, %v3895_v11  ;;  %v2937_v14 = vpop.f32.mrf.mxu0  ;;  %v3257_v15 = vpop.f32.mrf.mxu1 }
 0x28a   : > { %v4126_v24 = vmax.f32 %v2937_v14, %v3257_v15  ;;  %v6562_v14 = vld [vmem:[%s6672_s28 + $0x748] sm:$0xff] }
 0x28b   : > { %4897 = vst.msk [vmem:[%s6757_s8 + $0xec] sm:$0xf] %vm4837_vm2, %v4768_v12  ;;  %v4381_v16 = vmax.f32 %v4125_v9, %v4253_v13  ;;  %v6498_v13 = vld [vmem:[%s6672_s28 + $0x548] sm:$0xff] }
 0x28d   : > { %v4513_v17 = vadd.f32 %v6999_v19, %v4381_v16 }
 0x28f   : > { %v4641_v18 = vmax.f32 %v4513_v17, 0.0 }
 0x290   : > { %v3577_v50 = vpop.f32.mrf.mxu2  ;;  %v3897_v20 = vpop.f32.mrf.mxu3 }
 0x291   : > { %v4769_v23 = vpack.c.bf16 %v4641_v18, %v4641_v18  ;;  %v4254_v25 = vmax.f32 %v3577_v50, %v3897_v20  ;;  %v2940_v26 = vpop.f32.mrf.mxu0  ;;  %v3260_v27 = vpop.f32.mrf.mxu1 }
 0x292   : > { %v4127_v33 = vmax.f32 %v2940_v26, %v3260_v27 }
 0x293   : > { %4898 = vst.msk [vmem:[%s6757_s8 + $0xf0] sm:$0xf] %vm4837_vm2, %v4769_v23  ;;  %v4382_v30 = vmax.f32 %v4126_v24, %v4254_v25 }
 0x294   : > { %6110 = vmatmul.msk.bf16.gmra.mxu0 %vm2003_vm1, %v6368_v21  ;;  %6174 = vmatmul.msk.bf16.gmra.mxu1 %vm2003_vm1, %v6432_v22 }
 0x295   : > { %v4514_v31 = vadd.f32 %v6999_v19, %v4382_v30  ;;  %6238 = vmatmul.msk.bf16.gmra.mxu2 %vm2003_vm1, %v6496_v28  ;;  %6302 = vmatmul.msk.bf16.gmra.mxu3 %vm2003_vm1, %v6560_v29  ;;  %v6371_v30 = vld [vmem:[%s6672_s28 + $0x150] sm:$0xff] }
 0x297   : > { %v4642_v32 = vmax.f32 %v4514_v31, 0.0  ;;  %v6435_v31 = vld [vmem:[%s6672_s28 + $0x350] sm:$0xff] }
 0x298   : > { %v3580_v34 = vpop.f32.mrf.mxu2  ;;  %v3900_v35 = vpop.f32.mrf.mxu3 }
 0x299   : > { %v4770_v36 = vpack.c.bf16 %v4642_v32, %v4642_v32  ;;  %v4255_v37 = vmax.f32 %v3580_v34, %v3900_v35  ;;  %v2942_v38 = vpop.f32.mrf.mxu0  ;;  %v3262_v39 = vpop.f32.mrf.mxu1 }
 0x29a   : > { %v4128_v48 = vmax.f32 %v2942_v38, %v3262_v39  ;;  %v6563_v38 = vld [vmem:[%s6672_s28 + $0x750] sm:$0xff] }
 0x29b   : > { %4899 = vst.msk [vmem:[%s6757_s8 + $0xf4] sm:$0xf] %vm4837_vm2, %v4770_v36  ;;  %v4383_v40 = vmax.f32 %v4127_v33, %v4255_v37  ;;  %v6499_v37 = vld [vmem:[%s6672_s28 + $0x550] sm:$0xff] }
 0x29d   : > { %v4515_v41 = vadd.f32 %v6999_v19, %v4383_v40 }
 0x29f   : > { %v4643_v42 = vmax.f32 %v4515_v41, 0.0 }
 0x2a0   : > { %v3582_v43 = vpop.f32.mrf.mxu2  ;;  %v3902_v44 = vpop.f32.mrf.mxu3 }
 0x2a1   : > { %v4771_v47 = vpack.c.bf16 %v4643_v42, %v4643_v42  ;;  %v4256_v49 = vmax.f32 %v3582_v43, %v3902_v44  ;;  %v2945_v51 = vpop.f32.mrf.mxu0  ;;  %v3265_v52 = vpop.f32.mrf.mxu1 }
 0x2a2   : > { %v4129_v58 = vmax.f32 %v2945_v51, %v3265_v52 }
 0x2a3   : > { %4900 = vst.msk [vmem:[%s6757_s8 + $0xf8] sm:$0xf] %vm4837_vm2, %v4771_v47  ;;  %v4384_v55 = vmax.f32 %v4128_v48, %v4256_v49 }
 0x2a4   : > { %6111 = vmatmul.msk.bf16.gmra.mxu0 %vm2003_vm1, %v6369_v45  ;;  %6175 = vmatmul.msk.bf16.gmra.mxu1 %vm2003_vm1, %v6433_v46 }
 0x2a5   : > { %v4516_v56 = vadd.f32 %v6999_v19, %v4384_v55  ;;  %6239 = vmatmul.msk.bf16.gmra.mxu2 %vm2003_vm1, %v6497_v53  ;;  %6303 = vmatmul.msk.bf16.gmra.mxu3 %vm2003_vm1, %v6561_v54  ;;  %v6372_v55 = vld [vmem:[%s6672_s28 + $0x158] sm:$0xff] }
 0x2a7   : > { %v4644_v57 = vmax.f32 %v4516_v56, 0.0  ;;  %v6436_v56 = vld [vmem:[%s6672_s28 + $0x358] sm:$0xff] }
 0x2a8   : > { %v3585_v59 = vpop.f32.mrf.mxu2  ;;  %v3905_v60 = vpop.f32.mrf.mxu3 }
 0x2a9   : > { %v4772_v61 = vpack.c.bf16 %v4644_v57, %v4644_v57  ;;  %v4257_v62 = vmax.f32 %v3585_v59, %v3905_v60  ;;  %v2947_v63 = vpop.f32.mrf.mxu0  ;;  %v3267_v0 = vpop.f32.mrf.mxu1 }
 0x2aa   : > { %v4130_v9 = vmax.f32 %v2947_v63, %v3267_v0  ;;  %v6564_v63 = vld [vmem:[%s6672_s28 + $0x758] sm:$0xff] }
 0x2ab   : > { %4901 = vst.msk [vmem:[%s6757_s8 + $0xfc] sm:$0xf] %vm4837_vm2, %v4772_v61  ;;  %v4385_v1 = vmax.f32 %v4129_v58, %v4257_v62  ;;  %v6500_v62 = vld [vmem:[%s6672_s28 + $0x558] sm:$0xff] }
 0x2ad   : > { %v4517_v2 = vadd.f32 %v6999_v19, %v4385_v1 }
 0x2af   : > { %v4645_v3 = vmax.f32 %v4517_v2, 0.0 }
 0x2b0   : > { %v3587_v4 = vpop.f32.mrf.mxu2  ;;  %v3907_v5 = vpop.f32.mrf.mxu3 }
 0x2b1   : > { %v4773_v8 = vpack.c.bf16 %v4645_v3, %v4645_v3  ;;  %v4258_v10 = vmax.f32 %v3587_v4, %v3907_v5  ;;  %v2950_v11 = vpop.f32.mrf.mxu0  ;;  %v3270_v12 = vpop.f32.mrf.mxu1 }
 0x2b2   : > { %v4131_v18 = vmax.f32 %v2950_v11, %v3270_v12 }
 0x2b3   : > { %4902 = vst.msk [vmem:[%s6757_s8 + $0x100] sm:$0xf] %vm4837_vm2, %v4773_v8  ;;  %v4386_v15 = vmax.f32 %v4130_v9, %v4258_v10 }
 0x2b4   : > { %6112 = vmatmul.msk.bf16.gmra.mxu0 %vm2003_vm1, %v6370_v6  ;;  %6176 = vmatmul.msk.bf16.gmra.mxu1 %vm2003_vm1, %v6434_v7 }
 0x2b5   : > { %v4518_v16 = vadd.f32 %v6999_v19, %v4386_v15  ;;  %6240 = vmatmul.msk.bf16.gmra.mxu2 %vm2003_vm1, %v6498_v13  ;;  %6304 = vmatmul.msk.bf16.gmra.mxu3 %vm2003_vm1, %v6562_v14  ;;  %v6373_v15 = vld [vmem:[%s6672_s28 + $0x160] sm:$0xff] }
 0x2b7   : > { %v4646_v17 = vmax.f32 %v4518_v16, 0.0  ;;  %v6437_v16 = vld [vmem:[%s6672_s28 + $0x360] sm:$0xff] }
 0x2b8   : > { %v3590_v50 = vpop.f32.mrf.mxu2  ;;  %v3910_v20 = vpop.f32.mrf.mxu3 }
 0x2b9   : > { %v4774_v21 = vpack.c.bf16 %v4646_v17, %v4646_v17  ;;  %v4259_v22 = vmax.f32 %v3590_v50, %v3910_v20  ;;  %v2952_v23 = vpop.f32.mrf.mxu0  ;;  %v3272_v24 = vpop.f32.mrf.mxu1 }
 0x2ba   : > { %v4132_v33 = vmax.f32 %v2952_v23, %v3272_v24  ;;  %v6565_v23 = vld [vmem:[%s6672_s28 + $0x760] sm:$0xff] }
 0x2bb   : > { %4903 = vst.msk [vmem:[%s6757_s8 + $0x104] sm:$0xf] %vm4837_vm2, %v4774_v21  ;;  %v4387_v25 = vmax.f32 %v4131_v18, %v4259_v22  ;;  %v6501_v22 = vld [vmem:[%s6672_s28 + $0x560] sm:$0xff] }
 0x2bd   : > { %v4519_v26 = vadd.f32 %v6999_v19, %v4387_v25 }
 0x2bf   : > { %v4647_v27 = vmax.f32 %v4519_v26, 0.0 }
 0x2c0   : > { %v3592_v28 = vpop.f32.mrf.mxu2  ;;  %v3912_v29 = vpop.f32.mrf.mxu3 }
 0x2c1   : > { %v4775_v32 = vpack.c.bf16 %v4647_v27, %v4647_v27  ;;  %v4260_v34 = vmax.f32 %v3592_v28, %v3912_v29  ;;  %v2955_v35 = vpop.f32.mrf.mxu0  ;;  %v3275_v36 = vpop.f32.mrf.mxu1 }
 0x2c2   : > { %v4133_v42 = vmax.f32 %v2955_v35, %v3275_v36 }
 0x2c3   : > { %4904 = vst.msk [vmem:[%s6757_s8 + $0x108] sm:$0xf] %vm4837_vm2, %v4775_v32  ;;  %v4388_v39 = vmax.f32 %v4132_v33, %v4260_v34 }
 0x2c4   : > { %6113 = vmatmul.msk.bf16.gmra.mxu0 %vm2003_vm1, %v6371_v30  ;;  %6177 = vmatmul.msk.bf16.gmra.mxu1 %vm2003_vm1, %v6435_v31 }
 0x2c5   : > { %v4520_v40 = vadd.f32 %v6999_v19, %v4388_v39  ;;  %6241 = vmatmul.msk.bf16.gmra.mxu2 %vm2003_vm1, %v6499_v37  ;;  %6305 = vmatmul.msk.bf16.gmra.mxu3 %vm2003_vm1, %v6563_v38  ;;  %v6374_v39 = vld [vmem:[%s6672_s28 + $0x168] sm:$0xff] }
 0x2c7   : > { %v4648_v41 = vmax.f32 %v4520_v40, 0.0  ;;  %v6438_v40 = vld [vmem:[%s6672_s28 + $0x368] sm:$0xff] }
 0x2c8   : > { %v3595_v43 = vpop.f32.mrf.mxu2  ;;  %v3915_v44 = vpop.f32.mrf.mxu3 }
 0x2c9   : > { %v4776_v45 = vpack.c.bf16 %v4648_v41, %v4648_v41  ;;  %v4261_v46 = vmax.f32 %v3595_v43, %v3915_v44  ;;  %v2957_v47 = vpop.f32.mrf.mxu0  ;;  %v3277_v48 = vpop.f32.mrf.mxu1 }
 0x2ca   : > { %v4134_v58 = vmax.f32 %v2957_v47, %v3277_v48  ;;  %v6566_v47 = vld [vmem:[%s6672_s28 + $0x768] sm:$0xff] }
 0x2cb   : > { %4905 = vst.msk [vmem:[%s6757_s8 + $0x10c] sm:$0xf] %vm4837_vm2, %v4776_v45  ;;  %v4389_v49 = vmax.f32 %v4133_v42, %v4261_v46  ;;  %v6502_v46 = vld [vmem:[%s6672_s28 + $0x568] sm:$0xff] }
 0x2cd   : > { %v4521_v51 = vadd.f32 %v6999_v19, %v4389_v49  ;;  %v7251_v19 = vld [vmem:[%s7602_s2] ss:$0 sm:$0xff] }
 0x2cf   : > { %v4649_v52 = vmax.f32 %v4521_v51, 0.0 }
 0x2d0   : > { %v3597_v53 = vpop.f32.mrf.mxu2  ;;  %v3917_v54 = vpop.f32.mrf.mxu3 }
 0x2d1   : > { %v4777_v57 = vpack.c.bf16 %v4649_v52, %v4649_v52  ;;  %v4262_v59 = vmax.f32 %v3597_v53, %v3917_v54  ;;  %v2960_v60 = vpop.f32.mrf.mxu0  ;;  %v3280_v61 = vpop.f32.mrf.mxu1 }
 0x2d2   : > { %v4135_v3 = vmax.f32 %v2960_v60, %v3280_v61 }
 0x2d3   : > { %4906 = vst.msk [vmem:[%s6757_s8 + $0x110] sm:$0xf] %vm4837_vm2, %v4777_v57  ;;  %v4390_v0 = vmax.f32 %v4134_v58, %v4262_v59 }
 0x2d4   : > { %6114 = vmatmul.msk.bf16.gmra.mxu0 %vm2003_vm1, %v6372_v55  ;;  %6178 = vmatmul.msk.bf16.gmra.mxu1 %vm2003_vm1, %v6436_v56 }
 0x2d5   : > { %v4522_v1 = vadd.f32 %v7251_v19, %v4390_v0  ;;  %6242 = vmatmul.msk.bf16.gmra.mxu2 %vm2003_vm1, %v6500_v62  ;;  %6306 = vmatmul.msk.bf16.gmra.mxu3 %vm2003_vm1, %v6564_v63  ;;  %v6375_v0 = vld [vmem:[%s6672_s28 + $0x170] sm:$0xff] }
 0x2d7   : > { %v4650_v2 = vmax.f32 %v4522_v1, 0.0  ;;  %v6439_v1 = vld [vmem:[%s6672_s28 + $0x370] sm:$0xff] }
 0x2d8   : > { %v3600_v4 = vpop.f32.mrf.mxu2  ;;  %v3920_v5 = vpop.f32.mrf.mxu3 }
 0x2d9   : > { %v4778_v6 = vpack.c.bf16 %v4650_v2, %v4650_v2  ;;  %v4263_v7 = vmax.f32 %v3600_v4, %v3920_v5  ;;  %v2962_v8 = vpop.f32.mrf.mxu0  ;;  %v3282_v9 = vpop.f32.mrf.mxu1 }
 0x2da   : > { %v4136_v18 = vmax.f32 %v2962_v8, %v3282_v9  ;;  %v6567_v8 = vld [vmem:[%s6672_s28 + $0x770] sm:$0xff] }
 0x2db   : > { %4907 = vst.msk [vmem:[%s6757_s8 + $0x114] sm:$0xf] %vm4837_vm2, %v4778_v6  ;;  %v4391_v10 = vmax.f32 %v4135_v3, %v4263_v7  ;;  %v6503_v7 = vld [vmem:[%s6672_s28 + $0x570] sm:$0xff] }
 0x2dd   : > { %v4523_v11 = vadd.f32 %v7251_v19, %v4391_v10 }
 0x2df   : > { %v4651_v12 = vmax.f32 %v4523_v11, 0.0 }
 0x2e0   : > { %v3602_v13 = vpop.f32.mrf.mxu2  ;;  %v3922_v14 = vpop.f32.mrf.mxu3 }
 0x2e1   : > { %v4779_v17 = vpack.c.bf16 %v4651_v12, %v4651_v12  ;;  %v4264_v50 = vmax.f32 %v3602_v13, %v3922_v14  ;;  %v2965_v20 = vpop.f32.mrf.mxu0  ;;  %v3285_v21 = vpop.f32.mrf.mxu1 }
 0x2e2   : > { %v4137_v27 = vmax.f32 %v2965_v20, %v3285_v21 }
 0x2e3   : > { %4908 = vst.msk [vmem:[%s6757_s8 + $0x118] sm:$0xf] %vm4837_vm2, %v4779_v17  ;;  %v4392_v24 = vmax.f32 %v4136_v18, %v4264_v50 }
 0x2e4   : > { %6115 = vmatmul.msk.bf16.gmra.mxu0 %vm2003_vm1, %v6373_v15  ;;  %6179 = vmatmul.msk.bf16.gmra.mxu1 %vm2003_vm1, %v6437_v16 }
 0x2e5   : > { %v4524_v25 = vadd.f32 %v7251_v19, %v4392_v24  ;;  %6243 = vmatmul.msk.bf16.gmra.mxu2 %vm2003_vm1, %v6501_v22  ;;  %6307 = vmatmul.msk.bf16.gmra.mxu3 %vm2003_vm1, %v6565_v23  ;;  %v6376_v24 = vld [vmem:[%s6672_s28 + $0x178] sm:$0xff] }
 0x2e7   : > { %v4652_v26 = vmax.f32 %v4524_v25, 0.0  ;;  %v6440_v25 = vld [vmem:[%s6672_s28 + $0x378] sm:$0xff] }
 0x2e8   : > { %v3605_v28 = vpop.f32.mrf.mxu2  ;;  %v3925_v29 = vpop.f32.mrf.mxu3 }
 0x2e9   : > { %v4780_v30 = vpack.c.bf16 %v4652_v26, %v4652_v26  ;;  %v4265_v31 = vmax.f32 %v3605_v28, %v3925_v29  ;;  %v2967_v32 = vpop.f32.mrf.mxu0  ;;  %v3287_v33 = vpop.f32.mrf.mxu1 }
 0x2ea   : > { %v4138_v42 = vmax.f32 %v2967_v32, %v3287_v33  ;;  %v6568_v32 = vld [vmem:[%s6672_s28 + $0x778] sm:$0xff] }
 0x2eb   : > { %4909 = vst.msk [vmem:[%s6757_s8 + $0x11c] sm:$0xf] %vm4837_vm2, %v4780_v30  ;;  %v4393_v34 = vmax.f32 %v4137_v27, %v4265_v31  ;;  %v6504_v31 = vld [vmem:[%s6672_s28 + $0x578] sm:$0xff] }
 0x2ed   : > { %v4525_v35 = vadd.f32 %v7251_v19, %v4393_v34 }
 0x2ef   : > { %v4653_v36 = vmax.f32 %v4525_v35, 0.0 }
 0x2f0   : > { %v3607_v37 = vpop.f32.mrf.mxu2  ;;  %v3927_v38 = vpop.f32.mrf.mxu3 }
 0x2f1   : > { %v4781_v41 = vpack.c.bf16 %v4653_v36, %v4653_v36  ;;  %v4266_v43 = vmax.f32 %v3607_v37, %v3927_v38  ;;  %v2970_v44 = vpop.f32.mrf.mxu0  ;;  %v3290_v45 = vpop.f32.mrf.mxu1 }
 0x2f2   : > { %v4139_v52 = vmax.f32 %v2970_v44, %v3290_v45 }
 0x2f3   : > { %4910 = vst.msk [vmem:[%s6757_s8 + $0x120] sm:$0xf] %vm4837_vm2, %v4781_v41  ;;  %v4394_v48 = vmax.f32 %v4138_v42, %v4266_v43 }
 0x2f4   : > { %6116 = vmatmul.msk.bf16.gmra.mxu0 %vm2003_vm1, %v6374_v39  ;;  %6180 = vmatmul.msk.bf16.gmra.mxu1 %vm2003_vm1, %v6438_v40 }
 0x2f5   : > { %v4526_v49 = vadd.f32 %v7251_v19, %v4394_v48  ;;  %6244 = vmatmul.msk.bf16.gmra.mxu2 %vm2003_vm1, %v6502_v46  ;;  %6308 = vmatmul.msk.bf16.gmra.mxu3 %vm2003_vm1, %v6566_v47  ;;  %v6377_v48 = vld [vmem:[%s6672_s28 + $0x180] sm:$0xff] }
 0x2f7   : > { %v4654_v51 = vmax.f32 %v4526_v49, 0.0  ;;  %v6441_v49 = vld [vmem:[%s6672_s28 + $0x380] sm:$0xff] }
 0x2f8   : > { %v3610_v53 = vpop.f32.mrf.mxu2  ;;  %v3930_v54 = vpop.f32.mrf.mxu3 }
 0x2f9   : > { %v4782_v55 = vpack.c.bf16 %v4654_v51, %v4654_v51  ;;  %v4267_v56 = vmax.f32 %v3610_v53, %v3930_v54  ;;  %v2972_v57 = vpop.f32.mrf.mxu0  ;;  %v3292_v58 = vpop.f32.mrf.mxu1 }
 0x2fa   : > { %v4140_v3 = vmax.f32 %v2972_v57, %v3292_v58  ;;  %v6569_v57 = vld [vmem:[%s6672_s28 + $0x780] sm:$0xff] }
 0x2fb   : > { %4911 = vst.msk [vmem:[%s6757_s8 + $0x124] sm:$0xf] %vm4837_vm2, %v4782_v55  ;;  %v4395_v59 = vmax.f32 %v4139_v52, %v4267_v56  ;;  %v6505_v56 = vld [vmem:[%s6672_s28 + $0x580] sm:$0xff] }
 0x2fd   : > { %v4527_v60 = vadd.f32 %v7251_v19, %v4395_v59 }
 0x2ff   : > { %v4655_v61 = vmax.f32 %v4527_v60, 0.0 }
 0x300   : > { %v3612_v62 = vpop.f32.mrf.mxu2  ;;  %v3932_v63 = vpop.f32.mrf.mxu3 }
 0x301   : > { %v4783_v2 = vpack.c.bf16 %v4655_v61, %v4655_v61  ;;  %v4268_v4 = vmax.f32 %v3612_v62, %v3932_v63  ;;  %v2975_v5 = vpop.f32.mrf.mxu0  ;;  %v3295_v6 = vpop.f32.mrf.mxu1 }
 0x302   : > { %v4141_v12 = vmax.f32 %v2975_v5, %v3295_v6 }
 0x303   : > { %4912 = vst.msk [vmem:[%s6757_s8 + $0x128] sm:$0xf] %vm4837_vm2, %v4783_v2  ;;  %v4396_v9 = vmax.f32 %v4140_v3, %v4268_v4 }
 0x304   : > { %6117 = vmatmul.msk.bf16.gmra.mxu0 %vm2003_vm1, %v6375_v0  ;;  %6181 = vmatmul.msk.bf16.gmra.mxu1 %vm2003_vm1, %v6439_v1 }
 0x305   : > { %v4528_v10 = vadd.f32 %v7251_v19, %v4396_v9  ;;  %6245 = vmatmul.msk.bf16.gmra.mxu2 %vm2003_vm1, %v6503_v7  ;;  %6309 = vmatmul.msk.bf16.gmra.mxu3 %vm2003_vm1, %v6567_v8  ;;  %v6378_v9 = vld [vmem:[%s6672_s28 + $0x188] sm:$0xff] }
 0x307   : > { %v4656_v11 = vmax.f32 %v4528_v10, 0.0  ;;  %v6442_v10 = vld [vmem:[%s6672_s28 + $0x388] sm:$0xff] }
 0x308   : > { %v3615_v13 = vpop.f32.mrf.mxu2  ;;  %v3935_v14 = vpop.f32.mrf.mxu3 }
 0x309   : > { %v4784_v15 = vpack.c.bf16 %v4656_v11, %v4656_v11  ;;  %v4269_v16 = vmax.f32 %v3615_v13, %v3935_v14  ;;  %v2977_v17 = vpop.f32.mrf.mxu0  ;;  %v3297_v18 = vpop.f32.mrf.mxu1 }
 0x30a   : > { %v4142_v27 = vmax.f32 %v2977_v17, %v3297_v18  ;;  %v6570_v17 = vld [vmem:[%s6672_s28 + $0x788] sm:$0xff] }
 0x30b   : > { %4913 = vst.msk [vmem:[%s6757_s8 + $0x12c] sm:$0xf] %vm4837_vm2, %v4784_v15  ;;  %v4397_v50 = vmax.f32 %v4141_v12, %v4269_v16  ;;  %v6506_v16 = vld [vmem:[%s6672_s28 + $0x588] sm:$0xff] }
 0x30d   : > { %v4529_v20 = vadd.f32 %v7251_v19, %v4397_v50 }
 0x30f   : > { %v4657_v21 = vmax.f32 %v4529_v20, 0.0 }
 0x310   : > { %v3617_v22 = vpop.f32.mrf.mxu2  ;;  %v3937_v23 = vpop.f32.mrf.mxu3 }
 0x311   : > { %v4785_v26 = vpack.c.bf16 %v4657_v21, %v4657_v21  ;;  %v4270_v28 = vmax.f32 %v3617_v22, %v3937_v23  ;;  %v2980_v29 = vpop.f32.mrf.mxu0  ;;  %v3300_v30 = vpop.f32.mrf.mxu1 }
 0x312   : > { %v4143_v36 = vmax.f32 %v2980_v29, %v3300_v30 }
 0x313   : > { %4914 = vst.msk [vmem:[%s6757_s8 + $0x130] sm:$0xf] %vm4837_vm2, %v4785_v26  ;;  %v4398_v33 = vmax.f32 %v4142_v27, %v4270_v28 }
 0x314   : > { %6118 = vmatmul.msk.bf16.gmra.mxu0 %vm2003_vm1, %v6376_v24  ;;  %6182 = vmatmul.msk.bf16.gmra.mxu1 %vm2003_vm1, %v6440_v25 }
 0x315   : > { %v4530_v34 = vadd.f32 %v7251_v19, %v4398_v33  ;;  %6246 = vmatmul.msk.bf16.gmra.mxu2 %vm2003_vm1, %v6504_v31  ;;  %6310 = vmatmul.msk.bf16.gmra.mxu3 %vm2003_vm1, %v6568_v32  ;;  %v6379_v33 = vld [vmem:[%s6672_s28 + $0x190] sm:$0xff] }
 0x317   : > { %v4658_v35 = vmax.f32 %v4530_v34, 0.0  ;;  %v6443_v34 = vld [vmem:[%s6672_s28 + $0x390] sm:$0xff] }
 0x318   : > { %v3620_v37 = vpop.f32.mrf.mxu2  ;;  %v3940_v38 = vpop.f32.mrf.mxu3 }
 0x319   : > { %v4786_v39 = vpack.c.bf16 %v4658_v35, %v4658_v35  ;;  %v4271_v40 = vmax.f32 %v3620_v37, %v3940_v38  ;;  %v2982_v41 = vpop.f32.mrf.mxu0  ;;  %v3302_v42 = vpop.f32.mrf.mxu1 }
 0x31a   : > { %v4144_v52 = vmax.f32 %v2982_v41, %v3302_v42  ;;  %v6571_v41 = vld [vmem:[%s6672_s28 + $0x790] sm:$0xff] }
 0x31b   : > { %4915 = vst.msk [vmem:[%s6757_s8 + $0x134] sm:$0xf] %vm4837_vm2, %v4786_v39  ;;  %v4399_v43 = vmax.f32 %v4143_v36, %v4271_v40  ;;  %v6507_v40 = vld [vmem:[%s6672_s28 + $0x590] sm:$0xff] }
 0x31d   : > { %v4531_v44 = vadd.f32 %v7251_v19, %v4399_v43 }
 0x31f   : > { %v4659_v45 = vmax.f32 %v4531_v44, 0.0 }
 0x320   : > { %v3622_v46 = vpop.f32.mrf.mxu2  ;;  %v3942_v47 = vpop.f32.mrf.mxu3 }
 0x321   : > { %v4787_v51 = vpack.c.bf16 %v4659_v45, %v4659_v45  ;;  %v4272_v53 = vmax.f32 %v3622_v46, %v3942_v47  ;;  %v2985_v54 = vpop.f32.mrf.mxu0  ;;  %v3305_v55 = vpop.f32.mrf.mxu1 }
 0x322   : > { %v4145_v61 = vmax.f32 %v2985_v54, %v3305_v55 }
 0x323   : > { %4916 = vst.msk [vmem:[%s6757_s8 + $0x138] sm:$0xf] %vm4837_vm2, %v4787_v51  ;;  %v4400_v58 = vmax.f32 %v4144_v52, %v4272_v53 }
 0x324   : > { %6119 = vmatmul.msk.bf16.gmra.mxu0 %vm2003_vm1, %v6377_v48  ;;  %6183 = vmatmul.msk.bf16.gmra.mxu1 %vm2003_vm1, %v6441_v49 }
 0x325   : > { %v4532_v59 = vadd.f32 %v7251_v19, %v4400_v58  ;;  %6247 = vmatmul.msk.bf16.gmra.mxu2 %vm2003_vm1, %v6505_v56  ;;  %6311 = vmatmul.msk.bf16.gmra.mxu3 %vm2003_vm1, %v6569_v57  ;;  %v6380_v58 = vld [vmem:[%s6672_s28 + $0x198] sm:$0xff] }
 0x327   : > { %v4660_v60 = vmax.f32 %v4532_v59, 0.0  ;;  %v6444_v59 = vld [vmem:[%s6672_s28 + $0x398] sm:$0xff] }
 0x328   : > { %v3625_v62 = vpop.f32.mrf.mxu2  ;;  %v3945_v63 = vpop.f32.mrf.mxu3 }
 0x329   : > { %v4788_v0 = vpack.c.bf16 %v4660_v60, %v4660_v60  ;;  %v4273_v1 = vmax.f32 %v3625_v62, %v3945_v63  ;;  %v2987_v2 = vpop.f32.mrf.mxu0  ;;  %v3307_v3 = vpop.f32.mrf.mxu1 }
 0x32a   : > { %v4146_v12 = vmax.f32 %v2987_v2, %v3307_v3  ;;  %v6572_v2 = vld [vmem:[%s6672_s28 + $0x798] sm:$0xff] }
 0x32b   : > { %4917 = vst.msk [vmem:[%s6757_s8 + $0x13c] sm:$0xf] %vm4837_vm2, %v4788_v0  ;;  %v4401_v4 = vmax.f32 %v4145_v61, %v4273_v1  ;;  %v6508_v1 = vld [vmem:[%s6672_s28 + $0x598] sm:$0xff] }
 0x32d   : > { %v4533_v5 = vadd.f32 %v7251_v19, %v4401_v4 }
 0x32f   : > { %v4661_v6 = vmax.f32 %v4533_v5, 0.0 }
 0x330   : > { %v3627_v7 = vpop.f32.mrf.mxu2  ;;  %v3947_v8 = vpop.f32.mrf.mxu3 }
 0x331   : > { %v4789_v11 = vpack.c.bf16 %v4661_v6, %v4661_v6  ;;  %v4274_v13 = vmax.f32 %v3627_v7, %v3947_v8  ;;  %v2990_v14 = vpop.f32.mrf.mxu0  ;;  %v3310_v15 = vpop.f32.mrf.mxu1 }
 0x332   : > { %v4147_v21 = vmax.f32 %v2990_v14, %v3310_v15 }
 0x333   : > { %4918 = vst.msk [vmem:[%s6757_s8 + $0x140] sm:$0xf] %vm4837_vm2, %v4789_v11  ;;  %v4402_v18 = vmax.f32 %v4146_v12, %v4274_v13 }
 0x334   : > { %6120 = vmatmul.msk.bf16.gmra.mxu0 %vm2003_vm1, %v6378_v9  ;;  %6184 = vmatmul.msk.bf16.gmra.mxu1 %vm2003_vm1, %v6442_v10 }
 0x335   : > { %v4534_v50 = vadd.f32 %v7251_v19, %v4402_v18  ;;  %6248 = vmatmul.msk.bf16.gmra.mxu2 %vm2003_vm1, %v6506_v16  ;;  %6312 = vmatmul.msk.bf16.gmra.mxu3 %vm2003_vm1, %v6570_v17  ;;  %v6381_v18 = vld [vmem:[%s6672_s28 + $0x1a0] sm:$0xff] }
 0x337   : > { %v4662_v20 = vmax.f32 %v4534_v50, 0.0  ;;  %v6445_v50 = vld [vmem:[%s6672_s28 + $0x3a0] sm:$0xff] }
 0x338   : > { %v3630_v22 = vpop.f32.mrf.mxu2  ;;  %v3950_v23 = vpop.f32.mrf.mxu3 }
 0x339   : > { %v4790_v24 = vpack.c.bf16 %v4662_v20, %v4662_v20  ;;  %v4275_v25 = vmax.f32 %v3630_v22, %v3950_v23  ;;  %v2992_v26 = vpop.f32.mrf.mxu0  ;;  %v3312_v27 = vpop.f32.mrf.mxu1 }
 0x33a   : > { %v4148_v36 = vmax.f32 %v2992_v26, %v3312_v27  ;;  %v6573_v26 = vld [vmem:[%s6672_s28 + $0x7a0] sm:$0xff] }
 0x33b   : > { %4919 = vst.msk [vmem:[%s6757_s8 + $0x144] sm:$0xf] %vm4837_vm2, %v4790_v24  ;;  %v4403_v28 = vmax.f32 %v4147_v21, %v4275_v25  ;;  %v6509_v25 = vld [vmem:[%s6672_s28 + $0x5a0] sm:$0xff] }
 0x33d   : > { %v4535_v29 = vadd.f32 %v7251_v19, %v4403_v28 }
 0x33f   : > { %v4663_v30 = vmax.f32 %v4535_v29, 0.0 }
 0x340   : > { %v3632_v31 = vpop.f32.mrf.mxu2  ;;  %v3952_v32 = vpop.f32.mrf.mxu3 }
 0x341   : > { %v4791_v35 = vpack.c.bf16 %v4663_v30, %v4663_v30  ;;  %v4276_v37 = vmax.f32 %v3632_v31, %v3952_v32  ;;  %v2995_v38 = vpop.f32.mrf.mxu0  ;;  %v3315_v39 = vpop.f32.mrf.mxu1 }
 0x342   : > { %v4149_v45 = vmax.f32 %v2995_v38, %v3315_v39 }
 0x343   : > { %4920 = vst.msk [vmem:[%s6757_s8 + $0x148] sm:$0xf] %vm4837_vm2, %v4791_v35  ;;  %v4404_v42 = vmax.f32 %v4148_v36, %v4276_v37 }
 0x344   : > { %6121 = vmatmul.msk.bf16.gmra.mxu0 %vm2003_vm1, %v6379_v33  ;;  %6185 = vmatmul.msk.bf16.gmra.mxu1 %vm2003_vm1, %v6443_v34 }
 0x345   : > { %v4536_v43 = vadd.f32 %v7251_v19, %v4404_v42  ;;  %6249 = vmatmul.msk.bf16.gmra.mxu2 %vm2003_vm1, %v6507_v40  ;;  %6313 = vmatmul.msk.bf16.gmra.mxu3 %vm2003_vm1, %v6571_v41  ;;  %v6382_v42 = vld [vmem:[%s6672_s28 + $0x1a8] sm:$0xff] }
 0x347   : > { %v4664_v44 = vmax.f32 %v4536_v43, 0.0  ;;  %v6446_v43 = vld [vmem:[%s6672_s28 + $0x3a8] sm:$0xff] }
 0x348   : > { %v3635_v46 = vpop.f32.mrf.mxu2  ;;  %v3955_v47 = vpop.f32.mrf.mxu3 }
 0x349   : > { %v4792_v48 = vpack.c.bf16 %v4664_v44, %v4664_v44  ;;  %v4277_v49 = vmax.f32 %v3635_v46, %v3955_v47  ;;  %v2997_v51 = vpop.f32.mrf.mxu0  ;;  %v3317_v52 = vpop.f32.mrf.mxu1 }
 0x34a   : > { %v4150_v61 = vmax.f32 %v2997_v51, %v3317_v52  ;;  %v6574_v51 = vld [vmem:[%s6672_s28 + $0x7a8] sm:$0xff] }
 0x34b   : > { %4921 = vst.msk [vmem:[%s6757_s8 + $0x14c] sm:$0xf] %vm4837_vm2, %v4792_v48  ;;  %v4405_v53 = vmax.f32 %v4149_v45, %v4277_v49  ;;  %v6510_v49 = vld [vmem:[%s6672_s28 + $0x5a8] sm:$0xff] }
 0x34d   : > { %v4537_v54 = vadd.f32 %v7251_v19, %v4405_v53 }
 0x34f   : > { %v4665_v55 = vmax.f32 %v4537_v54, 0.0 }
 0x350   : > { %v3637_v56 = vpop.f32.mrf.mxu2  ;;  %v3957_v57 = vpop.f32.mrf.mxu3 }
 0x351   : > { %v4793_v60 = vpack.c.bf16 %v4665_v55, %v4665_v55  ;;  %v4278_v62 = vmax.f32 %v3637_v56, %v3957_v57  ;;  %v3000_v63 = vpop.f32.mrf.mxu0  ;;  %v3320_v0 = vpop.f32.mrf.mxu1 }
 0x352   : > { %v4151_v6 = vmax.f32 %v3000_v63, %v3320_v0 }
 0x353   : > { %4922 = vst.msk [vmem:[%s6757_s8 + $0x150] sm:$0xf] %vm4837_vm2, %v4793_v60  ;;  %v4406_v3 = vmax.f32 %v4150_v61, %v4278_v62 }
 0x354   : > { %6122 = vmatmul.msk.bf16.gmra.mxu0 %vm2003_vm1, %v6380_v58  ;;  %6186 = vmatmul.msk.bf16.gmra.mxu1 %vm2003_vm1, %v6444_v59 }
 0x355   : > { %v4538_v4 = vadd.f32 %v7251_v19, %v4406_v3  ;;  %6250 = vmatmul.msk.bf16.gmra.mxu2 %vm2003_vm1, %v6508_v1  ;;  %6314 = vmatmul.msk.bf16.gmra.mxu3 %vm2003_vm1, %v6572_v2  ;;  %v6383_v3 = vld [vmem:[%s6672_s28 + $0x1b0] sm:$0xff] }
 0x357   : > { %v4666_v5 = vmax.f32 %v4538_v4, 0.0  ;;  %v6447_v4 = vld [vmem:[%s6672_s28 + $0x3b0] sm:$0xff] }
 0x358   : > { %v3640_v7 = vpop.f32.mrf.mxu2  ;;  %v3960_v8 = vpop.f32.mrf.mxu3 }
 0x359   : > { %v4794_v9 = vpack.c.bf16 %v4666_v5, %v4666_v5  ;;  %v4279_v10 = vmax.f32 %v3640_v7, %v3960_v8  ;;  %v3002_v11 = vpop.f32.mrf.mxu0  ;;  %v3322_v12 = vpop.f32.mrf.mxu1 }
 0x35a   : > { %v4152_v21 = vmax.f32 %v3002_v11, %v3322_v12  ;;  %v6575_v11 = vld [vmem:[%s6672_s28 + $0x7b0] sm:$0xff] }
 0x35b   : > { %4923 = vst.msk [vmem:[%s6757_s8 + $0x154] sm:$0xf] %vm4837_vm2, %v4794_v9  ;;  %v4407_v13 = vmax.f32 %v4151_v6, %v4279_v10  ;;  %v6511_v10 = vld [vmem:[%s6672_s28 + $0x5b0] sm:$0xff] }
 0x35d   : > { %v4539_v14 = vadd.f32 %v7251_v19, %v4407_v13 }
 0x35f   : > { %v4667_v15 = vmax.f32 %v4539_v14, 0.0 }
 0x360   : > { %v3642_v16 = vpop.f32.mrf.mxu2  ;;  %v3962_v17 = vpop.f32.mrf.mxu3 }
 0x361   : > { %v4795_v20 = vpack.c.bf16 %v4667_v15, %v4667_v15  ;;  %v4280_v22 = vmax.f32 %v3642_v16, %v3962_v17  ;;  %v3005_v23 = vpop.f32.mrf.mxu0  ;;  %v3325_v24 = vpop.f32.mrf.mxu1 }
 0x362   : > { %v4153_v30 = vmax.f32 %v3005_v23, %v3325_v24 }
 0x363   : > { %4924 = vst.msk [vmem:[%s6757_s8 + $0x158] sm:$0xf] %vm4837_vm2, %v4795_v20  ;;  %v4408_v27 = vmax.f32 %v4152_v21, %v4280_v22 }
 0x364   : > { %6123 = vmatmul.msk.bf16.gmra.mxu0 %vm2003_vm1, %v6381_v18  ;;  %6187 = vmatmul.msk.bf16.gmra.mxu1 %vm2003_vm1, %v6445_v50 }
 0x365   : > { %v4540_v28 = vadd.f32 %v7251_v19, %v4408_v27  ;;  %6251 = vmatmul.msk.bf16.gmra.mxu2 %vm2003_vm1, %v6509_v25  ;;  %6315 = vmatmul.msk.bf16.gmra.mxu3 %vm2003_vm1, %v6573_v26  ;;  %v6384_v27 = vld [vmem:[%s6672_s28 + $0x1b8] sm:$0xff] }
 0x367   : > { %v4668_v29 = vmax.f32 %v4540_v28, 0.0  ;;  %v6448_v28 = vld [vmem:[%s6672_s28 + $0x3b8] sm:$0xff] }
 0x368   : > { %v3645_v31 = vpop.f32.mrf.mxu2  ;;  %v3965_v32 = vpop.f32.mrf.mxu3 }
 0x369   : > { %v4796_v33 = vpack.c.bf16 %v4668_v29, %v4668_v29  ;;  %v4281_v34 = vmax.f32 %v3645_v31, %v3965_v32  ;;  %v3007_v35 = vpop.f32.mrf.mxu0  ;;  %v3327_v36 = vpop.f32.mrf.mxu1 }
 0x36a   : > { %v4154_v45 = vmax.f32 %v3007_v35, %v3327_v36  ;;  %v6576_v35 = vld [vmem:[%s6672_s28 + $0x7b8] sm:$0xff] }
 0x36b   : > { %4925 = vst.msk [vmem:[%s6757_s8 + $0x15c] sm:$0xf] %vm4837_vm2, %v4796_v33  ;;  %v4409_v37 = vmax.f32 %v4153_v30, %v4281_v34  ;;  %v6512_v34 = vld [vmem:[%s6672_s28 + $0x5b8] sm:$0xff] }
 0x36d   : > { %v4541_v38 = vadd.f32 %v7251_v19, %v4409_v37 }
 0x36f   : > { %v4669_v39 = vmax.f32 %v4541_v38, 0.0 }
 0x370   : > { %v3647_v40 = vpop.f32.mrf.mxu2  ;;  %v3967_v41 = vpop.f32.mrf.mxu3 }
 0x371   : > { %v4797_v44 = vpack.c.bf16 %v4669_v39, %v4669_v39  ;;  %v4282_v46 = vmax.f32 %v3647_v40, %v3967_v41  ;;  %v3010_v47 = vpop.f32.mrf.mxu0  ;;  %v3330_v48 = vpop.f32.mrf.mxu1 }
 0x372   : > { %v4155_v55 = vmax.f32 %v3010_v47, %v3330_v48 }
 0x373   : > { %4926 = vst.msk [vmem:[%s6757_s8 + $0x160] sm:$0xf] %vm4837_vm2, %v4797_v44  ;;  %v4410_v52 = vmax.f32 %v4154_v45, %v4282_v46 }
 0x374   : > { %6124 = vmatmul.msk.bf16.gmra.mxu0 %vm2003_vm1, %v6382_v42  ;;  %6188 = vmatmul.msk.bf16.gmra.mxu1 %vm2003_vm1, %v6446_v43 }
 0x375   : > { %v4542_v53 = vadd.f32 %v7251_v19, %v4410_v52  ;;  %6252 = vmatmul.msk.bf16.gmra.mxu2 %vm2003_vm1, %v6510_v49  ;;  %6316 = vmatmul.msk.bf16.gmra.mxu3 %vm2003_vm1, %v6574_v51  ;;  %v6385_v52 = vld [vmem:[%s6672_s28 + $0x1c0] sm:$0xff] }
 0x377   : > { %v4670_v54 = vmax.f32 %v4542_v53, 0.0  ;;  %v6449_v53 = vld [vmem:[%s6672_s28 + $0x3c0] sm:$0xff] }
 0x378   : > { %v3650_v56 = vpop.f32.mrf.mxu2  ;;  %v3970_v57 = vpop.f32.mrf.mxu3 }
 0x379   : > { %v4798_v58 = vpack.c.bf16 %v4670_v54, %v4670_v54  ;;  %v4283_v59 = vmax.f32 %v3650_v56, %v3970_v57  ;;  %v3012_v60 = vpop.f32.mrf.mxu0  ;;  %v3332_v61 = vpop.f32.mrf.mxu1 }
 0x37a   : > { %v4156_v6 = vmax.f32 %v3012_v60, %v3332_v61  ;;  %v6577_v60 = vld [vmem:[%s6672_s28 + $0x7c0] sm:$0xff] }
 0x37b   : > { %4927 = vst.msk [vmem:[%s6757_s8 + $0x164] sm:$0xf] %vm4837_vm2, %v4798_v58  ;;  %v4411_v62 = vmax.f32 %v4155_v55, %v4283_v59  ;;  %v6513_v59 = vld [vmem:[%s6672_s28 + $0x5c0] sm:$0xff] }
 0x37d   : > { %v4543_v63 = vadd.f32 %v7251_v19, %v4411_v62 }
 0x37f   : > { %v4671_v0 = vmax.f32 %v4543_v63, 0.0 }
 0x380   : > { %v3652_v1 = vpop.f32.mrf.mxu2  ;;  %v3972_v2 = vpop.f32.mrf.mxu3 }
 0x381   : > { %v4799_v5 = vpack.c.bf16 %v4671_v0, %v4671_v0  ;;  %v4284_v7 = vmax.f32 %v3652_v1, %v3972_v2  ;;  %v3015_v8 = vpop.f32.mrf.mxu0  ;;  %v3335_v9 = vpop.f32.mrf.mxu1 }
 0x382   : > { %v4157_v15 = vmax.f32 %v3015_v8, %v3335_v9 }
 0x383   : > { %4928 = vst.msk [vmem:[%s6757_s8 + $0x168] sm:$0xf] %vm4837_vm2, %v4799_v5  ;;  %v4412_v12 = vmax.f32 %v4156_v6, %v4284_v7 }
 0x384   : > { %6125 = vmatmul.msk.bf16.gmra.mxu0 %vm2003_vm1, %v6383_v3  ;;  %6189 = vmatmul.msk.bf16.gmra.mxu1 %vm2003_vm1, %v6447_v4 }
 0x385   : > { %v4544_v13 = vadd.f32 %v7251_v19, %v4412_v12  ;;  %6253 = vmatmul.msk.bf16.gmra.mxu2 %vm2003_vm1, %v6511_v10  ;;  %6317 = vmatmul.msk.bf16.gmra.mxu3 %vm2003_vm1, %v6575_v11  ;;  %v6386_v12 = vld [vmem:[%s6672_s28 + $0x1c8] sm:$0xff] }
 0x387   : > { %v4672_v14 = vmax.f32 %v4544_v13, 0.0  ;;  %v6450_v13 = vld [vmem:[%s6672_s28 + $0x3c8] sm:$0xff] }
 0x388   : > { %v3655_v16 = vpop.f32.mrf.mxu2  ;;  %v3975_v17 = vpop.f32.mrf.mxu3 }
 0x389   : > { %v4800_v18 = vpack.c.bf16 %v4672_v14, %v4672_v14  ;;  %v4285_v50 = vmax.f32 %v3655_v16, %v3975_v17  ;;  %v3017_v20 = vpop.f32.mrf.mxu0  ;;  %v3337_v21 = vpop.f32.mrf.mxu1 }
 0x38a   : > { %v4158_v30 = vmax.f32 %v3017_v20, %v3337_v21  ;;  %v6578_v20 = vld [vmem:[%s6672_s28 + $0x7c8] sm:$0xff] }
 0x38b   : > { %4929 = vst.msk [vmem:[%s6757_s8 + $0x16c] sm:$0xf] %vm4837_vm2, %v4800_v18  ;;  %v4413_v22 = vmax.f32 %v4157_v15, %v4285_v50  ;;  %v6514_v50 = vld [vmem:[%s6672_s28 + $0x5c8] sm:$0xff] }
 0x38d   : > { %v4545_v23 = vadd.f32 %v7251_v19, %v4413_v22 }
 0x38f   : > { %v4673_v24 = vmax.f32 %v4545_v23, 0.0 }
 0x390   : > { %v3657_v25 = vpop.f32.mrf.mxu2  ;;  %v3977_v26 = vpop.f32.mrf.mxu3 }
 0x391   : > { %v4801_v29 = vpack.c.bf16 %v4673_v24, %v4673_v24  ;;  %v4286_v31 = vmax.f32 %v3657_v25, %v3977_v26  ;;  %v3020_v32 = vpop.f32.mrf.mxu0  ;;  %v3340_v33 = vpop.f32.mrf.mxu1 }
 0x392   : > { %v4159_v39 = vmax.f32 %v3020_v32, %v3340_v33 }
 0x393   : > { %4930 = vst.msk [vmem:[%s6757_s8 + $0x170] sm:$0xf] %vm4837_vm2, %v4801_v29  ;;  %v4414_v36 = vmax.f32 %v4158_v30, %v4286_v31 }
 0x394   : > { %6126 = vmatmul.msk.bf16.gmra.mxu0 %vm2003_vm1, %v6384_v27  ;;  %6190 = vmatmul.msk.bf16.gmra.mxu1 %vm2003_vm1, %v6448_v28 }
 0x395   : > { %v4546_v37 = vadd.f32 %v7251_v19, %v4414_v36  ;;  %6254 = vmatmul.msk.bf16.gmra.mxu2 %vm2003_vm1, %v6512_v34  ;;  %6318 = vmatmul.msk.bf16.gmra.mxu3 %vm2003_vm1, %v6576_v35  ;;  %v6387_v36 = vld [vmem:[%s6672_s28 + $0x1d0] sm:$0xff] }
 0x397   : > { %v4674_v38 = vmax.f32 %v4546_v37, 0.0  ;;  %v6451_v37 = vld [vmem:[%s6672_s28 + $0x3d0] sm:$0xff] }
 0x398   : > { %v3660_v40 = vpop.f32.mrf.mxu2  ;;  %v3980_v41 = vpop.f32.mrf.mxu3 }
 0x399   : > { %v4802_v42 = vpack.c.bf16 %v4674_v38, %v4674_v38  ;;  %v4287_v43 = vmax.f32 %v3660_v40, %v3980_v41  ;;  %v3022_v44 = vpop.f32.mrf.mxu0  ;;  %v3342_v45 = vpop.f32.mrf.mxu1 }
 0x39a   : > { %v4160_v55 = vmax.f32 %v3022_v44, %v3342_v45  ;;  %v6579_v44 = vld [vmem:[%s6672_s28 + $0x7d0] sm:$0xff] }
 0x39b   : > { %4931 = vst.msk [vmem:[%s6757_s8 + $0x174] sm:$0xf] %vm4837_vm2, %v4802_v42  ;;  %v4415_v46 = vmax.f32 %v4159_v39, %v4287_v43  ;;  %v6515_v43 = vld [vmem:[%s6672_s28 + $0x5d0] sm:$0xff] }
 0x39d   : > { %v4547_v47 = vadd.f32 %v7251_v19, %v4415_v46 }
 0x39f   : > { %v4675_v48 = vmax.f32 %v4547_v47, 0.0 }
 0x3a0   : > { %v3662_v49 = vpop.f32.mrf.mxu2  ;;  %v3982_v51 = vpop.f32.mrf.mxu3 }
 0x3a1   : > { %v4803_v54 = vpack.c.bf16 %v4675_v48, %v4675_v48  ;;  %v4288_v56 = vmax.f32 %v3662_v49, %v3982_v51  ;;  %v3025_v57 = vpop.f32.mrf.mxu0  ;;  %v3345_v58 = vpop.f32.mrf.mxu1 }
 0x3a2   : > { %v4161_v0 = vmax.f32 %v3025_v57, %v3345_v58 }
 0x3a3   : > { %4932 = vst.msk [vmem:[%s6757_s8 + $0x178] sm:$0xf] %vm4837_vm2, %v4803_v54  ;;  %v4416_v61 = vmax.f32 %v4160_v55, %v4288_v56 }
 0x3a4   : > { %6127 = vmatmul.msk.bf16.gmra.mxu0 %vm2003_vm1, %v6385_v52  ;;  %6191 = vmatmul.msk.bf16.gmra.mxu1 %vm2003_vm1, %v6449_v53 }
 0x3a5   : > { %v4548_v62 = vadd.f32 %v7251_v19, %v4416_v61  ;;  %6255 = vmatmul.msk.bf16.gmra.mxu2 %vm2003_vm1, %v6513_v59  ;;  %6319 = vmatmul.msk.bf16.gmra.mxu3 %vm2003_vm1, %v6577_v60  ;;  %v6388_v61 = vld [vmem:[%s6672_s28 + $0x1d8] sm:$0xff] }
 0x3a7   : > { %v4676_v63 = vmax.f32 %v4548_v62, 0.0  ;;  %v6452_v62 = vld [vmem:[%s6672_s28 + $0x3d8] sm:$0xff] }
 0x3a8   : > { %v3665_v1 = vpop.f32.mrf.mxu2  ;;  %v3985_v2 = vpop.f32.mrf.mxu3 }
 0x3a9   : > { %v4804_v3 = vpack.c.bf16 %v4676_v63, %v4676_v63  ;;  %v4289_v4 = vmax.f32 %v3665_v1, %v3985_v2  ;;  %v3027_v5 = vpop.f32.mrf.mxu0  ;;  %v3347_v6 = vpop.f32.mrf.mxu1 }
 0x3aa   : > { %v4162_v15 = vmax.f32 %v3027_v5, %v3347_v6  ;;  %v6580_v5 = vld [vmem:[%s6672_s28 + $0x7d8] sm:$0xff] }
 0x3ab   : > { %4933 = vst.msk [vmem:[%s6757_s8 + $0x17c] sm:$0xf] %vm4837_vm2, %v4804_v3  ;;  %v4417_v7 = vmax.f32 %v4161_v0, %v4289_v4  ;;  %v6516_v4 = vld [vmem:[%s6672_s28 + $0x5d8] sm:$0xff] }
 0x3ad   : > { %v4549_v8 = vadd.f32 %v7251_v19, %v4417_v7 }
 0x3af   : > { %v4677_v9 = vmax.f32 %v4549_v8, 0.0 }
 0x3b0   : > { %v3667_v10 = vpop.f32.mrf.mxu2  ;;  %v3987_v11 = vpop.f32.mrf.mxu3 }
 0x3b1   : > { %v4805_v14 = vpack.c.bf16 %v4677_v9, %v4677_v9  ;;  %v4290_v16 = vmax.f32 %v3667_v10, %v3987_v11  ;;  %v3030_v17 = vpop.f32.mrf.mxu0  ;;  %v3350_v18 = vpop.f32.mrf.mxu1 }
 0x3b2   : > { %v4163_v24 = vmax.f32 %v3030_v17, %v3350_v18 }
 0x3b3   : > { %4934 = vst.msk [vmem:[%s6757_s8 + $0x180] sm:$0xf] %vm4837_vm2, %v4805_v14  ;;  %v4418_v21 = vmax.f32 %v4162_v15, %v4290_v16 }
 0x3b4   : > { %6128 = vmatmul.msk.bf16.gmra.mxu0 %vm2003_vm1, %v6386_v12  ;;  %6192 = vmatmul.msk.bf16.gmra.mxu1 %vm2003_vm1, %v6450_v13 }
 0x3b5   : > { %v4550_v22 = vadd.f32 %v7251_v19, %v4418_v21  ;;  %6256 = vmatmul.msk.bf16.gmra.mxu2 %vm2003_vm1, %v6514_v50  ;;  %6320 = vmatmul.msk.bf16.gmra.mxu3 %vm2003_vm1, %v6578_v20  ;;  %v6389_v21 = vld [vmem:[%s6672_s28 + $0x1e0] sm:$0xff] }
 0x3b7   : > { %v4678_v23 = vmax.f32 %v4550_v22, 0.0  ;;  %v6453_v22 = vld [vmem:[%s6672_s28 + $0x3e0] sm:$0xff] }
 0x3b8   : > { %v3670_v25 = vpop.f32.mrf.mxu2  ;;  %v3990_v26 = vpop.f32.mrf.mxu3 }
 0x3b9   : > { %v4806_v27 = vpack.c.bf16 %v4678_v23, %v4678_v23  ;;  %v4291_v28 = vmax.f32 %v3670_v25, %v3990_v26  ;;  %v3032_v29 = vpop.f32.mrf.mxu0  ;;  %v3352_v30 = vpop.f32.mrf.mxu1 }
 0x3ba   : > { %v4164_v39 = vmax.f32 %v3032_v29, %v3352_v30  ;;  %v6581_v29 = vld [vmem:[%s6672_s28 + $0x7e0] sm:$0xff] }
 0x3bb   : > { %4935 = vst.msk [vmem:[%s6757_s8 + $0x184] sm:$0xf] %vm4837_vm2, %v4806_v27  ;;  %v4419_v31 = vmax.f32 %v4163_v24, %v4291_v28  ;;  %v6517_v28 = vld [vmem:[%s6672_s28 + $0x5e0] sm:$0xff] }
 0x3bd   : > { %v4551_v32 = vadd.f32 %v7251_v19, %v4419_v31 }
 0x3bf   : > { %v4679_v33 = vmax.f32 %v4551_v32, 0.0 }
 0x3c0   : > { %v3672_v34 = vpop.f32.mrf.mxu2  ;;  %v3992_v35 = vpop.f32.mrf.mxu3 }
 0x3c1   : > { %v4807_v38 = vpack.c.bf16 %v4679_v33, %v4679_v33  ;;  %v4292_v40 = vmax.f32 %v3672_v34, %v3992_v35  ;;  %v3035_v41 = vpop.f32.mrf.mxu0  ;;  %v3355_v42 = vpop.f32.mrf.mxu1 }
 0x3c2   : > { %v4165_v48 = vmax.f32 %v3035_v41, %v3355_v42 }
 0x3c3   : > { %4936 = vst.msk [vmem:[%s6757_s8 + $0x188] sm:$0xf] %vm4837_vm2, %v4807_v38  ;;  %v4420_v45 = vmax.f32 %v4164_v39, %v4292_v40  ;;  %v7499_v40 = vld [vmem:[%s7602_s2] ss:$0 sm:$0xff] }
 0x3c4   : > { %6129 = vmatmul.msk.bf16.gmra.mxu0 %vm2003_vm1, %v6387_v36  ;;  %6193 = vmatmul.msk.bf16.gmra.mxu1 %vm2003_vm1, %v6451_v37 }
 0x3c5   : > { %v4552_v46 = vadd.f32 %v7251_v19, %v4420_v45  ;;  %6257 = vmatmul.msk.bf16.gmra.mxu2 %vm2003_vm1, %v6515_v43  ;;  %6321 = vmatmul.msk.bf16.gmra.mxu3 %vm2003_vm1, %v6579_v44  ;;  %v6390_v45 = vld [vmem:[%s6672_s28 + $0x1e8] sm:$0xff] }
 0x3c7   : > { %v4680_v47 = vmax.f32 %v4552_v46, 0.0  ;;  %v6454_v46 = vld [vmem:[%s6672_s28 + $0x3e8] sm:$0xff] }
 0x3c8   : > { %v3675_v49 = vpop.f32.mrf.mxu2  ;;  %v3995_v51 = vpop.f32.mrf.mxu3 }
 0x3c9   : > { %v4808_v52 = vpack.c.bf16 %v4680_v47, %v4680_v47  ;;  %v4293_v53 = vmax.f32 %v3675_v49, %v3995_v51  ;;  %v3037_v54 = vpop.f32.mrf.mxu0  ;;  %v3357_v55 = vpop.f32.mrf.mxu1 }
 0x3ca   : > { %v4166_v0 = vmax.f32 %v3037_v54, %v3357_v55  ;;  %v6582_v54 = vld [vmem:[%s6672_s28 + $0x7e8] sm:$0xff] }
 0x3cb   : > { %4937 = vst.msk [vmem:[%s6757_s8 + $0x18c] sm:$0xf] %vm4837_vm2, %v4808_v52  ;;  %v4421_v56 = vmax.f32 %v4165_v48, %v4293_v53  ;;  %v6518_v53 = vld [vmem:[%s6672_s28 + $0x5e8] sm:$0xff] }
 0x3cd   : > { %v4553_v57 = vadd.f32 %v7251_v19, %v4421_v56 }
 0x3cf   : > { %v4681_v58 = vmax.f32 %v4553_v57, 0.0 }
 0x3d0   : > { %v3677_v59 = vpop.f32.mrf.mxu2  ;;  %v3997_v60 = vpop.f32.mrf.mxu3 }
 0x3d1   : > { %v4809_v63 = vpack.c.bf16 %v4681_v58, %v4681_v58  ;;  %v4294_v1 = vmax.f32 %v3677_v59, %v3997_v60  ;;  %v3040_v2 = vpop.f32.mrf.mxu0  ;;  %v3360_v3 = vpop.f32.mrf.mxu1 }
 0x3d2   : > { %v4167_v9 = vmax.f32 %v3040_v2, %v3360_v3 }
 0x3d3   : > { %4938 = vst.msk [vmem:[%s6757_s8 + $0x190] sm:$0xf] %vm4837_vm2, %v4809_v63  ;;  %v4422_v6 = vmax.f32 %v4166_v0, %v4294_v1 }
 0x3d4   : > { %6130 = vmatmul.msk.bf16.gmra.mxu0 %vm2003_vm1, %v6388_v61  ;;  %6194 = vmatmul.msk.bf16.gmra.mxu1 %vm2003_vm1, %v6452_v62 }
 0x3d5   : > { %v4554_v7 = vadd.f32 %v7251_v19, %v4422_v6  ;;  %6258 = vmatmul.msk.bf16.gmra.mxu2 %vm2003_vm1, %v6516_v4  ;;  %6322 = vmatmul.msk.bf16.gmra.mxu3 %vm2003_vm1, %v6580_v5  ;;  %v6391_v6 = vld [vmem:[%s6672_s28 + $0x1f0] sm:$0xff] }
 0x3d7   : > { %v4682_v8 = vmax.f32 %v4554_v7, 0.0  ;;  %v6455_v7 = vld [vmem:[%s6672_s28 + $0x3f0] sm:$0xff] }
 0x3d8   : > { %v3680_v10 = vpop.f32.mrf.mxu2  ;;  %v4000_v11 = vpop.f32.mrf.mxu3 }
 0x3d9   : > { %v4810_v12 = vpack.c.bf16 %v4682_v8, %v4682_v8  ;;  %v4295_v13 = vmax.f32 %v3680_v10, %v4000_v11  ;;  %v3042_v14 = vpop.f32.mrf.mxu0  ;;  %v3362_v15 = vpop.f32.mrf.mxu1 }
 0x3da   : > { %v4168_v24 = vmax.f32 %v3042_v14, %v3362_v15  ;;  %v6583_v14 = vld [vmem:[%s6672_s28 + $0x7f0] sm:$0xff] }
 0x3db   : > { %4939 = vst.msk [vmem:[%s6757_s8 + $0x194] sm:$0xf] %vm4837_vm2, %v4810_v12  ;;  %v4423_v16 = vmax.f32 %v4167_v9, %v4295_v13  ;;  %v6519_v13 = vld [vmem:[%s6672_s28 + $0x5f0] sm:$0xff] }
 0x3dd   : > { %v4555_v17 = vadd.f32 %v7251_v19, %v4423_v16 }
 0x3df   : > { %v4683_v18 = vmax.f32 %v4555_v17, 0.0 }
 0x3e0   : > { %v3682_v50 = vpop.f32.mrf.mxu2  ;;  %v4002_v20 = vpop.f32.mrf.mxu3 }
 0x3e1   : > { %v4811_v23 = vpack.c.bf16 %v4683_v18, %v4683_v18  ;;  %v4296_v25 = vmax.f32 %v3682_v50, %v4002_v20  ;;  %v3045_v26 = vpop.f32.mrf.mxu0  ;;  %v3365_v27 = vpop.f32.mrf.mxu1 }
 0x3e2   : > { %v4169_v33 = vmax.f32 %v3045_v26, %v3365_v27 }
 0x3e3   : > { %4940 = vst.msk [vmem:[%s6757_s8 + $0x198] sm:$0xf] %vm4837_vm2, %v4811_v23  ;;  %v4424_v30 = vmax.f32 %v4168_v24, %v4296_v25 }
 0x3e4   : > { %6131 = vmatmul.msk.bf16.gmra.mxu0 %vm2003_vm1, %v6389_v21  ;;  %6195 = vmatmul.msk.bf16.gmra.mxu1 %vm2003_vm1, %v6453_v22 }
 0x3e5   : > { %v4556_v31 = vadd.f32 %v7251_v19, %v4424_v30  ;;  %6259 = vmatmul.msk.bf16.gmra.mxu2 %vm2003_vm1, %v6517_v28  ;;  %6323 = vmatmul.msk.bf16.gmra.mxu3 %vm2003_vm1, %v6581_v29  ;;  %v6392_v30 = vld [vmem:[%s6672_s28 + $0x1f8] sm:$0xff] }
 0x3e7   : > { %v4684_v32 = vmax.f32 %v4556_v31, 0.0  ;;  %v6456_v31 = vld [vmem:[%s6672_s28 + $0x3f8] sm:$0xff] }
 0x3e8   : > { %v3685_v34 = vpop.f32.mrf.mxu2  ;;  %v4005_v35 = vpop.f32.mrf.mxu3 }
 0x3e9   : > { %v4812_v36 = vpack.c.bf16 %v4684_v32, %v4684_v32  ;;  %v4297_v37 = vmax.f32 %v3685_v34, %v4005_v35  ;;  %v3047_v38 = vpop.f32.mrf.mxu0  ;;  %v3367_v39 = vpop.f32.mrf.mxu1 }
 0x3ea   : > { %v4170_v48 = vmax.f32 %v3047_v38, %v3367_v39  ;;  %v6584_v38 = vld [vmem:[%s6672_s28 + $0x7f8] sm:$0xff] }
 0x3eb   : > { %4941 = vst.msk [vmem:[%s6757_s8 + $0x19c] sm:$0xf] %vm4837_vm2, %v4812_v36  ;;  %v4425_v19 = vmax.f32 %v4169_v33, %v4297_v37  ;;  %v6520_v37 = vld [vmem:[%s6672_s28 + $0x5f8] sm:$0xff] }
 0x3ed   : > { %v4557_v41 = vadd.f32 %v7499_v40, %v4425_v19 }
 0x3ef   : > { %v4685_v42 = vmax.f32 %v4557_v41, 0.0 }
 0x3f0   : > { %v3687_v43 = vpop.f32.mrf.mxu2  ;;  %v4007_v44 = vpop.f32.mrf.mxu3 }
 0x3f1   : > { %v4813_v47 = vpack.c.bf16 %v4685_v42, %v4685_v42  ;;  %v4298_v49 = vmax.f32 %v3687_v43, %v4007_v44  ;;  %v3050_v51 = vpop.f32.mrf.mxu0  ;;  %v3370_v52 = vpop.f32.mrf.mxu1 }
 0x3f2   : > { %v4171_v58 = vmax.f32 %v3050_v51, %v3370_v52 }
 0x3f3   : > { %4942 = vst.msk [vmem:[%s6757_s8 + $0x1a0] sm:$0xf] %vm4837_vm2, %v4813_v47  ;;  %v4426_v55 = vmax.f32 %v4170_v48, %v4298_v49 }
 0x3f4   : > { %6132 = vmatmul.msk.bf16.gmra.mxu0 %vm2003_vm1, %v6390_v45  ;;  %6196 = vmatmul.msk.bf16.gmra.mxu1 %vm2003_vm1, %v6454_v46 }
 0x3f5   : > { %v4558_v56 = vadd.f32 %v7499_v40, %v4426_v55  ;;  %6260 = vmatmul.msk.bf16.gmra.mxu2 %vm2003_vm1, %v6518_v53  ;;  %6324 = vmatmul.msk.bf16.gmra.mxu3 %vm2003_vm1, %v6582_v54 }
 0x3f7   : > { %v4686_v57 = vmax.f32 %v4558_v56, 0.0 }
 0x3f8   : > { %v3690_v59 = vpop.f32.mrf.mxu2  ;;  %v4010_v60 = vpop.f32.mrf.mxu3 }
 0x3f9   : > { %v4814_v61 = vpack.c.bf16 %v4686_v57, %v4686_v57  ;;  %v4299_v62 = vmax.f32 %v3690_v59, %v4010_v60  ;;  %v3052_v63 = vpop.f32.mrf.mxu0  ;;  %v3372_v0 = vpop.f32.mrf.mxu1 }
 0x3fa   : > { %v4172_v9 = vmax.f32 %v3052_v63, %v3372_v0 }
 0x3fb   : > { %4943 = vst.msk [vmem:[%s6757_s8 + $0x1a4] sm:$0xf] %vm4837_vm2, %v4814_v61  ;;  %v4427_v1 = vmax.f32 %v4171_v58, %v4299_v62 }
 0x3fd   : > { %v4559_v2 = vadd.f32 %v7499_v40, %v4427_v1 }
 0x3ff   : > { %v4687_v3 = vmax.f32 %v4559_v2, 0.0 }
 0x400   : > { %v3692_v4 = vpop.f32.mrf.mxu2  ;;  %v4012_v5 = vpop.f32.mrf.mxu3 }
 0x401   : > { %v4815_v8 = vpack.c.bf16 %v4687_v3, %v4687_v3  ;;  %v4300_v10 = vmax.f32 %v3692_v4, %v4012_v5  ;;  %v3055_v11 = vpop.f32.mrf.mxu0  ;;  %v3375_v12 = vpop.f32.mrf.mxu1 }
 0x402   : > { %v4173_v18 = vmax.f32 %v3055_v11, %v3375_v12 }
 0x403   : > { %4944 = vst.msk [vmem:[%s6757_s8 + $0x1a8] sm:$0xf] %vm4837_vm2, %v4815_v8  ;;  %v4428_v15 = vmax.f32 %v4172_v9, %v4300_v10 }
 0x404   : > { %6133 = vmatmul.msk.bf16.gmra.mxu0 %vm2003_vm1, %v6391_v6  ;;  %6197 = vmatmul.msk.bf16.gmra.mxu1 %vm2003_vm1, %v6455_v7 }
 0x405   : > { %v4560_v16 = vadd.f32 %v7499_v40, %v4428_v15  ;;  %6261 = vmatmul.msk.bf16.gmra.mxu2 %vm2003_vm1, %v6519_v13  ;;  %6325 = vmatmul.msk.bf16.gmra.mxu3 %vm2003_vm1, %v6583_v14 }
 0x407   : > { %v4688_v17 = vmax.f32 %v4560_v16, 0.0 }
 0x408   : > { %v3695_v50 = vpop.f32.mrf.mxu2  ;;  %v4015_v20 = vpop.f32.mrf.mxu3 }
 0x409   : > { %v4816_v21 = vpack.c.bf16 %v4688_v17, %v4688_v17  ;;  %v4301_v22 = vmax.f32 %v3695_v50, %v4015_v20  ;;  %v3057_v23 = vpop.f32.mrf.mxu0  ;;  %v3377_v24 = vpop.f32.mrf.mxu1 }
 0x40a   : > { %v4174_v33 = vmax.f32 %v3057_v23, %v3377_v24 }
 0x40b   : > { %4945 = vst.msk [vmem:[%s6757_s8 + $0x1ac] sm:$0xf] %vm4837_vm2, %v4816_v21  ;;  %v4429_v25 = vmax.f32 %v4173_v18, %v4301_v22 }
 0x40d   : > { %v4561_v26 = vadd.f32 %v7499_v40, %v4429_v25 }
 0x40f   : > { %v4689_v27 = vmax.f32 %v4561_v26, 0.0 }
 0x410   : > { %v3697_v28 = vpop.f32.mrf.mxu2  ;;  %v4017_v29 = vpop.f32.mrf.mxu3 }
 0x411   : > { %v4817_v32 = vpack.c.bf16 %v4689_v27, %v4689_v27  ;;  %v4302_v34 = vmax.f32 %v3697_v28, %v4017_v29  ;;  %v3060_v35 = vpop.f32.mrf.mxu0  ;;  %v3380_v36 = vpop.f32.mrf.mxu1 }
 0x412   : > { %v4175_v42 = vmax.f32 %v3060_v35, %v3380_v36 }
 0x413   : > { %4946 = vst.msk [vmem:[%s6757_s8 + $0x1b0] sm:$0xf] %vm4837_vm2, %v4817_v32  ;;  %v4430_v39 = vmax.f32 %v4174_v33, %v4302_v34 }
 0x414   : > { %6134 = vmatmul.msk.bf16.gmra.mxu0 %vm2003_vm1, %v6392_v30  ;;  %6198 = vmatmul.msk.bf16.gmra.mxu1 %vm2003_vm1, %v6456_v31 }
 0x415   : > { %v4562_v19 = vadd.f32 %v7499_v40, %v4430_v39  ;;  %6262 = vmatmul.msk.bf16.gmra.mxu2 %vm2003_vm1, %v6520_v37  ;;  %6326 = vmatmul.msk.bf16.gmra.mxu3 %vm2003_vm1, %v6584_v38 }
 0x417   : > { %v4690_v41 = vmax.f32 %v4562_v19, 0.0 }
 0x418   : > { %v3700_v43 = vpop.f32.mrf.mxu2  ;;  %v4020_v44 = vpop.f32.mrf.mxu3 }
 0x419   : > { %v4818_v45 = vpack.c.bf16 %v4690_v41, %v4690_v41  ;;  %v4303_v46 = vmax.f32 %v3700_v43, %v4020_v44  ;;  %v3062_v47 = vpop.f32.mrf.mxu0  ;;  %v3382_v48 = vpop.f32.mrf.mxu1 }
 0x41a   : > { %v4176_v56 = vmax.f32 %v3062_v47, %v3382_v48 }
 0x41b   : > { %4947 = vst.msk [vmem:[%s6757_s8 + $0x1b4] sm:$0xf] %vm4837_vm2, %v4818_v45  ;;  %v4431_v49 = vmax.f32 %v4175_v42, %v4303_v46 }
 0x41d   : > { %v4563_v51 = vadd.f32 %v7499_v40, %v4431_v49 }
 0x41f   : > { %v4691_v52 = vmax.f32 %v4563_v51, 0.0 }
 0x420   : > { %v3702_v53 = vpop.f32.mrf.mxu2  ;;  %v4022_v54 = vpop.f32.mrf.mxu3 }
 0x421   : > { %v4819_v55 = vpack.c.bf16 %v4691_v52, %v4691_v52  ;;  %v4304_v57 = vmax.f32 %v3702_v53, %v4022_v54  ;;  %v3065_v58 = vpop.f32.mrf.mxu0  ;;  %v3385_v59 = vpop.f32.mrf.mxu1 }
 0x422   : > { %v4177_v63 = vmax.f32 %v3065_v58, %v3385_v59 }
 0x423   : > { %4948 = vst.msk [vmem:[%s6757_s8 + $0x1b8] sm:$0xf] %vm4837_vm2, %v4819_v55  ;;  %v4432_v60 = vmax.f32 %v4176_v56, %v4304_v57 }
 0x425   : > { %v4564_v61 = vadd.f32 %v7499_v40, %v4432_v60 }
 0x427   : > { %v4692_v62 = vmax.f32 %v4564_v61, 0.0 }
 0x428   : > { %v3705_v0 = vpop.f32.mrf.mxu2  ;;  %v4025_v1 = vpop.f32.mrf.mxu3 }
 0x429   : > { %v4820_v2 = vpack.c.bf16 %v4692_v62, %v4692_v62  ;;  %v4305_v3 = vmax.f32 %v3705_v0, %v4025_v1  ;;  %v3067_v4 = vpop.f32.mrf.mxu0  ;;  %v3387_v5 = vpop.f32.mrf.mxu1 }
 0x42a   : > { %v4178_v12 = vmax.f32 %v3067_v4, %v3387_v5 }
 0x42b   : > { %4949 = vst.msk [vmem:[%s6757_s8 + $0x1bc] sm:$0xf] %vm4837_vm2, %v4820_v2  ;;  %v4433_v6 = vmax.f32 %v4177_v63, %v4305_v3 }
 0x42d   : > { %v4565_v7 = vadd.f32 %v7499_v40, %v4433_v6 }
 0x42f   : > { %v4693_v8 = vmax.f32 %v4565_v7, 0.0 }
 0x430   : > { %v3707_v9 = vpop.f32.mrf.mxu2  ;;  %v4027_v10 = vpop.f32.mrf.mxu3 }
 0x431   : > { %v4821_v11 = vpack.c.bf16 %v4693_v8, %v4693_v8  ;;  %v4306_v13 = vmax.f32 %v3707_v9, %v4027_v10  ;;  %v3070_v14 = vpop.f32.mrf.mxu0  ;;  %v3390_v15 = vpop.f32.mrf.mxu1 }
 0x432   : > { %v4179_v50 = vmax.f32 %v3070_v14, %v3390_v15 }
 0x433   : > { %4950 = vst.msk [vmem:[%s6757_s8 + $0x1c0] sm:$0xf] %vm4837_vm2, %v4821_v11  ;;  %v4434_v16 = vmax.f32 %v4178_v12, %v4306_v13 }
 0x435   : > { %v4566_v17 = vadd.f32 %v7499_v40, %v4434_v16 }
 0x437   : > { %v4694_v18 = vmax.f32 %v4566_v17, 0.0 }
 0x438   : > { %v3710_v20 = vpop.f32.mrf.mxu2  ;;  %v4030_v21 = vpop.f32.mrf.mxu3 }
 0x439   : > { %v4822_v22 = vpack.c.bf16 %v4694_v18, %v4694_v18  ;;  %v4307_v23 = vmax.f32 %v3710_v20, %v4030_v21  ;;  %v3072_v24 = vpop.f32.mrf.mxu0  ;;  %v3392_v25 = vpop.f32.mrf.mxu1 }
 0x43a   : > { %v4180_v32 = vmax.f32 %v3072_v24, %v3392_v25 }
 0x43b   : > { %4951 = vst.msk [vmem:[%s6757_s8 + $0x1c4] sm:$0xf] %vm4837_vm2, %v4822_v22  ;;  %v4435_v26 = vmax.f32 %v4179_v50, %v4307_v23 }
 0x43d   : > { %v4567_v27 = vadd.f32 %v7499_v40, %v4435_v26 }
 0x43f   : > { %v4695_v28 = vmax.f32 %v4567_v27, 0.0 }
 0x440   : > { %v3712_v29 = vpop.f32.mrf.mxu2  ;;  %v4032_v30 = vpop.f32.mrf.mxu3 }
 0x441   : > { %v4823_v31 = vpack.c.bf16 %v4695_v28, %v4695_v28  ;;  %v4308_v33 = vmax.f32 %v3712_v29, %v4032_v30  ;;  %v3075_v34 = vpop.f32.mrf.mxu0  ;;  %v3395_v35 = vpop.f32.mrf.mxu1 }
 0x442   : > { %v4181_v39 = vmax.f32 %v3075_v34, %v3395_v35 }
 0x443   : > { %4952 = vst.msk [vmem:[%s6757_s8 + $0x1c8] sm:$0xf] %vm4837_vm2, %v4823_v31  ;;  %v4436_v36 = vmax.f32 %v4180_v32, %v4308_v33 }
 0x445   : > { %v4568_v37 = vadd.f32 %v7499_v40, %v4436_v36 }
 0x447   : > { %v4696_v38 = vmax.f32 %v4568_v37, 0.0 }
 0x448   : > { %v3715_v19 = vpop.f32.mrf.mxu2  ;;  %v4035_v41 = vpop.f32.mrf.mxu3 }
 0x449   : > { %v4824_v42 = vpack.c.bf16 %v4696_v38, %v4696_v38  ;;  %v4309_v43 = vmax.f32 %v3715_v19, %v4035_v41  ;;  %v3077_v44 = vpop.f32.mrf.mxu0  ;;  %v3397_v45 = vpop.f32.mrf.mxu1 }
 0x44a   : > { %v4182_v53 = vmax.f32 %v3077_v44, %v3397_v45 }
 0x44b   : > { %4953 = vst.msk [vmem:[%s6757_s8 + $0x1cc] sm:$0xf] %vm4837_vm2, %v4824_v42  ;;  %v4437_v46 = vmax.f32 %v4181_v39, %v4309_v43 }
 0x44d   : > { %v4569_v47 = vadd.f32 %v7499_v40, %v4437_v46 }
 0x44f   : > { %v4697_v48 = vmax.f32 %v4569_v47, 0.0 }
 0x450   : > { %v3717_v49 = vpop.f32.mrf.mxu2  ;;  %v4037_v51 = vpop.f32.mrf.mxu3 }
 0x451   : > { %v4825_v52 = vpack.c.bf16 %v4697_v48, %v4697_v48  ;;  %v4310_v54 = vmax.f32 %v3717_v49, %v4037_v51  ;;  %v3080_v55 = vpop.f32.mrf.mxu0  ;;  %v3400_v56 = vpop.f32.mrf.mxu1 }
 0x452   : > { %v4183_v60 = vmax.f32 %v3080_v55, %v3400_v56 }
 0x453   : > { %4954 = vst.msk [vmem:[%s6757_s8 + $0x1d0] sm:$0xf] %vm4837_vm2, %v4825_v52  ;;  %v4438_v57 = vmax.f32 %v4182_v53, %v4310_v54 }
 0x455   : > { %v4570_v58 = vadd.f32 %v7499_v40, %v4438_v57 }
 0x457   : > { %v4698_v59 = vmax.f32 %v4570_v58, 0.0 }
 0x458   : > { %v3720_v61 = vpop.f32.mrf.mxu2  ;;  %v4040_v62 = vpop.f32.mrf.mxu3 }
 0x459   : > { %v4826_v63 = vpack.c.bf16 %v4698_v59, %v4698_v59  ;;  %v4311_v0 = vmax.f32 %v3720_v61, %v4040_v62  ;;  %v3082_v1 = vpop.f32.mrf.mxu0  ;;  %v3402_v2 = vpop.f32.mrf.mxu1 }
 0x45a   : > { %v4184_v9 = vmax.f32 %v3082_v1, %v3402_v2 }
 0x45b   : > { %4955 = vst.msk [vmem:[%s6757_s8 + $0x1d4] sm:$0xf] %vm4837_vm2, %v4826_v63  ;;  %v4439_v3 = vmax.f32 %v4183_v60, %v4311_v0 }
 0x45d   : > { %v4571_v4 = vadd.f32 %v7499_v40, %v4439_v3 }
 0x45f   : > { %v4699_v5 = vmax.f32 %v4571_v4, 0.0 }
 0x460   : > { %v3722_v6 = vpop.f32.mrf.mxu2  ;;  %v4042_v7 = vpop.f32.mrf.mxu3 }
 0x461   : > { %v4827_v8 = vpack.c.bf16 %v4699_v5, %v4699_v5  ;;  %v4312_v10 = vmax.f32 %v3722_v6, %v4042_v7  ;;  %v3085_v11 = vpop.f32.mrf.mxu0  ;;  %v3405_v12 = vpop.f32.mrf.mxu1 }
 0x462   : > { %v4185_v16 = vmax.f32 %v3085_v11, %v3405_v12 }
 0x463   : > { %4956 = vst.msk [vmem:[%s6757_s8 + $0x1d8] sm:$0xf] %vm4837_vm2, %v4827_v8  ;;  %v4440_v13 = vmax.f32 %v4184_v9, %v4312_v10 }
 0x465   : > { %v4572_v14 = vadd.f32 %v7499_v40, %v4440_v13 }
 0x467   : > { %v4700_v15 = vmax.f32 %v4572_v14, 0.0 }
 0x468   : > { %v3725_v17 = vpop.f32.mrf.mxu2  ;;  %v4045_v18 = vpop.f32.mrf.mxu3 }
 0x469   : > { %v4828_v50 = vpack.c.bf16 %v4700_v15, %v4700_v15  ;;  %v4313_v20 = vmax.f32 %v3725_v17, %v4045_v18  ;;  %v3087_v21 = vpop.f32.mrf.mxu0  ;;  %v3407_v22 = vpop.f32.mrf.mxu1 }
 0x46a   : > { %v4186_v29 = vmax.f32 %v3087_v21, %v3407_v22 }
 0x46b   : > { %4957 = vst.msk [vmem:[%s6757_s8 + $0x1dc] sm:$0xf] %vm4837_vm2, %v4828_v50  ;;  %v4441_v23 = vmax.f32 %v4185_v16, %v4313_v20 }
 0x46d   : > { %v4573_v24 = vadd.f32 %v7499_v40, %v4441_v23 }
 0x46f   : > { %v4701_v25 = vmax.f32 %v4573_v24, 0.0 }
 0x470   : > { %v3727_v26 = vpop.f32.mrf.mxu2  ;;  %v4047_v27 = vpop.f32.mrf.mxu3 }
 0x471   : > { %v4829_v28 = vpack.c.bf16 %v4701_v25, %v4701_v25  ;;  %v4314_v30 = vmax.f32 %v3727_v26, %v4047_v27  ;;  %v3090_v31 = vpop.f32.mrf.mxu0  ;;  %v3410_v32 = vpop.f32.mrf.mxu1 }
 0x472   : > { %v4187_v36 = vmax.f32 %v3090_v31, %v3410_v32 }
 0x473   : > { %4958 = vst.msk [vmem:[%s6757_s8 + $0x1e0] sm:$0xf] %vm4837_vm2, %v4829_v28  ;;  %v4442_v33 = vmax.f32 %v4186_v29, %v4314_v30 }
 0x475   : > { %v4574_v34 = vadd.f32 %v7499_v40, %v4442_v33 }
 0x477   : > { %v4702_v35 = vmax.f32 %v4574_v34, 0.0 }
 0x478   : > { %v3730_v37 = vpop.f32.mrf.mxu2  ;;  %v4050_v38 = vpop.f32.mrf.mxu3 }
 0x479   : > { %v4830_v39 = vpack.c.bf16 %v4702_v35, %v4702_v35  ;;  %v4315_v19 = vmax.f32 %v3730_v37, %v4050_v38  ;;  %v3092_v41 = vpop.f32.mrf.mxu0  ;;  %v3412_v42 = vpop.f32.mrf.mxu1 }
 0x47a   : > { %v4188_v49 = vmax.f32 %v3092_v41, %v3412_v42 }
 0x47b   : > { %4959 = vst.msk [vmem:[%s6757_s8 + $0x1e4] sm:$0xf] %vm4837_vm2, %v4830_v39  ;;  %v4443_v43 = vmax.f32 %v4187_v36, %v4315_v19 }
 0x47d   : > { %v4575_v44 = vadd.f32 %v7499_v40, %v4443_v43 }
 0x47f   : > { %v4703_v45 = vmax.f32 %v4575_v44, 0.0 }
 0x480   : > { %v3732_v46 = vpop.f32.mrf.mxu2  ;;  %v4052_v47 = vpop.f32.mrf.mxu3 }
 0x481   : > { %v4831_v48 = vpack.c.bf16 %v4703_v45, %v4703_v45  ;;  %v4316_v51 = vmax.f32 %v3732_v46, %v4052_v47  ;;  %v3095_v52 = vpop.f32.mrf.mxu0  ;;  %v3415_v53 = vpop.f32.mrf.mxu1 }
 0x482   : > { %v4189_v57 = vmax.f32 %v3095_v52, %v3415_v53 }
 0x483   : > { %4960 = vst.msk [vmem:[%s6757_s8 + $0x1e8] sm:$0xf] %vm4837_vm2, %v4831_v48  ;;  %v4444_v54 = vmax.f32 %v4188_v49, %v4316_v51 }
 0x485   : > { %v4576_v55 = vadd.f32 %v7499_v40, %v4444_v54 }
 0x487   : > { %v4704_v56 = vmax.f32 %v4576_v55, 0.0 }
 0x488   : > { %v3735_v58 = vpop.f32.mrf.mxu2  ;;  %v4055_v59 = vpop.f32.mrf.mxu3 }
 0x489   : > { %v4832_v60 = vpack.c.bf16 %v4704_v56, %v4704_v56  ;;  %v4317_v61 = vmax.f32 %v3735_v58, %v4055_v59  ;;  %v3097_v62 = vpop.f32.mrf.mxu0  ;;  %v3417_v63 = vpop.f32.mrf.mxu1 }
 0x48a   : > { %v4190_v6 = vmax.f32 %v3097_v62, %v3417_v63 }
 0x48b   : > { %4961 = vst.msk [vmem:[%s6757_s8 + $0x1ec] sm:$0xf] %vm4837_vm2, %v4832_v60  ;;  %v4445_v0 = vmax.f32 %v4189_v57, %v4317_v61 }
 0x48d   : > { %v4577_v1 = vadd.f32 %v7499_v40, %v4445_v0 }
 0x48f   : > { %v4705_v2 = vmax.f32 %v4577_v1, 0.0 }
 0x490   : > { %v3737_v3 = vpop.f32.mrf.mxu2  ;;  %v4057_v4 = vpop.f32.mrf.mxu3 }
 0x491   : > { %v4833_v5 = vpack.c.bf16 %v4705_v2, %v4705_v2  ;;  %v4318_v7 = vmax.f32 %v3737_v3, %v4057_v4  ;;  %v3100_v9 = vpop.f32.mrf.mxu0  ;;  %v3420_v10 = vpop.f32.mrf.mxu1 }
 0x492   : > { %v4191_v13 = vmax.f32 %v3100_v9, %v3420_v10 }
 0x493   : > { %4962 = vst.msk [vmem:[%s6757_s8 + $0x1f0] sm:$0xf] %vm4837_vm2, %v4833_v5  ;;  %v4446_v8 = vmax.f32 %v4190_v6, %v4318_v7 }
 0x495   : > { %v4578_v11 = vadd.f32 %v7499_v40, %v4446_v8 }
 0x497   : > { %v4706_v12 = vmax.f32 %v4578_v11, 0.0 }
 0x498   : > { %v3740_v14 = vpop.f32.mrf.mxu2  ;;  %v4060_v15 = vpop.f32.mrf.mxu3 }
 0x499   : > { %v4834_v16 = vpack.c.bf16 %v4706_v12, %v4706_v12  ;;  %v4319_v17 = vmax.f32 %v3740_v14, %v4060_v15  ;;  %v3102_v20 = vpop.f32.mrf.mxu0  ;;  %v3422_v21 = vpop.f32.mrf.mxu1 }
 0x49a   : > { %v4192_v26 = vmax.f32 %v3102_v20, %v3422_v21 }
 0x49b   : > { %4963 = vst.msk [vmem:[%s6757_s8 + $0x1f4] sm:$0xf] %vm4837_vm2, %v4834_v16  ;;  %v4447_v18 = vmax.f32 %v4191_v13, %v4319_v17 }
 0x49d   : > { %v4579_v50 = vadd.f32 %v7499_v40, %v4447_v18 }
 0x49f   : > { %v4707_v22 = vmax.f32 %v4579_v50, 0.0 }
 0x4a0   : > { %v3742_v23 = vpop.f32.mrf.mxu2  ;;  %v4062_v24 = vpop.f32.mrf.mxu3 }
 0x4a1   : > { %v4835_v25 = vpack.c.bf16 %v4707_v22, %v4707_v22  ;;  %v4320_v27 = vmax.f32 %v3742_v23, %v4062_v24 }
 0x4a3   : > { %4964 = vst.msk [vmem:[%s6757_s8 + $0x1f8] sm:$0xf] %vm4837_vm2, %v4835_v25  ;;  %v4448_v28 = vmax.f32 %v4192_v26, %v4320_v27 }
 0x4a5   : > { %v4580_v29 = vadd.f32 %v7499_v40, %v4448_v28 }
 0x4a7   : > { %v4708_v30 = vmax.f32 %v4580_v29, 0.0 }
 0x4a9   : > { %v4836_v31 = vpack.c.bf16 %v4708_v30, %v4708_v30 }
 0x4ab   : > { %4965 = vst.msk [vmem:[%s6757_s8 + $0x1fc] sm:$0xf] %vm4837_vm2, %v4836_v31 }
 0x4ac PF: > { %s13_s12 = sadd.s32 1, %s6622_s12  }
 0x4ad   : > { %p10_p5 = scmp.ge.s32.totalorder %s13_s12, 4  }
 0x4af   :  { %12 = sbr.rel (!%p10_p5) target bundleno = 1 (0x1), region = 62 }

// kernel: verifier_cnn_forward.6
= control target key start
LH: loop header
LB: loop body
LE: loop exit
PB: predicated region body
PF: predicated region fallthrough
CT: control target
= control target key end

     0   :  { %s2898_s12 = smov 0   ;;  %s3707_s0 = inlined_call_operand.vmem [shape: bf16[2048,144], index: 0, kind: input, shape index: {}]   ;;  %s3708_s1 = inlined_call_operand.vmem [shape: bf16[144,32], index: 1, kind: input, shape index: {}]   ;;  %s3709_s2 = inlined_call_operand.vmem [shape: f32[1,32], index: 2, kind: input, shape index: {}]   ;;  %s3710_s3 = inlined_call_operand.vmem [shape: bf16[512,32], index: 3, kind: output, shape index: {}]  }
   0x1 LB: > { %s2090_s13 = sadd.s32 4294967295, %s2876_s12   ;;  %p2094_p0 = scmp.ge.s32.totalorder %s2876_s12, 1  ;;  %s2876_s12 = sphi %s2898_s12, %s13_s12  }
   0x2   : > { %p139_p1 = scmp.lt.s32.totalorder %s2876_s12, 3 }
   0x4   : > { %p140_p2 = pnand %p2094_p0, %p139_p1 }
   0x6   : > { %143 = sbr.rel (%p140_p2) target bundleno = 693 (0x2b5), region = 32 }
   0xb   : > { %v2850_v0 = vld [vmem:[%s3708_s1 + $0x38] sm:$0xff]  ;;  %v2851_v1 = vld [vmem:[%s3708_s1 + $0x40] sm:$0xff]  ;;  %s2095_s18 = sshll.u32 %s2090_s13, 7  ;;  %v2849_v2 = vld [vmem:[%s3708_s1 + $0x30] sm:$0xff]  ;;  %vm954_vm0 = vcmask 130048   ;;  %s2098_s10 = sshll.u32 %s2090_s13, 5 }
   0xc   : > { %p165_p3 = scmp.lt.s32.totalorder %s2095_s18, 255  ;;  %1147 = vmatpush.bf16.msra.mxu0 %v2850_v0  ;;  %2852 = vmatpush.bf16.msra.mxu2 %v2850_v0  ;;  %v2848_v3 = vld [vmem:[%s3708_s1 + $0x28] sm:$0xff]  ;;  %v2847_v7 = vld [vmem:[%s3708_s1 + $0x20] sm:$0xff]  ;;  %v2846_v11 = vld [vmem:[%s3708_s1 + $0x18] sm:$0xff]  ;;  %p172_p4 = scmp.lt.s32.totalorder %s2098_s10, 63  ;;  %vm2001_vm1 = vcmask 257024  }
   0xd   : > { %1483 = vmatpush.bf16.msra.mxu1 %v2851_v1  ;;  %2860 = vmatpush.bf16.msra.mxu3 %v2851_v1  ;;  %v2845_v12 = vld [vmem:[%s3708_s1 + $0x10] sm:$0xff]  ;;  %v2844_v16 = vld [vmem:[%s3708_s1 + $0x8] sm:$0xff]  ;;  %v2843_v20 = vld [vmem:[%s3708_s1] sm:$0xff] }
   0xe   : > { %s3776_s18 = smov (!%p165_p3, %s2095_s18), 255  ;;  %s3778_s10 = smov (!%p172_p4, %s2098_s10), 63 }
   0xf   : > { %s2714_s21 = sshll.u32 %s3776_s18, 3  ;;  %s2099_s14 = sshll.u32 %s3778_s10, 2 }
  0x10   : > { %1148 = vmatpush.bf16.msra.mxu0 %v2849_v2  ;;  %2853 = vmatpush.bf16.msra.mxu2 %v2849_v2  ;;  %s2920_s24 = scalar_lea.vmem %s3707_s0, %s2714_s21  ;;  %s3440_s17 = scalar_lea.vmem %s3710_s3, %s2099_s14 }
  0x11   : > { %v2715_v4 = vld [vmem:[%s2920_s24 + $0x4] sm:$0xf]  ;;  %v2104_v5 = vld [vmem:[%s2920_s24 + $0x8] sm:$0xf0]  ;;  %v2781_v8 = vld [vmem:[%s2920_s24 + $0x214] sm:$0xf] }
  0x12   : > { %v2107_v6 = vor.u32 %v2715_v4, %v2104_v5  ;;  %v2368_v9 = vld [vmem:[%s2920_s24 + $0x218] sm:$0xf0]  ;;  %v2717_v13 = vld [vmem:[%s2920_s24 + $0x14] sm:$0xf]  ;;  %v2783_v17 = vld [vmem:[%s2920_s24 + $0x224] sm:$0xf] }
  0x13   : > { %v2371_v10 = vor.u32 %v2781_v8, %v2368_v9  ;;  %v2112_v14 = vld [vmem:[%s2920_s24 + $0x18] sm:$0xf0]  ;;  %v2376_v18 = vld [vmem:[%s2920_s24 + $0x228] sm:$0xf0]  ;;  %v2102_v21 = vld [vmem:[%s2920_s24] sm:$0xf] }
  0x14   : > { %2648 = vmatmul.msk.bf16.vlgmr.msra.gmra.mxu1 %vm954_vm0, %v2107_v6  ;;  %1149 = vmatpush.bf16.msra.mxu0 %v2848_v3  ;;  %v2115_v15 = vor.u32 %v2717_v13, %v2112_v14  ;;  %v2379_v19 = vor.u32 %v2783_v17, %v2376_v18  ;;  %v2716_v22 = vld [vmem:[%s2920_s24 + $0x4] sm:$0xf0]  ;;  %v2358_v23 = vld [vmem:[%s2920_s24 + $0x200] sm:$0xf]  ;;  %v2719_v27 = vld [vmem:[%s2920_s24 + $0x24] sm:$0xf] }
  0x15   : > { %2854 = vmatpush.bf16.msra.mxu2 %v2848_v3  ;;  %2681 = vmatmul.msk.bf16.vlgmr.msra.gmra.mxu3 %vm954_vm0, %v2371_v10  ;;  %v2780_v24 = vld [vmem:[%s2920_s24 + $0x204] sm:$0xf0]  ;;  %v2103_v25 = vor.u32 %v2716_v22, %v2102_v21  ;;  %v2120_v28 = vld [vmem:[%s2920_s24 + $0x28] sm:$0xf0]  ;;  %v2785_v30 = vld [vmem:[%s2920_s24 + $0x234] sm:$0xf] }
  0x16   : > { %v2359_v26 = vor.u32 %v2780_v24, %v2358_v23  ;;  %v2123_v29 = vor.u32 %v2719_v27, %v2120_v28  ;;  %v2384_v31 = vld [vmem:[%s2920_s24 + $0x238] sm:$0xf0]  ;;  %v2110_v33 = vld [vmem:[%s2920_s24 + $0x10] sm:$0xf]  ;;  %v2718_v34 = vld [vmem:[%s2920_s24 + $0x14] sm:$0xf0] }
  0x17   : > { %v2387_v32 = vor.u32 %v2785_v30, %v2384_v31  ;;  %v2366_v35 = vld [vmem:[%s2920_s24 + $0x210] sm:$0xf]  ;;  %v2782_v36 = vld [vmem:[%s2920_s24 + $0x214] sm:$0xf0]  ;;  %v2111_v37 = vor.u32 %v2718_v34, %v2110_v33  ;;  %v2721_v39 = vld [vmem:[%s2920_s24 + $0x34] sm:$0xf] }
  0x18   : > { %1150 = vmatpush.bf16.msra.mxu0 %v2847_v7  ;;  %v2367_v38 = vor.u32 %v2782_v36, %v2366_v35  ;;  %v2128_v40 = vld [vmem:[%s2920_s24 + $0x38] sm:$0xf0]  ;;  %v2787_v42 = vld [vmem:[%s2920_s24 + $0x244] sm:$0xf]  ;;  %v2392_v43 = vld [vmem:[%s2920_s24 + $0x248] sm:$0xf0] }
  0x19   : > { %2855 = vmatpush.bf16.msra.mxu2 %v2847_v7  ;;  %v2131_v41 = vor.u32 %v2721_v39, %v2128_v40  ;;  %v2395_v44 = vor.u32 %v2787_v42, %v2392_v43  ;;  %v2118_v45 = vld [vmem:[%s2920_s24 + $0x20] sm:$0xf]  ;;  %v2720_v46 = vld [vmem:[%s2920_s24 + $0x24] sm:$0xf0]  ;;  %v2723_v51 = vld [vmem:[%s2920_s24 + $0x44] sm:$0xf] }
  0x1a   : > { %v2374_v47 = vld [vmem:[%s2920_s24 + $0x220] sm:$0xf]  ;;  %v2784_v48 = vld [vmem:[%s2920_s24 + $0x224] sm:$0xf0]  ;;  %v2119_v49 = vor.u32 %v2720_v46, %v2118_v45  ;;  %v2136_v52 = vld [vmem:[%s2920_s24 + $0x48] sm:$0xf0] }
  0x1b   : > { %v2375_v50 = vor.u32 %v2784_v48, %v2374_v47  ;;  %v2139_v53 = vor.u32 %v2723_v51, %v2136_v52  ;;  %v2789_v54 = vld [vmem:[%s2920_s24 + $0x254] sm:$0xf]  ;;  %v2400_v55 = vld [vmem:[%s2920_s24 + $0x258] sm:$0xf0]  ;;  %v2126_v57 = vld [vmem:[%s2920_s24 + $0x30] sm:$0xf] }
  0x1c   : > { %1151 = vmatpush.bf16.msra.mxu0 %v2846_v11  ;;  %v2403_v56 = vor.u32 %v2789_v54, %v2400_v55  ;;  %v2722_v58 = vld [vmem:[%s2920_s24 + $0x34] sm:$0xf0]  ;;  %v2382_v59 = vld [vmem:[%s2920_s24 + $0x230] sm:$0xf]  ;;  %v2725_v63 = vld [vmem:[%s2920_s24 + $0x54] sm:$0xf] }
  0x1d   : > { %2856 = vmatpush.bf16.msra.mxu2 %v2846_v11  ;;  %v2786_v60 = vld [vmem:[%s2920_s24 + $0x234] sm:$0xf0]  ;;  %v2127_v61 = vor.u32 %v2722_v58, %v2126_v57  ;;  %v2144_v0 = vld [vmem:[%s2920_s24 + $0x58] sm:$0xf0]  ;;  %v2791_v2 = vld [vmem:[%s2920_s24 + $0x264] sm:$0xf] }
  0x1e   : > { %v2383_v62 = vor.u32 %v2786_v60, %v2382_v59  ;;  %v2147_v1 = vor.u32 %v2725_v63, %v2144_v0  ;;  %v2408_v3 = vld [vmem:[%s2920_s24 + $0x268] sm:$0xf0]  ;;  %v2134_v5 = vld [vmem:[%s2920_s24 + $0x40] sm:$0xf]  ;;  %v2724_v6 = vld [vmem:[%s2920_s24 + $0x44] sm:$0xf0] }
  0x1f   : > { %v2411_v4 = vor.u32 %v2791_v2, %v2408_v3  ;;  %v2390_v7 = vld [vmem:[%s2920_s24 + $0x240] sm:$0xf]  ;;  %v2788_v8 = vld [vmem:[%s2920_s24 + $0x244] sm:$0xf0]  ;;  %v2135_v9 = vor.u32 %v2724_v6, %v2134_v5  ;;  %v2727_v11 = vld [vmem:[%s2920_s24 + $0x64] sm:$0xf] }
  0x20   : > { %1152 = vmatpush.bf16.msra.mxu0 %v2845_v12  ;;  %v2391_v10 = vor.u32 %v2788_v8, %v2390_v7  ;;  %v2793_v14 = vld [vmem:[%s2920_s24 + $0x274] sm:$0xf]  ;;  %v2142_v17 = vld [vmem:[%s2920_s24 + $0x50] sm:$0xf]  ;;  %v2726_v18 = vld [vmem:[%s2920_s24 + $0x54] sm:$0xf0] }
  0x21   : > { %2857 = vmatpush.bf16.msra.mxu2 %v2845_v12  ;;  %v2152_v12 = vld [vmem:[%s2920_s24 + $0x68] sm:$0xf0]  ;;  %v2143_v21 = vor.u32 %v2726_v18, %v2142_v17  ;;  %v2729_v23 = vld [vmem:[%s2920_s24 + $0x74] sm:$0xf]  ;;  %v2160_v24 = vld [vmem:[%s2920_s24 + $0x78] sm:$0xf0] }
  0x22   : > { %v2155_v13 = vor.u32 %v2727_v11, %v2152_v12  ;;  %v2424_v27 = vld [vmem:[%s2920_s24 + $0x288] sm:$0xf0]  ;;  %v2728_v30 = vld [vmem:[%s2920_s24 + $0x64] sm:$0xf0]  ;;  %v2406_v31 = vld [vmem:[%s2920_s24 + $0x260] sm:$0xf] }
  0x23   : > { %v2731_v35 = vld [vmem:[%s2920_s24 + $0x84] sm:$0xf]  ;;  %v2168_v36 = vld [vmem:[%s2920_s24 + $0x88] sm:$0xf0]  ;;  %v2797_v39 = vld [vmem:[%s2920_s24 + $0x294] sm:$0xf] }
  0x24   : > { %2649 = vmatmul.msk.bf16.gmra.mxu1 %vm954_vm0, %v2115_v15  ;;  %1153 = vmatpush.bf16.msra.mxu0 %v2844_v16  ;;  %v2416_v15 = vld [vmem:[%s2920_s24 + $0x278] sm:$0xf0]  ;;  %v2158_v42 = vld [vmem:[%s2920_s24 + $0x70] sm:$0xf]  ;;  %v2730_v43 = vld [vmem:[%s2920_s24 + $0x74] sm:$0xf0] }
  0x25   : > { %2858 = vmatpush.bf16.msra.mxu2 %v2844_v16  ;;  %2682 = vmatmul.msk.bf16.gmra.mxu3 %vm954_vm0, %v2379_v19  ;;  %v2419_v16 = vor.u32 %v2793_v14, %v2416_v15  ;;  %v2398_v19 = vld [vmem:[%s2920_s24 + $0x250] sm:$0xf]  ;;  %v2432_v40 = vld [vmem:[%s2920_s24 + $0x298] sm:$0xf0]  ;;  %v2794_v45 = vld [vmem:[%s2920_s24 + $0x274] sm:$0xf0]  ;;  %v2159_v46 = vor.u32 %v2730_v43, %v2158_v42 }
  0x26   : > { %v2176_v51 = vld [vmem:[%s2920_s24 + $0x98] sm:$0xf0]  ;;  %v2799_v54 = vld [vmem:[%s2920_s24 + $0x2a4] sm:$0xf]  ;;  %v2166_v58 = vld [vmem:[%s2920_s24 + $0x80] sm:$0xf] }
  0x27   : > { %v2732_v59 = vld [vmem:[%s2920_s24 + $0x84] sm:$0xf0]  ;;  %v2422_v60 = vld [vmem:[%s2920_s24 + $0x280] sm:$0xf]  ;;  %v2184_v5 = vld [vmem:[%s2920_s24 + $0xa8] sm:$0xf0] }
  0x28   : > { %1154 = vmatpush.bf16.msra.mxu0 %v2843_v20  ;;  %v2801_v11 = vld [vmem:[%s2920_s24 + $0x2b4] sm:$0xf]  ;;  %v2174_v15 = vld [vmem:[%s2920_s24 + $0x90] sm:$0xf]  ;;  %v2798_v18 = vld [vmem:[%s2920_s24 + $0x294] sm:$0xf0] }
  0x29   : > { %2859 = vmatpush.bf16.msra.mxu2 %v2843_v20  ;;  %v2790_v20 = vld [vmem:[%s2920_s24 + $0x254] sm:$0xf0]  ;;  %v2430_v17 = vld [vmem:[%s2920_s24 + $0x290] sm:$0xf] }
  0x2a   : > { %v2399_v22 = vor.u32 %v2790_v20, %v2398_v19 }
  0x2b   : > { %1155 = vmatmul.bf16.vlgmr.msra.gmra.mxu0 %v2103_v25  ;;  %v2163_v25 = vor.u32 %v2729_v23, %v2160_v24 }
  0x2c   : > { %1315 = vmatmul.bf16.vlgmr.msra.gmra.mxu2 %v2359_v26  ;;  %v2795_v26 = vld [vmem:[%s2920_s24 + $0x284] sm:$0xf] }
  0x2d   : > { %v2427_v28 = vor.u32 %v2795_v26, %v2424_v27  ;;  %v2737_v26 = vld [vmem:[%s2920_s24 + $0xb4] sm:$0xf]  ;;  %v2192_v27 = vld [vmem:[%s2920_s24 + $0xb8] sm:$0xf0] }
  0x34   : > { %2650 = vmatmul.msk.bf16.gmra.mxu1 %vm954_vm0, %v2123_v29  ;;  %v2150_v29 = vld [vmem:[%s2920_s24 + $0x60] sm:$0xf] }
  0x35   : > { %2683 = vmatmul.msk.bf16.gmra.mxu3 %vm954_vm0, %v2387_v32  ;;  %v2792_v32 = vld [vmem:[%s2920_s24 + $0x264] sm:$0xf0]  ;;  %v2151_v33 = vor.u32 %v2728_v30, %v2150_v29 }
  0x36   : > { %v2407_v34 = vor.u32 %v2792_v32, %v2406_v31  ;;  %v2195_v31 = vor.u32 %v2737_v26, %v2192_v27  ;;  %v2472_v26 = vld [vmem:[%s2920_s24 + $0x2e8] sm:$0xf0] }
  0x3b   : > { %1160 = vmatmul.bf16.gmra.mxu0 %v2111_v37  ;;  %v2171_v37 = vor.u32 %v2731_v35, %v2168_v36  ;;  %v2456_v36 = vld [vmem:[%s2920_s24 + $0x2c8] sm:$0xf0] }
  0x3c   : > { %1320 = vmatmul.bf16.gmra.mxu2 %v2367_v38 }
  0x44   : > { %2651 = vmatmul.msk.bf16.gmra.mxu1 %vm954_vm0, %v2131_v41  ;;  %v2435_v41 = vor.u32 %v2797_v39, %v2432_v40  ;;  %v2736_v39 = vld [vmem:[%s2920_s24 + $0xa4] sm:$0xf0]  ;;  %v2438_v40 = vld [vmem:[%s2920_s24 + $0x2a0] sm:$0xf] }
  0x45   : > { %2684 = vmatmul.msk.bf16.gmra.mxu3 %vm954_vm0, %v2395_v44  ;;  %v2414_v44 = vld [vmem:[%s2920_s24 + $0x270] sm:$0xf] }
  0x46   : > { %v2415_v47 = vor.u32 %v2794_v45, %v2414_v44 }
  0x4b   : > { %1165 = vmatmul.bf16.gmra.mxu0 %v2119_v49 }
  0x4c   : > { %1325 = vmatmul.bf16.gmra.mxu2 %v2375_v50  ;;  %v2733_v50 = vld [vmem:[%s2920_s24 + $0x94] sm:$0xf] }
  0x4d   : > { %v2179_v52 = vor.u32 %v2733_v50, %v2176_v51  ;;  %v2739_v50 = vld [vmem:[%s2920_s24 + $0xc4] sm:$0xf]  ;;  %v2200_v51 = vld [vmem:[%s2920_s24 + $0xc8] sm:$0xf0] }
  0x54   : > { %2652 = vmatmul.msk.bf16.gmra.mxu1 %vm954_vm0, %v2139_v53 }
  0x55   : > { %2685 = vmatmul.msk.bf16.gmra.mxu3 %vm954_vm0, %v2403_v56  ;;  %v2440_v56 = vld [vmem:[%s2920_s24 + $0x2a8] sm:$0xf0] }
  0x56   : > { %v2443_v57 = vor.u32 %v2799_v54, %v2440_v56 }
  0x5b   : > { %1170 = vmatmul.bf16.gmra.mxu0 %v2127_v61  ;;  %v2796_v61 = vld [vmem:[%s2920_s24 + $0x284] sm:$0xf0] }
  0x5c   : > { %1330 = vmatmul.bf16.gmra.mxu2 %v2383_v62  ;;  %v2167_v62 = vor.u32 %v2732_v59, %v2166_v58  ;;  %v2423_v0 = vor.u32 %v2796_v61, %v2422_v60  ;;  %v2805_v58 = vld [vmem:[%s2920_s24 + $0x2d4] sm:$0xf]  ;;  %v2464_v60 = vld [vmem:[%s2920_s24 + $0x2d8] sm:$0xf0] }
  0x5d   : > { %v2467_v61 = vor.u32 %v2805_v58, %v2464_v60  ;;  %v2206_v58 = vld [vmem:[%s2920_s24 + $0xd0] sm:$0xf]  ;;  %v2742_v60 = vld [vmem:[%s2920_s24 + $0xd4] sm:$0xf0] }
  0x64   : > { %2653 = vmatmul.msk.bf16.gmra.mxu1 %vm954_vm0, %v2147_v1 }
  0x65   : > { %2686 = vmatmul.msk.bf16.gmra.mxu3 %vm954_vm0, %v2411_v4  ;;  %v2735_v4 = vld [vmem:[%s2920_s24 + $0xa4] sm:$0xf] }
  0x66   : > { %v2187_v8 = vor.u32 %v2735_v4, %v2184_v5 }
  0x6b   : > { %1175 = vmatmul.bf16.gmra.mxu0 %v2135_v9 }
  0x6c   : > { %1335 = vmatmul.bf16.gmra.mxu2 %v2391_v10 }
  0x74   : > { %2654 = vmatmul.msk.bf16.gmra.mxu1 %vm954_vm0, %v2155_v13  ;;  %v2448_v13 = vld [vmem:[%s2920_s24 + $0x2b8] sm:$0xf0] }
  0x75   : > { %2687 = vmatmul.msk.bf16.gmra.mxu3 %vm954_vm0, %v2419_v16  ;;  %v2451_v14 = vor.u32 %v2801_v11, %v2448_v13  ;;  %v2734_v16 = vld [vmem:[%s2920_s24 + $0x94] sm:$0xf0] }
  0x76   : > { %v2175_v20 = vor.u32 %v2734_v16, %v2174_v15  ;;  %v2208_v15 = vld [vmem:[%s2920_s24 + $0xd8] sm:$0xf0] }
  0x7b   : > { %1180 = vmatmul.bf16.gmra.mxu0 %v2143_v21 }
  0x7c   : > { %1340 = vmatmul.bf16.gmra.mxu2 %v2399_v22  ;;  %v2431_v22 = vor.u32 %v2798_v18, %v2430_v17 }
  0x84   : > { %2655 = vmatmul.msk.bf16.gmra.mxu1 %vm954_vm0, %v2163_v25 }
  0x85   : > { %2688 = vmatmul.msk.bf16.gmra.mxu3 %vm954_vm0, %v2427_v28 }
  0x8b   : > { %1185 = vmatmul.bf16.gmra.mxu0 %v2151_v33 }
  0x8c   : > { %1345 = vmatmul.bf16.gmra.mxu2 %v2407_v34  ;;  %v2803_v34 = vld [vmem:[%s2920_s24 + $0x2c4] sm:$0xf] }
  0x91   : > { %v1485_v38 = vpop.f32.mrf.mxu1 }
  0x94   : > { %2656 = vmatmul.msk.bf16.gmra.mxu1 %vm954_vm0, %v2171_v37  ;;  %v2459_v37 = vor.u32 %v2803_v34, %v2456_v36 }
  0x95   : > { %2689 = vmatmul.msk.bf16.gmra.mxu3 %vm954_vm0, %v2435_v41  ;;  %v2800_v41 = vld [vmem:[%s2920_s24 + $0x2a4] sm:$0xf0] }
  0x98   : > { %v1650_v49 = vpop.f32.mrf.mxu3 }
  0x99   : > { %v1487_v48 = vpop.f32.mrf.mxu1 }
  0x9b   : > { %1190 = vmatmul.bf16.gmra.mxu0 %v2159_v46  ;;  %v2439_v46 = vor.u32 %v2800_v41, %v2438_v40 }
  0x9c   : > { %1350 = vmatmul.bf16.gmra.mxu2 %v2415_v47 }
  0xa0   : > { %v3029_v55 = vpop.f32.mrf.mxu3 }
  0xa1   : > { %v1490_v53 = vpop.f32.mrf.mxu1 }
  0xa4   : > { %2657 = vmatmul.msk.bf16.gmra.mxu1 %vm954_vm0, %v2179_v52 }
  0xa5   : > { %2690 = vmatmul.msk.bf16.gmra.mxu3 %vm954_vm0, %v2443_v57 }
  0xa8   : > { %v1156_v63 = vpop.f32.mrf.mxu0  ;;  %v1655_v3 = vpop.f32.mrf.mxu3 }
  0xa9   : > { %v3038_v1 = vadd.f32 %v1485_v38, %v1156_v63  ;;  %v1492_v2 = vpop.f32.mrf.mxu1  ;;  %v2182_v38 = vld [vmem:[%s2920_s24 + $0xa0] sm:$0xf]  ;;  %v2738_v63 = vld [vmem:[%s2920_s24 + $0xb4] sm:$0xf0] }
  0xaa   : > { %v2183_v43 = vor.u32 %v2736_v39, %v2182_v38 }
  0xab   : > { %3715 = vst [vmem:[#allocation2_spill] sm:$0xff] %v3038_v1  ;;  %1195 = vmatmul.bf16.gmra.mxu0 %v2167_v62  ;;  %v2190_v62 = vld [vmem:[%s2920_s24 + $0xb0] sm:$0xf] }
  0xac   : > { %1355 = vmatmul.bf16.gmra.mxu2 %v2423_v0  ;;  %v2446_v0 = vld [vmem:[%s2920_s24 + $0x2b0] sm:$0xf]  ;;  %v2191_v4 = vor.u32 %v2738_v63, %v2190_v62  ;;  %v2806_v62 = vld [vmem:[%s2920_s24 + $0x2d4] sm:$0xf0]  ;;  %v2207_v63 = vor.u32 %v2742_v60, %v2206_v58 }
  0xaf   : > { %v3042_v6 = vpop.f32.mrf.mxu2 }
  0xb0   : > { %3716 = vst [vmem:[#allocation3_spill] sm:$0xff] %v3042_v6  ;;  %v1158_v7 = vpop.f32.mrf.mxu0  ;;  %v3047_v12 = vpop.f32.mrf.mxu3 }
  0xb1   : > { %v3044_v9 = vadd.f32 %v1487_v48, %v1158_v7  ;;  %v1495_v10 = vpop.f32.mrf.mxu1 }
  0xb3   : > { %3717 = vst [vmem:[#allocation4_spill] sm:$0xff] %v3044_v9 }
  0xb4   : > { %2658 = vmatmul.msk.bf16.gmra.mxu1 %vm954_vm0, %v2187_v8 }
  0xb5   : > { %2691 = vmatmul.msk.bf16.gmra.mxu3 %vm954_vm0, %v2451_v14  ;;  %v2741_v14 = vld [vmem:[%s2920_s24 + $0xd4] sm:$0xf] }
  0xb6   : > { %v2211_v18 = vor.u32 %v2741_v14, %v2208_v15  ;;  %v2224_v14 = vld [vmem:[%s2920_s24 + $0xf8] sm:$0xf0] }
  0xb7   : > { %v3055_v19 = vpop.f32.mrf.mxu2 }
  0xb8   : > { %3718 = vst [vmem:[#allocation5_spill] sm:$0xff] %v3055_v19  ;;  %v1161_v21 = vpop.f32.mrf.mxu0  ;;  %v1660_v25 = vpop.f32.mrf.mxu3  ;;  %v2818_v19 = vld [vmem:[%s2920_s24 + $0x334] sm:$0xf0] }
  0xb9   : > { %v3058_v23 = vadd.f32 %v1490_v53, %v1161_v21  ;;  %v1497_v24 = vpop.f32.mrf.mxu1 }
  0xbb   : > { %1200 = vmatmul.bf16.gmra.mxu0 %v2175_v20 }
  0xbc   : > { %1360 = vmatmul.bf16.gmra.mxu2 %v2431_v22  ;;  %v2807_v22 = vld [vmem:[%s2920_s24 + $0x2e4] sm:$0xf] }
  0xbd   : > { %v2475_v27 = vor.u32 %v2807_v22, %v2472_v26 }
  0xbf   : > { %v1321_v28 = vpop.f32.mrf.mxu2 }
  0xc0   : > { %v3062_v29 = vadd.f32 %v1650_v49, %v1321_v28  ;;  %v1163_v30 = vpop.f32.mrf.mxu0  ;;  %v3067_v35 = vpop.f32.mrf.mxu3  ;;  %v2198_v28 = vld [vmem:[%s2920_s24 + $0xc0] sm:$0xf] }
  0xc1   : > { %v3064_v32 = vadd.f32 %v1492_v2, %v1163_v30  ;;  %v1500_v33 = vpop.f32.mrf.mxu1  ;;  %v2802_v2 = vld [vmem:[%s2920_s24 + $0x2b4] sm:$0xf0]  ;;  %v2740_v30 = vld [vmem:[%s2920_s24 + $0xc4] sm:$0xf0] }
  0xc2   : > { %v2447_v8 = vor.u32 %v2802_v2, %v2446_v0  ;;  %v2199_v34 = vor.u32 %v2740_v30, %v2198_v28  ;;  %v2214_v30 = vld [vmem:[%s2920_s24 + $0xe0] sm:$0xf] }
  0xc4   : > { %2659 = vmatmul.msk.bf16.gmra.mxu1 %vm954_vm0, %v2195_v31  ;;  %v2454_v31 = vld [vmem:[%s2920_s24 + $0x2c0] sm:$0xf] }
  0xc5   : > { %2692 = vmatmul.msk.bf16.gmra.mxu3 %vm954_vm0, %v2459_v37 }
  0xc7   : > { %v1323_v42 = vpop.f32.mrf.mxu2 }
  0xc8   : > { %v3077_v44 = vadd.f32 %v3029_v55, %v1323_v42  ;;  %v1166_v45 = vpop.f32.mrf.mxu0  ;;  %v1665_v49 = vpop.f32.mrf.mxu3  ;;  %v2203_v55 = vor.u32 %v2739_v50, %v2200_v51  ;;  %v2743_v42 = vld [vmem:[%s2920_s24 + $0xe4] sm:$0xf] }
  0xc9   : > { %v3079_v47 = vadd.f32 %v1495_v10, %v1166_v45  ;;  %v1502_v48 = vpop.f32.mrf.mxu1 }
  0xcb   : > { %1205 = vmatmul.bf16.gmra.mxu0 %v2183_v43  ;;  %v2216_v43 = vld [vmem:[%s2920_s24 + $0xe8] sm:$0xf0] }
  0xcc   : > { %1365 = vmatmul.bf16.gmra.mxu2 %v2439_v46 }
  0xcf   : > { %v1326_v52 = vpop.f32.mrf.mxu2 }
  0xd0   : > { %v3083_v53 = vadd.f32 %v1655_v3, %v1326_v52  ;;  %v1168_v54 = vpop.f32.mrf.mxu0  ;;  %v3088_v59 = vpop.f32.mrf.mxu3  ;;  %v2809_v52 = vld [vmem:[%s2920_s24 + $0x2f4] sm:$0xf] }
  0xd1   : > { %v3085_v56 = vadd.f32 %v1497_v24, %v1168_v54  ;;  %v1505_v57 = vpop.f32.mrf.mxu1 }
  0xd4   : > { %2660 = vmatmul.msk.bf16.gmra.mxu1 %vm954_vm0, %v2203_v55  ;;  %v2480_v55 = vld [vmem:[%s2920_s24 + $0x2f8] sm:$0xf0] }
  0xd5   : > { %2693 = vmatmul.msk.bf16.gmra.mxu3 %vm954_vm0, %v2467_v61  ;;  %v2462_v61 = vld [vmem:[%s2920_s24 + $0x2d0] sm:$0xf] }
  0xd7   : > { %v1328_v3 = vpop.f32.mrf.mxu2 }
  0xd8   : > { %v3098_v5 = vadd.f32 %v3047_v12, %v1328_v3  ;;  %v1171_v7 = vpop.f32.mrf.mxu0  ;;  %v1670_v13 = vpop.f32.mrf.mxu3  ;;  %v2463_v3 = vor.u32 %v2806_v62, %v2462_v61  ;;  %v2496_v62 = vld [vmem:[%s2920_s24 + $0x318] sm:$0xf0] }
  0xd9   : > { %v3100_v10 = vadd.f32 %v1500_v33, %v1171_v7  ;;  %v1507_v11 = vpop.f32.mrf.mxu1  ;;  %v2804_v33 = vld [vmem:[%s2920_s24 + $0x2c4] sm:$0xf0] }
  0xda   : > { %v2455_v38 = vor.u32 %v2804_v33, %v2454_v31  ;;  %v2744_v31 = vld [vmem:[%s2920_s24 + $0xe4] sm:$0xf0]  ;;  %v2470_v33 = vld [vmem:[%s2920_s24 + $0x2e0] sm:$0xf] }
  0xdb   : > { %1210 = vmatmul.bf16.gmra.mxu0 %v2191_v4 }
  0xdc   : > { %1370 = vmatmul.bf16.gmra.mxu2 %v2447_v8 }
  0xdf   : > { %v1331_v16 = vpop.f32.mrf.mxu2 }
  0xe0   : > { %v3104_v17 = vadd.f32 %v1660_v25, %v1331_v16  ;;  %v1173_v12 = vpop.f32.mrf.mxu0  ;;  %v3109_v24 = vpop.f32.mrf.mxu3 }
  0xe1   : > { %v3106_v20 = vadd.f32 %v1502_v48, %v1173_v12  ;;  %v1510_v21 = vpop.f32.mrf.mxu1  ;;  %v2219_v48 = vor.u32 %v2743_v42, %v2216_v43 }
  0xe4   : > { %2661 = vmatmul.msk.bf16.gmra.mxu1 %vm954_vm0, %v2211_v18 }
  0xe5   : > { %2694 = vmatmul.msk.bf16.gmra.mxu3 %vm954_vm0, %v2475_v27  ;;  %v2488_v27 = vld [vmem:[%s2920_s24 + $0x308] sm:$0xf0] }
  0xe7   : > { %v1333_v25 = vpop.f32.mrf.mxu2 }
  0xe8   : > { %v3119_v36 = vadd.f32 %v3067_v35, %v1333_v25  ;;  %v1176_v37 = vpop.f32.mrf.mxu0  ;;  %v1675_v41 = vpop.f32.mrf.mxu3  ;;  %v2808_v25 = vld [vmem:[%s2920_s24 + $0x2e4] sm:$0xf0] }
  0xe9   : > { %v3121_v39 = vadd.f32 %v1505_v57, %v1176_v37  ;;  %v1512_v40 = vpop.f32.mrf.mxu1  ;;  %v2483_v57 = vor.u32 %v2809_v52, %v2480_v55 }
  0xeb   : > { %1215 = vmatmul.bf16.gmra.mxu0 %v2199_v34  ;;  %v2215_v34 = vor.u32 %v2744_v31, %v2214_v30  ;;  %v2240_v30 = vld [vmem:[%s2920_s24 + $0x118] sm:$0xf0] }
  0xec   : > { %1375 = vmatmul.bf16.gmra.mxu2 %v2455_v38 }
  0xef   : > { %v1336_v45 = vpop.f32.mrf.mxu2 }
  0xf0   : > { %v3125_v46 = vadd.f32 %v1665_v49, %v1336_v45  ;;  %v1178_v35 = vpop.f32.mrf.mxu0  ;;  %v3130_v54 = vpop.f32.mrf.mxu3 }
  0xf1   : > { %v3127_v50 = vadd.f32 %v1507_v11, %v1178_v35  ;;  %v1515_v51 = vpop.f32.mrf.mxu1  ;;  %v2745_v11 = vld [vmem:[%s2920_s24 + $0xf4] sm:$0xf]  ;;  %v2747_v35 = vld [vmem:[%s2920_s24 + $0x104] sm:$0xf] }
  0xf2   : > { %v2227_v12 = vor.u32 %v2745_v11, %v2224_v14  ;;  %v2810_v11 = vld [vmem:[%s2920_s24 + $0x2f4] sm:$0xf0] }
  0xf4   : > { %2662 = vmatmul.msk.bf16.gmra.mxu1 %vm954_vm0, %v2219_v48  ;;  %v2232_v48 = vld [vmem:[%s2920_s24 + $0x108] sm:$0xf0] }
  0xf5   : > { %2695 = vmatmul.msk.bf16.gmra.mxu3 %vm954_vm0, %v2483_v57  ;;  %v2235_v57 = vor.u32 %v2747_v35, %v2232_v48  ;;  %v2230_v48 = vld [vmem:[%s2920_s24 + $0x100] sm:$0xf] }
  0xf7   : > { %v1338_v49 = vpop.f32.mrf.mxu2 }
  0xf8   : > { %v3140_v0 = vadd.f32 %v3088_v59, %v1338_v49  ;;  %v1181_v2 = vpop.f32.mrf.mxu0  ;;  %v1680_v8 = vpop.f32.mrf.mxu3 }
  0xf9   : > { %v3142_v4 = vadd.f32 %v1510_v21, %v1181_v2  ;;  %v1517_v7 = vpop.f32.mrf.mxu1  ;;  %v2811_v21 = vld [vmem:[%s2920_s24 + $0x304] sm:$0xf]  ;;  %v2746_v2 = vld [vmem:[%s2920_s24 + $0xf4] sm:$0xf0] }
  0xfa   : > { %v2491_v28 = vor.u32 %v2811_v21, %v2488_v27 }
  0xfb   : > { %1220 = vmatmul.bf16.gmra.mxu0 %v2207_v63  ;;  %v2222_v63 = vld [vmem:[%s2920_s24 + $0xf0] sm:$0xf] }
  0xfc   : > { %1380 = vmatmul.bf16.gmra.mxu2 %v2463_v3  ;;  %v2478_v3 = vld [vmem:[%s2920_s24 + $0x2f0] sm:$0xf]  ;;  %v2223_v14 = vor.u32 %v2746_v2, %v2222_v63 }
  0xff   : > { %v1341_v15 = vpop.f32.mrf.mxu2 }
 0x100   : > { %v3146_v16 = vadd.f32 %v1670_v13, %v1341_v15  ;;  %v1183_v59 = vpop.f32.mrf.mxu0  ;;  %v3151_v26 = vpop.f32.mrf.mxu3 }
 0x101   : > { %v3148_v18 = vadd.f32 %v1512_v40, %v1183_v59  ;;  %v1520_v22 = vpop.f32.mrf.mxu1  ;;  %v2471_v40 = vor.u32 %v2808_v25, %v2470_v33  ;;  %v2479_v59 = vor.u32 %v2810_v11, %v2478_v3  ;;  %v2751_v11 = vld [vmem:[%s2920_s24 + $0x124] sm:$0xf] }
 0x104   : > { %2663 = vmatmul.msk.bf16.gmra.mxu1 %vm954_vm0, %v2227_v12 }
 0x105   : > { %2696 = vmatmul.msk.bf16.gmra.mxu3 %vm954_vm0, %v2491_v28  ;;  %v2749_v28 = vld [vmem:[%s2920_s24 + $0x114] sm:$0xf] }
 0x106   : > { %v2243_v25 = vor.u32 %v2749_v28, %v2240_v30 }
 0x107   : > { %v1343_v13 = vpop.f32.mrf.mxu2 }
 0x108   : > { %v3161_v37 = vadd.f32 %v3109_v24, %v1343_v13  ;;  %v1186_v38 = vpop.f32.mrf.mxu0  ;;  %v1685_v45 = vpop.f32.mrf.mxu3 }
 0x109   : > { %v3163_v42 = vadd.f32 %v1515_v51, %v1186_v38  ;;  %v1522_v43 = vpop.f32.mrf.mxu1  ;;  %v2813_v51 = vld [vmem:[%s2920_s24 + $0x314] sm:$0xf] }
 0x10a   : > { %v2499_v49 = vor.u32 %v2813_v51, %v2496_v62 }
 0x10b   : > { %1225 = vmatmul.bf16.gmra.mxu0 %v2215_v34 }
 0x10c   : > { %1385 = vmatmul.bf16.gmra.mxu2 %v2471_v40  ;;  %v2504_v40 = vld [vmem:[%s2920_s24 + $0x328] sm:$0xf0] }
 0x10f   : > { %v1346_v52 = vpop.f32.mrf.mxu2 }
 0x110   : > { %v3167_v55 = vadd.f32 %v1675_v41, %v1346_v52  ;;  %v1188_v24 = vpop.f32.mrf.mxu0  ;;  %v3172_v61 = vpop.f32.mrf.mxu3  ;;  %v2748_v52 = vld [vmem:[%s2920_s24 + $0x104] sm:$0xf0] }
 0x111   : > { %v3169_v58 = vadd.f32 %v1517_v7, %v1188_v24  ;;  %v1525_v60 = vpop.f32.mrf.mxu1  ;;  %v2486_v24 = vld [vmem:[%s2920_s24 + $0x300] sm:$0xf]  ;;  %v2231_v51 = vor.u32 %v2748_v52, %v2230_v48  ;;  %v2814_v48 = vld [vmem:[%s2920_s24 + $0x314] sm:$0xf0] }
 0x114   : > { %2664 = vmatmul.msk.bf16.gmra.mxu1 %vm954_vm0, %v2235_v57  ;;  %v2812_v57 = vld [vmem:[%s2920_s24 + $0x304] sm:$0xf0] }
 0x115   : > { %2697 = vmatmul.msk.bf16.gmra.mxu3 %vm954_vm0, %v2499_v49  ;;  %v2487_v49 = vor.u32 %v2812_v57, %v2486_v24 }
 0x117   : > { %v1348_v41 = vpop.f32.mrf.mxu2 }
 0x118   : > { %v3182_v7 = vadd.f32 %v3130_v54, %v1348_v41  ;;  %v1191_v15 = vpop.f32.mrf.mxu0  ;;  %v1690_v27 = vpop.f32.mrf.mxu3  ;;  %v2248_v41 = vld [vmem:[%s2920_s24 + $0x128] sm:$0xf0] }
 0x119   : > { %v3184_v12 = vadd.f32 %v1520_v22, %v1191_v15  ;;  %v1527_v21 = vpop.f32.mrf.mxu1  ;;  %v2815_v22 = vld [vmem:[%s2920_s24 + $0x324] sm:$0xf] }
 0x11a   : > { %v2507_v35 = vor.u32 %v2815_v22, %v2504_v40  ;;  %v2238_v22 = vld [vmem:[%s2920_s24 + $0x110] sm:$0xf]  ;;  %v2750_v40 = vld [vmem:[%s2920_s24 + $0x114] sm:$0xf0] }
 0x11b   : > { %1230 = vmatmul.bf16.gmra.mxu0 %v2223_v14  ;;  %v2239_v52 = vor.u32 %v2750_v40, %v2238_v22  ;;  %v2246_v40 = vld [vmem:[%s2920_s24 + $0x120] sm:$0xf] }
 0x11c   : > { %1390 = vmatmul.bf16.gmra.mxu2 %v2479_v59  ;;  %v2251_v59 = vor.u32 %v2751_v11, %v2248_v41  ;;  %v2256_v11 = vld [vmem:[%s2920_s24 + $0x138] sm:$0xf0] }
 0x11f   : > { %v1351_v31 = vpop.f32.mrf.mxu2 }
 0x120   : > { %v3188_v33 = vadd.f32 %v1680_v8, %v1351_v31  ;;  %v1193_v54 = vpop.f32.mrf.mxu0  ;;  %v3193_v38 = vpop.f32.mrf.mxu3 }
 0x121   : > { %v3190_v13 = vadd.f32 %v1522_v43, %v1193_v54  ;;  %v1530_v34 = vpop.f32.mrf.mxu1  ;;  %v2512_v54 = vld [vmem:[%s2920_s24 + $0x338] sm:$0xf0] }
 0x124   : > { %2665 = vmatmul.msk.bf16.gmra.mxu1 %vm954_vm0, %v2243_v25 }
 0x125   : > { %2698 = vmatmul.msk.bf16.gmra.mxu3 %vm954_vm0, %v2507_v35  ;;  %v2494_v35 = vld [vmem:[%s2920_s24 + $0x310] sm:$0xf] }
 0x126   : > { %v2495_v57 = vor.u32 %v2814_v48, %v2494_v35  ;;  %v2752_v35 = vld [vmem:[%s2920_s24 + $0x124] sm:$0xf0]  ;;  %v2502_v48 = vld [vmem:[%s2920_s24 + $0x320] sm:$0xf] }
 0x127   : > { %v1353_v8 = vpop.f32.mrf.mxu2 }
 0x128   : > { %v3203_v43 = vadd.f32 %v3151_v26, %v1353_v8  ;;  %v1196_v62 = vpop.f32.mrf.mxu0  ;;  %v1695_v3 = vpop.f32.mrf.mxu3 }
 0x129   : > { %v3205_v63 = vadd.f32 %v1525_v60, %v1196_v62  ;;  %v1532_v2 = vpop.f32.mrf.mxu1  ;;  %v2817_v60 = vld [vmem:[%s2920_s24 + $0x334] sm:$0xf] }
 0x12a   : > { %v2515_v25 = vor.u32 %v2817_v60, %v2512_v54 }
 0x12b   : > { %1235 = vmatmul.bf16.gmra.mxu0 %v2231_v51 }
 0x12c   : > { %1395 = vmatmul.bf16.gmra.mxu2 %v2487_v49  ;;  %v2753_v49 = vld [vmem:[%s2920_s24 + $0x134] sm:$0xf] }
 0x12f   : > { %v1356_v14 = vpop.f32.mrf.mxu2 }
 0x130   : > { %v3209_v15 = vadd.f32 %v1685_v45, %v1356_v14  ;;  %v1198_v26 = vpop.f32.mrf.mxu0  ;;  %v3214_v31 = vpop.f32.mrf.mxu3 }
 0x131   : > { %v3211_v28 = vadd.f32 %v1527_v21, %v1198_v26  ;;  %v1535_v30 = vpop.f32.mrf.mxu1  ;;  %v2259_v26 = vor.u32 %v2753_v49, %v2256_v11 }
 0x134   : > { %2666 = vmatmul.msk.bf16.gmra.mxu1 %vm954_vm0, %v2251_v59 }
 0x135   : > { %2699 = vmatmul.msk.bf16.gmra.mxu3 %vm954_vm0, %v2515_v25  ;;  %v2520_v25 = vld [vmem:[%s2920_s24 + $0x348] sm:$0xf0] }
 0x137   : > { %v1358_v45 = vpop.f32.mrf.mxu2 }
 0x138   : > { %v3224_v21 = vadd.f32 %v3172_v61, %v1358_v45  ;;  %v1201_v24 = vpop.f32.mrf.mxu0  ;;  %v1700_v62 = vpop.f32.mrf.mxu3  ;;  %v2816_v45 = vld [vmem:[%s2920_s24 + $0x324] sm:$0xf0] }
 0x139   : > { %v3226_v8 = vadd.f32 %v1530_v34, %v1201_v24  ;;  %v1537_v51 = vpop.f32.mrf.mxu1  ;;  %v2819_v34 = vld [vmem:[%s2920_s24 + $0x344] sm:$0xf] }
 0x13a   : > { %v2523_v22 = vor.u32 %v2819_v34, %v2520_v25 }
 0x13b   : > { %1240 = vmatmul.bf16.gmra.mxu0 %v2239_v52  ;;  %v2247_v52 = vor.u32 %v2752_v35, %v2246_v40 }
 0x13c   : > { %1400 = vmatmul.bf16.gmra.mxu2 %v2495_v57  ;;  %v2503_v57 = vor.u32 %v2816_v45, %v2502_v48  ;;  %v2528_v45 = vld [vmem:[%s2920_s24 + $0x358] sm:$0xf0] }
 0x13f   : > { %v1361_v41 = vpop.f32.mrf.mxu2 }
 0x140   : > { %v3230_v14 = vadd.f32 %v1690_v27, %v1361_v41  ;;  %v1203_v61 = vpop.f32.mrf.mxu0  ;;  %v3235_v54 = vpop.f32.mrf.mxu3 }
 0x141   : > { %v3232_v59 = vadd.f32 %v1532_v2, %v1203_v61  ;;  %v1540_v60 = vpop.f32.mrf.mxu1  ;;  %v2755_v61 = vld [vmem:[%s2920_s24 + $0x144] sm:$0xf] }
 0x144   : > { %2667 = vmatmul.msk.bf16.gmra.mxu1 %vm954_vm0, %v2259_v26  ;;  %v2264_v26 = vld [vmem:[%s2920_s24 + $0x148] sm:$0xf0] }
 0x145   : > { %2700 = vmatmul.msk.bf16.gmra.mxu3 %vm954_vm0, %v2523_v22  ;;  %v2267_v22 = vor.u32 %v2755_v61, %v2264_v26 }
 0x147   : > { %v1363_v27 = vpop.f32.mrf.mxu2 }
 0x148   : > { %v3245_v2 = vadd.f32 %v3193_v38, %v1363_v27  ;;  %v1206_v24 = vpop.f32.mrf.mxu0  ;;  %v1705_v41 = vpop.f32.mrf.mxu3 }
 0x149   : > { %v3247_v49 = vadd.f32 %v1535_v30, %v1206_v24  ;;  %v1542_v11 = vpop.f32.mrf.mxu1  ;;  %v2821_v30 = vld [vmem:[%s2920_s24 + $0x354] sm:$0xf]  ;;  %v2754_v24 = vld [vmem:[%s2920_s24 + $0x134] sm:$0xf0] }
 0x14a   : > { %v2531_v27 = vor.u32 %v2821_v30, %v2528_v45  ;;  %v2757_v45 = vld [vmem:[%s2920_s24 + $0x154] sm:$0xf] }
 0x14b   : > { %1245 = vmatmul.bf16.gmra.mxu0 %v2247_v52  ;;  %v2254_v52 = vld [vmem:[%s2920_s24 + $0x130] sm:$0xf] }
 0x14c   : > { %1405 = vmatmul.bf16.gmra.mxu2 %v2503_v57  ;;  %v2510_v57 = vld [vmem:[%s2920_s24 + $0x330] sm:$0xf] }
 0x14d   : > { %v2511_v26 = vor.u32 %v2818_v19, %v2510_v57 }
 0x14f   : > { %v1366_v34 = vpop.f32.mrf.mxu2 }
 0x150   : > { %v3251_v25 = vadd.f32 %v1695_v3, %v1366_v34  ;;  %v1208_v38 = vpop.f32.mrf.mxu0  ;;  %v3256_v48 = vpop.f32.mrf.mxu3  ;;  %v2255_v34 = vor.u32 %v2754_v24, %v2254_v52  ;;  %v2272_v52 = vld [vmem:[%s2920_s24 + $0x158] sm:$0xf0] }
 0x151   : > { %v3253_v40 = vadd.f32 %v1537_v51, %v1208_v38  ;;  %v1545_v35 = vpop.f32.mrf.mxu1 }
 0x153   : > { %3719 = vst [vmem:[#allocation6_spill] sm:$0xff] %v3253_v40  ;;  %v2820_v40 = vld [vmem:[%s2920_s24 + $0x344] sm:$0xf0] }
 0x154   : > { %2668 = vmatmul.msk.bf16.gmra.mxu1 %vm954_vm0, %v2267_v22 }
 0x155   : > { %2701 = vmatmul.msk.bf16.gmra.mxu3 %vm954_vm0, %v2531_v27 }
 0x157   : > { %v1368_v3 = vpop.f32.mrf.mxu2 }
 0x158   : > { %v3266_v51 = vadd.f32 %v3214_v31, %v1368_v3  ;;  %v1211_v61 = vpop.f32.mrf.mxu0  ;;  %v1710_v30 = vpop.f32.mrf.mxu3  ;;  %v2275_v3 = vor.u32 %v2757_v45, %v2272_v52 }
 0x159   : > { %v3268_v38 = vadd.f32 %v1540_v60, %v1211_v61  ;;  %v1547_v22 = vpop.f32.mrf.mxu1  ;;  %v2823_v60 = vld [vmem:[%s2920_s24 + $0x364] sm:$0xf]  ;;  %v2536_v61 = vld [vmem:[%s2920_s24 + $0x368] sm:$0xf0] }
 0x15a   : > { %3720 = vst [vmem:[#allocation7_spill] sm:$0xff] %v3266_v51  ;;  %v2518_v51 = vld [vmem:[%s2920_s24 + $0x340] sm:$0xf] }
 0x15b   : > { %3721 = vst [vmem:[#allocation8_spill] sm:$0xff] %v3268_v38  ;;  %1250 = vmatmul.bf16.gmra.mxu0 %v2255_v34  ;;  %v2539_v38 = vor.u32 %v2823_v60, %v2536_v61  ;;  %v2262_v34 = vld [vmem:[%s2920_s24 + $0x140] sm:$0xf]  ;;  %v2519_v52 = vor.u32 %v2820_v40, %v2518_v51  ;;  %v2759_v61 = vld [vmem:[%s2920_s24 + $0x164] sm:$0xf] }
 0x15c   : > { %1410 = vmatmul.bf16.gmra.mxu2 %v2511_v26  ;;  %v2756_v26 = vld [vmem:[%s2920_s24 + $0x144] sm:$0xf0] }
 0x15f   : > { %v1371_v27 = vpop.f32.mrf.mxu2 }
 0x160   : > { %v3272_v24 = vadd.f32 %v1700_v62, %v1371_v27  ;;  %v1213_v31 = vpop.f32.mrf.mxu0  ;;  %v3277_v57 = vpop.f32.mrf.mxu3  ;;  %v2263_v27 = vor.u32 %v2756_v26, %v2262_v34  ;;  %v2280_v34 = vld [vmem:[%s2920_s24 + $0x168] sm:$0xf0] }
 0x161   : > { %v3274_v6 = vadd.f32 %v1542_v11, %v1213_v31  ;;  %v1550_v19 = vpop.f32.mrf.mxu1 }
 0x162   : > { %3722 = vst [vmem:[#allocation9_spill] sm:$0xff] %v3272_v24  ;;  %v2822_v24 = vld [vmem:[%s2920_s24 + $0x354] sm:$0xf0] }
 0x163   : > { %3723 = vst [vmem:[#allocation10_spill] sm:$0xff] %v3274_v6  ;;  %v2526_v6 = vld [vmem:[%s2920_s24 + $0x350] sm:$0xf] }
 0x164   : > { %2669 = vmatmul.msk.bf16.gmra.mxu1 %vm954_vm0, %v2275_v3 }
 0x165   : > { %2702 = vmatmul.msk.bf16.gmra.mxu3 %vm954_vm0, %v2539_v38 }
 0x167   : > { %v1373_v62 = vpop.f32.mrf.mxu2 }
 0x168   : > { %v3287_v11 = vadd.f32 %v3235_v54, %v1373_v62  ;;  %v1216_v45 = vpop.f32.mrf.mxu0  ;;  %v1715_v60 = vpop.f32.mrf.mxu3  ;;  %v2283_v62 = vor.u32 %v2759_v61, %v2280_v34  ;;  %v2527_v34 = vor.u32 %v2822_v24, %v2526_v6  ;;  %v2827_v24 = vld [vmem:[%s2920_s24 + $0x384] sm:$0xf] }
 0x169   : > { %v3289_v31 = vadd.f32 %v1545_v35, %v1216_v45  ;;  %v1552_v3 = vpop.f32.mrf.mxu1  ;;  %v2825_v35 = vld [vmem:[%s2920_s24 + $0x374] sm:$0xf]  ;;  %v2544_v45 = vld [vmem:[%s2920_s24 + $0x378] sm:$0xf0] }
 0x16a   : > { %3724 = vst [vmem:[#allocation11_spill] sm:$0xff] %v3287_v11 }
 0x16b   : > { %3725 = vst [vmem:[#allocation12_spill] sm:$0xff] %v3289_v31  ;;  %1255 = vmatmul.bf16.gmra.mxu0 %v2263_v27  ;;  %v2547_v31 = vor.u32 %v2825_v35, %v2544_v45  ;;  %v2270_v27 = vld [vmem:[%s2920_s24 + $0x150] sm:$0xf]  ;;  %v2761_v45 = vld [vmem:[%s2920_s24 + $0x174] sm:$0xf] }
 0x16c   : > { %1415 = vmatmul.bf16.gmra.mxu2 %v2519_v52  ;;  %v2758_v52 = vld [vmem:[%s2920_s24 + $0x154] sm:$0xf0] }
 0x16f   : > { %v1376_v38 = vpop.f32.mrf.mxu2 }
 0x170   : > { %v3293_v26 = vadd.f32 %v1705_v41, %v1376_v38  ;;  %v1218_v54 = vpop.f32.mrf.mxu0  ;;  %v3298_v51 = vpop.f32.mrf.mxu3  ;;  %v2271_v38 = vor.u32 %v2758_v52, %v2270_v27  ;;  %v2288_v27 = vld [vmem:[%s2920_s24 + $0x178] sm:$0xf0] }
 0x171   : > { %v3295_v11 = vadd.f32 %v1547_v22, %v1218_v54  ;;  %v1555_v40 = vpop.f32.mrf.mxu1 }
 0x172   : > { %3726 = vst [vmem:[#allocation13_spill] sm:$0xff] %v3293_v26  ;;  %v2824_v26 = vld [vmem:[%s2920_s24 + $0x364] sm:$0xf0] }
 0x173   : > { %3727 = vst [vmem:[#allocation14_spill] sm:$0xff] %v3295_v11  ;;  %v2534_v11 = vld [vmem:[%s2920_s24 + $0x360] sm:$0xf] }
 0x174   : > { %2670 = vmatmul.msk.bf16.gmra.mxu1 %vm954_vm0, %v2283_v62 }
 0x175   : > { %2703 = vmatmul.msk.bf16.gmra.mxu3 %vm954_vm0, %v2547_v31 }
 0x177   : > { %v1378_v41 = vpop.f32.mrf.mxu2 }
 0x178   : > { %v3308_v22 = vadd.f32 %v3256_v48, %v1378_v41  ;;  %v1221_v61 = vpop.f32.mrf.mxu0  ;;  %v1720_v35 = vpop.f32.mrf.mxu3  ;;  %v2291_v41 = vor.u32 %v2761_v45, %v2288_v27  ;;  %v2535_v27 = vor.u32 %v2824_v26, %v2534_v11  ;;  %v2829_v26 = vld [vmem:[%s2920_s24 + $0x394] sm:$0xf] }
 0x179   : > { %v3310_v54 = vadd.f32 %v1550_v19, %v1221_v61  ;;  %v1557_v62 = vpop.f32.mrf.mxu1  ;;  %v2552_v61 = vld [vmem:[%s2920_s24 + $0x388] sm:$0xf0] }
 0x17a   : > { %3728 = vst [vmem:[#allocation15_spill] sm:$0xff] %v3308_v22 }
 0x17b   : > { %3729 = vst [vmem:[#allocation16_spill] sm:$0xff] %v3310_v54  ;;  %1260 = vmatmul.bf16.gmra.mxu0 %v2271_v38  ;;  %v2555_v54 = vor.u32 %v2827_v24, %v2552_v61  ;;  %v2278_v38 = vld [vmem:[%s2920_s24 + $0x160] sm:$0xf]  ;;  %v2763_v61 = vld [vmem:[%s2920_s24 + $0x184] sm:$0xf] }
 0x17c   : > { %1420 = vmatmul.bf16.gmra.mxu2 %v2527_v34  ;;  %v2760_v34 = vld [vmem:[%s2920_s24 + $0x164] sm:$0xf0] }
 0x17f   : > { %v1381_v31 = vpop.f32.mrf.mxu2 }
 0x180   : > { %v3314_v52 = vadd.f32 %v1710_v30, %v1381_v31  ;;  %v1223_v48 = vpop.f32.mrf.mxu0  ;;  %v3319_v19 = vpop.f32.mrf.mxu3  ;;  %v2279_v31 = vor.u32 %v2760_v34, %v2278_v38 }
 0x181   : > { %v3316_v22 = vadd.f32 %v1552_v3, %v1223_v48  ;;  %v1560_v6 = vpop.f32.mrf.mxu1 }
 0x182   : > { %3730 = vst [vmem:[#allocation17_spill] sm:$0xff] %v3314_v52  ;;  %v2826_v52 = vld [vmem:[%s2920_s24 + $0x374] sm:$0xf0] }
 0x183   : > { %3731 = vst [vmem:[#allocation18_spill] sm:$0xff] %v3316_v22  ;;  %v2542_v22 = vld [vmem:[%s2920_s24 + $0x370] sm:$0xf] }
 0x184   : > { %2671 = vmatmul.msk.bf16.gmra.mxu1 %vm954_vm0, %v2291_v41 }
 0x185   : > { %2704 = vmatmul.msk.bf16.gmra.mxu3 %vm954_vm0, %v2555_v54  ;;  %v2296_v54 = vld [vmem:[%s2920_s24 + $0x188] sm:$0xf0] }
 0x187   : > { %v1383_v30 = vpop.f32.mrf.mxu2 }
 0x188   : > { %v3329_v3 = vadd.f32 %v3277_v57, %v1383_v30  ;;  %v1226_v45 = vpop.f32.mrf.mxu0  ;;  %v3333_v24 = vpop.f32.mrf.mxu3  ;;  %v2299_v30 = vor.u32 %v2763_v61, %v2296_v54  ;;  %v2543_v54 = vor.u32 %v2826_v52, %v2542_v22  ;;  %v2831_v52 = vld [vmem:[%s2920_s24 + $0x3a4] sm:$0xf] }
 0x189   : > { %v3331_v48 = vadd.f32 %v1555_v40, %v1226_v45  ;;  %v1562_v41 = vpop.f32.mrf.mxu1  ;;  %v2560_v40 = vld [vmem:[%s2920_s24 + $0x398] sm:$0xf0] }
 0x18a   : > { %3732 = vst [vmem:[#allocation19_spill] sm:$0xff] %v3329_v3 }
 0x18b   : > { %3733 = vst [vmem:[#allocation20_spill] sm:$0xff] %v3331_v48  ;;  %1265 = vmatmul.bf16.gmra.mxu0 %v2279_v31  ;;  %v2563_v48 = vor.u32 %v2829_v26, %v2560_v40  ;;  %v2286_v31 = vld [vmem:[%s2920_s24 + $0x170] sm:$0xf]  ;;  %v2765_v40 = vld [vmem:[%s2920_s24 + $0x194] sm:$0xf] }
 0x18c   : > { %1425 = vmatmul.bf16.gmra.mxu2 %v2535_v27  ;;  %v2762_v27 = vld [vmem:[%s2920_s24 + $0x174] sm:$0xf0] }
 0x18f   : > { %v1386_v38 = vpop.f32.mrf.mxu2 }
 0x190   : > { %v3337_v57 = vadd.f32 %v1715_v60, %v1386_v38  ;;  %v1228_v34 = vpop.f32.mrf.mxu0  ;;  %v3343_v45 = vpop.f32.mrf.mxu3  ;;  %v2287_v38 = vor.u32 %v2762_v27, %v2286_v31 }
 0x191   : > { %v3339_v3 = vadd.f32 %v1557_v62, %v1228_v34  ;;  %v1565_v11 = vpop.f32.mrf.mxu1 }
 0x192   : > { %3734 = vst [vmem:[#allocation21_spill] sm:$0xff] %v3337_v57  ;;  %v2828_v57 = vld [vmem:[%s2920_s24 + $0x384] sm:$0xf0] }
 0x193   : > { %3735 = vst [vmem:[#allocation22_spill] sm:$0xff] %v3339_v3  ;;  %v2550_v3 = vld [vmem:[%s2920_s24 + $0x380] sm:$0xf] }
 0x194   : > { %2672 = vmatmul.msk.bf16.gmra.mxu1 %vm954_vm0, %v2299_v30 }
 0x195   : > { %2705 = vmatmul.msk.bf16.gmra.mxu3 %vm954_vm0, %v2563_v48  ;;  %v2304_v48 = vld [vmem:[%s2920_s24 + $0x198] sm:$0xf0] }
 0x197   : > { %v1388_v60 = vpop.f32.mrf.mxu2 }
 0x198   : > { %v3352_v62 = vadd.f32 %v3298_v51, %v1388_v60  ;;  %v1231_v61 = vpop.f32.mrf.mxu0  ;;  %v3356_v26 = vpop.f32.mrf.mxu3  ;;  %v2307_v60 = vor.u32 %v2765_v40, %v2304_v48  ;;  %v2551_v48 = vor.u32 %v2828_v57, %v2550_v3 }
 0x199   : > { %v3354_v34 = vadd.f32 %v1560_v6, %v1231_v61  ;;  %v1567_v30 = vpop.f32.mrf.mxu1  ;;  %v2568_v6 = vld [vmem:[%s2920_s24 + $0x3a8] sm:$0xf0] }
 0x19a   : > { %3736 = vst [vmem:[#allocation23_spill] sm:$0xff] %v3352_v62 }
 0x19b   : > { %3737 = vst [vmem:[#allocation24_spill] sm:$0xff] %v3354_v34  ;;  %1270 = vmatmul.bf16.gmra.mxu0 %v2287_v38  ;;  %v2571_v34 = vor.u32 %v2831_v52, %v2568_v6  ;;  %v2294_v38 = vld [vmem:[%s2920_s24 + $0x180] sm:$0xf]  ;;  %v2576_v6 = vld [vmem:[%s2920_s24 + $0x3b8] sm:$0xf0] }
 0x19c   : > { %1430 = vmatmul.bf16.gmra.mxu2 %v2543_v54  ;;  %v2764_v54 = vld [vmem:[%s2920_s24 + $0x184] sm:$0xf0] }
 0x19f   : > { %v1391_v31 = vpop.f32.mrf.mxu2 }
 0x1a0   : > { %v3360_v51 = vadd.f32 %v1720_v35, %v1391_v31  ;;  %v1233_v27 = vpop.f32.mrf.mxu0  ;;  %v3366_v61 = vpop.f32.mrf.mxu3  ;;  %v2295_v31 = vor.u32 %v2764_v54, %v2294_v38 }
 0x1a1   : > { %v3362_v62 = vadd.f32 %v1562_v41, %v1233_v27  ;;  %v1570_v22 = vpop.f32.mrf.mxu1 }
 0x1a2   : > { %3738 = vst [vmem:[#allocation25_spill] sm:$0xff] %v3360_v51 }
 0x1a3   : > { %3739 = vst [vmem:[#allocation26_spill] sm:$0xff] %v3362_v62 }
 0x1a4   : > { %2673 = vmatmul.msk.bf16.gmra.mxu1 %vm954_vm0, %v2307_v60 }
 0x1a5   : > { %2706 = vmatmul.msk.bf16.gmra.mxu3 %vm954_vm0, %v2571_v34  ;;  %v2767_v34 = vld [vmem:[%s2920_s24 + $0x1a4] sm:$0xf] }
 0x1a7   : > { %v1393_v35 = vpop.f32.mrf.mxu2 }
 0x1a8   : > { %v3375_v41 = vadd.f32 %v3319_v19, %v1393_v35  ;;  %v1236_v40 = vpop.f32.mrf.mxu0  ;;  %v3379_v52 = vpop.f32.mrf.mxu3  ;;  %v2312_v19 = vld [vmem:[%s2920_s24 + $0x1a8] sm:$0xf0] }
 0x1a9   : > { %v3377_v27 = vadd.f32 %v1565_v11, %v1236_v40  ;;  %v1572_v60 = vpop.f32.mrf.mxu1  ;;  %v2315_v11 = vor.u32 %v2767_v34, %v2312_v19  ;;  %v2833_v40 = vld [vmem:[%s2920_s24 + $0x3b4] sm:$0xf]  ;;  %v2558_v34 = vld [vmem:[%s2920_s24 + $0x390] sm:$0xf] }
 0x1aa   : > { %3740 = vst [vmem:[#allocation27_spill] sm:$0xff] %v3375_v41  ;;  %v2579_v41 = vor.u32 %v2833_v40, %v2576_v6  ;;  %v2769_v40 = vld [vmem:[%s2920_s24 + $0x1b4] sm:$0xf] }
 0x1ab   : > { %3741 = vst [vmem:[#allocation28_spill] sm:$0xff] %v3377_v27  ;;  %1275 = vmatmul.bf16.gmra.mxu0 %v2295_v31  ;;  %v2832_v27 = vld [vmem:[%s2920_s24 + $0x3a4] sm:$0xf0] }
 0x1ac   : > { %1435 = vmatmul.bf16.gmra.mxu2 %v2551_v48 }
 0x1af   : > { %v1396_v38 = vpop.f32.mrf.mxu2 }
 0x1b0   : > { %v3386_v3 = vadd.f32 %v3333_v24, %v1396_v38  ;;  %v1238_v57 = vpop.f32.mrf.mxu0  ;;  %v3394_v31 = vpop.f32.mrf.mxu3  ;;  %v2302_v24 = vld [vmem:[%s2920_s24 + $0x190] sm:$0xf]  ;;  %v2766_v38 = vld [vmem:[%s2920_s24 + $0x194] sm:$0xf0] }
 0x1b1   : > { %v3388_v54 = vadd.f32 %v1567_v30, %v1238_v57  ;;  %v3390_v35 = vpop.f32.mrf.mxu1  ;;  %v2830_v30 = vld [vmem:[%s2920_s24 + $0x394] sm:$0xf0]  ;;  %v2303_v57 = vor.u32 %v2766_v38, %v2302_v24 }
 0x1b2   : > { %v2559_v48 = vor.u32 %v2830_v30, %v2558_v34 }
 0x1b3   : > { %3742 = vst [vmem:[#allocation29_spill] sm:$0xff] %v3388_v54  ;;  %v2320_v54 = vld [vmem:[%s2920_s24 + $0x1b8] sm:$0xf0] }
 0x1b4   : > { %2674 = vmatmul.msk.bf16.gmra.mxu1 %vm954_vm0, %v2315_v11  ;;  %v2323_v34 = vor.u32 %v2769_v40, %v2320_v54  ;;  %v2310_v54 = vld [vmem:[%s2920_s24 + $0x1a0] sm:$0xf]  ;;  %v2768_v40 = vld [vmem:[%s2920_s24 + $0x1a4] sm:$0xf0] }
 0x1b5   : > { %2707 = vmatmul.msk.bf16.gmra.mxu3 %vm954_vm0, %v2579_v41 }
 0x1b7   : > { %v1398_v19 = vpop.f32.mrf.mxu2 }
 0x1b8   : > { %v3405_v62 = vadd.f32 %v3343_v45, %v1398_v19  ;;  %v1241_v51 = vpop.f32.mrf.mxu0  ;;  %v3409_v11 = vpop.f32.mrf.mxu3  ;;  %v2835_v19 = vld [vmem:[%s2920_s24 + $0x3c4] sm:$0xf] }
 0x1b9   : > { %v3407_v6 = vpop.f32.mrf.mxu1  ;;  %v1571_v24 = vadd.f32 %v1570_v22, %v1241_v51  ;;  %v3425_v51 = vld [vmem:[%s3709_s2] ss:$0 sm:$0xff] }
 0x1ba   : > { %3743 = vst [vmem:[#allocation30_spill] sm:$0xff] %v3405_v62  ;;  %v2566_v62 = vld [vmem:[%s2920_s24 + $0x3a0] sm:$0xf] }
 0x1bb   : > { %1280 = vmatmul.bf16.gmra.mxu0 %v2303_v57  ;;  %v2584_v57 = vld [vmem:[%s2920_s24 + $0x3c8] sm:$0xf0]  ;;  %v1807_v9 = vmax.f32 %v3058_v23, %v1571_v24 }
 0x1bc   : > { %1440 = vmatmul.bf16.gmra.mxu2 %v2559_v48 }
 0x1bf   : > { %v1401_v41 = vpop.f32.mrf.mxu2 }
 0x1c0   : > { %v1731_v45 = vadd.f32 %v3356_v26, %v1401_v41  ;;  %v1243_v38 = vpop.f32.mrf.mxu0  ;;  %v3427_v22 = vpop.f32.mrf.mxu3  ;;  %v2587_v26 = vor.u32 %v2835_v19, %v2584_v57  ;;  %v2567_v57 = vor.u32 %v2832_v27, %v2566_v62  ;;  %v2328_v27 = vld [vmem:[%s2920_s24 + $0x1c8] sm:$0xf0] }
 0x1c1   : > { %v3416_v30 = vpop.f32.mrf.mxu1  ;;  %v1573_v24 = vadd.f32 %v1572_v60, %v1243_v38 }
 0x1c2   : > { %v1839_v48 = vmax.f32 %v3062_v29, %v1731_v45  ;;  %v2311_v45 = vor.u32 %v2768_v40, %v2310_v54 }
 0x1c3   : > { %v1808_v38 = vmax.f32 %v3064_v32, %v1573_v24 }
 0x1c4   : > { %v1871_v41 = vmax.f32 %v1807_v9, %v1839_v48  ;;  %2675 = vmatmul.msk.bf16.gmra.mxu1 %vm954_vm0, %v2323_v34 }
 0x1c5   : > { %2708 = vmatmul.msk.bf16.gmra.mxu3 %vm954_vm0, %v2587_v26 }
 0x1c6   : > { %v1907_v23 = vadd.f32 %v3425_v51, %v1871_v41 }
 0x1c7   : > { %v1403_v29 = vpop.f32.mrf.mxu2 }
 0x1c8   : > { %v1939_v1 = vmax.f32 %v1907_v23, 0.0  ;;  %v1733_v19 = vadd.f32 %v3366_v61, %v1403_v29  ;;  %v1246_v9 = vpop.f32.mrf.mxu0  ;;  %v3446_v26 = vpop.f32.mrf.mxu3  ;;  %v2771_v61 = vld [vmem:[%s2920_s24 + $0x1c4] sm:$0xf]  ;;  %v2837_v29 = vld [vmem:[%s2920_s24 + $0x3d4] sm:$0xf] }
 0x1c9   : > { %v3442_v34 = vpop.f32.mrf.mxu1  ;;  %v2331_v23 = vor.u32 %v2771_v61, %v2328_v27  ;;  %v2834_v61 = vld [vmem:[%s2920_s24 + $0x3b4] sm:$0xf0] }
 0x1ca   : > { %v1971_v60 = vpack.c.bf16 %v1939_v1, %v1939_v1  ;;  %v1840_v48 = vmax.f32 %v3077_v44, %v1733_v19  ;;  %v1576_v1 = vadd.f32 %v3390_v35, %v1246_v9 }
 0x1cb   : > { %1285 = vmatmul.bf16.gmra.mxu0 %v2311_v45  ;;  %v2592_v45 = vld [vmem:[%s2920_s24 + $0x3d8] sm:$0xf0] }
 0x1cc   : > { %2004 = vst.msk [vmem:[%s3440_s17 + $0x8] sm:$0xf] %vm2001_vm1, %v1971_v60  ;;  %v1872_v62 = vmax.f32 %v1808_v38, %v1840_v48  ;;  %1445 = vmatmul.bf16.gmra.mxu2 %v2567_v57  ;;  %v1809_v57 = vmax.f32 %v3079_v47, %v1576_v1  ;;  %v2595_v9 = vor.u32 %v2837_v29, %v2592_v45  ;;  %v2770_v48 = vld [vmem:[%s2920_s24 + $0x1b4] sm:$0xf0] }
 0x1ce   : > { %v1908_v41 = vadd.f32 %v3425_v51, %v1872_v62  ;;  %v2574_v62 = vld [vmem:[%s2920_s24 + $0x3b0] sm:$0xf] }
 0x1cf   : > { %v1406_v54 = vpop.f32.mrf.mxu2 }
 0x1d0   : > { %v1940_v32 = vmax.f32 %v1908_v41, 0.0  ;;  %v1736_v44 = vadd.f32 %v3379_v52, %v1406_v54  ;;  %v1248_v40 = vpop.f32.mrf.mxu0  ;;  %v3461_v35 = vpop.f32.mrf.mxu3  ;;  %v2318_v52 = vld [vmem:[%s2920_s24 + $0x1b0] sm:$0xf] }
 0x1d1   : > { %v3455_v24 = vpop.f32.mrf.mxu1  ;;  %v1578_v41 = vadd.f32 %v3407_v6, %v1248_v40 }
 0x1d2   : > { %v1972_v19 = vpack.c.bf16 %v1940_v32, %v1940_v32  ;;  %v1841_v60 = vmax.f32 %v3083_v53, %v1736_v44  ;;  %v2319_v53 = vor.u32 %v2770_v48, %v2318_v52  ;;  %v2575_v44 = vor.u32 %v2834_v61, %v2574_v62  ;;  %v2839_v61 = vld [vmem:[%s2920_s24 + $0x3e4] sm:$0xf] }
 0x1d3   : > { %v1810_v45 = vmax.f32 %v3085_v56, %v1578_v41 }
 0x1d4   : > { %2005 = vst.msk [vmem:[%s3440_s17 + $0xc] sm:$0xf] %vm2001_vm1, %v1972_v19  ;;  %v1873_v38 = vmax.f32 %v1809_v57, %v1841_v60  ;;  %2676 = vmatmul.msk.bf16.gmra.mxu1 %vm954_vm0, %v2331_v23  ;;  %v2773_v57 = vld [vmem:[%s2920_s24 + $0x1d4] sm:$0xf] }
 0x1d5   : > { %2709 = vmatmul.msk.bf16.gmra.mxu3 %vm954_vm0, %v2595_v9 }
 0x1d6   : > { %v1909_v27 = vadd.f32 %v3425_v51, %v1873_v38 }
 0x1d7   : > { %v1408_v47 = vpop.f32.mrf.mxu2 }
 0x1d8   : > { %v1941_v1 = vmax.f32 %v1909_v27, 0.0  ;;  %v1738_v54 = vadd.f32 %v3394_v31, %v1408_v47  ;;  %v1251_v32 = vpop.f32.mrf.mxu0  ;;  %v3478_v6 = vpop.f32.mrf.mxu3  ;;  %v2336_v31 = vld [vmem:[%s2920_s24 + $0x1d8] sm:$0xf0]  ;;  %v2600_v27 = vld [vmem:[%s2920_s24 + $0x3e8] sm:$0xf0] }
 0x1d9   : > { %v3474_v23 = vpop.f32.mrf.mxu1  ;;  %v1581_v9 = vadd.f32 %v3416_v30, %v1251_v32  ;;  %v2339_v48 = vor.u32 %v2773_v57, %v2336_v31  ;;  %v2772_v32 = vld [vmem:[%s2920_s24 + $0x1c4] sm:$0xf0] }
 0x1da   : > { %v1973_v29 = vpack.c.bf16 %v1941_v1, %v1941_v1  ;;  %v1842_v19 = vmax.f32 %v3098_v5, %v1738_v54  ;;  %v2603_v1 = vor.u32 %v2839_v61, %v2600_v27 }
 0x1db   : > { %1290 = vmatmul.bf16.gmra.mxu0 %v2319_v53  ;;  %v1811_v47 = vmax.f32 %v3100_v10, %v1581_v9 }
 0x1dc   : > { %2006 = vst.msk [vmem:[%s3440_s17 + $0x10] sm:$0xf] %vm2001_vm1, %v1973_v29  ;;  %v1874_v40 = vmax.f32 %v1810_v45, %v1842_v19  ;;  %1450 = vmatmul.bf16.gmra.mxu2 %v2575_v44  ;;  %v2582_v44 = vld [vmem:[%s2920_s24 + $0x3c0] sm:$0xf]  ;;  %v2836_v29 = vld [vmem:[%s2920_s24 + $0x3c4] sm:$0xf0] }
 0x1de   : > { %v1910_v60 = vadd.f32 %v3425_v51, %v1874_v40 }
 0x1df   : > { %v1411_v38 = vpop.f32.mrf.mxu2 }
 0x1e0   : > { %v1942_v56 = vmax.f32 %v1910_v60, 0.0  ;;  %v1741_v5 = vadd.f32 %v3409_v11, %v1411_v38  ;;  %v1253_v52 = vpop.f32.mrf.mxu0  ;;  %v3493_v30 = vpop.f32.mrf.mxu3  ;;  %v2326_v11 = vld [vmem:[%s2920_s24 + $0x1c0] sm:$0xf]  ;;  %v2583_v60 = vor.u32 %v2836_v29, %v2582_v44 }
 0x1e1   : > { %v3487_v62 = vpop.f32.mrf.mxu1  ;;  %v1583_v19 = vadd.f32 %v3442_v34, %v1253_v52 }
 0x1e2   : > { %v1974_v41 = vpack.c.bf16 %v1942_v56, %v1942_v56  ;;  %v1843_v53 = vmax.f32 %v3104_v17, %v1741_v5  ;;  %v2327_v17 = vor.u32 %v2772_v32, %v2326_v11  ;;  %v2608_v11 = vld [vmem:[%s2920_s24 + $0x3f8] sm:$0xf0] }
 0x1e3   : > { %v1812_v56 = vmax.f32 %v3106_v20, %v1583_v19 }
 0x1e4   : > { %2007 = vst.msk [vmem:[%s3440_s17 + $0x14] sm:$0xf] %vm2001_vm1, %v1974_v41  ;;  %v1875_v54 = vmax.f32 %v1811_v47, %v1843_v53  ;;  %2677 = vmatmul.msk.bf16.gmra.mxu1 %vm954_vm0, %v2339_v48  ;;  %v2775_v48 = vld [vmem:[%s2920_s24 + $0x1e4] sm:$0xf] }
 0x1e5   : > { %2710 = vmatmul.msk.bf16.gmra.mxu3 %vm954_vm0, %v2603_v1 }
 0x1e6   : > { %v1911_v45 = vadd.f32 %v3425_v51, %v1875_v54  ;;  %v2841_v54 = vld [vmem:[%s2920_s24 + $0x3f4] sm:$0xf] }
 0x1e7   : > { %v1413_v10 = vpop.f32.mrf.mxu2 }
 0x1e8   : > { %v1943_v40 = vmax.f32 %v1911_v45, 0.0  ;;  %v1743_v57 = vadd.f32 %v3427_v22, %v1413_v10  ;;  %v1256_v31 = vpop.f32.mrf.mxu0  ;;  %v3510_v34 = vpop.f32.mrf.mxu3  ;;  %v2344_v22 = vld [vmem:[%s2920_s24 + $0x1e8] sm:$0xf0]  ;;  %v2611_v45 = vor.u32 %v2841_v54, %v2608_v11  ;;  %v2774_v10 = vld [vmem:[%s2920_s24 + $0x1d4] sm:$0xf0] }
 0x1e9   : > { %v3506_v9 = vpop.f32.mrf.mxu1  ;;  %v1586_v27 = vadd.f32 %v3455_v24, %v1256_v31  ;;  %v2347_v53 = vor.u32 %v2775_v48, %v2344_v22 }
 0x1ea   : > { %v1975_v38 = vpack.c.bf16 %v1943_v40, %v1943_v40  ;;  %v1844_v5 = vmax.f32 %v3119_v36, %v1743_v57  ;;  %v2838_v40 = vld [vmem:[%s2920_s24 + $0x3d4] sm:$0xf0] }
 0x1eb   : > { %1295 = vmatmul.bf16.gmra.mxu0 %v2327_v17  ;;  %v1813_v44 = vmax.f32 %v3121_v39, %v1586_v27  ;;  %v2590_v17 = vld [vmem:[%s2920_s24 + $0x3d0] sm:$0xf]  ;;  %v2777_v27 = vld [vmem:[%s2920_s24 + $0x1f4] sm:$0xf] }
 0x1ec   : > { %2008 = vst.msk [vmem:[%s3440_s17 + $0x18] sm:$0xf] %vm2001_vm1, %v1975_v38  ;;  %v1876_v52 = vmax.f32 %v1812_v56, %v1844_v5  ;;  %1455 = vmatmul.bf16.gmra.mxu2 %v2583_v60  ;;  %v2591_v5 = vor.u32 %v2838_v40, %v2590_v17 }
 0x1ee   : > { %v1912_v61 = vadd.f32 %v3425_v51, %v1876_v52 }
 0x1ef   : > { %v1416_v41 = vpop.f32.mrf.mxu2 }
 0x1f0   : > { %v1944_v20 = vmax.f32 %v1912_v61, 0.0  ;;  %v1746_v36 = vadd.f32 %v3446_v26, %v1416_v41  ;;  %v1258_v47 = vpop.f32.mrf.mxu0  ;;  %v3525_v24 = vpop.f32.mrf.mxu3  ;;  %v2334_v26 = vld [vmem:[%s2920_s24 + $0x1d0] sm:$0xf]  ;;  %v2352_v41 = vld [vmem:[%s2920_s24 + $0x1f8] sm:$0xf0] }
 0x1f1   : > { %v3519_v1 = vpop.f32.mrf.mxu1  ;;  %v1588_v31 = vadd.f32 %v3474_v23, %v1258_v47  ;;  %v2355_v54 = vor.u32 %v2777_v27, %v2352_v41 }
 0x1f2   : > { %v1976_v32 = vpack.c.bf16 %v1944_v20, %v1944_v20  ;;  %v1845_v29 = vmax.f32 %v3125_v46, %v1746_v36  ;;  %v2335_v46 = vor.u32 %v2774_v10, %v2334_v26  ;;  %v2598_v26 = vld [vmem:[%s2920_s24 + $0x3e0] sm:$0xf]  ;;  %v2840_v10 = vld [vmem:[%s2920_s24 + $0x3e4] sm:$0xf0] }
 0x1f3   : > { %v1814_v22 = vmax.f32 %v3127_v50, %v1588_v31 }
 0x1f4   : > { %2009 = vst.msk [vmem:[%s3440_s17 + $0x1c] sm:$0xf] %vm2001_vm1, %v1976_v32  ;;  %v1877_v19 = vmax.f32 %v1813_v44, %v1845_v29  ;;  %2678 = vmatmul.msk.bf16.gmra.mxu1 %vm954_vm0, %v2347_v53 }
 0x1f5   : > { %2711 = vmatmul.msk.bf16.gmra.mxu3 %vm954_vm0, %v2611_v45 }
 0x1f6   : > { %v1913_v57 = vadd.f32 %v3425_v51, %v1877_v19  ;;  %v2776_v19 = vld [vmem:[%s2920_s24 + $0x1e4] sm:$0xf0] }
 0x1f7   : > { %v1418_v39 = vpop.f32.mrf.mxu2 }
 0x1f8   : > { %v1945_v60 = vmax.f32 %v1913_v57, 0.0  ;;  %v1748_v38 = vadd.f32 %v3461_v35, %v1418_v39  ;;  %v1261_v56 = vpop.f32.mrf.mxu0  ;;  %v3546_v20 = vpop.f32.mrf.mxu3 }
 0x1f9   : > { %v3538_v52 = vpop.f32.mrf.mxu1  ;;  %v1591_v36 = vadd.f32 %v3487_v62, %v1261_v56  ;;  %v2342_v62 = vld [vmem:[%s2920_s24 + $0x1e0] sm:$0xf] }
 0x1fa   : > { %v1977_v48 = vpack.c.bf16 %v1945_v60, %v1945_v60  ;;  %v1846_v61 = vmax.f32 %v3140_v0, %v1748_v38 }
 0x1fb   : > { %1300 = vmatmul.bf16.gmra.mxu0 %v2335_v46  ;;  %v1815_v44 = vmax.f32 %v3142_v4, %v1591_v36  ;;  %v2343_v4 = vor.u32 %v2776_v19, %v2342_v62  ;;  %v2599_v46 = vor.u32 %v2840_v10, %v2598_v26 }
 0x1fc   : > { %2010 = vst.msk [vmem:[%s3440_s17 + $0x20] sm:$0xf] %vm2001_vm1, %v1977_v48  ;;  %v1878_v23 = vmax.f32 %v1814_v22, %v1846_v61  ;;  %1460 = vmatmul.bf16.gmra.mxu2 %v2591_v5  ;;  %v2779_v48 = vld [vmem:[%s2920_s24 + $0x204] sm:$0xf]  ;;  %v2360_v22 = vld [vmem:[%s2920_s24 + $0x208] sm:$0xf0] }
 0x1fd   : > { %v2363_v41 = vor.u32 %v2779_v48, %v2360_v22 }
 0x1fe   : > { %v1914_v35 = vadd.f32 %v3425_v51, %v1878_v23 }
 0x1ff   : > { %v1421_v50 = vpop.f32.mrf.mxu2 }
 0x200   : > { %v1946_v0 = vmax.f32 %v1914_v35, 0.0  ;;  %v1751_v47 = vadd.f32 %v3478_v6, %v1421_v50  ;;  %v1263_v53 = vpop.f32.mrf.mxu0  ;;  %v3564_v57 = vpop.f32.mrf.mxu3 }
 0x201   : > { %v3551_v11 = vpop.f32.mrf.mxu1  ;;  %v1593_v17 = vadd.f32 %v3506_v9, %v1263_v53 }
 0x202   : > { %v1978_v32 = vpack.c.bf16 %v1946_v0, %v1946_v0  ;;  %v1847_v29 = vmax.f32 %v3146_v16, %v1751_v47 }
 0x203   : > { %v1816_v56 = vmax.f32 %v3148_v18, %v1593_v17 }
 0x204   : > { %2011 = vst.msk [vmem:[%s3440_s17 + $0x24] sm:$0xf] %vm2001_vm1, %v1978_v32  ;;  %v1879_v45 = vmax.f32 %v1815_v44, %v1847_v29  ;;  %2679 = vmatmul.msk.bf16.gmra.mxu1 %vm954_vm0, %v2355_v54  ;;  %v2778_v54 = vld [vmem:[%s2920_s24 + $0x1f4] sm:$0xf0]  ;;  %v2606_v32 = vld [vmem:[%s2920_s24 + $0x3f0] sm:$0xf] }
 0x205   : > { %v2842_v44 = vld [vmem:[%s2920_s24 + $0x3f4] sm:$0xf0] }
 0x206   : > { %v1915_v6 = vadd.f32 %v3425_v51, %v1879_v45  ;;  %v2607_v26 = vor.u32 %v2842_v44, %v2606_v32 }
 0x207   : > { %v1423_v40 = vpop.f32.mrf.mxu2 }
 0x208   : > { %v1947_v16 = vmax.f32 %v1915_v6, 0.0  ;;  %v1753_v31 = vadd.f32 %v3493_v30, %v1423_v40  ;;  %v1266_v39 = vpop.f32.mrf.mxu0  ;;  %v1765_v36 = vpop.f32.mrf.mxu3 }
 0x209   : > { %v1602_v60 = vpop.f32.mrf.mxu1  ;;  %v1596_v30 = vadd.f32 %v3519_v1, %v1266_v39  ;;  %v2350_v1 = vld [vmem:[%s2920_s24 + $0x1f0] sm:$0xf] }
 0x20a   : > { %v1979_v38 = vpack.c.bf16 %v1947_v16, %v1947_v16  ;;  %v1848_v5 = vmax.f32 %v3161_v37, %v1753_v31  ;;  %v2351_v62 = vor.u32 %v2778_v54, %v2350_v1 }
 0x20b   : > { %1305 = vmatmul.bf16.gmra.mxu0 %v2343_v4  ;;  %v1817_v0 = vmax.f32 %v3163_v42, %v1596_v30 }
 0x20c   : > { %2012 = vst.msk [vmem:[%s3440_s17 + $0x28] sm:$0xf] %vm2001_vm1, %v1979_v38  ;;  %v1880_v9 = vmax.f32 %v1816_v56, %v1848_v5  ;;  %1465 = vmatmul.bf16.gmra.mxu2 %v2599_v46 }
 0x20e   : > { %v1916_v61 = vadd.f32 %v3425_v51, %v1880_v9 }
 0x20f   : > { %v1426_v23 = vpop.f32.mrf.mxu2 }
 0x210   : > { %v1948_v18 = vmax.f32 %v1916_v61, 0.0  ;;  %v1756_v37 = vadd.f32 %v3510_v34, %v1426_v23  ;;  %v1268_v27 = vpop.f32.mrf.mxu0  ;;  %v1767_v4 = vpop.f32.mrf.mxu3 }
 0x211   : > { %v1605_v35 = vpop.f32.mrf.mxu1  ;;  %v1598_v29 = vadd.f32 %v3538_v52, %v1268_v27 }
 0x212   : > { %v1980_v50 = vpack.c.bf16 %v1948_v18, %v1948_v18  ;;  %v1849_v47 = vmax.f32 %v3167_v55, %v1756_v37 }
 0x213   : > { %v1818_v17 = vmax.f32 %v3169_v58, %v1598_v29 }
 0x214   : > { %2013 = vst.msk [vmem:[%s3440_s17 + $0x2c] sm:$0xf] %vm2001_vm1, %v1980_v50  ;;  %v1881_v53 = vmax.f32 %v1817_v0, %v1849_v47  ;;  %2680 = vmatmul.msk.bf16.gmra.mxu1 %vm954_vm0, %v2363_v41 }
 0x216   : > { %v1917_v34 = vadd.f32 %v3425_v51, %v1881_v53 }
 0x217   : > { %v1428_v45 = vpop.f32.mrf.mxu2 }
 0x218   : > { %v1949_v19 = vmax.f32 %v1917_v34, 0.0  ;;  %v1758_v42 = vadd.f32 %v3525_v24, %v1428_v45  ;;  %v1271_v55 = vpop.f32.mrf.mxu0  ;;  %v1770_v48 = vpop.f32.mrf.mxu3 }
 0x219   : > { %v1607_v10 = vpop.f32.mrf.mxu1  ;;  %v1601_v31 = vadd.f32 %v3551_v11, %v1271_v55 }
 0x21a   : > { %v1981_v6 = vpack.c.bf16 %v1949_v19, %v1949_v19  ;;  %v1850_v40 = vmax.f32 %v3182_v7, %v1758_v42 }
 0x21b   : > { %1310 = vmatmul.bf16.gmra.mxu0 %v2351_v62  ;;  %v1819_v7 = vmax.f32 %v3184_v12, %v1601_v31 }
 0x21c   : > { %2014 = vst.msk [vmem:[%s3440_s17 + $0x30] sm:$0xf] %vm2001_vm1, %v1981_v6  ;;  %v1882_v16 = vmax.f32 %v1818_v17, %v1850_v40  ;;  %1470 = vmatmul.bf16.gmra.mxu2 %v2607_v26 }
 0x21e   : > { %v1918_v52 = vadd.f32 %v3425_v51, %v1882_v16 }
 0x21f   : > { %v1431_v24 = vpop.f32.mrf.mxu2 }
 0x220   : > { %v1950_v39 = vmax.f32 %v1918_v52, 0.0  ;;  %v1761_v46 = vadd.f32 %v3546_v20, %v1431_v24  ;;  %v1273_v38 = vpop.f32.mrf.mxu0 }
 0x221   : > { %v1610_v56 = vpop.f32.mrf.mxu1  ;;  %v1603_v61 = vadd.f32 %v1602_v60, %v1273_v38  ;;  %v1772_v60 = vpop.f32.mrf.mxu3 }
 0x222   : > { %v1982_v58 = vpack.c.bf16 %v1950_v39, %v1950_v39  ;;  %v1851_v5 = vmax.f32 %v3188_v33, %v1761_v46 }
 0x223   : > { %v1820_v27 = vmax.f32 %v3190_v13, %v1603_v61 }
 0x224   : > { %2015 = vst.msk [vmem:[%s3440_s17 + $0x34] sm:$0xf] %vm2001_vm1, %v1982_v58  ;;  %v1883_v9 = vmax.f32 %v1819_v7, %v1851_v5 }
 0x226   : > { %v1919_v22 = vadd.f32 %v3425_v51, %v1883_v9 }
 0x227   : > { %v1433_v11 = vpop.f32.mrf.mxu2 }
 0x228   : > { %v1951_v30 = vmax.f32 %v1919_v22, 0.0  ;;  %v1763_v23 = vadd.f32 %v3564_v57, %v1433_v11  ;;  %v1276_v20 = vpop.f32.mrf.mxu0 }
 0x229   : > { %v1612_v18 = vpop.f32.mrf.mxu1  ;;  %v1606_v50 = vadd.f32 %v1605_v35, %v1276_v20 }
 0x22a   : > { %v1983_v37 = vpack.c.bf16 %v1951_v30, %v1951_v30  ;;  %v1852_v12 = vmax.f32 %v3203_v43, %v1763_v23 }
 0x22b   : > { %v1821_v32 = vmax.f32 %v3205_v63, %v1606_v50 }
 0x22c   : > { %2016 = vst.msk [vmem:[%s3440_s17 + $0x38] sm:$0xf] %vm2001_vm1, %v1983_v37  ;;  %v1884_v33 = vmax.f32 %v1820_v27, %v1852_v12 }
 0x22e   : > { %v1920_v41 = vadd.f32 %v3425_v51, %v1884_v33 }
 0x22f   : > { %v1436_v0 = vpop.f32.mrf.mxu2 }
 0x230   : > { %v1952_v47 = vmax.f32 %v1920_v41, 0.0  ;;  %v1766_v53 = vadd.f32 %v1765_v36, %v1436_v0  ;;  %v1278_v1 = vpop.f32.mrf.mxu0  ;;  %v1775_v36 = vpop.f32.mrf.mxu3 }
 0x231   : > { %v1615_v57 = vpop.f32.mrf.mxu1  ;;  %v1608_v34 = vadd.f32 %v1607_v10, %v1278_v1 }
 0x232   : > { %v1984_v54 = vpack.c.bf16 %v1952_v47, %v1952_v47  ;;  %v1853_v13 = vmax.f32 %v3209_v15, %v1766_v53 }
 0x233   : > { %v1822_v55 = vmax.f32 %v3211_v28, %v1608_v34 }
 0x234   : > { %2017 = vst.msk [vmem:[%s3440_s17 + $0x3c] sm:$0xf] %vm2001_vm1, %v1984_v54  ;;  %v1885_v43 = vmax.f32 %v1821_v32, %v1853_v13  ;;  %v3744_v54 = vld [vmem:[#allocation6_spill] sm:$0xff]  ;;  %v3745_v13 = vld [vmem:[#allocation7_spill] sm:$0xff] }
 0x236   : > { %v1921_v44 = vadd.f32 %v3425_v51, %v1885_v43 }
 0x237   : > { %v1438_v29 = vpop.f32.mrf.mxu2 }
 0x238   : > { %v1953_v35 = vmax.f32 %v1921_v44, 0.0  ;;  %v1768_v45 = vadd.f32 %v1767_v4, %v1438_v29  ;;  %v1281_v62 = vpop.f32.mrf.mxu0  ;;  %v1777_v28 = vpop.f32.mrf.mxu3 }
 0x239   : > { %v1617_v19 = vpop.f32.mrf.mxu1  ;;  %v1611_v6 = vadd.f32 %v1610_v56, %v1281_v62 }
 0x23a   : > { %v1985_v42 = vpack.c.bf16 %v1953_v35, %v1953_v35  ;;  %v1854_v63 = vmax.f32 %v3224_v21, %v1768_v45 }
 0x23b   : > { %v1823_v31 = vmax.f32 %v3226_v8, %v1611_v6 }
 0x23c   : > { %2018 = vst.msk [vmem:[%s3440_s17 + $0x40] sm:$0xf] %vm2001_vm1, %v1985_v42  ;;  %v1886_v15 = vmax.f32 %v1822_v55, %v1854_v63  ;;  %v3746_v42 = vld [vmem:[#allocation8_spill] sm:$0xff]  ;;  %v3747_v63 = vld [vmem:[#allocation9_spill] sm:$0xff] }
 0x23e   : > { %v1922_v26 = vadd.f32 %v3425_v51, %v1886_v15 }
 0x23f   : > { %v1441_v17 = vpop.f32.mrf.mxu2 }
 0x240   : > { %v1954_v10 = vmax.f32 %v1922_v26, 0.0  ;;  %v1771_v40 = vadd.f32 %v1770_v48, %v1441_v17  ;;  %v1283_v16 = vpop.f32.mrf.mxu0  ;;  %v1780_v22 = vpop.f32.mrf.mxu3 }
 0x241   : > { %v1620_v4 = vpop.f32.mrf.mxu1  ;;  %v1613_v46 = vadd.f32 %v1612_v18, %v1283_v16 }
 0x242   : > { %v1986_v52 = vpack.c.bf16 %v1954_v10, %v1954_v10  ;;  %v1855_v24 = vmax.f32 %v3230_v14, %v1771_v40 }
 0x243   : > { %v1824_v48 = vmax.f32 %v3232_v59, %v1613_v46 }
 0x244   : > { %2019 = vst.msk [vmem:[%s3440_s17 + $0x44] sm:$0xf] %vm2001_vm1, %v1986_v52  ;;  %v1887_v21 = vmax.f32 %v1823_v31, %v1855_v24  ;;  %v3748_v24 = vld [vmem:[#allocation10_spill] sm:$0xff] }
 0x246   : > { %v1923_v39 = vadd.f32 %v3425_v51, %v1887_v21  ;;  %v3749_v21 = vld [vmem:[#allocation11_spill] sm:$0xff] }
 0x247   : > { %v1443_v38 = vpop.f32.mrf.mxu2 }
 0x248   : > { %v1955_v56 = vmax.f32 %v1923_v39, 0.0  ;;  %v1773_v58 = vadd.f32 %v1772_v60, %v1443_v38  ;;  %v1286_v7 = vpop.f32.mrf.mxu0  ;;  %v1782_v0 = vpop.f32.mrf.mxu3 }
 0x249   : > { %v1622_v5 = vpop.f32.mrf.mxu1  ;;  %v1616_v11 = vadd.f32 %v1615_v57, %v1286_v7 }
 0x24a   : > { %v1987_v9 = vpack.c.bf16 %v1955_v56, %v1955_v56  ;;  %v1856_v8 = vmax.f32 %v3245_v2, %v1773_v58 }
 0x24b   : > { %v1825_v12 = vmax.f32 %v3247_v49, %v1616_v11  ;;  %v3751_v11 = vld [vmem:[#allocation13_spill] sm:$0xff] }
 0x24c   : > { %2020 = vst.msk [vmem:[%s3440_s17 + $0x48] sm:$0xf] %vm2001_vm1, %v1987_v9  ;;  %v1888_v14 = vmax.f32 %v1824_v48, %v1856_v8 }
 0x24e   : > { %v1924_v61 = vadd.f32 %v3425_v51, %v1888_v14 }
 0x24f   : > { %v1446_v30 = vpop.f32.mrf.mxu2 }
 0x250   : > { %v1956_v23 = vmax.f32 %v1924_v61, 0.0  ;;  %v1776_v20 = vadd.f32 %v1775_v36, %v1446_v30  ;;  %v1288_v18 = vpop.f32.mrf.mxu0 }
 0x251   : > { %v1625_v37 = vpop.f32.mrf.mxu1  ;;  %v1618_v41 = vadd.f32 %v1617_v19, %v1288_v18  ;;  %v1785_v19 = vpop.f32.mrf.mxu3 }
 0x252   : > { %v1988_v27 = vpack.c.bf16 %v1956_v23, %v1956_v23  ;;  %v1857_v59 = vmax.f32 %v3251_v25, %v1776_v20 }
 0x253   : > { %v1826_v32 = vmax.f32 %v3744_v54, %v1618_v41 }
 0x254   : > { %2021 = vst.msk [vmem:[%s3440_s17 + $0x4c] sm:$0xf] %vm2001_vm1, %v1988_v27  ;;  %v1889_v2 = vmax.f32 %v1825_v12, %v1857_v59 }
 0x256   : > { %v1925_v33 = vadd.f32 %v3425_v51, %v1889_v2 }
 0x257   : > { %v1448_v50 = vpop.f32.mrf.mxu2 }
 0x258   : > { %v1957_v60 = vmax.f32 %v1925_v33, 0.0  ;;  %v1778_v47 = vadd.f32 %v1777_v28, %v1448_v50  ;;  %v1291_v53 = vpop.f32.mrf.mxu0  ;;  %v3752_v50 = vld [vmem:[#allocation14_spill] sm:$0xff] }
 0x259   : > { %v1627_v1 = vpop.f32.mrf.mxu1  ;;  %v1621_v44 = vadd.f32 %v1620_v4, %v1291_v53  ;;  %v1787_v46 = vpop.f32.mrf.mxu3 }
 0x25a   : > { %v1989_v57 = vpack.c.bf16 %v1957_v60, %v1957_v60  ;;  %v1858_v49 = vmax.f32 %v3745_v13, %v1778_v47  ;;  %v3753_v60 = vld [vmem:[#allocation15_spill] sm:$0xff] }
 0x25b   : > { %v1827_v55 = vmax.f32 %v3746_v42, %v1621_v44 }
 0x25c   : > { %2022 = vst.msk [vmem:[%s3440_s17 + $0x50] sm:$0xf] %vm2001_vm1, %v1989_v57  ;;  %v1890_v25 = vmax.f32 %v1826_v32, %v1858_v49 }
 0x25e   : > { %v1926_v43 = vadd.f32 %v3425_v51, %v1890_v25 }
 0x25f   : > { %v1451_v34 = vpop.f32.mrf.mxu2 }
 0x260   : > { %v1958_v29 = vmax.f32 %v1926_v43, 0.0  ;;  %v1781_v35 = vadd.f32 %v1780_v22, %v1451_v34  ;;  %v1293_v45 = vpop.f32.mrf.mxu0  ;;  %v3750_v22 = vld [vmem:[#allocation12_spill] sm:$0xff] }
 0x261   : > { %v1630_v62 = vpop.f32.mrf.mxu1  ;;  %v1623_v17 = vadd.f32 %v1622_v5, %v1293_v45  ;;  %v1790_v20 = vpop.f32.mrf.mxu3  ;;  %v3754_v34 = vld [vmem:[#allocation16_spill] sm:$0xff] }
 0x262   : > { %v1990_v36 = vpack.c.bf16 %v1958_v29, %v1958_v29  ;;  %v1859_v15 = vmax.f32 %v3747_v63, %v1781_v35  ;;  %v3755_v35 = vld [vmem:[#allocation17_spill] sm:$0xff] }
 0x263   : > { %v1828_v28 = vmax.f32 %v3748_v24, %v1623_v17 }
 0x264   : > { %2023 = vst.msk [vmem:[%s3440_s17 + $0x54] sm:$0xf] %vm2001_vm1, %v1990_v36  ;;  %v1891_v26 = vmax.f32 %v1827_v55, %v1859_v15 }
 0x266   : > { %v1927_v6 = vadd.f32 %v3425_v51, %v1891_v26 }
 0x267   : > { %v1453_v10 = vpop.f32.mrf.mxu2 }
 0x268   : > { %v1959_v40 = vmax.f32 %v1927_v6, 0.0  ;;  %v1783_v16 = vadd.f32 %v1782_v0, %v1453_v10  ;;  %v1296_v4 = vpop.f32.mrf.mxu0  ;;  %v3756_v10 = vld [vmem:[#allocation18_spill] sm:$0xff] }
 0x269   : > { %v1632_v52 = vpop.f32.mrf.mxu1  ;;  %v1626_v58 = vadd.f32 %v1625_v37, %v1296_v4  ;;  %v1792_v13 = vpop.f32.mrf.mxu3 }
 0x26a   : > { %v1991_v31 = vpack.c.bf16 %v1959_v40, %v1959_v40  ;;  %v1860_v39 = vmax.f32 %v3749_v21, %v1783_v16  ;;  %v3757_v16 = vld [vmem:[#allocation19_spill] sm:$0xff] }
 0x26b   : > { %v1829_v61 = vmax.f32 %v3750_v22, %v1626_v58  ;;  %v3758_v58 = vld [vmem:[#allocation20_spill] sm:$0xff] }
 0x26c   : > { %2024 = vst.msk [vmem:[%s3440_s17 + $0x58] sm:$0xf] %vm2001_vm1, %v1991_v31  ;;  %v1892_v38 = vmax.f32 %v1828_v28, %v1860_v39 }
 0x26e   : > { %v1928_v56 = vadd.f32 %v3425_v51, %v1892_v38 }
 0x26f   : > { %v1456_v7 = vpop.f32.mrf.mxu2 }
 0x270   : > { %v1960_v5 = vmax.f32 %v1928_v56, 0.0  ;;  %v1786_v9 = vadd.f32 %v1785_v19, %v1456_v7  ;;  %v1298_v48 = vpop.f32.mrf.mxu0 }
 0x271   : > { %v1635_v8 = vpop.f32.mrf.mxu1  ;;  %v1628_v27 = vadd.f32 %v1627_v1, %v1298_v48  ;;  %v1795_v26 = vpop.f32.mrf.mxu3  ;;  %v3760_v48 = vld [vmem:[#allocation3_spill] sm:$0xff] }
 0x272   : > { %v1992_v14 = vpack.c.bf16 %v1960_v5, %v1960_v5  ;;  %v1861_v30 = vmax.f32 %v3751_v11, %v1786_v9  ;;  %v3759_v5 = vld [vmem:[#allocation21_spill] sm:$0xff] }
 0x273   : > { %v1830_v0 = vmax.f32 %v3752_v50, %v1628_v27 }
 0x274   : > { %2025 = vst.msk [vmem:[%s3440_s17 + $0x5c] sm:$0xf] %vm2001_vm1, %v1992_v14  ;;  %v1893_v23 = vmax.f32 %v1829_v61, %v1861_v30 }
 0x276   : > { %v1929_v18 = vadd.f32 %v3425_v51, %v1893_v23  ;;  %v3761_v23 = vld [vmem:[#allocation2_spill] sm:$0xff] }
 0x277   : > { %v1458_v12 = vpop.f32.mrf.mxu2 }
 0x278   : > { %v1961_v37 = vmax.f32 %v1929_v18, 0.0  ;;  %v1788_v59 = vadd.f32 %v1787_v46, %v1458_v12  ;;  %v1301_v2 = vpop.f32.mrf.mxu0 }
 0x279   : > { %v1637_v33 = vpop.f32.mrf.mxu1  ;;  %v1631_v54 = vadd.f32 %v1630_v62, %v1301_v2  ;;  %v1797_v22 = vpop.f32.mrf.mxu3 }
 0x27a   : > { %v1993_v41 = vpack.c.bf16 %v1961_v37, %v1961_v37  ;;  %v1862_v47 = vmax.f32 %v3753_v60, %v1788_v59 }
 0x27b   : > { %v1831_v29 = vmax.f32 %v3754_v34, %v1631_v54 }
 0x27c   : > { %2026 = vst.msk [vmem:[%s3440_s17 + $0x60] sm:$0xf] %vm2001_vm1, %v1993_v41  ;;  %v1894_v53 = vmax.f32 %v1830_v0, %v1862_v47  ;;  %v3764_v41 = vld [vmem:[#allocation22_spill] sm:$0xff] }
 0x27e   : > { %v1930_v57 = vadd.f32 %v3425_v51, %v1894_v53 }
 0x27f   : > { %v1461_v32 = vpop.f32.mrf.mxu2 }
 0x280   : > { %v1962_v1 = vmax.f32 %v1930_v57, 0.0  ;;  %v1791_v49 = vadd.f32 %v1790_v20, %v1461_v32  ;;  %v1303_v25 = vpop.f32.mrf.mxu0  ;;  %v3762_v20 = vld [vmem:[#allocation28_spill] sm:$0xff]  ;;  %v3766_v57 = vld [vmem:[#allocation5_spill] sm:$0xff] }
 0x281   : > { %v1640_v43 = vpop.f32.mrf.mxu1  ;;  %v1633_v42 = vadd.f32 %v1632_v52, %v1303_v25  ;;  %v3763_v18 = vmax.f32 %v3761_v23, %v3762_v20  ;;  %v1800_v25 = vpop.f32.mrf.mxu3 }
 0x282   : > { %v1994_v44 = vpack.c.bf16 %v1962_v1, %v1962_v1  ;;  %v1863_v45 = vmax.f32 %v3755_v35, %v1791_v49  ;;  %v3767_v1 = vld [vmem:[#allocation30_spill] sm:$0xff]  ;;  %v3769_v35 = vld [vmem:[#allocation29_spill] sm:$0xff] }
 0x283   : > { %v1832_v40 = vmax.f32 %v3756_v10, %v1633_v42  ;;  %v3772_v10 = vld [vmem:[#allocation25_spill] sm:$0xff] }
 0x284   : > { %2027 = vst.msk [vmem:[%s3440_s17 + $0x64] sm:$0xf] %vm2001_vm1, %v1994_v44  ;;  %v1895_v19 = vmax.f32 %v1831_v29, %v1863_v45  ;;  %v3768_v29 = vld [vmem:[#allocation4_spill] sm:$0xff] }
 0x285   : > { %v3770_v45 = vmax.f32 %v3768_v29, %v3769_v35 }
 0x286   : > { %v1931_v36 = vadd.f32 %v3425_v51, %v1895_v19 }
 0x287   : > { %v1463_v55 = vpop.f32.mrf.mxu2 }
 0x288   : > { %v1963_v62 = vmax.f32 %v1931_v36, 0.0  ;;  %v1793_v63 = vadd.f32 %v1792_v13, %v1463_v55  ;;  %v1306_v15 = vpop.f32.mrf.mxu0 }
 0x289   : > { %v1642_v6 = vpop.f32.mrf.mxu1  ;;  %v1636_v28 = vadd.f32 %v1635_v8, %v1306_v15  ;;  %v3771_v15 = vld [vmem:[#allocation24_spill] sm:$0xff] }
 0x28a   : > { %v1995_v17 = vpack.c.bf16 %v1963_v62, %v1963_v62  ;;  %v1864_v4 = vmax.f32 %v3757_v16, %v1793_v63 }
 0x28b   : > { %v1833_v7 = vmax.f32 %v3758_v58, %v1636_v28  ;;  %v1802_v28 = vpop.f32.mrf.mxu3  ;;  %v3774_v58 = vld [vmem:[#allocation27_spill] sm:$0xff] }
 0x28c   : > { %2028 = vst.msk [vmem:[%s3440_s17 + $0x68] sm:$0xf] %vm2001_vm1, %v1995_v17  ;;  %v1896_v31 = vmax.f32 %v1832_v40, %v1864_v4 }
 0x28e   : > { %v1932_v24 = vadd.f32 %v3425_v51, %v1896_v31 }
 0x28f   : > { %v1466_v21 = vpop.f32.mrf.mxu2 }
 0x290   : > { %v1964_v52 = vmax.f32 %v1932_v24, 0.0  ;;  %v1796_v39 = vadd.f32 %v1795_v26, %v1466_v21  ;;  %v1308_v46 = vpop.f32.mrf.mxu0 }
 0x291   : > { %v1645_v38 = vpop.f32.mrf.mxu1  ;;  %v1638_v8 = vadd.f32 %v1637_v33, %v1308_v46 }
 0x292   : > { %v1996_v56 = vpack.c.bf16 %v1964_v52, %v1964_v52  ;;  %v1865_v9 = vmax.f32 %v3759_v5, %v1796_v39  ;;  %v1646_v14 = vadd.f32 %v1645_v38, %v3760_v48  ;;  %v3773_v38 = vld [vmem:[#allocation26_spill] sm:$0xff] }
 0x293   : > { %v1834_v50 = vmax.f32 %v3764_v41, %v1638_v8 }
 0x294   : > { %2029 = vst.msk [vmem:[%s3440_s17 + $0x6c] sm:$0xf] %vm2001_vm1, %v1996_v56  ;;  %v1897_v61 = vmax.f32 %v1833_v7, %v1865_v9  ;;  %v1837_v11 = vmax.f32 %v1646_v14, %v3386_v3  ;;  %v3765_v3 = vld [vmem:[#allocation23_spill] sm:$0xff] }
 0x296   : > { %v1933_v30 = vadd.f32 %v3425_v51, %v1897_v61  ;;  %v1869_v27 = vmax.f32 %v3763_v18, %v1837_v11 }
 0x297   : > { %v1468_v12 = vpop.f32.mrf.mxu2 }
 0x298   : > { %v1965_v37 = vmax.f32 %v1933_v30, 0.0  ;;  %v1905_v59 = vadd.f32 %v3425_v51, %v1869_v27  ;;  %v1798_v2 = vadd.f32 %v1797_v22, %v1468_v12  ;;  %v1311_v0 = vpop.f32.mrf.mxu0 }
 0x299   : > { %v1647_v60 = vpop.f32.mrf.mxu1  ;;  %v1641_v34 = vadd.f32 %v1640_v43, %v1311_v0 }
 0x29a   : > { %v1997_v47 = vpack.c.bf16 %v1965_v37, %v1965_v37  ;;  %v1937_v53 = vmax.f32 %v1905_v59, 0.0  ;;  %v1866_v33 = vmax.f32 %v3765_v3, %v1798_v2  ;;  %v1648_v54 = vadd.f32 %v1647_v60, %v3766_v57 }
 0x29b   : > { %v1835_v26 = vmax.f32 %v3771_v15, %v1641_v34 }
 0x29c   : > { %2030 = vst.msk [vmem:[%s3440_s17 + $0x70] sm:$0xf] %vm2001_vm1, %v1997_v47  ;;  %v1969_v32 = vpack.c.bf16 %v1937_v53, %v1937_v53  ;;  %v1898_v13 = vmax.f32 %v1834_v50, %v1866_v33  ;;  %v1838_v49 = vmax.f32 %v1648_v54, %v3767_v1 }
 0x29e   : > { %2002 = vst.msk [vmem:[%s3440_s17] sm:$0xf] %vm2001_vm1, %v1969_v32  ;;  %v1934_v44 = vadd.f32 %v3425_v51, %v1898_v13  ;;  %v1870_v19 = vmax.f32 %v3770_v45, %v1838_v49 }
 0x29f   : > { %v1471_v36 = vpop.f32.mrf.mxu2 }
 0x2a0   : > { %v1966_v42 = vmax.f32 %v1934_v44, 0.0  ;;  %v1906_v55 = vadd.f32 %v3425_v51, %v1870_v19  ;;  %v1801_v62 = vadd.f32 %v1800_v25, %v1471_v36  ;;  %v1313_v16 = vpop.f32.mrf.mxu0 }
 0x2a1   : > { %v1643_v24 = vadd.f32 %v1642_v6, %v1313_v16 }
 0x2a2   : > { %v1998_v63 = vpack.c.bf16 %v1966_v42, %v1966_v42  ;;  %v1938_v17 = vmax.f32 %v1906_v55, 0.0  ;;  %v1867_v40 = vmax.f32 %v3772_v10, %v1801_v62 }
 0x2a3   : > { %v1836_v56 = vmax.f32 %v3773_v38, %v1643_v24 }
 0x2a4   : > { %2031 = vst.msk [vmem:[%s3440_s17 + $0x74] sm:$0xf] %vm2001_vm1, %v1998_v63  ;;  %v1970_v43 = vpack.c.bf16 %v1938_v17, %v1938_v17  ;;  %v1899_v4 = vmax.f32 %v1835_v26, %v1867_v40 }
 0x2a6   : > { %2003 = vst.msk [vmem:[%s3440_s17 + $0x4] sm:$0xf] %vm2001_vm1, %v1970_v43  ;;  %v1935_v31 = vadd.f32 %v3425_v51, %v1899_v4 }
 0x2a7   : > { %v1473_v21 = vpop.f32.mrf.mxu2 }
 0x2a8   : > { %v1967_v52 = vmax.f32 %v1935_v31, 0.0  ;;  %v1803_v39 = vadd.f32 %v1802_v28, %v1473_v21 }
 0x2aa   : > { %v1999_v46 = vpack.c.bf16 %v1967_v52, %v1967_v52  ;;  %v1868_v7 = vmax.f32 %v3774_v58, %v1803_v39 }
 0x2ac   : > { %2032 = vst.msk [vmem:[%s3440_s17 + $0x78] sm:$0xf] %vm2001_vm1, %v1999_v46  ;;  %v1900_v5 = vmax.f32 %v1836_v56, %v1868_v7 }
 0x2ae   : > { %v1936_v9 = vadd.f32 %v3425_v51, %v1900_v5 }
 0x2b0   : > { %v1968_v48 = vmax.f32 %v1936_v9, 0.0 }
 0x2b2   : > { %v2000_v14 = vpack.c.bf16 %v1968_v48, %v1968_v48 }
 0x2b4   : > { %2033 = vst.msk [vmem:[%s3440_s17 + $0x7c] sm:$0xf] %vm2001_vm1, %v2000_v14 }
 0x2b5 PF: > { %s13_s12 = sadd.s32 1, %s2876_s12  }
 0x2b6   : > { %p10_p5 = scmp.ge.s32.totalorder %s13_s12, 4  }
 0x2b8   :  { %12 = sbr.rel (!%p10_p5) target bundleno = 1 (0x1), region = 62 }

// kernel: verifier_cnn_forward.7
= control target key start
LH: loop header
LB: loop body
LE: loop exit
PB: predicated region body
PF: predicated region fallthrough
CT: control target
= control target key end

     0   :  { %10 = vsyncpa [#allocation3], 0  ;;  %s2169_s0 = inlined_call_operand.vmem [shape: bf16[512,288], index: 0, kind: input, shape index: {}]   ;;  %s2170_s1 = inlined_call_operand.vmem [shape: bf16[288,64], index: 1, kind: input, shape index: {}]   ;;  %s2171_s2 = inlined_call_operand.vmem [shape: f32[1,64], index: 2, kind: input, shape index: {}]   ;;  %s2172_s3 = inlined_call_operand.vmem [shape: f32[2,64,64], index: 3, kind: input, shape index: {}]   ;;  %s2173_s4 = inlined_call_operand.vmem [shape: f32[1,1,128], index: 4, kind: input, shape index: {}]   ;;  %s2174_s5 = inlined_call_operand.hbm [shape: f32[2,1,128], index: 5, kind: output, shape index: {}]  }
   0x1   :  { %12 = vsyncpa [#allocation3 + $0x1], 0  ;;  %s1717_s18 = smov 0   ;;  %s1719_s19 = smov 0  }
   0x2   :  { %s1721_s20 = smov 0   ;;  %s1723_s21 = smov 0  }
   0x3 LB: > { %s1738_s22 = sadd.s32 4294967295, %s1685_s21   ;;  %s1198_s23 = sadd.s32 4294967294, %s1685_s21   ;;  %s1685_s21 = sphi %s1723_s21, %s2184_s21   ;;  %s1681_s20 = sphi %s1721_s20, %s2183_s20   ;;  %s1677_s19 = sphi %s1719_s19, %s2182_s19   ;;  %s1673_s18 = sphi %s1717_s18, %s2181_s18  }
   0x4   : > { %s1742_s24 = sadd.s32 1, %s1685_s21   ;;  %s135_s25 = sadd.s32 1, %s1681_s20 }
   0x5   : > { %s132_s26 = ssub.s32 %s1685_s21, %s1742_s24  ;;  %p145_p0 = scmp.ne.s32.totalorder %s1681_s20, %s1677_s19 }
   0x6   : > { %p133_p1 = scmp.eq.s32.totalorder %s132_s26, 0  ;;  %p146_p2 = scmp.eq.s32.totalorder %s1738_s22, 1 }
   0x7   : > { %p151_p3 = scmp.ne.s32.totalorder %s1677_s19, %s1673_s18  ;;  %p152_p4 = scmp.eq.s32.totalorder %s1198_s23, 1 }
   0x8   : > { %s1753_s27 = scalar_select %p133_p1, %s1681_s20, %s135_s25  }
   0x9   : > { %p1755_p5 = por %p146_p2, %p145_p0  ;;  %p1759_p6 = por %p152_p4, %p151_p3 }
   0xa   : > { %p1201_p7 = scmp.ge.s32.totalorder %s1685_s21, 1  ;;  %p192_p8 = scmp.lt.s32.totalorder %s1685_s21, 3 }
   0xc   : > { %p193_p9 = pnand %p1201_p7, %p192_p8 }
   0xd   : > { %s1202_s11 = sshll.u32 (!%p193_p9), %s1738_s22, 5  ;;  %s218_s17 = sand.u32 (!%p193_p9), 1, %s1677_s19  }
   0xe   : > { %196 = sbr.rel (%p193_p9) target bundleno = 593 (0x251), region = 40  ;;  %p221_p10 = scmp.lt.s32.totalorder (!%p193_p9), %s1202_s11, 63 }
   0xf   : > { %s1139_s26 = scalar_lea.hbm (!%p193_p9), %s2174_s5, %s1738_s22  ;;  %s219_s7 = scalar_lea.vmem (!%p193_p9), [#allocation2], %s218_s17 }
  0x10   : > { %s1141_s8 = sshll.u32 (!%p193_p9), %s219_s7, 4  ;;  %s1131_s12 = scalar_lea.sflag (!%p193_p9), [#allocation3], %s218_s17  ;;  %s1142_s8 = int_to_ptr.vmem [resolvable:$true] %s1141_s8 }
  0x11   : > { %s1643_s15 = scalar_lea.hbm (!%p193_p9), %s2174_s5, 2 }
  0x13   : > { %v1549_v0 = vld [vmem:[%s2170_s1 + $0x38] sm:$0xff]  ;;  %v1776_v2 = vld [vmem:[%s2170_s1 + $0x88] sm:$0xff]  ;;  %v1548_v3 = vld [vmem:[%s2170_s1 + $0x30] sm:$0xff]  ;;  %s2186_s11 = smov (!%p221_p10, %s1202_s11), 63  ;;  %vm676_vm0 = vcmask 261120   ;;  %vm1055_vm1 = vcmask 523264  }
  0x14   : > { %v1771_v1 = vld [vmem:[%s2170_s1 + $0x78] sm:$0xff]  ;;  %725 = vmatpush.bf16.msra.mxu0 %v1549_v0  ;;  %1560 = vmatpush.bf16.msra.mxu3 %v1549_v0  ;;  %v1556_v4 = vld [vmem:[%s2170_s1 + $0x70] sm:$0xff]  ;;  %v1790_v5 = vld [vmem:[%s2170_s1 + $0x80] sm:$0xff]  ;;  %s1578_s23 = smul.u32 12, %s2186_s11  ;;  %s1143_s11 = sshll.u32 %s1139_s26, 4  ;;  %s1144_s11 = int_to_ptr.hbm [resolvable:$true] %s1143_s11 }
  0x15   : > { %814 = vmatpush.bf16.msra.mxu1 %v1771_v1  ;;  %909 = vmatpush.bf16.msra.mxu2 %v1776_v2  ;;  %v1547_v6 = vld [vmem:[%s2170_s1 + $0x28] sm:$0xff]  ;;  %v1546_v11 = vld [vmem:[%s2170_s1 + $0x20] sm:$0xff]  ;;  %v1545_v13 = vld [vmem:[%s2170_s1 + $0x18] sm:$0xff]  ;;  %s1637_s22 = sshra.s32 %s1144_s11, 4  ;;  %s1638_s22 = int_to_ptr.hbm [resolvable:$true] %s1637_s22 }
  0x16   : > { %v1555_v7 = vld [vmem:[%s2170_s1 + $0x68] sm:$0xff]  ;;  %s1802_s9 = scalar_lea.vmem %s2169_s0, %s1578_s23  ;;  %v1554_v12 = vld [vmem:[%s2170_s1 + $0x60] sm:$0xff]  ;;  %v1553_v14 = vld [vmem:[%s2170_s1 + $0x58] sm:$0xff]  ;;  %s1639_s13 = scalar_lea.hbm %s1638_s22, 1 }
  0x17   : > { %v1214_v8 = vld [vmem:[%s1802_s9 + $0x8] sm:$0xf]  ;;  %v1496_v9 = vld [vmem:[%s1802_s9 + $0x10] sm:$0xf0]  ;;  %v1226_v17 = vld [vmem:[%s1802_s9 + $0x20] sm:$0xf]  ;;  %p1640_p11 = scmp.ne.s32.totalorder %s1638_s22, %s1639_s13  ;;  %p1644_p0 = scmp.lt.s32.totalorder %s1638_s22, %s2174_s5 }
  0x18   : > { %726 = vmatpush.bf16.msra.mxu0 %v1548_v3  ;;  %1561 = vmatpush.bf16.msra.mxu3 %v1548_v3  ;;  %v1215_v10 = vor.u32 %v1496_v9, %v1214_v8  ;;  %v1544_v15 = vld [vmem:[%s2170_s1 + $0x10] sm:$0xff]  ;;  %v1499_v18 = vld [vmem:[%s1802_s9 + $0x28] sm:$0xf0]  ;;  %v1542_v22 = vld [vmem:[%s2170_s1] sm:$0xff]  ;;  %p1645_p1 = scmp.lt.s32.totalorder %s1643_s15, %s1639_s13 }
  0x19   : > { %815 = vmatpush.bf16.msra.mxu1 %v1556_v4  ;;  %910 = vmatpush.bf16.msra.mxu2 %v1790_v5  ;;  %v1552_v16 = vld [vmem:[%s2170_s1 + $0x50] sm:$0xff]  ;;  %v1543_v19 = vld [vmem:[%s2170_s1 + $0x8] sm:$0xff]  ;;  %v1227_v21 = vor.u32 %v1499_v18, %v1226_v17  ;;  %v1206_v23 = vld [vmem:[%s1802_s9] sm:$0xf]  ;;  %p1641_p12 = pnand %p1640_p11, %p1755_p5 }
  0x1a   : > { %v1551_v20 = vld [vmem:[%s2170_s1 + $0x48] sm:$0xff]  ;;  %v1350_v25 = vld [vmem:[%s1802_s9 + $0x120] sm:$0xf]  ;;  %v1494_v28 = vld [vmem:[%s1802_s9 + $0x4] sm:$0xf]  ;;  %p1646_p2 = por %p1645_p1, %p1644_p0 }
  0x1b   : > { %v1495_v24 = vld [vmem:[%s1802_s9 + $0x8] sm:$0xf0]  ;;  %v1550_v27 = vld [vmem:[%s2170_s1 + $0x40] sm:$0xff]  ;;  %v1208_v29 = vld [vmem:[%s1802_s9 + $0xc] sm:$0xf0]  ;;  %p1642_p13 = pneg %p1641_p12 }
  0x1c   : > { %727 = vmatpush.bf16.msra.mxu0 %v1547_v6  ;;  %1562 = vmatpush.bf16.msra.mxu3 %v1547_v6  ;;  %v1531_v26 = vld [vmem:[%s1802_s9 + $0x128] sm:$0xf0]  ;;  %v1207_v30 = vor.u32 %v1495_v24, %v1206_v23  ;;  %v1211_v32 = vor.u32 %v1494_v28, %v1208_v29  ;;  %v1238_v33 = vld [vmem:[%s1802_s9 + $0x38] sm:$0xf]  ;;  %v1502_v34 = vld [vmem:[%s1802_s9 + $0x40] sm:$0xf0] }
  0x1d   : > { %816 = vmatpush.bf16.msra.mxu1 %v1555_v7  ;;  %1468 = vmatmul.msk.bf16.vlgmr.msra.gmra.mxu2 %vm676_vm0, %v1215_v10  ;;  %v1351_v31 = vor.u32 %v1531_v26, %v1350_v25  ;;  %v1239_v35 = vor.u32 %v1502_v34, %v1238_v33  ;;  %v1218_v36 = vld [vmem:[%s1802_s9 + $0x18] sm:$0xf]  ;;  %v1498_v37 = vld [vmem:[%s1802_s9 + $0x20] sm:$0xf0]  ;;  %v1497_v40 = vld [vmem:[%s1802_s9 + $0x1c] sm:$0xf]  ;;  %p1647_p3 = pnand %p1646_p2, %p1642_p13 }
  0x1e   : > { %v1362_v38 = vld [vmem:[%s1802_s9 + $0x138] sm:$0xf]  ;;  %v1534_v39 = vld [vmem:[%s1802_s9 + $0x140] sm:$0xf0]  ;;  %v1220_v41 = vld [vmem:[%s1802_s9 + $0x24] sm:$0xf0]  ;;  %v1219_v42 = vor.u32 %v1498_v37, %v1218_v36 }
  0x1f   : > { %v1363_v43 = vor.u32 %v1534_v39, %v1362_v38  ;;  %v1223_v44 = vor.u32 %v1497_v40, %v1220_v41  ;;  %v1250_v45 = vld [vmem:[%s1802_s9 + $0x50] sm:$0xf]  ;;  %v1505_v46 = vld [vmem:[%s1802_s9 + $0x58] sm:$0xf0]  ;;  %v1500_v52 = vld [vmem:[%s1802_s9 + $0x34] sm:$0xf] }
  0x20   : > { %728 = vmatpush.bf16.msra.mxu0 %v1546_v11  ;;  %1563 = vmatpush.bf16.msra.mxu3 %v1546_v11  ;;  %v1251_v47 = vor.u32 %v1505_v46, %v1250_v45  ;;  %v1230_v48 = vld [vmem:[%s1802_s9 + $0x30] sm:$0xf]  ;;  %v1501_v49 = vld [vmem:[%s1802_s9 + $0x38] sm:$0xf0]  ;;  %v1232_v53 = vld [vmem:[%s1802_s9 + $0x3c] sm:$0xf0] }
  0x21   : > { %817 = vmatpush.bf16.msra.mxu1 %v1554_v12  ;;  %v1374_v50 = vld [vmem:[%s1802_s9 + $0x150] sm:$0xf]  ;;  %v1537_v51 = vld [vmem:[%s1802_s9 + $0x158] sm:$0xf0]  ;;  %v1231_v54 = vor.u32 %v1501_v49, %v1230_v48  ;;  %v1235_v56 = vor.u32 %v1500_v52, %v1232_v53  ;;  %v1262_v57 = vld [vmem:[%s1802_s9 + $0x68] sm:$0xf] }
  0x22   : > { %v1375_v55 = vor.u32 %v1537_v51, %v1374_v50  ;;  %v1508_v58 = vld [vmem:[%s1802_s9 + $0x70] sm:$0xf0]  ;;  %v1242_v60 = vld [vmem:[%s1802_s9 + $0x48] sm:$0xf]  ;;  %v1503_v0 = vld [vmem:[%s1802_s9 + $0x4c] sm:$0xf] }
  0x23   : > { %v1263_v59 = vor.u32 %v1508_v58, %v1262_v57  ;;  %v1504_v61 = vld [vmem:[%s1802_s9 + $0x50] sm:$0xf0]  ;;  %v1386_v62 = vld [vmem:[%s1802_s9 + $0x168] sm:$0xf]  ;;  %v1511_v6 = vld [vmem:[%s1802_s9 + $0x88] sm:$0xf0] }
  0x24   : > { %729 = vmatpush.bf16.msra.mxu0 %v1545_v13  ;;  %1564 = vmatpush.bf16.msra.mxu3 %v1545_v13  ;;  %v1540_v63 = vld [vmem:[%s1802_s9 + $0x170] sm:$0xf0]  ;;  %v1254_v8 = vld [vmem:[%s1802_s9 + $0x60] sm:$0xf]  ;;  %v1507_v9 = vld [vmem:[%s1802_s9 + $0x68] sm:$0xf0] }
  0x25   : > { %818 = vmatpush.bf16.msra.mxu1 %v1553_v14  ;;  %v1387_v3 = vor.u32 %v1540_v63, %v1386_v62  ;;  %v1530_v10 = vld [vmem:[%s1802_s9 + $0x124] sm:$0xf]  ;;  %v1352_v11 = vld [vmem:[%s1802_s9 + $0x12c] sm:$0xf0]  ;;  %v1286_v17 = vld [vmem:[%s1802_s9 + $0x98] sm:$0xf] }
  0x26   : > { %v1256_v13 = vld [vmem:[%s1802_s9 + $0x6c] sm:$0xf0]  ;;  %v1514_v18 = vld [vmem:[%s1802_s9 + $0xa0] sm:$0xf0]  ;;  %v1364_v23 = vld [vmem:[%s1802_s9 + $0x144] sm:$0xf0] }
  0x27   : > { %v1509_v24 = vld [vmem:[%s1802_s9 + $0x7c] sm:$0xf]  ;;  %v1268_v25 = vld [vmem:[%s1802_s9 + $0x84] sm:$0xf0]  ;;  %v1298_v29 = vld [vmem:[%s1802_s9 + $0xb0] sm:$0xf] }
  0x28   : > { %730 = vmatpush.bf16.msra.mxu0 %v1544_v15  ;;  %1565 = vmatpush.bf16.msra.mxu3 %v1544_v15  ;;  %v1355_v15 = vor.u32 %v1530_v10, %v1352_v11  ;;  %v1271_v28 = vor.u32 %v1509_v24, %v1268_v25  ;;  %v1513_v33 = vld [vmem:[%s1802_s9 + $0x98] sm:$0xf0]  ;;  %v1536_v34 = vld [vmem:[%s1802_s9 + $0x154] sm:$0xf]  ;;  %v1280_v37 = vld [vmem:[%s1802_s9 + $0x9c] sm:$0xf0] }
  0x29   : > { %819 = vmatpush.bf16.msra.mxu1 %v1552_v16  ;;  %v1512_v36 = vld [vmem:[%s1802_s9 + $0x94] sm:$0xf]  ;;  %v1310_v41 = vld [vmem:[%s1802_s9 + $0xc8] sm:$0xf]  ;;  %v1539_v46 = vld [vmem:[%s1802_s9 + $0x16c] sm:$0xf] }
  0x2a   : > { %v1283_v40 = vor.u32 %v1512_v36, %v1280_v37  ;;  %v1516_v45 = vld [vmem:[%s1802_s9 + $0xb0] sm:$0xf0]  ;;  %v1515_v48 = vld [vmem:[%s1802_s9 + $0xac] sm:$0xf]  ;;  %v1292_v49 = vld [vmem:[%s1802_s9 + $0xb4] sm:$0xf0] }
  0x2b   : > { %v1295_v53 = vor.u32 %v1515_v48, %v1292_v49  ;;  %v1302_v58 = vld [vmem:[%s1802_s9 + $0xc0] sm:$0xf]  ;;  %v1518_v62 = vld [vmem:[%s1802_s9 + $0xc4] sm:$0xf]  ;;  %v1304_v63 = vld [vmem:[%s1802_s9 + $0xcc] sm:$0xf0] }
  0x2c   : > { %731 = vmatpush.bf16.msra.mxu0 %v1543_v19  ;;  %1566 = vmatpush.bf16.msra.mxu3 %v1543_v19  ;;  %v1287_v19 = vor.u32 %v1514_v18, %v1286_v17  ;;  %v1526_v10 = vld [vmem:[%s1802_s9 + $0x100] sm:$0xf0] }
  0x2d   : > { %820 = vmatpush.bf16.msra.mxu1 %v1551_v20  ;;  %1469 = vmatmul.msk.bf16.gmra.mxu2 %vm676_vm0, %v1227_v21  ;;  %v1510_v21 = vld [vmem:[%s1802_s9 + $0x80] sm:$0xf0] }
  0x2e   : > { %v1522_v18 = vld [vmem:[%s1802_s9 + $0xe0] sm:$0xf0] }
  0x30   : > { %732 = vmatpush.bf16.msra.mxu0 %v1542_v22  ;;  %1567 = vmatpush.bf16.msra.mxu3 %v1542_v22  ;;  %v1533_v22 = vld [vmem:[%s1802_s9 + $0x13c] sm:$0xf] }
  0x31   : > { %821 = vmatpush.bf16.msra.mxu1 %v1550_v27 }
  0x33   : > { %733 = vmatmul.bf16.vlgmr.msra.gmra.mxu0 %v1207_v30  ;;  %793 = vmatmul.bf16.vlgmr.msra.gmra.mxu3 %v1351_v31  ;;  %v1517_v30 = vld [vmem:[%s1802_s9 + $0xb8] sm:$0xf0] }
  0x34   : > { %1568 = vmatpush.bf16.msrb.mxu3 %v1771_v1  ;;  %822 = vmatmul.bf16.vlgmr.msra.gmra.mxu1 %v1211_v32  ;;  %v1244_v1 = vld [vmem:[%s1802_s9 + $0x54] sm:$0xf0]  ;;  %v1299_v31 = vor.u32 %v1517_v30, %v1298_v29  ;;  %v1278_v32 = vld [vmem:[%s1802_s9 + $0x90] sm:$0xf] }
  0x35   : > { %v1279_v38 = vor.u32 %v1513_v33, %v1278_v32  ;;  %v1346_v33 = vld [vmem:[%s1802_s9 + $0x110] sm:$0xf] }
  0x38   : > { %1569 = vmatpush.bf16.msrb.mxu3 %v1556_v4  ;;  %v1247_v4 = vor.u32 %v1503_v0, %v1244_v1 }
  0x3c   : > { %1570 = vmatpush.bf16.msrb.mxu3 %v1555_v7 }
  0x3d   : > { %1470 = vmatmul.msk.bf16.gmra.mxu2 %vm676_vm0, %v1239_v35  ;;  %v1376_v35 = vld [vmem:[%s1802_s9 + $0x15c] sm:$0xf0] }
  0x3e   : > { %v1379_v39 = vor.u32 %v1536_v34, %v1376_v35  ;;  %v1529_v34 = vld [vmem:[%s1802_s9 + $0x118] sm:$0xf0] }
  0x40   : > { %1571 = vmatpush.bf16.msrb.mxu3 %v1554_v12  ;;  %v1506_v12 = vld [vmem:[%s1802_s9 + $0x64] sm:$0xf] }
  0x43   : > { %738 = vmatmul.bf16.gmra.mxu0 %v1219_v42  ;;  %798 = vmatmul.bf16.gmra.mxu3 %v1363_v43  ;;  %v1520_v42 = vld [vmem:[%s1802_s9 + $0xd0] sm:$0xf0] }
  0x44   : > { %1572 = vmatpush.bf16.msrb.mxu3 %v1553_v14  ;;  %827 = vmatmul.bf16.gmra.mxu1 %v1223_v44  ;;  %v1255_v14 = vor.u32 %v1507_v9, %v1254_v8  ;;  %v1311_v43 = vor.u32 %v1520_v42, %v1310_v41  ;;  %v1290_v44 = vld [vmem:[%s1802_s9 + $0xa8] sm:$0xf]  ;;  %v1334_v9 = vld [vmem:[%s1802_s9 + $0xf8] sm:$0xf]  ;;  %v1326_v41 = vld [vmem:[%s1802_s9 + $0xf0] sm:$0xf] }
  0x45   : > { %v1291_v50 = vor.u32 %v1516_v45, %v1290_v44  ;;  %v1525_v42 = vld [vmem:[%s1802_s9 + $0xf8] sm:$0xf0]  ;;  %v1328_v44 = vld [vmem:[%s1802_s9 + $0xfc] sm:$0xf0] }
  0x48   : > { %1573 = vmatpush.bf16.msrb.mxu3 %v1552_v16  ;;  %v1259_v16 = vor.u32 %v1506_v12, %v1256_v13 }
  0x4c   : > { %1574 = vmatpush.bf16.msrb.mxu3 %v1551_v20  ;;  %v1266_v20 = vld [vmem:[%s1802_s9 + $0x78] sm:$0xf] }
  0x4d   : > { %1471 = vmatmul.msk.bf16.gmra.mxu2 %vm676_vm0, %v1251_v47  ;;  %v1267_v26 = vor.u32 %v1510_v21, %v1266_v20  ;;  %v1388_v47 = vld [vmem:[%s1802_s9 + $0x174] sm:$0xf0]  ;;  %v1541_v20 = vld [vmem:[%s1802_s9 + $0x178] sm:$0xf0] }
  0x4e   : > { %v1391_v51 = vor.u32 %v1539_v46, %v1388_v47  ;;  %v1521_v21 = vld [vmem:[%s1802_s9 + $0xdc] sm:$0xf]  ;;  %v1327_v46 = vor.u32 %v1525_v42, %v1326_v41 }
  0x50   : > { %1575 = vmatpush.bf16.msrb.mxu3 %v1550_v27  ;;  %v1367_v27 = vor.u32 %v1533_v22, %v1364_v23  ;;  %v1316_v22 = vld [vmem:[%s1802_s9 + $0xe4] sm:$0xf0] }
  0x53   : > { %743 = vmatmul.bf16.gmra.mxu0 %v1231_v54  ;;  %803 = vmatmul.bf16.gmra.mxu3 %v1375_v55  ;;  %v1322_v54 = vld [vmem:[%s1802_s9 + $0xe0] sm:$0xf]  ;;  %v1523_v55 = vld [vmem:[%s1802_s9 + $0xe8] sm:$0xf0] }
  0x54   : > { %1576 = vmatpush.bf16.msra.mxu3 %v1776_v2  ;;  %832 = vmatmul.bf16.gmra.mxu1 %v1235_v56  ;;  %v1243_v2 = vor.u32 %v1504_v61, %v1242_v60  ;;  %v1323_v57 = vor.u32 %v1523_v55, %v1322_v54  ;;  %v1382_v60 = vld [vmem:[%s1802_s9 + $0x158] sm:$0xf]  ;;  %v1538_v61 = vld [vmem:[%s1802_s9 + $0x160] sm:$0xf0]  ;;  %v1358_v54 = vld [vmem:[%s1802_s9 + $0x128] sm:$0xf] }
  0x55   : > { %v1383_v1 = vor.u32 %v1538_v61, %v1382_v60  ;;  %v1532_v55 = vld [vmem:[%s1802_s9 + $0x130] sm:$0xf0] }
  0x58   : > { %1577 = vmatpush.bf16.msra.mxu3 %v1790_v5  ;;  %v1274_v5 = vld [vmem:[%s1802_s9 + $0x80] sm:$0xf] }
  0x59   : > { %v1275_v7 = vor.u32 %v1511_v6, %v1274_v5 }
  0x5d   : > { %1472 = vmatmul.msk.bf16.gmra.mxu2 %vm676_vm0, %v1263_v59  ;;  %v1519_v59 = vld [vmem:[%s1802_s9 + $0xc8] sm:$0xf0] }
  0x5e   : > { %v1303_v0 = vor.u32 %v1519_v59, %v1302_v58  ;;  %v1359_v59 = vor.u32 %v1532_v55, %v1358_v54 }
  0x63   : > { %748 = vmatmul.bf16.gmra.mxu0 %v1243_v2  ;;  %808 = vmatmul.bf16.gmra.mxu3 %v1387_v3 }
  0x64   : > { %837 = vmatmul.bf16.gmra.mxu1 %v1247_v4  ;;  %v1307_v4 = vor.u32 %v1518_v62, %v1304_v63  ;;  %v1338_v62 = vld [vmem:[%s1802_s9 + $0x108] sm:$0xf]  ;;  %v1528_v63 = vld [vmem:[%s1802_s9 + $0x110] sm:$0xf0] }
  0x6d   : > { %1473 = vmatmul.msk.bf16.gmra.mxu2 %vm676_vm0, %v1275_v7 }
  0x73   : > { %753 = vmatmul.bf16.gmra.mxu0 %v1255_v14  ;;  %882 = vmatmul.bf16.vlgmr.msrb.gmra.mxu3 %v1355_v15  ;;  %v1335_v14 = vor.u32 %v1526_v10, %v1334_v9 }
  0x74   : > { %842 = vmatmul.bf16.gmra.mxu1 %v1259_v16  ;;  %v1314_v16 = vld [vmem:[%s1802_s9 + $0xd8] sm:$0xf] }
  0x75   : > { %v1315_v24 = vor.u32 %v1522_v18, %v1314_v16 }
  0x7d   : > { %1474 = vmatmul.msk.bf16.gmra.mxu2 %vm676_vm0, %v1287_v19  ;;  %v1394_v19 = vld [vmem:[%s1802_s9 + $0x170] sm:$0xf] }
  0x7e   : > { %v1395_v25 = vor.u32 %v1541_v20, %v1394_v19 }
  0x83   : > { %758 = vmatmul.bf16.gmra.mxu0 %v1267_v26  ;;  %887 = vmatmul.bf16.gmra.mxu3 %v1367_v27 }
  0x84   : > { %847 = vmatmul.bf16.gmra.mxu1 %v1271_v28  ;;  %v1319_v28 = vor.u32 %v1521_v21, %v1316_v22 }
  0x8d   : > { %1475 = vmatmul.msk.bf16.gmra.mxu2 %vm676_vm0, %v1299_v31 }
  0x93   : > { %763 = vmatmul.bf16.gmra.mxu0 %v1279_v38  ;;  %892 = vmatmul.bf16.gmra.mxu3 %v1379_v39  ;;  %v1347_v38 = vor.u32 %v1529_v34, %v1346_v33 }
  0x94   : > { %852 = vmatmul.bf16.gmra.mxu1 %v1283_v40 }
  0x9d   : > { %1476 = vmatmul.msk.bf16.gmra.mxu2 %vm676_vm0, %v1311_v43  ;;  %v1524_v43 = vld [vmem:[%s1802_s9 + $0xf4] sm:$0xf] }
  0x9e   : > { %v1331_v49 = vor.u32 %v1524_v43, %v1328_v44 }
  0xa0   : > { %v912_v52 = vpop.f32.mrf.mxu2 }
  0xa3   : > { %768 = vmatmul.bf16.gmra.mxu0 %v1291_v50  ;;  %897 = vmatmul.bf16.gmra.mxu3 %v1391_v51 }
  0xa4   : > { %857 = vmatmul.bf16.gmra.mxu1 %v1295_v53 }
  0xa8   : > { %v914_v56 = vpop.f32.mrf.mxu2 }
  0xad   : > { %1477 = vmatmul.msk.bf16.gmra.mxu2 %vm676_vm0, %v1323_v57 }
  0xb0   : > { %v917_v2 = vpop.f32.mrf.mxu2  ;;  %v734_v3 = vpop.f32.mrf.mxu0 }
  0xb1   : > { %v823_v5 = vpop.f32.mrf.mxu1 }
  0xb2   : > { %v824_v6 = vadd.f32 %v823_v5, %v734_v3  ;;  %v1339_v3 = vor.u32 %v1528_v63, %v1338_v62 }
  0xb3   : > { %773 = vmatmul.bf16.gmra.mxu0 %v1303_v0  ;;  %1482 = vmatmul.msk.bf16.vlgmr.msra.gmra.mxu3 %vm676_vm0, %v1383_v1  ;;  %v1527_v0 = vld [vmem:[%s1802_s9 + $0x10c] sm:$0xf]  ;;  %v1340_v1 = vld [vmem:[%s1802_s9 + $0x114] sm:$0xf0] }
  0xb4   : > { %v1922_v7 = vadd.f32 %v912_v52, %v824_v6  ;;  %862 = vmatmul.bf16.gmra.mxu1 %v1307_v4  ;;  %v1343_v6 = vor.u32 %v1527_v0, %v1340_v1 }
  0xb6   : > { %v1924_v8 = vpop.f32.mrf.mxu3 }
  0xb8   : > { %v919_v11 = vpop.f32.mrf.mxu2  ;;  %v736_v12 = vpop.f32.mrf.mxu0 }
  0xb9   : > { %v825_v13 = vpop.f32.mrf.mxu1 }
  0xba   : > { %v826_v15 = vadd.f32 %v825_v13, %v736_v12  ;;  %v1370_v13 = vld [vmem:[%s1802_s9 + $0x140] sm:$0xf] }
  0xbc   : > { %v1929_v17 = vadd.f32 %v914_v56, %v826_v15 }
  0xbd   : > { %1478 = vmatmul.msk.bf16.gmra.mxu2 %vm676_vm0, %v1335_v14  ;;  %v1535_v14 = vld [vmem:[%s1802_s9 + $0x148] sm:$0xf0] }
  0xbe   : > { %v1937_v23 = vpop.f32.mrf.mxu3  ;;  %v1371_v19 = vor.u32 %v1535_v14, %v1370_v13 }
  0xc0   : > { %v922_v26 = vpop.f32.mrf.mxu2  ;;  %v739_v27 = vpop.f32.mrf.mxu0 }
  0xc1   : > { %v828_v29 = vpop.f32.mrf.mxu1 }
  0xc2   : > { %v829_v30 = vadd.f32 %v828_v29, %v739_v27 }
  0xc3   : > { %778 = vmatmul.bf16.gmra.mxu0 %v1315_v24  ;;  %1483 = vmatmul.msk.bf16.gmra.mxu3 %vm676_vm0, %v1395_v25 }
  0xc4   : > { %v1940_v31 = vadd.f32 %v917_v2, %v829_v30  ;;  %867 = vmatmul.bf16.gmra.mxu1 %v1319_v28 }
  0xc6   : > { %v1942_v32 = vpop.f32.mrf.mxu3 }
  0xc8   : > { %v924_v35 = vpop.f32.mrf.mxu2  ;;  %v741_v36 = vpop.f32.mrf.mxu0 }
  0xc9   : > { %v830_v37 = vpop.f32.mrf.mxu1 }
  0xca   : > { %v831_v39 = vadd.f32 %v830_v37, %v741_v36 }
  0xcc   : > { %v1946_v40 = vadd.f32 %v919_v11, %v831_v39 }
  0xcd   : > { %1479 = vmatmul.msk.bf16.gmra.mxu2 %vm676_vm0, %v1347_v38 }
  0xce   : > { %v1953_v45 = vpop.f32.mrf.mxu3 }
  0xd0   : > { %v927_v47 = vpop.f32.mrf.mxu2  ;;  %v744_v48 = vpop.f32.mrf.mxu0 }
  0xd1   : > { %v833_v50 = vpop.f32.mrf.mxu1 }
  0xd2   : > { %v834_v51 = vadd.f32 %v833_v50, %v744_v48 }
  0xd3   : > { %783 = vmatmul.bf16.gmra.mxu0 %v1327_v46 }
  0xd4   : > { %v1955_v52 = vadd.f32 %v922_v26, %v834_v51  ;;  %872 = vmatmul.bf16.gmra.mxu1 %v1331_v49 }
  0xd6   : > { %v1957_v53 = vpop.f32.mrf.mxu3 }
  0xd8   : > { %v929_v56 = vpop.f32.mrf.mxu2  ;;  %v746_v57 = vpop.f32.mrf.mxu0 }
  0xd9   : > { %v835_v58 = vpop.f32.mrf.mxu1 }
  0xda   : > { %v836_v60 = vadd.f32 %v835_v58, %v746_v57 }
  0xdc   : > { %v1961_v61 = vadd.f32 %v924_v35, %v836_v60 }
  0xdd   : > { %1480 = vmatmul.msk.bf16.gmra.mxu2 %vm676_vm0, %v1359_v59 }
  0xde   : > { %v1968_v2 = vpop.f32.mrf.mxu3 }
  0xe0   : > { %v932_v4 = vpop.f32.mrf.mxu2  ;;  %v749_v5 = vpop.f32.mrf.mxu0 }
  0xe1   : > { %v838_v9 = vpop.f32.mrf.mxu1 }
  0xe2   : > { %v839_v10 = vadd.f32 %v838_v9, %v749_v5 }
  0xe3   : > { %788 = vmatmul.bf16.gmra.mxu0 %v1339_v3 }
  0xe4   : > { %v1970_v11 = vadd.f32 %v927_v47, %v839_v10  ;;  %877 = vmatmul.bf16.gmra.mxu1 %v1343_v6 }
  0xe6   : > { %v1972_v12 = vpop.f32.mrf.mxu3 }
  0xe8   : > { %v934_v15 = vpop.f32.mrf.mxu2  ;;  %v751_v16 = vpop.f32.mrf.mxu0 }
  0xe9   : > { %v840_v18 = vpop.f32.mrf.mxu1 }
  0xea   : > { %v841_v20 = vadd.f32 %v840_v18, %v751_v16 }
  0xec   : > { %v1976_v21 = vadd.f32 %v929_v56, %v841_v20 }
  0xed   : > { %1481 = vmatmul.msk.bf16.gmra.mxu2 %vm676_vm0, %v1371_v19 }
  0xee   : > { %v1979_v22 = vpop.f32.mrf.mxu3 }
  0xf0   : > { %v937_v24 = vpop.f32.mrf.mxu2  ;;  %v754_v25 = vpop.f32.mrf.mxu0 }
  0xf1   : > { %v843_v26 = vpop.f32.mrf.mxu1 }
  0xf2   : > { %v844_v27 = vadd.f32 %v843_v26, %v754_v25 }
  0xf4   : > { %v1981_v28 = vadd.f32 %v932_v4, %v844_v27 }
  0xf6   : > { %v992_v29 = vmax.f32 %v1922_v7, %v1981_v28  ;;  %v883_v30 = vpop.f32.mrf.mxu3 }
  0xf7   : > { %v1986_v33 = vadd.f32 %v883_v30, %v1924_v8 }
  0xf8   : > { %v939_v34 = vpop.f32.mrf.mxu2  ;;  %v756_v35 = vpop.f32.mrf.mxu0 }
  0xf9   : > { %v845_v36 = vpop.f32.mrf.mxu1 }
  0xfa   : > { %v846_v37 = vadd.f32 %v845_v36, %v756_v35 }
  0xfc   : > { %v1988_v38 = vadd.f32 %v934_v15, %v846_v37 }
  0xfe   : > { %v885_v41 = vpop.f32.mrf.mxu3 }
  0xff   : > { %v1993_v42 = vadd.f32 %v885_v41, %v1937_v23 }
 0x100   : > { %v942_v43 = vpop.f32.mrf.mxu2  ;;  %v759_v44 = vpop.f32.mrf.mxu0 }
 0x101   : > { %v848_v46 = vpop.f32.mrf.mxu1 }
 0x102   : > { %v849_v47 = vadd.f32 %v848_v46, %v759_v44 }
 0x104   : > { %v1995_v48 = vadd.f32 %v937_v24, %v849_v47 }
 0x106   : > { %v2003_v23 = vpop.f32.mrf.mxu3 }
 0x108   : > { %v944_v49 = vpop.f32.mrf.mxu2  ;;  %v761_v50 = vpop.f32.mrf.mxu0 }
 0x109   : > { %v850_v51 = vpop.f32.mrf.mxu1 }
 0x10a   : > { %v851_v54 = vadd.f32 %v850_v51, %v761_v50 }
 0x10c   : > { %v1999_v55 = vadd.f32 %v939_v34, %v851_v54 }
 0x10e   : > { %v2006_v3 = vpop.f32.mrf.mxu3 }
 0x110   : > { %v947_v57 = vpop.f32.mrf.mxu2  ;;  %v764_v58 = vpop.f32.mrf.mxu0 }
 0x111   : > { %v853_v59 = vpop.f32.mrf.mxu1 }
 0x112   : > { %v854_v60 = vadd.f32 %v853_v59, %v764_v58 }
 0x114   : > { %v943_v62 = vadd.f32 %v942_v43, %v854_v60 }
 0x116   : > { %v996_v63 = vmax.f32 %v1955_v52, %v943_v62  ;;  %v893_v16 = vpop.f32.mrf.mxu3 }
 0x117   : > { %v894_v60 = vadd.f32 %v893_v16, %v1957_v53 }
 0x118   : > { %v949_v0 = vpop.f32.mrf.mxu2  ;;  %v766_v1 = vpop.f32.mrf.mxu0 }
 0x119   : > { %v855_v4 = vpop.f32.mrf.mxu1 }
 0x11a   : > { %v856_v5 = vadd.f32 %v855_v4, %v766_v1 }
 0x11c   : > { %v945_v6 = vadd.f32 %v944_v49, %v856_v5 }
 0x11e   : > { %v997_v9 = vmax.f32 %v1961_v61, %v945_v6  ;;  %v895_v27 = vpop.f32.mrf.mxu3 }
 0x120   : > { %v952_v10 = vpop.f32.mrf.mxu2  ;;  %v769_v13 = vpop.f32.mrf.mxu0 }
 0x121   : > { %v858_v14 = vpop.f32.mrf.mxu1 }
 0x122   : > { %v859_v15 = vadd.f32 %v858_v14, %v769_v13 }
 0x124   : > { %v948_v18 = vadd.f32 %v947_v57, %v859_v15 }
 0x126   : > { %v998_v19 = vmax.f32 %v1970_v11, %v948_v18  ;;  %v898_v36 = vpop.f32.mrf.mxu3  ;;  %v896_v18 = vadd.f32 %v895_v27, %v1968_v2 }
 0x128   : > { %v954_v20 = vpop.f32.mrf.mxu2  ;;  %v771_v24 = vpop.f32.mrf.mxu0 }
 0x129   : > { %v860_v52 = vpop.f32.mrf.mxu1 }
 0x12a   : > { %v861_v25 = vadd.f32 %v860_v52, %v771_v24 }
 0x12c   : > { %v2010_v26 = vadd.f32 %v949_v0, %v861_v25 }
 0x12e   : > { %v900_v46 = vpop.f32.mrf.mxu3 }
 0x130   : > { %v2014_v34 = vpop.f32.mrf.mxu2  ;;  %v774_v61 = vpop.f32.mrf.mxu0 }
 0x131   : > { %v863_v35 = vpop.f32.mrf.mxu1 }
 0x132   : > { %v864_v56 = vadd.f32 %v863_v35, %v774_v61 }
 0x136   : > { %v982_v54 = vpop.f32.mrf.mxu3 }
 0x137   : > { %v983_v0 = vadd.f32 %v982_v54, %v894_v60 }
 0x138   : > { %v2016_v37 = vpop.f32.mrf.mxu2  ;;  %v776_v41 = vpop.f32.mrf.mxu0 }
 0x139   : > { %v865_v43 = vpop.f32.mrf.mxu1 }
 0x13a   : > { %v866_v27 = vadd.f32 %v865_v43, %v776_v41  ;;  %v901_v43 = vadd.f32 %v900_v46, %v1979_v22  ;;  %v889_v22 = vadd.f32 %v2003_v23, %v1942_v32 }
 0x13c   : > { %v955_v35 = vadd.f32 %v954_v20, %v866_v27 }
 0x13e   : > { %v984_v4 = vpop.f32.mrf.mxu3 }
 0x13f   : > { %v985_v52 = vadd.f32 %v984_v4, %v896_v18 }
 0x140   : > { %v962_v11 = vpop.f32.mrf.mxu2  ;;  %v779_v44 = vpop.f32.mrf.mxu0 }
 0x141   : > { %v868_v47 = vpop.f32.mrf.mxu1 }
 0x146   : > { %v987_v30 = vpop.f32.mrf.mxu3 }
 0x148   : > { %v964_v49 = vpop.f32.mrf.mxu2  ;;  %v2018_v50 = vpop.f32.mrf.mxu0 }
 0x149   : > { %v2020_v51 = vpop.f32.mrf.mxu1 }
 0x150   : > { %v967_v57 = vpop.f32.mrf.mxu2  ;;  %v784_v58 = vpop.f32.mrf.mxu0 }
 0x151   : > { %v873_v59 = vpop.f32.mrf.mxu1 }
 0x152   : > { %v874_v62 = vadd.f32 %v873_v59, %v784_v58  ;;  %v899_v58 = vadd.f32 %v898_v36, %v1972_v12  ;;  %v989_v36 = vpop.f32.mrf.mxu3 }
 0x154   : > { %v963_v1 = vadd.f32 %v962_v11, %v874_v62  ;;  %v953_v11 = vadd.f32 %v952_v10, %v864_v56  ;;  %v988_v62 = vadd.f32 %v987_v30, %v899_v58  ;;  %v891_v58 = vadd.f32 %v2006_v3, %v1953_v45 }
 0x156   : > { %v1004_v5 = vmax.f32 %v963_v1, %v983_v0  ;;  %v869_v0 = vadd.f32 %v868_v47, %v779_v44  ;;  %v1039_v1 = vld [vmem:[%s2172_s3] sm:$0xff]  ;;  %v1040_v44 = vld [vmem:[%s2172_s3 + $0x8] sm:$0xff] }
 0x158   : > { %v2023_v6 = vmax.f32 %v996_v63, %v1004_v5  ;;  %v969_v13 = vpop.f32.mrf.mxu2  ;;  %v786_v14 = vpop.f32.mrf.mxu0 }
 0x159   : > { %v875_v15 = vpop.f32.mrf.mxu1 }
 0x15a   : > { %v876_v24 = vadd.f32 %v875_v15, %v786_v14  ;;  %v958_v14 = vadd.f32 %v2014_v34, %v869_v0  ;;  %v2179_v34 = vmax.f32 %v1940_v31, %v1995_v48 }
 0x15c   : > { %v965_v25 = vadd.f32 %v964_v49, %v876_v24 }
 0x15e   : > { %v1005_v8 = vmax.f32 %v965_v25, %v985_v52  ;;  %v871_v25 = vadd.f32 %v2020_v51, %v2018_v50  ;;  %v1041_v50 = vld [vmem:[%s2172_s3 + $0x10] sm:$0xff] }
 0x15f   : > { %v1486_v51 = vld [vmem:[%s2172_s3 + $0x50] sm:$0xff] }
 0x160   : > { %v2026_v39 = vmax.f32 %v997_v9, %v1005_v8  ;;  %v972_v53 = vpop.f32.mrf.mxu2  ;;  %v789_v16 = vpop.f32.mrf.mxu0  ;;  %v2036_v8 = vld [vmem:[%s2171_s2] ss:$0 sm:$0xff] }
 0x161   : > { %v973_v54 = vadd.f32 %v972_v53, %v1986_v33  ;;  %v878_v63 = vpop.f32.mrf.mxu1 }
 0x162   : > { %v879_v59 = vadd.f32 %v878_v63, %v789_v16 }
 0x163   : > { %v1000_v60 = vmax.f32 %v953_v11, %v973_v54 }
 0x164   : > { %v968_v2 = vadd.f32 %v967_v57, %v879_v59 }
 0x165   : > { %v1008_v61 = vmax.f32 %v992_v29, %v1000_v60  ;;  %v990_v29 = vadd.f32 %v989_v36, %v901_v43  ;;  %v1488_v43 = vld [vmem:[%s2172_s3 + $0x60] sm:$0xff] }
 0x166   : > { %v1006_v56 = vmax.f32 %v968_v2, %v988_v62  ;;  %v960_v62 = vadd.f32 %v2016_v37, %v871_v25  ;;  %v1024_v2 = vadd.f32 %v2036_v8, %v2023_v6 }
 0x167   : > { %v1020_v33 = vadd.f32 %v2036_v8, %v1008_v61  ;;  %v1025_v61 = vadd.f32 %v2036_v8, %v2026_v39  ;;  %v1042_v39 = vld [vmem:[%s2172_s3 + $0x18] sm:$0xff] }
 0x168   : > { %v1014_v9 = vmax.f32 %v998_v19, %v1006_v56  ;;  %v974_v10 = vpop.f32.mrf.mxu2  ;;  %v791_v12 = vpop.f32.mrf.mxu0  ;;  %v2177_v19 = vmax.f32 %v1929_v17, %v1988_v38  ;;  %v1485_v17 = vld [vmem:[%s2172_s3 + $0x48] sm:$0xff]  ;;  %v2178_v38 = vmax.f32 %v1976_v21, %v2010_v26  ;;  %v1032_v37 = vmax.f32 %v1024_v2, 0.0 }
 0x169   : > { %v975_v30 = vadd.f32 %v974_v10, %v1993_v42  ;;  %v880_v41 = vpop.f32.mrf.mxu1  ;;  %v1028_v49 = vmax.f32 %v1020_v33, 0.0  ;;  %v1484_v42 = vld [vmem:[%s2172_s3 + $0x40] sm:$0xff]  ;;  %v2180_v33 = vmax.f32 %v1946_v40, %v1999_v55  ;;  %v1487_v40 = vld [vmem:[%s2172_s3 + $0x58] sm:$0xff]  ;;  %v1033_v55 = vmax.f32 %v1025_v61, 0.0 }
 0x16a   : > { %v881_v7 = vadd.f32 %v880_v41, %v791_v12  ;;  %v1026_v6 = vadd.f32 %v2036_v8, %v1014_v9  ;;  %v1043_v41 = vld [vmem:[%s2172_s3 + $0x20] sm:$0xff] }
 0x16b   : > { %v1001_v28 = vmax.f32 %v955_v35, %v975_v30  ;;  %v1047_v5 = vmul.f32 %v1039_v1, %v1028_v49  ;;  %v1093_v15 = vmul.f32 %v1484_v42, %v1028_v49  ;;  %v1489_v49 = vld [vmem:[%s2172_s3 + $0x68] sm:$0xff] }
 0x16c   : > { %v970_v57 = vadd.f32 %v969_v13, %v881_v7  ;;  %v1034_v1 = vmax.f32 %v1026_v6, 0.0 }
 0x16d   : > { %v1009_v20 = vmax.f32 %v2177_v19, %v1001_v28  ;;  %v1056_v53 = vsel %vm1055_vm1, %v1047_v5, 0.0  ;;  %v1101_v16 = vsel %vm1055_vm1, %v1093_v15, 0.0  ;;  %v1044_v28 = vld [vmem:[%s2172_s3 + $0x28] sm:$0xff]  ;;  %v1097_v19 = vmul.f32 %v1488_v43, %v1032_v37 }
 0x16e   : > { %v1007_v4 = vmax.f32 %v970_v57, %v990_v29  ;;  %v1051_v29 = vmul.f32 %v1043_v41, %v1032_v37  ;;  %v1052_v42 = vmul.f32 %v1044_v28, %v1033_v55  ;;  %v1036_v37 = vlaneseq }
 0x16f   : > { %v1021_v46 = vadd.f32 %v2036_v8, %v1009_v20  ;;  %v1045_v20 = vld [vmem:[%s2172_s3 + $0x30] sm:$0xff] }
 0x170   : > { %v1015_v47 = vmax.f32 %v2178_v38, %v1007_v4  ;;  %v977_v13 = vpop.f32.mrf.mxu2  ;;  %v1491_v38 = vld [vmem:[%s2172_s3 + $0x78] sm:$0xff] }
 0x171   : > { %v1029_v32 = vmax.f32 %v1021_v46, 0.0  ;;  %v978_v23 = vadd.f32 %v977_v13, %v889_v22  ;;  %v1098_v46 = vmul.f32 %v1489_v49, %v1033_v55  ;;  %v1053_v13 = vmul.f32 %v1045_v20, %v1034_v1 }
 0x172   : > { %v1027_v9 = vadd.f32 %v2036_v8, %v1015_v47 }
 0x173   : > { %v1048_v18 = vmul.f32 %v1040_v44, %v1029_v32  ;;  %v1094_v24 = vmul.f32 %v1485_v17, %v1029_v32  ;;  %v1002_v52 = vmax.f32 %v958_v14, %v978_v23  ;;  %v1046_v44 = vld [vmem:[%s2172_s3 + $0x38] sm:$0xff]  ;;  %v1063_v14 = vsel %vm1055_vm1, %v1051_v29, 0.0 }
 0x174   : > { %v1035_v4 = vmax.f32 %v1027_v9, 0.0  ;;  %v1108_v32 = vsel %vm1055_vm1, %v1097_v19, 0.0 }
 0x175   : > { %v1057_v21 = vsel %vm1055_vm1, %v1048_v18, 0.0  ;;  %v1102_v26 = vsel %vm1055_vm1, %v1094_v24, 0.0  ;;  %v1010_v11 = vmax.f32 %v2179_v34, %v1002_v52  ;;  %v1065_v52 = vsel %vm1055_vm1, %v1052_v42, 0.0 }
 0x176   : > { %v1103_v54 = vadd.f32 %v1102_v26, %v1101_v16  ;;  %v1058_v63 = vadd.f32 %v1057_v21, %v1056_v53  ;;  %v1054_v24 = vmul.f32 %v1046_v44, %v1035_v4  ;;  %v1100_v25 = vmul.f32 %v1491_v38, %v1035_v4 }
 0x177   : > { %v1022_v59 = vadd.f32 %v2036_v8, %v1010_v11  ;;  %v1110_v53 = vsel %vm1055_vm1, %v1098_v46, 0.0  ;;  %v1067_v26 = vsel %vm1055_vm1, %v1053_v13, 0.0 }
 0x178   : > { %v979_v60 = vpop.f32.mrf.mxu2 }
 0x179   : > { %v1030_v31 = vmax.f32 %v1022_v59, 0.0  ;;  %v980_v48 = vadd.f32 %v979_v60, %v891_v58  ;;  %v1114_v58 = vsel %vm1055_vm1, %v1100_v25, 0.0 }
 0x17b   : > { %v1049_v27 = vmul.f32 %v1041_v50, %v1030_v31  ;;  %v1095_v45 = vmul.f32 %v1486_v51, %v1030_v31  ;;  %v1003_v3 = vmax.f32 %v960_v62, %v980_v48 }
 0x17d   : > { %v1104_v56 = vsel %vm1055_vm1, %v1095_v45, 0.0  ;;  %v1011_v10 = vmax.f32 %v2180_v33, %v1003_v3  ;;  %v1059_v12 = vsel %vm1055_vm1, %v1049_v27, 0.0 }
 0x17e   : > { %v1060_v35 = vadd.f32 %v1059_v12, %v1058_v63  ;;  %v1105_v36 = vadd.f32 %v1104_v56, %v1103_v54  ;;  %v1069_v63 = vsel %vm1055_vm1, %v1054_v24, 0.0 }
 0x17f   : > { %v1023_v30 = vadd.f32 %v2036_v8, %v1011_v10  ;;  %v1490_v8 = vld [vmem:[%s2172_s3 + $0x70] sm:$0xff] }
 0x180   : > { %v1099_v15 = vmul.f32 %v1490_v8, %v1034_v1 }
 0x181   : > { %v1031_v7 = vmax.f32 %v1023_v30, 0.0  ;;  %v1038_v30 = vld [vmem:[%s2173_s4] sm:$0x1] }
 0x182   : > { %v1112_v34 = vsel %vm1055_vm1, %v1099_v15, 0.0 }
 0x183   : > { %v1050_v57 = vmul.f32 %v1042_v39, %v1031_v7  ;;  %v1096_v0 = vmul.f32 %v1487_v40, %v1031_v7 }
 0x185   : > { %v1061_v22 = vsel %vm1055_vm1, %v1050_v57, 0.0  ;;  %v1106_v5 = vsel %vm1055_vm1, %v1096_v0, 0.0 }
 0x186   : > { %v1062_v17 = vadd.f32 %v1061_v22, %v1060_v35  ;;  %v1107_v47 = vadd.f32 %v1106_v5, %v1105_v36  ;;  %v1037_v35 = vand.u32 127, %v1036_v37 }
 0x188   : > { %v1064_v23 = vadd.f32 %v1063_v14, %v1062_v17  ;;  %v1109_v18 = vadd.f32 %v1108_v32, %v1107_v47  ;;  %vm1080_vm2 = vcmp.eq.s32.totalorder %v1037_v35, 0  ;;  %vm1125_vm3 = vcmp.eq.s32.totalorder %v1037_v35, 1 }
 0x18a   : > { %v1066_v16 = vadd.f32 %v1065_v52, %v1064_v23  ;;  %v1111_v21 = vadd.f32 %v1110_v53, %v1109_v18 }
 0x18c   : > { %v1068_v11 = vadd.f32 %v1067_v26, %v1066_v16  ;;  %v1113_v54 = vadd.f32 %v1112_v34, %v1111_v21 }
 0x18e   : > { %v1070_v59 = vadd.f32 %v1069_v63, %v1068_v11  ;;  %v1115_v50 = vadd.f32 %v1114_v58, %v1113_v54 }
 0x190   : > { %1071 = vadd.xlane.f32.xlu0 %v1070_v59 }
 0x198   : > { %1116 = vadd.xlane.f32.xlu0 %v1115_v50 }
 0x203   : > { %v1072_v51 = vpop.xlane.xlu0 %1071 }
 0x204   : > { %v1073_v60 = vrot.slane %v1072_v51, 4 }
 0x206   : > { %v1074_v62 = vadd.f32 %v1073_v60, %v1072_v51 }
 0x208   : > { %v1075_v31 = vrot.slane %v1074_v62, 2 }
 0x20a   : > { %v1076_v48 = vadd.f32 %v1075_v31, %v1074_v62 }
 0x20b   : > { %v1117_v2 = vpop.xlane.xlu0 %1116 }
 0x20c   : > { %v1118_v27 = vrot.slane %v1117_v2, 4  ;;  %v1077_v45 = vrot.slane %v1076_v48, 1 }
 0x20e   : > { %v1119_v3 = vadd.f32 %v1118_v27, %v1117_v2  ;;  %v1078_v61 = vadd.f32 %v1077_v45, %v1076_v48 }
 0x210   : > { %v1120_v56 = vrot.slane %v1119_v3, 2  ;;  %1579 = vpush %v1078_v61 }
 0x212   : > { %v1121_v33 = vadd.f32 %v1120_v56, %v1119_v3 }
 0x214   : > { %v1122_v10 = vrot.slane %v1121_v33, 1 }
 0x216   : > { %v1123_v12 = vadd.f32 %v1122_v10, %v1121_v33 }
 0x218   : > { %1581 = vpush %v1123_v12 }
 0x241   : > { %s1580_s16 = spop %1579 }
 0x242   : > { %v1081_v36 = vstv %s1580_s16 }
 0x243   : > { %v1082_v6 = vsel %vm1080_vm2, %v1081_v36, 0.0 }
 0x244   : > { %v1083_v41 = vadd.f32 %v1082_v6, %v1038_v30 }
 0x249   : > { %s1582_s10 = spop %1581 }
 0x24a   : > { %v1126_v39 = vstv %s1582_s10 }
 0x24b   : > { %v1127_v40 = vsel %vm1125_vm3, %v1126_v39, 0.0 }
 0x24c   : > { %v1128_v55 = vadd.f32 %v1127_v40, %v1083_v41 }
 0x24e   : > { %1129 = vst [vmem:[%s219_s7] sm:$0x1] %v1128_v55 }
 0x24f   : > { %1650 = shalt.err (!%p1647_p3)
}
 0x250   : > { %1583 = dma.vmem_to_hbm [thread:$0]  (%p1755_p5), %s1142_s8, 16, %s1144_s11, %s1131_s12  }
 0x251 PF: > { %p1589_p4 = scmp.ge.s32.totalorder %s1685_s21, 2  ;;  %s1155_s17 = sand.u32 1, %s1673_s18  }
 0x252   : > { %s1156_s25 = scalar_lea.sflag [#allocation3], %s1155_s17 }
 0x253   : > { %p1586_p7 = pnand %p1589_p4, %p1759_p6 }
 0x255   : > { %p1587_p8 = pneg %p1586_p7 }
 0x257   : > { %1668 = dma.done.wait (%p1587_p8), %s1156_s25, 16  }
 0x258   : > { %1670 = vsyncadd (%p1587_p8), %s1156_s25, 4294967280  ;;  %p15_p9 = scmp.ge.s32.totalorder %s1742_s24, 4   ;;  %s2181_s18 = smov %s1677_s19 }
 0x259   : > { %s2182_s19 = smov %s1681_s20  ;;  %s2183_s20 = smov %s1753_s27 }
 0x25a   : > { %s2184_s21 = smov %s1742_s24  ;;  %17 = sbr.rel (!%p15_p9) target bundleno = 3 (0x3), region = 76 }
 0x25f   :  { %1161 = vsyncpa [#allocation3], 1 }
 0x260   :  { %1163 = vsyncpa [#allocation3 + $0x1], 1 }

</bundles_post_ra>
